<compile_context>
chip_gen: v6e
topology: v6e:2x2x1
jax: 0.10.0
libtpu: 0.0.40
codegen_flags: <defaults>
</compile_context>

<pallas_src>
from functools import partial

import numpy as np
import jax
import jax.numpy as jnp
from jax.experimental import pallas as pl
from jax.experimental.pallas import tpu as pltpu

# ----- hyperparameters (from the PyTorch script) -----------------------------
N_EMBD = 16
N_HEAD = 4
N_LAYER = 2
BLOCK_SIZE = 7
VOCAB_SIZE = 11          # synthetic small vocab (the original derives it from a dataset)
HEAD_SIZE = N_EMBD // N_HEAD
LN_EPS = 1e-5
V_PAD = 128              # lm_head output padded to a full lane tile
MASK_NEG = -1e30         # additive mask value (exp underflows to exactly 0, no NaN/Inf)
# dropout = 0.2 in training; forward here is eval -> dropout == identity.


# ----- in-kernel helpers ------------------------------------------------------
def _layernorm(z, g, b):
    mu = jnp.mean(z, axis=-1, keepdims=True)
    var = jnp.mean((z - mu) ** 2, axis=-1, keepdims=True)
    return (z - mu) * jax.lax.rsqrt(var + LN_EPS) * g + b


# ----- kernel -----------------------------------------------------------------
def _make_kernel(b_tile, t_pad, store_attn):
    """Builds the transformer-forward kernel for one tile of b_tile sequences."""
    rows = b_tile * t_pad

    def kernel(idx_ref, tok_emb_ref, pos_ref,
               ln1_g_ref, ln1_b_ref, wqkv_ref, wproj_ref, bproj_ref,
               ln2_g_ref, ln2_b_ref, w1_ref, b1_ref, w2_ref, b2_ref,
               lnf_g_ref, lnf_b_ref, wlm_ref, blm_ref,
               logits_ref, *attn_refs):
        attn_ref = attn_refs[0] if store_attn else None
        vocab, n_embd = tok_emb_ref.shape
        n_layer = wqkv_ref.shape[0]
        hs = n_embd // N_HEAD
        scale = jnp.float32(hs ** -0.5)

        # ---- fused token + position embedding (gather as a one-hot matmul) ----
        ids = idx_ref[...]                                                  # (rows, 1)
        one_hot = (ids == jax.lax.broadcasted_iota(jnp.int32, (rows, vocab), 1)
                   ).astype(jnp.float32)                                    # (rows, V)
        x = jnp.dot(one_hot, tok_emb_ref[...],
                    preferred_element_type=jnp.float32) + pos_ref[...]      # (rows, C)

        # ---- causal additive bias over one padded sequence block, built in-kernel
        # (no (rows, rows) HBM mask stream).  Padded row i=T_pad-1 just attends
        # causally to garbage and is sliced away in the wrapper; real rows never
        # attend to it, so it cannot leak into real outputs.
        i_idx = jax.lax.broadcasted_iota(jnp.int32, (t_pad, t_pad), 0)
        j_idx = jax.lax.broadcasted_iota(jnp.int32, (t_pad, t_pad), 1)
        bias = jnp.where(j_idx <= i_idx, 0.0, MASK_NEG).astype(jnp.float32)[None, :, :]

        for l in range(n_layer):
            # ---- multi-head causal self-attention (pre-LN); dropout = identity ----
            h = _layernorm(x, ln1_g_ref[l:l + 1], ln1_b_ref[l:l + 1])
            qkv = jnp.dot(h, wqkv_ref[l],
                          preferred_element_type=jnp.float32)               # (rows, 3C)
            wproj_l = wproj_ref[l]                                          # (C, C)

            sa = None
            for hd in range(N_HEAD):
                lo = hd * hs
                qh = qkv[:, lo:lo + hs].reshape(b_tile, t_pad, hs)
                kh = qkv[:, n_embd + lo:n_embd + lo + hs].reshape(b_tile, t_pad, hs)
                vh = qkv[:, 2 * n_embd + lo:2 * n_embd + lo + hs].reshape(b_tile, t_pad, hs)

                # per-sequence batched scores: no cross-sequence waste.
                s = jnp.einsum('bid,bjd->bij', qh, kh,
                               preferred_element_type=jnp.float32)          # (b_tile, T_pad, T_pad)
                s = s * scale + bias
                p = jnp.exp(s - jnp.max(s, axis=-1, keepdims=True))
                p = p / jnp.sum(p, axis=-1, keepdims=True)   # exact norm: maps are a module output
                if store_attn:
                    attn_ref[0, l * N_HEAD + hd] = p         # small block-diagonal store only

                ho = jnp.einsum('bij,bjd->bid', p, vh,
                                preferred_element_type=jnp.float32)         # (b_tile, T_pad, hs)
                # accumulate directly into the output projection (no lane concat)
                contrib = jnp.dot(ho.reshape(rows, hs), wproj_l[lo:lo + hs, :],
                                  preferred_element_type=jnp.float32)
                sa = contrib if sa is None else sa + contrib

            x = x + sa + bproj_ref[l:l + 1]

            # ---- feed-forward (Linear -> ReLU -> Linear); dropout = identity ----
            h2 = _layernorm(x, ln2_g_ref[l:l + 1], ln2_b_ref[l:l + 1])
            ff = jnp.dot(h2, w1_ref[l],
                         preferred_element_type=jnp.float32) + b1_ref[l:l + 1]
            ff = jnp.maximum(ff, 0.0)
            ff = jnp.dot(ff, w2_ref[l],
                         preferred_element_type=jnp.float32) + b2_ref[l:l + 1]
            x = x + ff

        # ---- final LayerNorm + lm_head (lane-dense (rows, 128) store) ----
        xf = _layernorm(x, lnf_g_ref[...], lnf_b_ref[...])
        logits_ref[...] = jnp.dot(xf, wlm_ref[...],
                                  preferred_element_type=jnp.float32) + blm_ref[...]

    return kernel


# ----- parameter initialization (deterministic, matches _init_weights) -------
def init_params(key):
    keys = iter(jax.random.split(key, 32))
    nrm = lambda shape: 0.02 * jax.random.normal(next(keys), shape, jnp.float32)
    C, L, V, H4 = N_EMBD, N_LAYER, VOCAB_SIZE, 4 * N_EMBD
    p = {
        'tok_emb': nrm((V, C)),
        'pos_emb': nrm((BLOCK_SIZE, C)),
        'ln1_g': jnp.ones((L, C), jnp.float32), 'ln1_b': jnp.zeros((L, C), jnp.float32),
        'wq': nrm((L, C, C)), 'wk': nrm((L, C, C)), 'wv': nrm((L, C, C)),
        'wproj': nrm((L, C, C)), 'bproj': jnp.zeros((L, C), jnp.float32),
        'ln2_g': jnp.ones((L, C), jnp.float32), 'ln2_b': jnp.zeros((L, C), jnp.float32),
        'w1': nrm((L, C, H4)), 'b1': jnp.zeros((L, H4), jnp.float32),
        'w2': nrm((L, H4, C)), 'b2': jnp.zeros((L, C), jnp.float32),
        'lnf_g': jnp.ones((1, C), jnp.float32), 'lnf_b': jnp.zeros((1, C), jnp.float32),
        'wlm': nrm((C, VOCAB_SIZE)), 'blm': jnp.zeros((1, VOCAB_SIZE), jnp.float32),
    }
    return p


# ----- wrapper ----------------------------------------------------------------
def gpt_forward(idx, params, b_tile=None, return_attn=True):
    """Returns (logits, loss=None, attentions) like GPTLanguageModel.forward.

    `return_attn=False` skips the attention-map output entirely (fast path).
    """
    B, _ = idx.shape
    if b_tile is None:
        # T_pad = 8 -> b_tile = 16 gives rows = 128 (exact (8,128) tiles for the
        # lane-dense logits store).  Without attention maps and with larger
        # batches, 32 (rows = 256) fills the 2x256 MXU of v6e/v7x better.
        b_tile = 16 if (return_attn or B <= 16) else 32
    return _gpt_forward_jit(idx, params, b_tile=int(b_tile),
                            return_attn=bool(return_attn))


@partial(jax.jit, static_argnames=("b_tile", "return_attn"))
def _gpt_forward_jit(idx, params, *, b_tile, return_attn):
    B, T = idx.shape
    t_pad = -(-T // 8) * 8                 # pad each sequence to a full sublane (7 -> 8)
    n_tiles = -(-B // b_tile)
    b_pad = n_tiles * b_tile
    rows = b_tile * t_pad

    # ---- one-time XLA glue (idx/pos layout, weight fusion / padding) ----
    idx_p = jnp.zeros((b_pad, t_pad), jnp.int32).at[:B, :T].set(idx.astype(jnp.int32))
    idx_col = idx_p.reshape(b_pad * t_pad, 1)            # rows on the sublane axis

    pos_block = jnp.zeros((t_pad, N_EMBD), jnp.float32).at[:T].set(params['pos_emb'][:T])
    pos_tiled = jnp.tile(pos_block, (b_tile, 1))         # (rows, C)

    wqkv = jnp.concatenate([params['wq'], params['wk'], params['wv']], axis=-1)  # (L,C,3C)
    wlm_pad = jnp.zeros((N_EMBD, V_PAD), jnp.float32).at[:, :VOCAB_SIZE].set(params['wlm'])
    blm_pad = jnp.zeros((1, V_PAD), jnp.float32).at[:, :VOCAB_SIZE].set(params['blm'])

    weights = [params['ln1_g'], params['ln1_b'], wqkv, params['wproj'], params['bproj'],
               params['ln2_g'], params['ln2_b'], params['w1'], params['b1'],
               params['w2'], params['b2'], params['lnf_g'], params['lnf_b'],
               wlm_pad, blm_pad]

    def full_spec(a):
        return pl.BlockSpec(a.shape, lambda b, _nd=a.ndim: (0,) * _nd)

    in_specs = ([pl.BlockSpec((rows, 1), lambda b: (b, 0)),
                 full_spec(params['tok_emb']), full_spec(pos_tiled)] +
                [full_spec(w) for w in weights])

    logits_sds = jax.ShapeDtypeStruct((b_pad * t_pad, V_PAD), jnp.float32)
    logits_spec = pl.BlockSpec((rows, V_PAD), lambda b: (b, 0))

    if return_attn:
        attn_sds = jax.ShapeDtypeStruct(
            (n_tiles, N_LAYER * N_HEAD, b_tile, t_pad, t_pad), jnp.float32)
        attn_spec = pl.BlockSpec((1, N_LAYER * N_HEAD, b_tile, t_pad, t_pad),
                                 lambda b: (b, 0, 0, 0, 0))
        out_shape = (logits_sds, attn_sds)
        out_specs = (logits_spec, attn_spec)
    else:
        out_shape = logits_sds
        out_specs = logits_spec

    result = pl.pallas_call(
        _make_kernel(b_tile, t_pad, return_attn),
        grid=(n_tiles,),
        in_specs=in_specs,
        out_specs=out_specs,
        out_shape=out_shape,
        compiler_params=pltpu.CompilerParams(
            dimension_semantics=("parallel",)),   # batch tiles are independent (v7x: 2 TCs)
    )(idx_col, params['tok_emb'], pos_tiled, *weights)

    if return_attn:
        logits_flat, attn_full = result
    else:
        logits_flat, attn_full = result, None

    logits = logits_flat.reshape(b_pad, t_pad, V_PAD)[:B, :T, :VOCAB_SIZE]

    attentions = None
    if return_attn:
        a = attn_full.reshape(n_tiles, N_LAYER, N_HEAD, b_tile, t_pad, t_pad)
        a = jnp.moveaxis(a, 3, 1)                              # (nt, b_tile, L, H, Tp, Tp)
        a = a.reshape(b_pad, N_LAYER, N_HEAD, t_pad, t_pad)[:B, :, :, :T, :T]
        attentions = [a[:, l] for l in range(N_LAYER)]         # list of (B, H, T, T)

    # TODO(synk): targets / cross-entropy loss path not implemented (targets=None).
    return logits, None, attentions


# ----- pure-JAX reference (for a correctness check) ---------------------------
def _ref_forward(idx, p):
    B, T = idx.shape
    x = p['tok_emb'][idx] + p['pos_emb'][:T][None]
    attentions = []
    causal = np.tril(np.ones((T, T), bool))
    for l in range(N_LAYER):
        h = _layernorm(x, p['ln1_g'][l], p['ln1_b'][l])
        q, k, v = h @ p['wq'][l], h @ p['wk'][l], h @ p['wv'][l]
        outs, atts = [], []
        for hd in range(N_HEAD):
            sl = slice(hd * HEAD_SIZE, (hd + 1) * HEAD_SIZE)
            wei = (q[:, :, sl] @ jnp.swapaxes(k[:, :, sl], -1, -2)) * HEAD_SIZE ** -0.5
            wei = jnp.where(causal, wei, -jnp.inf)
            wei = jax.nn.softmax(wei, axis=-1)
            atts.append(wei)
            outs.append(wei @ v[:, :, sl])
        sa = jnp.concatenate(outs, -1) @ p['wproj'][l] + p['bproj'][l]
        x = x + sa
        h2 = _layernorm(x, p['ln2_g'][l], p['ln2_b'][l])
        x = x + jnp.maximum(h2 @ p['w1'][l] + p['b1'][l], 0.0) @ p['w2'][l] + p['b2'][l]
        attentions.append(jnp.stack(atts, 1))
    xf = _layernorm(x, p['lnf_g'][0], p['lnf_b'][0])
    return xf @ p['wlm'] + p['blm'][0], attentions


# ----- main --------------------------------------------------------------------
if __name__ == "__main__":
    key = jax.random.PRNGKey(0)
    pkey, ikey = jax.random.split(key)
    params = init_params(pkey)

    B, T = 2, BLOCK_SIZE
    idx = jax.random.randint(ikey, (B, T), 0, VOCAB_SIZE, dtype=jnp.int32)

    # full forward (with attention maps, like the PyTorch module)
    logits, loss, attentions = gpt_forward(idx, params)
    logits = jax.block_until_ready(logits)
    attentions = [jax.block_until_ready(a) for a in attentions]

    # logits-only fast path (attention-map output disabled)
    logits_na, _, attn_na = gpt_forward(idx, params, return_attn=False)
    logits_na = jax.block_until_ready(logits_na)

    # sanity-check against a pure-JAX reference
    ref_logits, ref_attns = _ref_forward(idx, params)
    np.testing.assert_allclose(np.asarray(logits), np.asarray(ref_logits),
                               rtol=2e-3, atol=1e-4)
    np.testing.assert_allclose(np.asarray(logits_na), np.asarray(ref_logits),
                               rtol=2e-3, atol=1e-4)
    for a, ra in zip(attentions, ref_attns):
        np.testing.assert_allclose(np.asarray(a), np.asarray(ra),
                                   rtol=2e-3, atol=1e-4)

    assert logits.shape == (B, T, VOCAB_SIZE)
    assert all(a.shape == (B, N_HEAD, T, T) for a in attentions)
    assert loss is None            # targets=None path, same as the PyTorch module
    assert attn_na is None

    print("KERNEL_OK")
</pallas_src>

<mosaic_0001>
module attributes {stable_mosaic.version = 11 : i64} {
  func.func @kernel(%arg0: i32, %arg1: memref<128x1xi32, #tpu.memory_space<vmem>>, %arg2: memref<11x16xf32, #tpu.memory_space<vmem>>, %arg3: memref<128x16xf32, #tpu.memory_space<vmem>>, %arg4: memref<2x16xf32, #tpu.memory_space<vmem>>, %arg5: memref<2x16xf32, #tpu.memory_space<vmem>>, %arg6: memref<2x16x48xf32, #tpu.memory_space<vmem>>, %arg7: memref<2x16x16xf32, #tpu.memory_space<vmem>>, %arg8: memref<2x16xf32, #tpu.memory_space<vmem>>, %arg9: memref<2x16xf32, #tpu.memory_space<vmem>>, %arg10: memref<2x16xf32, #tpu.memory_space<vmem>>, %arg11: memref<2x16x64xf32, #tpu.memory_space<vmem>>, %arg12: memref<2x64xf32, #tpu.memory_space<vmem>>, %arg13: memref<2x64x16xf32, #tpu.memory_space<vmem>>, %arg14: memref<2x16xf32, #tpu.memory_space<vmem>>, %arg15: memref<1x16xf32, #tpu.memory_space<vmem>>, %arg16: memref<1x16xf32, #tpu.memory_space<vmem>>, %arg17: memref<16x128xf32, #tpu.memory_space<vmem>>, %arg18: memref<1x128xf32, #tpu.memory_space<vmem>>, %arg19: memref<128x128xf32, #tpu.memory_space<vmem>>, %arg20: memref<1x8x16x8x8xf32, #tpu.memory_space<vmem>>) attributes {dimension_semantics = [#tpu.dimension_semantics<parallel>], iteration_bounds = array<i64: 1>, scalar_prefetch = 0 : i64, scratch_operands = 0 : i64, tpu.core_type = #tpu.core_type<tc>, window_params = [{transform_indices = @transform_0, window_bounds = array<i64: 128, 1>}, {pipeline_mode = #tpu.pipeline_mode<synchronous>, transform_indices = @transform_1, window_bounds = array<i64: 11, 16>}, {pipeline_mode = #tpu.pipeline_mode<synchronous>, transform_indices = @transform_2, window_bounds = array<i64: 128, 16>}, {pipeline_mode = #tpu.pipeline_mode<synchronous>, transform_indices = @transform_3, window_bounds = array<i64: 2, 16>}, {pipeline_mode = #tpu.pipeline_mode<synchronous>, transform_indices = @transform_4, window_bounds = array<i64: 2, 16>}, {pipeline_mode = #tpu.pipeline_mode<synchronous>, transform_indices = @transform_5, window_bounds = array<i64: 2, 16, 48>}, {pipeline_mode = #tpu.pipeline_mode<synchronous>, transform_indices = @transform_6, window_bounds = array<i64: 2, 16, 16>}, {pipeline_mode = #tpu.pipeline_mode<synchronous>, transform_indices = @transform_7, window_bounds = array<i64: 2, 16>}, {pipeline_mode = #tpu.pipeline_mode<synchronous>, transform_indices = @transform_8, window_bounds = array<i64: 2, 16>}, {pipeline_mode = #tpu.pipeline_mode<synchronous>, transform_indices = @transform_9, window_bounds = array<i64: 2, 16>}, {pipeline_mode = #tpu.pipeline_mode<synchronous>, transform_indices = @transform_10, window_bounds = array<i64: 2, 16, 64>}, {pipeline_mode = #tpu.pipeline_mode<synchronous>, transform_indices = @transform_11, window_bounds = array<i64: 2, 64>}, {pipeline_mode = #tpu.pipeline_mode<synchronous>, transform_indices = @transform_12, window_bounds = array<i64: 2, 64, 16>}, {pipeline_mode = #tpu.pipeline_mode<synchronous>, transform_indices = @transform_13, window_bounds = array<i64: 2, 16>}, {pipeline_mode = #tpu.pipeline_mode<synchronous>, transform_indices = @transform_14, window_bounds = array<i64: 1, 16>}, {pipeline_mode = #tpu.pipeline_mode<synchronous>, transform_indices = @transform_15, window_bounds = array<i64: 1, 16>}, {pipeline_mode = #tpu.pipeline_mode<synchronous>, transform_indices = @transform_16, window_bounds = array<i64: 16, 128>}, {pipeline_mode = #tpu.pipeline_mode<synchronous>, transform_indices = @transform_17, window_bounds = array<i64: 1, 128>}, {transform_indices = @transform_18, window_bounds = array<i64: 128, 128>}, {transform_indices = @transform_19, window_bounds = array<i64: 1, 8, 16, 8, 8>}]} {
    %c0 = arith.constant 0 : index
    %c0_0 = arith.constant 0 : index
    %0 = vector.load %arg1[%c0, %c0_0] : memref<128x1xi32, #tpu.memory_space<vmem>>, vector<128x1xi32>
    %1 = tpu.iota {dimensions = array<i32: 1>} : vector<128x11xi32>
    %2 = vector.broadcast %0 : vector<128x1xi32> to vector<128x11xi32>
    %3 = arith.cmpi eq, %2, %1 : vector<128x11xi32>
    %4 = arith.extui %3 : vector<128x11xi1> to vector<128x11xi32>
    %5 = arith.sitofp %4 : vector<128x11xi32> to vector<128x11xf32>
    %c0_1 = arith.constant 0 : index
    %c0_2 = arith.constant 0 : index
    %6 = vector.load %arg2[%c0_1, %c0_2] : memref<11x16xf32, #tpu.memory_space<vmem>>, vector<11x16xf32>
    %cst = arith.constant dense<0.000000e+00> : vector<128x16xf32>
    %7 = tpu.matmul %5, %6, %cst {dimension_numbers = #tpu.dot_dimension_numbers<[1], [0], [0], [1], [0, 0, 1, 1], [], []>} : vector<128x11xf32>, vector<11x16xf32>, vector<128x16xf32> -> vector<128x16xf32>
    %c0_3 = arith.constant 0 : index
    %c0_4 = arith.constant 0 : index
    %8 = vector.load %arg3[%c0_3, %c0_4] : memref<128x16xf32, #tpu.memory_space<vmem>>, vector<128x16xf32>
    %9 = arith.addf %7, %8 : vector<128x16xf32>
    %10 = tpu.iota {dimensions = array<i32: 0>} : vector<8x8xi32>
    %11 = tpu.iota {dimensions = array<i32: 1>} : vector<8x8xi32>
    %12 = arith.cmpi sle, %11, %10 : vector<8x8xi32>
    %cst_5 = arith.constant 0.000000e+00 : f32
    %cst_6 = arith.constant -1.000000e+30 : f32
    %13 = vector.broadcast %cst_5 : f32 to vector<8x8xf32>
    %14 = vector.broadcast %cst_6 : f32 to vector<8x8xf32>
    %15 = arith.select %12, %13, %14 : vector<8x8xi1>, vector<8x8xf32>
    %16 = vector.shape_cast %15 : vector<8x8xf32> to vector<1x8x8xf32>
    %c0_7 = arith.constant 0 : index
    %c0_8 = arith.constant 0 : index
    %17 = vector.load %arg4[%c0_7, %c0_8] : memref<2x16xf32, #tpu.memory_space<vmem>>, vector<1x16xf32>
    %c0_9 = arith.constant 0 : index
    %c0_10 = arith.constant 0 : index
    %18 = vector.load %arg5[%c0_9, %c0_10] : memref<2x16xf32, #tpu.memory_space<vmem>>, vector<1x16xf32>
    %cst_11 = arith.constant dense<0.000000e+00> : vector<128xf32>
    %19 = vector.multi_reduction <add>, %9, %cst_11 [1] : vector<128x16xf32> to vector<128xf32>
    %20 = vector.shape_cast %19 : vector<128xf32> to vector<128x1xf32>
    %cst_12 = arith.constant 1.600000e+01 : f32
    %21 = vector.broadcast %cst_12 : f32 to vector<128x1xf32>
    %22 = arith.divf %20, %21 : vector<128x1xf32>
    %23 = vector.broadcast %22 : vector<128x1xf32> to vector<128x16xf32>
    %24 = arith.subf %9, %23 : vector<128x16xf32>
    %25 = arith.mulf %24, %24 : vector<128x16xf32>
    %cst_13 = arith.constant dense<0.000000e+00> : vector<128xf32>
    %26 = vector.multi_reduction <add>, %25, %cst_13 [1] : vector<128x16xf32> to vector<128xf32>
    %27 = vector.shape_cast %26 : vector<128xf32> to vector<128x1xf32>
    %cst_14 = arith.constant 1.600000e+01 : f32
    %28 = vector.broadcast %cst_14 : f32 to vector<128x1xf32>
    %29 = arith.divf %27, %28 : vector<128x1xf32>
    %30 = vector.broadcast %22 : vector<128x1xf32> to vector<128x16xf32>
    %31 = arith.subf %9, %30 : vector<128x16xf32>
    %cst_15 = arith.constant 9.99999974E-6 : f32
    %32 = vector.broadcast %cst_15 : f32 to vector<128x1xf32>
    %33 = arith.addf %29, %32 : vector<128x1xf32>
    %34 = math.rsqrt %33 : vector<128x1xf32>
    %35 = vector.broadcast %34 : vector<128x1xf32> to vector<128x16xf32>
    %36 = arith.mulf %31, %35 : vector<128x16xf32>
    %37 = vector.broadcast %17 : vector<1x16xf32> to vector<128x16xf32>
    %38 = arith.mulf %36, %37 : vector<128x16xf32>
    %39 = vector.broadcast %18 : vector<1x16xf32> to vector<128x16xf32>
    %40 = arith.addf %38, %39 : vector<128x16xf32>
    %c0_16 = arith.constant 0 : index
    %c0_17 = arith.constant 0 : index
    %c0_18 = arith.constant 0 : index
    %41 = vector.load %arg6[%c0_16, %c0_17, %c0_18] : memref<2x16x48xf32, #tpu.memory_space<vmem>>, vector<1x16x48xf32>
    %42 = vector.shape_cast %41 : vector<1x16x48xf32> to vector<16x48xf32>
    %cst_19 = arith.constant dense<0.000000e+00> : vector<128x48xf32>
    %43 = tpu.matmul %40, %42, %cst_19 {dimension_numbers = #tpu.dot_dimension_numbers<[1], [0], [0], [1], [0, 0, 1, 1], [], []>} : vector<128x16xf32>, vector<16x48xf32>, vector<128x48xf32> -> vector<128x48xf32>
    %c0_20 = arith.constant 0 : index
    %c0_21 = arith.constant 0 : index
    %c0_22 = arith.constant 0 : index
    %44 = vector.load %arg7[%c0_20, %c0_21, %c0_22] : memref<2x16x16xf32, #tpu.memory_space<vmem>>, vector<1x16x16xf32>
    %45 = vector.shape_cast %44 : vector<1x16x16xf32> to vector<16x16xf32>
    %46 = vector.extract_strided_slice %43 {offsets = [0, 0], sizes = [128, 4], strides = [1, 1]} : vector<128x48xf32> to vector<128x4xf32>
    %47 = vector.shape_cast %46 : vector<128x4xf32> to vector<16x8x4xf32>
    %48 = vector.extract_strided_slice %43 {offsets = [0, 16], sizes = [128, 4], strides = [1, 1]} : vector<128x48xf32> to vector<128x4xf32>
    %49 = vector.shape_cast %48 : vector<128x4xf32> to vector<16x8x4xf32>
    %50 = vector.extract_strided_slice %43 {offsets = [0, 32], sizes = [128, 4], strides = [1, 1]} : vector<128x48xf32> to vector<128x4xf32>
    %51 = vector.shape_cast %50 : vector<128x4xf32> to vector<16x8x4xf32>
    "tpu.trace_start"() <{level = 10 : i32, message = "bid,bjd->bij"}> : () -> ()
    %cst_23 = arith.constant dense<0.000000e+00> : vector<16x8x8xf32>
    %52 = tpu.matmul %47, %49, %cst_23 {dimension_numbers = #tpu.dot_dimension_numbers<[2], [2], [1], [1], [0, 0, 0, 1, 1, 1], [0], [0]>} : vector<16x8x4xf32>, vector<16x8x4xf32>, vector<16x8x8xf32> -> vector<16x8x8xf32>
    "tpu.trace_stop"() : () -> ()
    %cst_24 = arith.constant 5.000000e-01 : f32
    %53 = vector.broadcast %cst_24 : f32 to vector<16x8x8xf32>
    %54 = arith.mulf %52, %53 : vector<16x8x8xf32>
    %55 = vector.broadcast %16 : vector<1x8x8xf32> to vector<16x8x8xf32>
    %56 = arith.addf %54, %55 : vector<16x8x8xf32>
    %cst_25 = arith.constant dense<0xFF800000> : vector<16x8xf32>
    %57 = vector.multi_reduction <maximumf>, %56, %cst_25 [2] : vector<16x8x8xf32> to vector<16x8xf32>
    %58 = vector.shape_cast %57 : vector<16x8xf32> to vector<16x8x1xf32>
    %59 = vector.broadcast %58 : vector<16x8x1xf32> to vector<16x8x8xf32>
    %60 = arith.subf %56, %59 : vector<16x8x8xf32>
    %61 = math.exp %60 : vector<16x8x8xf32>
    %cst_26 = arith.constant dense<0.000000e+00> : vector<16x8xf32>
    %62 = vector.multi_reduction <add>, %61, %cst_26 [2] : vector<16x8x8xf32> to vector<16x8xf32>
    %63 = vector.shape_cast %62 : vector<16x8xf32> to vector<16x8x1xf32>
    %64 = vector.broadcast %63 : vector<16x8x1xf32> to vector<16x8x8xf32>
    %65 = arith.divf %61, %64 : vector<16x8x8xf32>
    %c0_27 = arith.constant 0 : index
    %c0_28 = arith.constant 0 : index
    %c0_29 = arith.constant 0 : index
    %c0_30 = arith.constant 0 : index
    %c0_31 = arith.constant 0 : index
    %66 = vector.load %arg20[%c0_27, %c0_28, %c0_29, %c0_30, %c0_31] : memref<1x8x16x8x8xf32, #tpu.memory_space<vmem>>, vector<1x1x16x8x8xf32>
    %67 = vector.shape_cast %66 : vector<1x1x16x8x8xf32> to vector<16x8x8xf32>
    %68 = vector.shape_cast %65 : vector<16x8x8xf32> to vector<1x1x16x8x8xf32>
    tpu.vector_store %arg20[%c0_27, %c0_28, %c0_29, %c0_30, %c0_31], %68 {strides = array<i32>} : memref<1x8x16x8x8xf32, #tpu.memory_space<vmem>>, vector<1x1x16x8x8xf32>,
    "tpu.trace_start"() <{level = 10 : i32, message = "bij,bjd->bid"}> : () -> ()
    %cst_32 = arith.constant dense<0.000000e+00> : vector<16x8x4xf32>
    %69 = tpu.matmul %65, %51, %cst_32 {dimension_numbers = #tpu.dot_dimension_numbers<[2], [1], [1], [2], [0, 0, 0, 1, 1, 2], [0], [0]>} : vector<16x8x8xf32>, vector<16x8x4xf32>, vector<16x8x4xf32> -> vector<16x8x4xf32>
    "tpu.trace_stop"() : () -> ()
    %70 = vector.shape_cast %69 : vector<16x8x4xf32> to vector<128x4xf32>
    %71 = vector.extract_strided_slice %45 {offsets = [0, 0], sizes = [4, 16], strides = [1, 1]} : vector<16x16xf32> to vector<4x16xf32>
    %cst_33 = arith.constant dense<0.000000e+00> : vector<128x16xf32>
    %72 = tpu.matmul %70, %71, %cst_33 {dimension_numbers = #tpu.dot_dimension_numbers<[1], [0], [0], [1], [0, 0, 1, 1], [], []>} : vector<128x4xf32>, vector<4x16xf32>, vector<128x16xf32> -> vector<128x16xf32>
    %73 = vector.extract_strided_slice %43 {offsets = [0, 4], sizes = [128, 4], strides = [1, 1]} : vector<128x48xf32> to vector<128x4xf32>
    %74 = vector.shape_cast %73 : vector<128x4xf32> to vector<16x8x4xf32>
    %75 = vector.extract_strided_slice %43 {offsets = [0, 20], sizes = [128, 4], strides = [1, 1]} : vector<128x48xf32> to vector<128x4xf32>
    %76 = vector.shape_cast %75 : vector<128x4xf32> to vector<16x8x4xf32>
    %77 = vector.extract_strided_slice %43 {offsets = [0, 36], sizes = [128, 4], strides = [1, 1]} : vector<128x48xf32> to vector<128x4xf32>
    %78 = vector.shape_cast %77 : vector<128x4xf32> to vector<16x8x4xf32>
    "tpu.trace_start"() <{level = 10 : i32, message = "bid,bjd->bij"}> : () -> ()
    %cst_34 = arith.constant dense<0.000000e+00> : vector<16x8x8xf32>
    %79 = tpu.matmul %74, %76, %cst_34 {dimension_numbers = #tpu.dot_dimension_numbers<[2], [2], [1], [1], [0, 0, 0, 1, 1, 1], [0], [0]>} : vector<16x8x4xf32>, vector<16x8x4xf32>, vector<16x8x8xf32> -> vector<16x8x8xf32>
    "tpu.trace_stop"() : () -> ()
    %cst_35 = arith.constant 5.000000e-01 : f32
    %80 = vector.broadcast %cst_35 : f32 to vector<16x8x8xf32>
    %81 = arith.mulf %79, %80 : vector<16x8x8xf32>
    %82 = vector.broadcast %16 : vector<1x8x8xf32> to vector<16x8x8xf32>
    %83 = arith.addf %81, %82 : vector<16x8x8xf32>
    %cst_36 = arith.constant dense<0xFF800000> : vector<16x8xf32>
    %84 = vector.multi_reduction <maximumf>, %83, %cst_36 [2] : vector<16x8x8xf32> to vector<16x8xf32>
    %85 = vector.shape_cast %84 : vector<16x8xf32> to vector<16x8x1xf32>
    %86 = vector.broadcast %85 : vector<16x8x1xf32> to vector<16x8x8xf32>
    %87 = arith.subf %83, %86 : vector<16x8x8xf32>
    %88 = math.exp %87 : vector<16x8x8xf32>
    %cst_37 = arith.constant dense<0.000000e+00> : vector<16x8xf32>
    %89 = vector.multi_reduction <add>, %88, %cst_37 [2] : vector<16x8x8xf32> to vector<16x8xf32>
    %90 = vector.shape_cast %89 : vector<16x8xf32> to vector<16x8x1xf32>
    %91 = vector.broadcast %90 : vector<16x8x1xf32> to vector<16x8x8xf32>
    %92 = arith.divf %88, %91 : vector<16x8x8xf32>
    %c0_38 = arith.constant 0 : index
    %c1 = arith.constant 1 : index
    %c0_39 = arith.constant 0 : index
    %c0_40 = arith.constant 0 : index
    %c0_41 = arith.constant 0 : index
    %93 = vector.load %arg20[%c0_38, %c1, %c0_39, %c0_40, %c0_41] : memref<1x8x16x8x8xf32, #tpu.memory_space<vmem>>, vector<1x1x16x8x8xf32>
    %94 = vector.shape_cast %93 : vector<1x1x16x8x8xf32> to vector<16x8x8xf32>
    %95 = vector.shape_cast %92 : vector<16x8x8xf32> to vector<1x1x16x8x8xf32>
    tpu.vector_store %arg20[%c0_38, %c1, %c0_39, %c0_40, %c0_41], %95 {strides = array<i32>} : memref<1x8x16x8x8xf32, #tpu.memory_space<vmem>>, vector<1x1x16x8x8xf32>,
    "tpu.trace_start"() <{level = 10 : i32, message = "bij,bjd->bid"}> : () -> ()
    %cst_42 = arith.constant dense<0.000000e+00> : vector<16x8x4xf32>
    %96 = tpu.matmul %92, %78, %cst_42 {dimension_numbers = #tpu.dot_dimension_numbers<[2], [1], [1], [2], [0, 0, 0, 1, 1, 2], [0], [0]>} : vector<16x8x8xf32>, vector<16x8x4xf32>, vector<16x8x4xf32> -> vector<16x8x4xf32>
    "tpu.trace_stop"() : () -> ()
    %97 = vector.shape_cast %96 : vector<16x8x4xf32> to vector<128x4xf32>
    %98 = vector.extract_strided_slice %45 {offsets = [4, 0], sizes = [4, 16], strides = [1, 1]} : vector<16x16xf32> to vector<4x16xf32>
    %cst_43 = arith.constant dense<0.000000e+00> : vector<128x16xf32>
    %99 = tpu.matmul %97, %98, %cst_43 {dimension_numbers = #tpu.dot_dimension_numbers<[1], [0], [0], [1], [0, 0, 1, 1], [], []>} : vector<128x4xf32>, vector<4x16xf32>, vector<128x16xf32> -> vector<128x16xf32>
    %100 = arith.addf %72, %99 : vector<128x16xf32>
    %101 = vector.extract_strided_slice %43 {offsets = [0, 8], sizes = [128, 4], strides = [1, 1]} : vector<128x48xf32> to vector<128x4xf32>
    %102 = vector.shape_cast %101 : vector<128x4xf32> to vector<16x8x4xf32>
    %103 = vector.extract_strided_slice %43 {offsets = [0, 24], sizes = [128, 4], strides = [1, 1]} : vector<128x48xf32> to vector<128x4xf32>
    %104 = vector.shape_cast %103 : vector<128x4xf32> to vector<16x8x4xf32>
    %105 = vector.extract_strided_slice %43 {offsets = [0, 40], sizes = [128, 4], strides = [1, 1]} : vector<128x48xf32> to vector<128x4xf32>
    %106 = vector.shape_cast %105 : vector<128x4xf32> to vector<16x8x4xf32>
    "tpu.trace_start"() <{level = 10 : i32, message = "bid,bjd->bij"}> : () -> ()
    %cst_44 = arith.constant dense<0.000000e+00> : vector<16x8x8xf32>
    %107 = tpu.matmul %102, %104, %cst_44 {dimension_numbers = #tpu.dot_dimension_numbers<[2], [2], [1], [1], [0, 0, 0, 1, 1, 1], [0], [0]>} : vector<16x8x4xf32>, vector<16x8x4xf32>, vector<16x8x8xf32> -> vector<16x8x8xf32>
    "tpu.trace_stop"() : () -> ()
    %cst_45 = arith.constant 5.000000e-01 : f32
    %108 = vector.broadcast %cst_45 : f32 to vector<16x8x8xf32>
    %109 = arith.mulf %107, %108 : vector<16x8x8xf32>
    %110 = vector.broadcast %16 : vector<1x8x8xf32> to vector<16x8x8xf32>
    %111 = arith.addf %109, %110 : vector<16x8x8xf32>
    %cst_46 = arith.constant dense<0xFF800000> : vector<16x8xf32>
    %112 = vector.multi_reduction <maximumf>, %111, %cst_46 [2] : vector<16x8x8xf32> to vector<16x8xf32>
    %113 = vector.shape_cast %112 : vector<16x8xf32> to vector<16x8x1xf32>
    %114 = vector.broadcast %113 : vector<16x8x1xf32> to vector<16x8x8xf32>
    %115 = arith.subf %111, %114 : vector<16x8x8xf32>
    %116 = math.exp %115 : vector<16x8x8xf32>
    %cst_47 = arith.constant dense<0.000000e+00> : vector<16x8xf32>
    %117 = vector.multi_reduction <add>, %116, %cst_47 [2] : vector<16x8x8xf32> to vector<16x8xf32>
    %118 = vector.shape_cast %117 : vector<16x8xf32> to vector<16x8x1xf32>
    %119 = vector.broadcast %118 : vector<16x8x1xf32> to vector<16x8x8xf32>
    %120 = arith.divf %116, %119 : vector<16x8x8xf32>
    %c0_48 = arith.constant 0 : index
    %c2 = arith.constant 2 : index
    %c0_49 = arith.constant 0 : index
    %c0_50 = arith.constant 0 : index
    %c0_51 = arith.constant 0 : index
    %121 = vector.load %arg20[%c0_48, %c2, %c0_49, %c0_50, %c0_51] : memref<1x8x16x8x8xf32, #tpu.memory_space<vmem>>, vector<1x1x16x8x8xf32>
    %122 = vector.shape_cast %121 : vector<1x1x16x8x8xf32> to vector<16x8x8xf32>
    %123 = vector.shape_cast %120 : vector<16x8x8xf32> to vector<1x1x16x8x8xf32>
    tpu.vector_store %arg20[%c0_48, %c2, %c0_49, %c0_50, %c0_51], %123 {strides = array<i32>} : memref<1x8x16x8x8xf32, #tpu.memory_space<vmem>>, vector<1x1x16x8x8xf32>,
    "tpu.trace_start"() <{level = 10 : i32, message = "bij,bjd->bid"}> : () -> ()
    %cst_52 = arith.constant dense<0.000000e+00> : vector<16x8x4xf32>
    %124 = tpu.matmul %120, %106, %cst_52 {dimension_numbers = #tpu.dot_dimension_numbers<[2], [1], [1], [2], [0, 0, 0, 1, 1, 2], [0], [0]>} : vector<16x8x8xf32>, vector<16x8x4xf32>, vector<16x8x4xf32> -> vector<16x8x4xf32>
    "tpu.trace_stop"() : () -> ()
    %125 = vector.shape_cast %124 : vector<16x8x4xf32> to vector<128x4xf32>
    %126 = vector.extract_strided_slice %45 {offsets = [8, 0], sizes = [4, 16], strides = [1, 1]} : vector<16x16xf32> to vector<4x16xf32>
    %cst_53 = arith.constant dense<0.000000e+00> : vector<128x16xf32>
    %127 = tpu.matmul %125, %126, %cst_53 {dimension_numbers = #tpu.dot_dimension_numbers<[1], [0], [0], [1], [0, 0, 1, 1], [], []>} : vector<128x4xf32>, vector<4x16xf32>, vector<128x16xf32> -> vector<128x16xf32>
    %128 = arith.addf %100, %127 : vector<128x16xf32>
    %129 = vector.extract_strided_slice %43 {offsets = [0, 12], sizes = [128, 4], strides = [1, 1]} : vector<128x48xf32> to vector<128x4xf32>
    %130 = vector.shape_cast %129 : vector<128x4xf32> to vector<16x8x4xf32>
    %131 = vector.extract_strided_slice %43 {offsets = [0, 28], sizes = [128, 4], strides = [1, 1]} : vector<128x48xf32> to vector<128x4xf32>
    %132 = vector.shape_cast %131 : vector<128x4xf32> to vector<16x8x4xf32>
    %133 = vector.extract_strided_slice %43 {offsets = [0, 44], sizes = [128, 4], strides = [1, 1]} : vector<128x48xf32> to vector<128x4xf32>
    %134 = vector.shape_cast %133 : vector<128x4xf32> to vector<16x8x4xf32>
    "tpu.trace_start"() <{level = 10 : i32, message = "bid,bjd->bij"}> : () -> ()
    %cst_54 = arith.constant dense<0.000000e+00> : vector<16x8x8xf32>
    %135 = tpu.matmul %130, %132, %cst_54 {dimension_numbers = #tpu.dot_dimension_numbers<[2], [2], [1], [1], [0, 0, 0, 1, 1, 1], [0], [0]>} : vector<16x8x4xf32>, vector<16x8x4xf32>, vector<16x8x8xf32> -> vector<16x8x8xf32>
    "tpu.trace_stop"() : () -> ()
    %cst_55 = arith.constant 5.000000e-01 : f32
    %136 = vector.broadcast %cst_55 : f32 to vector<16x8x8xf32>
    %137 = arith.mulf %135, %136 : vector<16x8x8xf32>
    %138 = vector.broadcast %16 : vector<1x8x8xf32> to vector<16x8x8xf32>
    %139 = arith.addf %137, %138 : vector<16x8x8xf32>
    %cst_56 = arith.constant dense<0xFF800000> : vector<16x8xf32>
    %140 = vector.multi_reduction <maximumf>, %139, %cst_56 [2] : vector<16x8x8xf32> to vector<16x8xf32>
    %141 = vector.shape_cast %140 : vector<16x8xf32> to vector<16x8x1xf32>
    %142 = vector.broadcast %141 : vector<16x8x1xf32> to vector<16x8x8xf32>
    %143 = arith.subf %139, %142 : vector<16x8x8xf32>
    %144 = math.exp %143 : vector<16x8x8xf32>
    %cst_57 = arith.constant dense<0.000000e+00> : vector<16x8xf32>
    %145 = vector.multi_reduction <add>, %144, %cst_57 [2] : vector<16x8x8xf32> to vector<16x8xf32>
    %146 = vector.shape_cast %145 : vector<16x8xf32> to vector<16x8x1xf32>
    %147 = vector.broadcast %146 : vector<16x8x1xf32> to vector<16x8x8xf32>
    %148 = arith.divf %144, %147 : vector<16x8x8xf32>
    %c0_58 = arith.constant 0 : index
    %c3 = arith.constant 3 : index
    %c0_59 = arith.constant 0 : index
    %c0_60 = arith.constant 0 : index
    %c0_61 = arith.constant 0 : index
    %149 = vector.load %arg20[%c0_58, %c3, %c0_59, %c0_60, %c0_61] : memref<1x8x16x8x8xf32, #tpu.memory_space<vmem>>, vector<1x1x16x8x8xf32>
    %150 = vector.shape_cast %149 : vector<1x1x16x8x8xf32> to vector<16x8x8xf32>
    %151 = vector.shape_cast %148 : vector<16x8x8xf32> to vector<1x1x16x8x8xf32>
    tpu.vector_store %arg20[%c0_58, %c3, %c0_59, %c0_60, %c0_61], %151 {strides = array<i32>} : memref<1x8x16x8x8xf32, #tpu.memory_space<vmem>>, vector<1x1x16x8x8xf32>,
    "tpu.trace_start"() <{level = 10 : i32, message = "bij,bjd->bid"}> : () -> ()
    %cst_62 = arith.constant dense<0.000000e+00> : vector<16x8x4xf32>
    %152 = tpu.matmul %148, %134, %cst_62 {dimension_numbers = #tpu.dot_dimension_numbers<[2], [1], [1], [2], [0, 0, 0, 1, 1, 2], [0], [0]>} : vector<16x8x8xf32>, vector<16x8x4xf32>, vector<16x8x4xf32> -> vector<16x8x4xf32>
    "tpu.trace_stop"() : () -> ()
    %153 = vector.shape_cast %152 : vector<16x8x4xf32> to vector<128x4xf32>
    %154 = vector.extract_strided_slice %45 {offsets = [12, 0], sizes = [4, 16], strides = [1, 1]} : vector<16x16xf32> to vector<4x16xf32>
    %cst_63 = arith.constant dense<0.000000e+00> : vector<128x16xf32>
    %155 = tpu.matmul %153, %154, %cst_63 {dimension_numbers = #tpu.dot_dimension_numbers<[1], [0], [0], [1], [0, 0, 1, 1], [], []>} : vector<128x4xf32>, vector<4x16xf32>, vector<128x16xf32> -> vector<128x16xf32>
    %156 = arith.addf %128, %155 : vector<128x16xf32>
    %157 = arith.addf %9, %156 : vector<128x16xf32>
    %c0_64 = arith.constant 0 : index
    %c0_65 = arith.constant 0 : index
    %158 = vector.load %arg8[%c0_64, %c0_65] : memref<2x16xf32, #tpu.memory_space<vmem>>, vector<1x16xf32>
    %159 = vector.broadcast %158 : vector<1x16xf32> to vector<128x16xf32>
    %160 = arith.addf %157, %159 : vector<128x16xf32>
    %c0_66 = arith.constant 0 : index
    %c0_67 = arith.constant 0 : index
    %161 = vector.load %arg9[%c0_66, %c0_67] : memref<2x16xf32, #tpu.memory_space<vmem>>, vector<1x16xf32>
    %c0_68 = arith.constant 0 : index
    %c0_69 = arith.constant 0 : index
    %162 = vector.load %arg10[%c0_68, %c0_69] : memref<2x16xf32, #tpu.memory_space<vmem>>, vector<1x16xf32>
    %cst_70 = arith.constant dense<0.000000e+00> : vector<128xf32>
    %163 = vector.multi_reduction <add>, %160, %cst_70 [1] : vector<128x16xf32> to vector<128xf32>
    %164 = vector.shape_cast %163 : vector<128xf32> to vector<128x1xf32>
    %cst_71 = arith.constant 1.600000e+01 : f32
    %165 = vector.broadcast %cst_71 : f32 to vector<128x1xf32>
    %166 = arith.divf %164, %165 : vector<128x1xf32>
    %167 = vector.broadcast %166 : vector<128x1xf32> to vector<128x16xf32>
    %168 = arith.subf %160, %167 : vector<128x16xf32>
    %169 = arith.mulf %168, %168 : vector<128x16xf32>
    %cst_72 = arith.constant dense<0.000000e+00> : vector<128xf32>
    %170 = vector.multi_reduction <add>, %169, %cst_72 [1] : vector<128x16xf32> to vector<128xf32>
    %171 = vector.shape_cast %170 : vector<128xf32> to vector<128x1xf32>
    %cst_73 = arith.constant 1.600000e+01 : f32
    %172 = vector.broadcast %cst_73 : f32 to vector<128x1xf32>
    %173 = arith.divf %171, %172 : vector<128x1xf32>
    %174 = vector.broadcast %166 : vector<128x1xf32> to vector<128x16xf32>
    %175 = arith.subf %160, %174 : vector<128x16xf32>
    %cst_74 = arith.constant 9.99999974E-6 : f32
    %176 = vector.broadcast %cst_74 : f32 to vector<128x1xf32>
    %177 = arith.addf %173, %176 : vector<128x1xf32>
    %178 = math.rsqrt %177 : vector<128x1xf32>
    %179 = vector.broadcast %178 : vector<128x1xf32> to vector<128x16xf32>
    %180 = arith.mulf %175, %179 : vector<128x16xf32>
    %181 = vector.broadcast %161 : vector<1x16xf32> to vector<128x16xf32>
    %182 = arith.mulf %180, %181 : vector<128x16xf32>
    %183 = vector.broadcast %162 : vector<1x16xf32> to vector<128x16xf32>
    %184 = arith.addf %182, %183 : vector<128x16xf32>
    %c0_75 = arith.constant 0 : index
    %c0_76 = arith.constant 0 : index
    %c0_77 = arith.constant 0 : index
    %185 = vector.load %arg11[%c0_75, %c0_76, %c0_77] : memref<2x16x64xf32, #tpu.memory_space<vmem>>, vector<1x16x64xf32>
    %186 = vector.shape_cast %185 : vector<1x16x64xf32> to vector<16x64xf32>
    %cst_78 = arith.constant dense<0.000000e+00> : vector<128x64xf32>
    %187 = tpu.matmul %184, %186, %cst_78 {dimension_numbers = #tpu.dot_dimension_numbers<[1], [0], [0], [1], [0, 0, 1, 1], [], []>} : vector<128x16xf32>, vector<16x64xf32>, vector<128x64xf32> -> vector<128x64xf32>
    %c0_79 = arith.constant 0 : index
    %c0_80 = arith.constant 0 : index
    %188 = vector.load %arg12[%c0_79, %c0_80] : memref<2x64xf32, #tpu.memory_space<vmem>>, vector<1x64xf32>
    %189 = vector.broadcast %188 : vector<1x64xf32> to vector<128x64xf32>
    %190 = arith.addf %187, %189 : vector<128x64xf32>
    %cst_81 = arith.constant 0.000000e+00 : f32
    %191 = vector.broadcast %cst_81 : f32 to vector<128x64xf32>
    %192 = arith.maximumf %190, %191 : vector<128x64xf32>
    %c0_82 = arith.constant 0 : index
    %c0_83 = arith.constant 0 : index
    %c0_84 = arith.constant 0 : index
    %193 = vector.load %arg13[%c0_82, %c0_83, %c0_84] : memref<2x64x16xf32, #tpu.memory_space<vmem>>, vector<1x64x16xf32>
    %194 = vector.shape_cast %193 : vector<1x64x16xf32> to vector<64x16xf32>
    %cst_85 = arith.constant dense<0.000000e+00> : vector<128x16xf32>
    %195 = tpu.matmul %192, %194, %cst_85 {dimension_numbers = #tpu.dot_dimension_numbers<[1], [0], [0], [1], [0, 0, 1, 1], [], []>} : vector<128x64xf32>, vector<64x16xf32>, vector<128x16xf32> -> vector<128x16xf32>
    %c0_86 = arith.constant 0 : index
    %c0_87 = arith.constant 0 : index
    %196 = vector.load %arg14[%c0_86, %c0_87] : memref<2x16xf32, #tpu.memory_space<vmem>>, vector<1x16xf32>
    %197 = vector.broadcast %196 : vector<1x16xf32> to vector<128x16xf32>
    %198 = arith.addf %195, %197 : vector<128x16xf32>
    %199 = arith.addf %160, %198 : vector<128x16xf32>
    %c1_88 = arith.constant 1 : index
    %c0_89 = arith.constant 0 : index
    %200 = vector.load %arg4[%c1_88, %c0_89] : memref<2x16xf32, #tpu.memory_space<vmem>>, vector<1x16xf32>
    %c1_90 = arith.constant 1 : index
    %c0_91 = arith.constant 0 : index
    %201 = vector.load %arg5[%c1_90, %c0_91] : memref<2x16xf32, #tpu.memory_space<vmem>>, vector<1x16xf32>
    %cst_92 = arith.constant dense<0.000000e+00> : vector<128xf32>
    %202 = vector.multi_reduction <add>, %199, %cst_92 [1] : vector<128x16xf32> to vector<128xf32>
    %203 = vector.shape_cast %202 : vector<128xf32> to vector<128x1xf32>
    %cst_93 = arith.constant 1.600000e+01 : f32
    %204 = vector.broadcast %cst_93 : f32 to vector<128x1xf32>
    %205 = arith.divf %203, %204 : vector<128x1xf32>
    %206 = vector.broadcast %205 : vector<128x1xf32> to vector<128x16xf32>
    %207 = arith.subf %199, %206 : vector<128x16xf32>
    %208 = arith.mulf %207, %207 : vector<128x16xf32>
    %cst_94 = arith.constant dense<0.000000e+00> : vector<128xf32>
    %209 = vector.multi_reduction <add>, %208, %cst_94 [1] : vector<128x16xf32> to vector<128xf32>
    %210 = vector.shape_cast %209 : vector<128xf32> to vector<128x1xf32>
    %cst_95 = arith.constant 1.600000e+01 : f32
    %211 = vector.broadcast %cst_95 : f32 to vector<128x1xf32>
    %212 = arith.divf %210, %211 : vector<128x1xf32>
    %213 = vector.broadcast %205 : vector<128x1xf32> to vector<128x16xf32>
    %214 = arith.subf %199, %213 : vector<128x16xf32>
    %cst_96 = arith.constant 9.99999974E-6 : f32
    %215 = vector.broadcast %cst_96 : f32 to vector<128x1xf32>
    %216 = arith.addf %212, %215 : vector<128x1xf32>
    %217 = math.rsqrt %216 : vector<128x1xf32>
    %218 = vector.broadcast %217 : vector<128x1xf32> to vector<128x16xf32>
    %219 = arith.mulf %214, %218 : vector<128x16xf32>
    %220 = vector.broadcast %200 : vector<1x16xf32> to vector<128x16xf32>
    %221 = arith.mulf %219, %220 : vector<128x16xf32>
    %222 = vector.broadcast %201 : vector<1x16xf32> to vector<128x16xf32>
    %223 = arith.addf %221, %222 : vector<128x16xf32>
    %c1_97 = arith.constant 1 : index
    %c0_98 = arith.constant 0 : index
    %c0_99 = arith.constant 0 : index
    %224 = vector.load %arg6[%c1_97, %c0_98, %c0_99] : memref<2x16x48xf32, #tpu.memory_space<vmem>>, vector<1x16x48xf32>
    %225 = vector.shape_cast %224 : vector<1x16x48xf32> to vector<16x48xf32>
    %cst_100 = arith.constant dense<0.000000e+00> : vector<128x48xf32>
    %226 = tpu.matmul %223, %225, %cst_100 {dimension_numbers = #tpu.dot_dimension_numbers<[1], [0], [0], [1], [0, 0, 1, 1], [], []>} : vector<128x16xf32>, vector<16x48xf32>, vector<128x48xf32> -> vector<128x48xf32>
    %c1_101 = arith.constant 1 : index
    %c0_102 = arith.constant 0 : index
    %c0_103 = arith.constant 0 : index
    %227 = vector.load %arg7[%c1_101, %c0_102, %c0_103] : memref<2x16x16xf32, #tpu.memory_space<vmem>>, vector<1x16x16xf32>
    %228 = vector.shape_cast %227 : vector<1x16x16xf32> to vector<16x16xf32>
    %229 = vector.extract_strided_slice %226 {offsets = [0, 0], sizes = [128, 4], strides = [1, 1]} : vector<128x48xf32> to vector<128x4xf32>
    %230 = vector.shape_cast %229 : vector<128x4xf32> to vector<16x8x4xf32>
    %231 = vector.extract_strided_slice %226 {offsets = [0, 16], sizes = [128, 4], strides = [1, 1]} : vector<128x48xf32> to vector<128x4xf32>
    %232 = vector.shape_cast %231 : vector<128x4xf32> to vector<16x8x4xf32>
    %233 = vector.extract_strided_slice %226 {offsets = [0, 32], sizes = [128, 4], strides = [1, 1]} : vector<128x48xf32> to vector<128x4xf32>
    %234 = vector.shape_cast %233 : vector<128x4xf32> to vector<16x8x4xf32>
    "tpu.trace_start"() <{level = 10 : i32, message = "bid,bjd->bij"}> : () -> ()
    %cst_104 = arith.constant dense<0.000000e+00> : vector<16x8x8xf32>
    %235 = tpu.matmul %230, %232, %cst_104 {dimension_numbers = #tpu.dot_dimension_numbers<[2], [2], [1], [1], [0, 0, 0, 1, 1, 1], [0], [0]>} : vector<16x8x4xf32>, vector<16x8x4xf32>, vector<16x8x8xf32> -> vector<16x8x8xf32>
    "tpu.trace_stop"() : () -> ()
    %cst_105 = arith.constant 5.000000e-01 : f32
    %236 = vector.broadcast %cst_105 : f32 to vector<16x8x8xf32>
    %237 = arith.mulf %235, %236 : vector<16x8x8xf32>
    %238 = vector.broadcast %16 : vector<1x8x8xf32> to vector<16x8x8xf32>
    %239 = arith.addf %237, %238 : vector<16x8x8xf32>
    %cst_106 = arith.constant dense<0xFF800000> : vector<16x8xf32>
    %240 = vector.multi_reduction <maximumf>, %239, %cst_106 [2] : vector<16x8x8xf32> to vector<16x8xf32>
    %241 = vector.shape_cast %240 : vector<16x8xf32> to vector<16x8x1xf32>
    %242 = vector.broadcast %241 : vector<16x8x1xf32> to vector<16x8x8xf32>
    %243 = arith.subf %239, %242 : vector<16x8x8xf32>
    %244 = math.exp %243 : vector<16x8x8xf32>
    %cst_107 = arith.constant dense<0.000000e+00> : vector<16x8xf32>
    %245 = vector.multi_reduction <add>, %244, %cst_107 [2] : vector<16x8x8xf32> to vector<16x8xf32>
    %246 = vector.shape_cast %245 : vector<16x8xf32> to vector<16x8x1xf32>
    %247 = vector.broadcast %246 : vector<16x8x1xf32> to vector<16x8x8xf32>
    %248 = arith.divf %244, %247 : vector<16x8x8xf32>
    %c0_108 = arith.constant 0 : index
    %c4 = arith.constant 4 : index
    %c0_109 = arith.constant 0 : index
    %c0_110 = arith.constant 0 : index
    %c0_111 = arith.constant 0 : index
    %249 = vector.load %arg20[%c0_108, %c4, %c0_109, %c0_110, %c0_111] : memref<1x8x16x8x8xf32, #tpu.memory_space<vmem>>, vector<1x1x16x8x8xf32>
    %250 = vector.shape_cast %249 : vector<1x1x16x8x8xf32> to vector<16x8x8xf32>
    %251 = vector.shape_cast %248 : vector<16x8x8xf32> to vector<1x1x16x8x8xf32>
    tpu.vector_store %arg20[%c0_108, %c4, %c0_109, %c0_110, %c0_111], %251 {strides = array<i32>} : memref<1x8x16x8x8xf32, #tpu.memory_space<vmem>>, vector<1x1x16x8x8xf32>,
    "tpu.trace_start"() <{level = 10 : i32, message = "bij,bjd->bid"}> : () -> ()
    %cst_112 = arith.constant dense<0.000000e+00> : vector<16x8x4xf32>
    %252 = tpu.matmul %248, %234, %cst_112 {dimension_numbers = #tpu.dot_dimension_numbers<[2], [1], [1], [2], [0, 0, 0, 1, 1, 2], [0], [0]>} : vector<16x8x8xf32>, vector<16x8x4xf32>, vector<16x8x4xf32> -> vector<16x8x4xf32>
    "tpu.trace_stop"() : () -> ()
    %253 = vector.shape_cast %252 : vector<16x8x4xf32> to vector<128x4xf32>
    %254 = vector.extract_strided_slice %228 {offsets = [0, 0], sizes = [4, 16], strides = [1, 1]} : vector<16x16xf32> to vector<4x16xf32>
    %cst_113 = arith.constant dense<0.000000e+00> : vector<128x16xf32>
    %255 = tpu.matmul %253, %254, %cst_113 {dimension_numbers = #tpu.dot_dimension_numbers<[1], [0], [0], [1], [0, 0, 1, 1], [], []>} : vector<128x4xf32>, vector<4x16xf32>, vector<128x16xf32> -> vector<128x16xf32>
    %256 = vector.extract_strided_slice %226 {offsets = [0, 4], sizes = [128, 4], strides = [1, 1]} : vector<128x48xf32> to vector<128x4xf32>
    %257 = vector.shape_cast %256 : vector<128x4xf32> to vector<16x8x4xf32>
    %258 = vector.extract_strided_slice %226 {offsets = [0, 20], sizes = [128, 4], strides = [1, 1]} : vector<128x48xf32> to vector<128x4xf32>
    %259 = vector.shape_cast %258 : vector<128x4xf32> to vector<16x8x4xf32>
    %260 = vector.extract_strided_slice %226 {offsets = [0, 36], sizes = [128, 4], strides = [1, 1]} : vector<128x48xf32> to vector<128x4xf32>
    %261 = vector.shape_cast %260 : vector<128x4xf32> to vector<16x8x4xf32>
    "tpu.trace_start"() <{level = 10 : i32, message = "bid,bjd->bij"}> : () -> ()
    %cst_114 = arith.constant dense<0.000000e+00> : vector<16x8x8xf32>
    %262 = tpu.matmul %257, %259, %cst_114 {dimension_numbers = #tpu.dot_dimension_numbers<[2], [2], [1], [1], [0, 0, 0, 1, 1, 1], [0], [0]>} : vector<16x8x4xf32>, vector<16x8x4xf32>, vector<16x8x8xf32> -> vector<16x8x8xf32>
    "tpu.trace_stop"() : () -> ()
    %cst_115 = arith.constant 5.000000e-01 : f32
    %263 = vector.broadcast %cst_115 : f32 to vector<16x8x8xf32>
    %264 = arith.mulf %262, %263 : vector<16x8x8xf32>
    %265 = vector.broadcast %16 : vector<1x8x8xf32> to vector<16x8x8xf32>
    %266 = arith.addf %264, %265 : vector<16x8x8xf32>
    %cst_116 = arith.constant dense<0xFF800000> : vector<16x8xf32>
    %267 = vector.multi_reduction <maximumf>, %266, %cst_116 [2] : vector<16x8x8xf32> to vector<16x8xf32>
    %268 = vector.shape_cast %267 : vector<16x8xf32> to vector<16x8x1xf32>
    %269 = vector.broadcast %268 : vector<16x8x1xf32> to vector<16x8x8xf32>
    %270 = arith.subf %266, %269 : vector<16x8x8xf32>
    %271 = math.exp %270 : vector<16x8x8xf32>
    %cst_117 = arith.constant dense<0.000000e+00> : vector<16x8xf32>
    %272 = vector.multi_reduction <add>, %271, %cst_117 [2] : vector<16x8x8xf32> to vector<16x8xf32>
    %273 = vector.shape_cast %272 : vector<16x8xf32> to vector<16x8x1xf32>
    %274 = vector.broadcast %273 : vector<16x8x1xf32> to vector<16x8x8xf32>
    %275 = arith.divf %271, %274 : vector<16x8x8xf32>
    %c0_118 = arith.constant 0 : index
    %c5 = arith.constant 5 : index
    %c0_119 = arith.constant 0 : index
    %c0_120 = arith.constant 0 : index
    %c0_121 = arith.constant 0 : index
    %276 = vector.load %arg20[%c0_118, %c5, %c0_119, %c0_120, %c0_121] : memref<1x8x16x8x8xf32, #tpu.memory_space<vmem>>, vector<1x1x16x8x8xf32>
    %277 = vector.shape_cast %276 : vector<1x1x16x8x8xf32> to vector<16x8x8xf32>
    %278 = vector.shape_cast %275 : vector<16x8x8xf32> to vector<1x1x16x8x8xf32>
    tpu.vector_store %arg20[%c0_118, %c5, %c0_119, %c0_120, %c0_121], %278 {strides = array<i32>} : memref<1x8x16x8x8xf32, #tpu.memory_space<vmem>>, vector<1x1x16x8x8xf32>,
    "tpu.trace_start"() <{level = 10 : i32, message = "bij,bjd->bid"}> : () -> ()
    %cst_122 = arith.constant dense<0.000000e+00> : vector<16x8x4xf32>
    %279 = tpu.matmul %275, %261, %cst_122 {dimension_numbers = #tpu.dot_dimension_numbers<[2], [1], [1], [2], [0, 0, 0, 1, 1, 2], [0], [0]>} : vector<16x8x8xf32>, vector<16x8x4xf32>, vector<16x8x4xf32> -> vector<16x8x4xf32>
    "tpu.trace_stop"() : () -> ()
    %280 = vector.shape_cast %279 : vector<16x8x4xf32> to vector<128x4xf32>
    %281 = vector.extract_strided_slice %228 {offsets = [4, 0], sizes = [4, 16], strides = [1, 1]} : vector<16x16xf32> to vector<4x16xf32>
    %cst_123 = arith.constant dense<0.000000e+00> : vector<128x16xf32>
    %282 = tpu.matmul %280, %281, %cst_123 {dimension_numbers = #tpu.dot_dimension_numbers<[1], [0], [0], [1], [0, 0, 1, 1], [], []>} : vector<128x4xf32>, vector<4x16xf32>, vector<128x16xf32> -> vector<128x16xf32>
    %283 = arith.addf %255, %282 : vector<128x16xf32>
    %284 = vector.extract_strided_slice %226 {offsets = [0, 8], sizes = [128, 4], strides = [1, 1]} : vector<128x48xf32> to vector<128x4xf32>
    %285 = vector.shape_cast %284 : vector<128x4xf32> to vector<16x8x4xf32>
    %286 = vector.extract_strided_slice %226 {offsets = [0, 24], sizes = [128, 4], strides = [1, 1]} : vector<128x48xf32> to vector<128x4xf32>
    %287 = vector.shape_cast %286 : vector<128x4xf32> to vector<16x8x4xf32>
    %288 = vector.extract_strided_slice %226 {offsets = [0, 40], sizes = [128, 4], strides = [1, 1]} : vector<128x48xf32> to vector<128x4xf32>
    %289 = vector.shape_cast %288 : vector<128x4xf32> to vector<16x8x4xf32>
    "tpu.trace_start"() <{level = 10 : i32, message = "bid,bjd->bij"}> : () -> ()
    %cst_124 = arith.constant dense<0.000000e+00> : vector<16x8x8xf32>
    %290 = tpu.matmul %285, %287, %cst_124 {dimension_numbers = #tpu.dot_dimension_numbers<[2], [2], [1], [1], [0, 0, 0, 1, 1, 1], [0], [0]>} : vector<16x8x4xf32>, vector<16x8x4xf32>, vector<16x8x8xf32> -> vector<16x8x8xf32>
    "tpu.trace_stop"() : () -> ()
    %cst_125 = arith.constant 5.000000e-01 : f32
    %291 = vector.broadcast %cst_125 : f32 to vector<16x8x8xf32>
    %292 = arith.mulf %290, %291 : vector<16x8x8xf32>
    %293 = vector.broadcast %16 : vector<1x8x8xf32> to vector<16x8x8xf32>
    %294 = arith.addf %292, %293 : vector<16x8x8xf32>
    %cst_126 = arith.constant dense<0xFF800000> : vector<16x8xf32>
    %295 = vector.multi_reduction <maximumf>, %294, %cst_126 [2] : vector<16x8x8xf32> to vector<16x8xf32>
    %296 = vector.shape_cast %295 : vector<16x8xf32> to vector<16x8x1xf32>
    %297 = vector.broadcast %296 : vector<16x8x1xf32> to vector<16x8x8xf32>
    %298 = arith.subf %294, %297 : vector<16x8x8xf32>
    %299 = math.exp %298 : vector<16x8x8xf32>
    %cst_127 = arith.constant dense<0.000000e+00> : vector<16x8xf32>
    %300 = vector.multi_reduction <add>, %299, %cst_127 [2] : vector<16x8x8xf32> to vector<16x8xf32>
    %301 = vector.shape_cast %300 : vector<16x8xf32> to vector<16x8x1xf32>
    %302 = vector.broadcast %301 : vector<16x8x1xf32> to vector<16x8x8xf32>
    %303 = arith.divf %299, %302 : vector<16x8x8xf32>
    %c0_128 = arith.constant 0 : index
    %c6 = arith.constant 6 : index
    %c0_129 = arith.constant 0 : index
    %c0_130 = arith.constant 0 : index
    %c0_131 = arith.constant 0 : index
    %304 = vector.load %arg20[%c0_128, %c6, %c0_129, %c0_130, %c0_131] : memref<1x8x16x8x8xf32, #tpu.memory_space<vmem>>, vector<1x1x16x8x8xf32>
    %305 = vector.shape_cast %304 : vector<1x1x16x8x8xf32> to vector<16x8x8xf32>
    %306 = vector.shape_cast %303 : vector<16x8x8xf32> to vector<1x1x16x8x8xf32>
    tpu.vector_store %arg20[%c0_128, %c6, %c0_129, %c0_130, %c0_131], %306 {strides = array<i32>} : memref<1x8x16x8x8xf32, #tpu.memory_space<vmem>>, vector<1x1x16x8x8xf32>,
    "tpu.trace_start"() <{level = 10 : i32, message = "bij,bjd->bid"}> : () -> ()
    %cst_132 = arith.constant dense<0.000000e+00> : vector<16x8x4xf32>
    %307 = tpu.matmul %303, %289, %cst_132 {dimension_numbers = #tpu.dot_dimension_numbers<[2], [1], [1], [2], [0, 0, 0, 1, 1, 2], [0], [0]>} : vector<16x8x8xf32>, vector<16x8x4xf32>, vector<16x8x4xf32> -> vector<16x8x4xf32>
    "tpu.trace_stop"() : () -> ()
    %308 = vector.shape_cast %307 : vector<16x8x4xf32> to vector<128x4xf32>
    %309 = vector.extract_strided_slice %228 {offsets = [8, 0], sizes = [4, 16], strides = [1, 1]} : vector<16x16xf32> to vector<4x16xf32>
    %cst_133 = arith.constant dense<0.000000e+00> : vector<128x16xf32>
    %310 = tpu.matmul %308, %309, %cst_133 {dimension_numbers = #tpu.dot_dimension_numbers<[1], [0], [0], [1], [0, 0, 1, 1], [], []>} : vector<128x4xf32>, vector<4x16xf32>, vector<128x16xf32> -> vector<128x16xf32>
    %311 = arith.addf %283, %310 : vector<128x16xf32>
    %312 = vector.extract_strided_slice %226 {offsets = [0, 12], sizes = [128, 4], strides = [1, 1]} : vector<128x48xf32> to vector<128x4xf32>
    %313 = vector.shape_cast %312 : vector<128x4xf32> to vector<16x8x4xf32>
    %314 = vector.extract_strided_slice %226 {offsets = [0, 28], sizes = [128, 4], strides = [1, 1]} : vector<128x48xf32> to vector<128x4xf32>
    %315 = vector.shape_cast %314 : vector<128x4xf32> to vector<16x8x4xf32>
    %316 = vector.extract_strided_slice %226 {offsets = [0, 44], sizes = [128, 4], strides = [1, 1]} : vector<128x48xf32> to vector<128x4xf32>
    %317 = vector.shape_cast %316 : vector<128x4xf32> to vector<16x8x4xf32>
    "tpu.trace_start"() <{level = 10 : i32, message = "bid,bjd->bij"}> : () -> ()
    %cst_134 = arith.constant dense<0.000000e+00> : vector<16x8x8xf32>
    %318 = tpu.matmul %313, %315, %cst_134 {dimension_numbers = #tpu.dot_dimension_numbers<[2], [2], [1], [1], [0, 0, 0, 1, 1, 1], [0], [0]>} : vector<16x8x4xf32>, vector<16x8x4xf32>, vector<16x8x8xf32> -> vector<16x8x8xf32>
    "tpu.trace_stop"() : () -> ()
    %cst_135 = arith.constant 5.000000e-01 : f32
    %319 = vector.broadcast %cst_135 : f32 to vector<16x8x8xf32>
    %320 = arith.mulf %318, %319 : vector<16x8x8xf32>
    %321 = vector.broadcast %16 : vector<1x8x8xf32> to vector<16x8x8xf32>
    %322 = arith.addf %320, %321 : vector<16x8x8xf32>
    %cst_136 = arith.constant dense<0xFF800000> : vector<16x8xf32>
    %323 = vector.multi_reduction <maximumf>, %322, %cst_136 [2] : vector<16x8x8xf32> to vector<16x8xf32>
    %324 = vector.shape_cast %323 : vector<16x8xf32> to vector<16x8x1xf32>
    %325 = vector.broadcast %324 : vector<16x8x1xf32> to vector<16x8x8xf32>
    %326 = arith.subf %322, %325 : vector<16x8x8xf32>
    %327 = math.exp %326 : vector<16x8x8xf32>
    %cst_137 = arith.constant dense<0.000000e+00> : vector<16x8xf32>
    %328 = vector.multi_reduction <add>, %327, %cst_137 [2] : vector<16x8x8xf32> to vector<16x8xf32>
    %329 = vector.shape_cast %328 : vector<16x8xf32> to vector<16x8x1xf32>
    %330 = vector.broadcast %329 : vector<16x8x1xf32> to vector<16x8x8xf32>
    %331 = arith.divf %327, %330 : vector<16x8x8xf32>
    %c0_138 = arith.constant 0 : index
    %c7 = arith.constant 7 : index
    %c0_139 = arith.constant 0 : index
    %c0_140 = arith.constant 0 : index
    %c0_141 = arith.constant 0 : index
    %332 = vector.load %arg20[%c0_138, %c7, %c0_139, %c0_140, %c0_141] : memref<1x8x16x8x8xf32, #tpu.memory_space<vmem>>, vector<1x1x16x8x8xf32>
    %333 = vector.shape_cast %332 : vector<1x1x16x8x8xf32> to vector<16x8x8xf32>
    %334 = vector.shape_cast %331 : vector<16x8x8xf32> to vector<1x1x16x8x8xf32>
    tpu.vector_store %arg20[%c0_138, %c7, %c0_139, %c0_140, %c0_141], %334 {strides = array<i32>} : memref<1x8x16x8x8xf32, #tpu.memory_space<vmem>>, vector<1x1x16x8x8xf32>,
    "tpu.trace_start"() <{level = 10 : i32, message = "bij,bjd->bid"}> : () -> ()
    %cst_142 = arith.constant dense<0.000000e+00> : vector<16x8x4xf32>
    %335 = tpu.matmul %331, %317, %cst_142 {dimension_numbers = #tpu.dot_dimension_numbers<[2], [1], [1], [2], [0, 0, 0, 1, 1, 2], [0], [0]>} : vector<16x8x8xf32>, vector<16x8x4xf32>, vector<16x8x4xf32> -> vector<16x8x4xf32>
    "tpu.trace_stop"() : () -> ()
    %336 = vector.shape_cast %335 : vector<16x8x4xf32> to vector<128x4xf32>
    %337 = vector.extract_strided_slice %228 {offsets = [12, 0], sizes = [4, 16], strides = [1, 1]} : vector<16x16xf32> to vector<4x16xf32>
    %cst_143 = arith.constant dense<0.000000e+00> : vector<128x16xf32>
    %338 = tpu.matmul %336, %337, %cst_143 {dimension_numbers = #tpu.dot_dimension_numbers<[1], [0], [0], [1], [0, 0, 1, 1], [], []>} : vector<128x4xf32>, vector<4x16xf32>, vector<128x16xf32> -> vector<128x16xf32>
    %339 = arith.addf %311, %338 : vector<128x16xf32>
    %340 = arith.addf %199, %339 : vector<128x16xf32>
    %c1_144 = arith.constant 1 : index
    %c0_145 = arith.constant 0 : index
    %341 = vector.load %arg8[%c1_144, %c0_145] : memref<2x16xf32, #tpu.memory_space<vmem>>, vector<1x16xf32>
    %342 = vector.broadcast %341 : vector<1x16xf32> to vector<128x16xf32>
    %343 = arith.addf %340, %342 : vector<128x16xf32>
    %c1_146 = arith.constant 1 : index
    %c0_147 = arith.constant 0 : index
    %344 = vector.load %arg9[%c1_146, %c0_147] : memref<2x16xf32, #tpu.memory_space<vmem>>, vector<1x16xf32>
    %c1_148 = arith.constant 1 : index
    %c0_149 = arith.constant 0 : index
    %345 = vector.load %arg10[%c1_148, %c0_149] : memref<2x16xf32, #tpu.memory_space<vmem>>, vector<1x16xf32>
    %cst_150 = arith.constant dense<0.000000e+00> : vector<128xf32>
    %346 = vector.multi_reduction <add>, %343, %cst_150 [1] : vector<128x16xf32> to vector<128xf32>
    %347 = vector.shape_cast %346 : vector<128xf32> to vector<128x1xf32>
    %cst_151 = arith.constant 1.600000e+01 : f32
    %348 = vector.broadcast %cst_151 : f32 to vector<128x1xf32>
    %349 = arith.divf %347, %348 : vector<128x1xf32>
    %350 = vector.broadcast %349 : vector<128x1xf32> to vector<128x16xf32>
    %351 = arith.subf %343, %350 : vector<128x16xf32>
    %352 = arith.mulf %351, %351 : vector<128x16xf32>
    %cst_152 = arith.constant dense<0.000000e+00> : vector<128xf32>
    %353 = vector.multi_reduction <add>, %352, %cst_152 [1] : vector<128x16xf32> to vector<128xf32>
    %354 = vector.shape_cast %353 : vector<128xf32> to vector<128x1xf32>
    %cst_153 = arith.constant 1.600000e+01 : f32
    %355 = vector.broadcast %cst_153 : f32 to vector<128x1xf32>
    %356 = arith.divf %354, %355 : vector<128x1xf32>
    %357 = vector.broadcast %349 : vector<128x1xf32> to vector<128x16xf32>
    %358 = arith.subf %343, %357 : vector<128x16xf32>
    %cst_154 = arith.constant 9.99999974E-6 : f32
    %359 = vector.broadcast %cst_154 : f32 to vector<128x1xf32>
    %360 = arith.addf %356, %359 : vector<128x1xf32>
    %361 = math.rsqrt %360 : vector<128x1xf32>
    %362 = vector.broadcast %361 : vector<128x1xf32> to vector<128x16xf32>
    %363 = arith.mulf %358, %362 : vector<128x16xf32>
    %364 = vector.broadcast %344 : vector<1x16xf32> to vector<128x16xf32>
    %365 = arith.mulf %363, %364 : vector<128x16xf32>
    %366 = vector.broadcast %345 : vector<1x16xf32> to vector<128x16xf32>
    %367 = arith.addf %365, %366 : vector<128x16xf32>
    %c1_155 = arith.constant 1 : index
    %c0_156 = arith.constant 0 : index
    %c0_157 = arith.constant 0 : index
    %368 = vector.load %arg11[%c1_155, %c0_156, %c0_157] : memref<2x16x64xf32, #tpu.memory_space<vmem>>, vector<1x16x64xf32>
    %369 = vector.shape_cast %368 : vector<1x16x64xf32> to vector<16x64xf32>
    %cst_158 = arith.constant dense<0.000000e+00> : vector<128x64xf32>
    %370 = tpu.matmul %367, %369, %cst_158 {dimension_numbers = #tpu.dot_dimension_numbers<[1], [0], [0], [1], [0, 0, 1, 1], [], []>} : vector<128x16xf32>, vector<16x64xf32>, vector<128x64xf32> -> vector<128x64xf32>
    %c1_159 = arith.constant 1 : index
    %c0_160 = arith.constant 0 : index
    %371 = vector.load %arg12[%c1_159, %c0_160] : memref<2x64xf32, #tpu.memory_space<vmem>>, vector<1x64xf32>
    %372 = vector.broadcast %371 : vector<1x64xf32> to vector<128x64xf32>
    %373 = arith.addf %370, %372 : vector<128x64xf32>
    %cst_161 = arith.constant 0.000000e+00 : f32
    %374 = vector.broadcast %cst_161 : f32 to vector<128x64xf32>
    %375 = arith.maximumf %373, %374 : vector<128x64xf32>
    %c1_162 = arith.constant 1 : index
    %c0_163 = arith.constant 0 : index
    %c0_164 = arith.constant 0 : index
    %376 = vector.load %arg13[%c1_162, %c0_163, %c0_164] : memref<2x64x16xf32, #tpu.memory_space<vmem>>, vector<1x64x16xf32>
    %377 = vector.shape_cast %376 : vector<1x64x16xf32> to vector<64x16xf32>
    %cst_165 = arith.constant dense<0.000000e+00> : vector<128x16xf32>
    %378 = tpu.matmul %375, %377, %cst_165 {dimension_numbers = #tpu.dot_dimension_numbers<[1], [0], [0], [1], [0, 0, 1, 1], [], []>} : vector<128x64xf32>, vector<64x16xf32>, vector<128x16xf32> -> vector<128x16xf32>
    %c1_166 = arith.constant 1 : index
    %c0_167 = arith.constant 0 : index
    %379 = vector.load %arg14[%c1_166, %c0_167] : memref<2x16xf32, #tpu.memory_space<vmem>>, vector<1x16xf32>
    %380 = vector.broadcast %379 : vector<1x16xf32> to vector<128x16xf32>
    %381 = arith.addf %378, %380 : vector<128x16xf32>
    %382 = arith.addf %343, %381 : vector<128x16xf32>
    %c0_168 = arith.constant 0 : index
    %c0_169 = arith.constant 0 : index
    %383 = vector.load %arg15[%c0_168, %c0_169] : memref<1x16xf32, #tpu.memory_space<vmem>>, vector<1x16xf32>
    %c0_170 = arith.constant 0 : index
    %c0_171 = arith.constant 0 : index
    %384 = vector.load %arg16[%c0_170, %c0_171] : memref<1x16xf32, #tpu.memory_space<vmem>>, vector<1x16xf32>
    %cst_172 = arith.constant dense<0.000000e+00> : vector<128xf32>
    %385 = vector.multi_reduction <add>, %382, %cst_172 [1] : vector<128x16xf32> to vector<128xf32>
    %386 = vector.shape_cast %385 : vector<128xf32> to vector<128x1xf32>
    %cst_173 = arith.constant 1.600000e+01 : f32
    %387 = vector.broadcast %cst_173 : f32 to vector<128x1xf32>
    %388 = arith.divf %386, %387 : vector<128x1xf32>
    %389 = vector.broadcast %388 : vector<128x1xf32> to vector<128x16xf32>
    %390 = arith.subf %382, %389 : vector<128x16xf32>
    %391 = arith.mulf %390, %390 : vector<128x16xf32>
    %cst_174 = arith.constant dense<0.000000e+00> : vector<128xf32>
    %392 = vector.multi_reduction <add>, %391, %cst_174 [1] : vector<128x16xf32> to vector<128xf32>
    %393 = vector.shape_cast %392 : vector<128xf32> to vector<128x1xf32>
    %cst_175 = arith.constant 1.600000e+01 : f32
    %394 = vector.broadcast %cst_175 : f32 to vector<128x1xf32>
    %395 = arith.divf %393, %394 : vector<128x1xf32>
    %396 = vector.broadcast %388 : vector<128x1xf32> to vector<128x16xf32>
    %397 = arith.subf %382, %396 : vector<128x16xf32>
    %cst_176 = arith.constant 9.99999974E-6 : f32
    %398 = vector.broadcast %cst_176 : f32 to vector<128x1xf32>
    %399 = arith.addf %395, %398 : vector<128x1xf32>
    %400 = math.rsqrt %399 : vector<128x1xf32>
    %401 = vector.broadcast %400 : vector<128x1xf32> to vector<128x16xf32>
    %402 = arith.mulf %397, %401 : vector<128x16xf32>
    %403 = vector.broadcast %383 : vector<1x16xf32> to vector<128x16xf32>
    %404 = arith.mulf %402, %403 : vector<128x16xf32>
    %405 = vector.broadcast %384 : vector<1x16xf32> to vector<128x16xf32>
    %406 = arith.addf %404, %405 : vector<128x16xf32>
    %c0_177 = arith.constant 0 : index
    %c0_178 = arith.constant 0 : index
    %407 = vector.load %arg17[%c0_177, %c0_178] : memref<16x128xf32, #tpu.memory_space<vmem>>, vector<16x128xf32>
    %cst_179 = arith.constant dense<0.000000e+00> : vector<128x128xf32>
    %408 = tpu.matmul %406, %407, %cst_179 {dimension_numbers = #tpu.dot_dimension_numbers<[1], [0], [0], [1], [0, 0, 1, 1], [], []>} : vector<128x16xf32>, vector<16x128xf32>, vector<128x128xf32> -> vector<128x128xf32>
    %c0_180 = arith.constant 0 : index
    %c0_181 = arith.constant 0 : index
    %409 = vector.load %arg18[%c0_180, %c0_181] : memref<1x128xf32, #tpu.memory_space<vmem>>, vector<1x128xf32>
    %410 = vector.broadcast %409 : vector<1x128xf32> to vector<128x128xf32>
    %411 = arith.addf %408, %410 : vector<128x128xf32>
    %c0_182 = arith.constant 0 : index
    %c0_183 = arith.constant 0 : index
    %412 = vector.load %arg19[%c0_182, %c0_183] : memref<128x128xf32, #tpu.memory_space<vmem>>, vector<128x128xf32>
    tpu.vector_store %arg19[%c0_182, %c0_183], %411 {strides = array<i32>} : memref<128x128xf32, #tpu.memory_space<vmem>>, vector<128x128xf32>,
    return
  }
  func.func @transform_0(%arg0: i32) -> (i32, i32) {
    %c0_i32 = arith.constant 0 : i32
    %c0_i32_0 = arith.constant 0 : i32
    return %arg0, %c0_i32 : i32, i32
  }
  func.func @transform_1(%arg0: i32) -> (i32, i32) {
    %c0_i32 = arith.constant 0 : i32
    %c0_i32_0 = arith.constant 0 : i32
    %c0_i32_1 = arith.constant 0 : i32
    return %c0_i32, %c0_i32_0 : i32, i32
  }
  func.func @transform_2(%arg0: i32) -> (i32, i32) {
    %c0_i32 = arith.constant 0 : i32
    %c0_i32_0 = arith.constant 0 : i32
    %c0_i32_1 = arith.constant 0 : i32
    return %c0_i32, %c0_i32_0 : i32, i32
  }
  func.func @transform_3(%arg0: i32) -> (i32, i32) {
    %c0_i32 = arith.constant 0 : i32
    %c0_i32_0 = arith.constant 0 : i32
    %c0_i32_1 = arith.constant 0 : i32
    return %c0_i32, %c0_i32_0 : i32, i32
  }
  func.func @transform_4(%arg0: i32) -> (i32, i32) {
    %c0_i32 = arith.constant 0 : i32
    %c0_i32_0 = arith.constant 0 : i32
    %c0_i32_1 = arith.constant 0 : i32
    return %c0_i32, %c0_i32_0 : i32, i32
  }
  func.func @transform_5(%arg0: i32) -> (i32, i32, i32) {
    %c0_i32 = arith.constant 0 : i32
    %c0_i32_0 = arith.constant 0 : i32
    %c0_i32_1 = arith.constant 0 : i32
    %c0_i32_2 = arith.constant 0 : i32
    return %c0_i32, %c0_i32_0, %c0_i32_1 : i32, i32, i32
  }
  func.func @transform_6(%arg0: i32) -> (i32, i32, i32) {
    %c0_i32 = arith.constant 0 : i32
    %c0_i32_0 = arith.constant 0 : i32
    %c0_i32_1 = arith.constant 0 : i32
    %c0_i32_2 = arith.constant 0 : i32
    return %c0_i32, %c0_i32_0, %c0_i32_1 : i32, i32, i32
  }
  func.func @transform_7(%arg0: i32) -> (i32, i32) {
    %c0_i32 = arith.constant 0 : i32
    %c0_i32_0 = arith.constant 0 : i32
    %c0_i32_1 = arith.constant 0 : i32
    return %c0_i32, %c0_i32_0 : i32, i32
  }
  func.func @transform_8(%arg0: i32) -> (i32, i32) {
    %c0_i32 = arith.constant 0 : i32
    %c0_i32_0 = arith.constant 0 : i32
    %c0_i32_1 = arith.constant 0 : i32
    return %c0_i32, %c0_i32_0 : i32, i32
  }
  func.func @transform_9(%arg0: i32) -> (i32, i32) {
    %c0_i32 = arith.constant 0 : i32
    %c0_i32_0 = arith.constant 0 : i32
    %c0_i32_1 = arith.constant 0 : i32
    return %c0_i32, %c0_i32_0 : i32, i32
  }
  func.func @transform_10(%arg0: i32) -> (i32, i32, i32) {
    %c0_i32 = arith.constant 0 : i32
    %c0_i32_0 = arith.constant 0 : i32
    %c0_i32_1 = arith.constant 0 : i32
    %c0_i32_2 = arith.constant 0 : i32
    return %c0_i32, %c0_i32_0, %c0_i32_1 : i32, i32, i32
  }
  func.func @transform_11(%arg0: i32) -> (i32, i32) {
    %c0_i32 = arith.constant 0 : i32
    %c0_i32_0 = arith.constant 0 : i32
    %c0_i32_1 = arith.constant 0 : i32
    return %c0_i32, %c0_i32_0 : i32, i32
  }
  func.func @transform_12(%arg0: i32) -> (i32, i32, i32) {
    %c0_i32 = arith.constant 0 : i32
    %c0_i32_0 = arith.constant 0 : i32
    %c0_i32_1 = arith.constant 0 : i32
    %c0_i32_2 = arith.constant 0 : i32
    return %c0_i32, %c0_i32_0, %c0_i32_1 : i32, i32, i32
  }
  func.func @transform_13(%arg0: i32) -> (i32, i32) {
    %c0_i32 = arith.constant 0 : i32
    %c0_i32_0 = arith.constant 0 : i32
    %c0_i32_1 = arith.constant 0 : i32
    return %c0_i32, %c0_i32_0 : i32, i32
  }
  func.func @transform_14(%arg0: i32) -> (i32, i32) {
    %c0_i32 = arith.constant 0 : i32
    %c0_i32_0 = arith.constant 0 : i32
    %c0_i32_1 = arith.constant 0 : i32
    return %c0_i32, %c0_i32_0 : i32, i32
  }
  func.func @transform_15(%arg0: i32) -> (i32, i32) {
    %c0_i32 = arith.constant 0 : i32
    %c0_i32_0 = arith.constant 0 : i32
    %c0_i32_1 = arith.constant 0 : i32
    return %c0_i32, %c0_i32_0 : i32, i32
  }
  func.func @transform_16(%arg0: i32) -> (i32, i32) {
    %c0_i32 = arith.constant 0 : i32
    %c0_i32_0 = arith.constant 0 : i32
    %c0_i32_1 = arith.constant 0 : i32
    return %c0_i32, %c0_i32_0 : i32, i32
  }
  func.func @transform_17(%arg0: i32) -> (i32, i32) {
    %c0_i32 = arith.constant 0 : i32
    %c0_i32_0 = arith.constant 0 : i32
    %c0_i32_1 = arith.constant 0 : i32
    return %c0_i32, %c0_i32_0 : i32, i32
  }
  func.func @transform_18(%arg0: i32) -> (i32, i32) {
    %c0_i32 = arith.constant 0 : i32
    %c0_i32_0 = arith.constant 0 : i32
    return %arg0, %c0_i32 : i32, i32
  }
  func.func @transform_19(%arg0: i32) -> (i32, i32, i32, i32, i32) {
    %c0_i32 = arith.constant 0 : i32
    %c0_i32_0 = arith.constant 0 : i32
    %c0_i32_1 = arith.constant 0 : i32
    %c0_i32_2 = arith.constant 0 : i32
    %c0_i32_3 = arith.constant 0 : i32
    return %arg0, %c0_i32, %c0_i32_0, %c0_i32_1, %c0_i32_2 : i32, i32, i32, i32, i32
  }
}

</mosaic_0001>

<bundles_post_ra>
// kernel: _gpt_forward_jit.1
= control target key start
LH: loop header
LB: loop body
LE: loop exit
PB: predicated region body
PF: predicated region fallthrough
CT: control target
= control target key end

     0   :  { %v30379_v0 = vmov 0   ;;  %vm242_vm0 = vcmask 1042432   ;;  %v36924_v11 = vmov 0.0   ;;  %v77_v20 = vlaneseq  ;;  %s30382_s24 = smov 112   ;;  %s30383_s25 = smov 96   ;;  %s36900_s0 = inlined_call_operand.vmem [shape: s32[128,1], index: 0, kind: input, shape index: {}]   ;;  %s36901_s1 = inlined_call_operand.vmem [shape: f32[11,16], index: 1, kind: input, shape index: {}]   ;;  %s36902_s2 = inlined_call_operand.vmem [shape: f32[128,16], index: 2, kind: input, shape index: {}]   ;;  %s36903_s5 = inlined_call_operand.vmem [shape: f32[2,16,48], index: 5, kind: input, shape index: {}]   ;;  %s36904_s3 = inlined_call_operand.vmem [shape: f32[2,16], index: 3, kind: input, shape index: {}]   ;;  %s36905_s4 = inlined_call_operand.vmem [shape: f32[2,16], index: 4, kind: input, shape index: {}]   ;;  %s36906_s19 = inlined_call_operand.vmem [shape: f32[1,8,16,8,8], index: 19, kind: output, shape index: {1}]   ;;  %s36907_s6 = inlined_call_operand.vmem [shape: f32[2,16,16], index: 6, kind: input, shape index: {}]   ;;  %s36908_s7 = inlined_call_operand.vmem [shape: f32[2,16], index: 7, kind: input, shape index: {}]   ;;  %s36909_s10 = inlined_call_operand.vmem [shape: f32[2,16,64], index: 10, kind: input, shape index: {}]   ;;  %s36910_s8 = inlined_call_operand.vmem [shape: f32[2,16], index: 8, kind: input, shape index: {}]   ;;  %s36911_s9 = inlined_call_operand.vmem [shape: f32[2,16], index: 9, kind: input, shape index: {}]   ;;  %s36912_s12 = inlined_call_operand.vmem [shape: f32[2,64,16], index: 12, kind: input, shape index: {}]   ;;  %s36913_s11 = inlined_call_operand.vmem [shape: f32[2,64], index: 11, kind: input, shape index: {}]   ;;  %s36914_s13 = inlined_call_operand.vmem [shape: f32[2,16], index: 13, kind: input, shape index: {}]   ;;  %s36915_s16 = inlined_call_operand.vmem [shape: f32[16,128], index: 16, kind: input, shape index: {}]   ;;  %s36916_s14 = inlined_call_operand.vmem [shape: f32[1,16], index: 14, kind: input, shape index: {}]   ;;  %s36917_s15 = inlined_call_operand.vmem [shape: f32[1,16], index: 15, kind: input, shape index: {}]   ;;  %s36918_s17 = inlined_call_operand.vmem [shape: f32[1,128], index: 17, kind: input, shape index: {}]   ;;  %s36919_s18 = inlined_call_operand.vmem [shape: f32[128,128], index: 18, kind: output, shape index: {0}]  }
   0x1   :  { %36980 = sst [smem:[#allocation32_spill]] %s36900_s0  ;;  %29704 = vset.pattern.permute.xlu1 %v30379_v0  ;;  %29703 = vset.pattern.permute.xlu0 %v30379_v0  ;;  %vm193_vm1 = vcmask 89088   ;;  %s30388_s29 = smov 104  }
   0x2   :  { %36981 = sst [smem:[#allocation33_spill]] %s36901_s1  ;;  %v30550_v21 = vand.u32 127, %v77_v20  ;;  %s36962_s30 = smov 120  }
   0x3   :  { %36982 = sst [smem:[#allocation34_spill]] %s36902_s2  ;;  %s36958_s28 = smov 88  }
   0x4   :  { %36983 = sst [smem:[#allocation35_spill]] %s36903_s5  ;;  %s30385_s5 = smov 124  }
   0x5   :  { %s36984_s20 = sld [smem:[#allocation32_spill]]  ;;  %s36956_s22 = smov 100  }
   0x6   :  { %s36985_s26 = sld [smem:[#allocation33_spill]]  ;;  %s36954_s2 = smov 116  }
   0x7   :  { %s37003_s0 = sld [smem:[#allocation35_spill]]  ;;  %s37093_s27 = smov 100  }
   0x8   :  { %s37094_s21 = smov 116   ;;  %s37101_s23 = smov 84  }
   0xb   :  { %v63_v1 = vld [vmem:[%s36984_s20 + $0x10] sm:$0xff]  ;;  %v61_v2 = vld [vmem:[%s36984_s20] sm:$0xff]  ;;  %v64_v3 = vld [vmem:[%s36984_s20 + $0x18] sm:$0xff] }
   0xc   :  { %86 = vperm.xlu1 %29704, %v63_v1   ;;  %80 = vperm.xlu0 %29703, %v61_v2   ;;  %v62_v4 = vld [vmem:[%s36984_s20 + $0x8] sm:$0xff]  ;;  %v175_v6 = vld [vmem:[%s36985_s26] sm:$0xff]  ;;  %v68_v9 = vld [vmem:[%s36984_s20 + $0x38] sm:$0xff] }
   0xd   :  { %v176_v5 = vld [vmem:[%s36985_s26 + $0x8] sm:$0x7]  ;;  %v65_v8 = vld [vmem:[%s36984_s20 + $0x20] sm:$0xff]  ;;  %v67_v10 = vld [vmem:[%s36984_s20 + $0x30] sm:$0xff]  ;;  %s36986_s26 = sld [smem:[#allocation34_spill]] }
   0xe   :  { %v66_v7 = vld [vmem:[%s36984_s20 + $0x28] sm:$0xff]  ;;  %27952 = vmatprep.subr.msk.mxu0 %vm242_vm0, %v176_v5  ;;  %v69_v13 = vld [vmem:[%s36984_s20 + $0x40] sm:$0xff]  ;;  %v72_v14 = vld [vmem:[%s36984_s20 + $0x58] sm:$0xff] }
   0xf   :  { %27953 = vmatpush3.msk.msra.mxu0 %vm242_vm0, %v176_v5  ;;  %v70_v12 = vld [vmem:[%s36984_s20 + $0x48] sm:$0xff]  ;;  %v71_v15 = vld [vmem:[%s36984_s20 + $0x50] sm:$0xff]  ;;  %v73_v17 = vld [vmem:[%s36984_s20 + $0x60] sm:$0xff] }
  0x10   :  { %89 = vperm.xlu1 %29704, %v64_v3   ;;  %83 = vperm.xlu0 %29703, %v62_v4   ;;  %v74_v16 = vld [vmem:[%s36984_s20 + $0x68] sm:$0xff]  ;;  %v76_v18 = vld [vmem:[%s36984_s20 + $0x78] sm:$0xff]  ;;  %v75_v19 = vld [vmem:[%s36984_s20 + $0x70] sm:$0xff]  ;;  %s30384_s20 = smov 108  }
  0x11   :  { %27954 = vmatprep.subr.mxu0 %v175_v6 }
  0x12   :  { %27955 = vmatpush3.msra.mxu0 %v175_v6 }
  0x13   :  { %28008 = vmatprep.subr.mxu0 %v36924_v11  ;;  %v178_v54 = vld [vmem:[%s36986_s26 + $0x8] sm:$0xff]  ;;  %v177_v56 = vld [vmem:[%s36986_s26] sm:$0xff]  ;;  %v179_v62 = vld [vmem:[%s36986_s26 + $0x10] sm:$0xff] }
  0x14   :  { %95 = vperm.xlu1 %29704, %v66_v7   ;;  %92 = vperm.xlu0 %29703, %v65_v8   ;;  %v180_v0 = vld [vmem:[%s36986_s26 + $0x18] sm:$0xff]  ;;  %v181_v4 = vld [vmem:[%s36986_s26 + $0x20] sm:$0xff]  ;;  %v182_v7 = vld [vmem:[%s36986_s26 + $0x28] sm:$0xff] }
  0x18   :  { %101 = vperm.xlu1 %29704, %v68_v9   ;;  %98 = vperm.xlu0 %29703, %v67_v10  }
  0x1c   :  { %107 = vperm.xlu1 %29704, %v70_v12   ;;  %104 = vperm.xlu0 %29703, %v69_v13   ;;  %v183_v12 = vld [vmem:[%s36986_s26 + $0x30] sm:$0xff] }
  0x20   :  { %113 = vperm.xlu1 %29704, %v72_v14   ;;  %110 = vperm.xlu0 %29703, %v71_v15  }
  0x24   :  { %119 = vperm.xlu1 %29704, %v74_v16   ;;  %116 = vperm.xlu0 %29703, %v73_v17   ;;  %v184_v16 = vld [vmem:[%s36986_s26 + $0x38] sm:$0xff] }
  0x28   :  { %125 = vperm.xlu1 %29704, %v76_v18   ;;  %122 = vperm.xlu0 %29703, %v75_v19  }
  0x87   :  { %v87_v22 = vpop.permute.xlu1 %86  ;;  %v81_v23 = vpop.permute.xlu0 %80 }
  0x88   :  { %vm127_vm2 = vcmp.eq.s32.totalorder %v81_v23, %v30550_v21  ;;  %vm129_vm3 = vcmp.eq.s32.totalorder %v87_v22, %v30550_v21  ;;  %v185_v22 = vld [vmem:[%s36986_s26 + $0x40] sm:$0xff] }
  0x89   :  { %v26340_v24 = vsel %vm127_vm2, 1.0, %v36924_v11  ;;  %v26342_v27 = vsel %vm129_vm3, 1.0, %v36924_v11  ;;  %vm397_vm3 = vcmask 130048  }
  0x8a   :  { %27956 = vmatprep.mubr.msk.f32.mxu0 %vm193_vm1, %v26340_v24 }
  0x8b   :  { %v90_v25 = vpop.permute.xlu1 %89  ;;  %v84_v26 = vpop.permute.xlu0 %83 }
  0x8c   :  { %vm128_vm4 = vcmp.eq.s32.totalorder %v84_v26, %v30550_v21  ;;  %vm130_vm5 = vcmp.eq.s32.totalorder %v90_v25, %v30550_v21  ;;  %v186_v26 = vld [vmem:[%s36986_s26 + $0x48] sm:$0xff] }
  0x8d   :  { %v26341_v28 = vsel %vm128_vm4, 1.0, %v36924_v11  ;;  %v26343_v31 = vsel %vm130_vm5, 1.0, %v36924_v11  ;;  %vm847_vm4 = vcmask 31744  }
  0x8e   :  { %27957 = vmatmul.mubr.msk.f32.vlgmr.msra.gmra.mxu0 %vm193_vm1, %v26341_v28 }
  0x8f   :  { %v96_v29 = vpop.permute.xlu1 %95  ;;  %27959 = vmatprep.mubr.msk.f32.mxu0 %vm193_vm1, %v26342_v27  ;;  %v93_v30 = vpop.permute.xlu0 %92 }
  0x90   :  { %vm131_vm6 = vcmp.eq.s32.totalorder %v93_v30, %v30550_v21  ;;  %vm132_vm7 = vcmp.eq.s32.totalorder %v96_v29, %v30550_v21  ;;  %v187_v30 = vld [vmem:[%s36986_s26 + $0x50] sm:$0xff] }
  0x91   :  { %v26344_v32 = vsel %vm131_vm6, 1.0, %v36924_v11  ;;  %v26345_v35 = vsel %vm132_vm7, 1.0, %v36924_v11  ;;  %vm2109_vm6 = vcmask 64512   ;;  %vm6257_vm7 = vcmask 1043456  }
  0x92   :  { %27960 = vmatmul.mubr.msk.f32.gmra.mxu0 %vm193_vm1, %v26343_v31 }
  0x93   :  { %v102_v33 = vpop.permute.xlu1 %101  ;;  %27962 = vmatprep.mubr.msk.f32.mxu0 %vm193_vm1, %v26344_v32  ;;  %v99_v34 = vpop.permute.xlu0 %98 }
  0x94   :  { %vm133_vm8 = vcmp.eq.s32.totalorder %v99_v34, %v30550_v21  ;;  %vm134_vm9 = vcmp.eq.s32.totalorder %v102_v33, %v30550_v21  ;;  %v188_v34 = vld [vmem:[%s36986_s26 + $0x58] sm:$0xff] }
  0x95   :  { %v26346_v36 = vsel %vm133_vm8, 1.0, %v36924_v11  ;;  %v26347_v39 = vsel %vm134_vm9, 1.0, %v36924_v11  ;;  %vm12918_vm8 = vcmask 523264  }
  0x96   :  { %27963 = vmatmul.mubr.msk.f32.gmra.mxu0 %vm193_vm1, %v26345_v35 }
  0x97   :  { %v108_v37 = vpop.permute.xlu1 %107  ;;  %27965 = vmatprep.mubr.msk.f32.mxu0 %vm193_vm1, %v26346_v36  ;;  %v105_v38 = vpop.permute.xlu0 %104 }
  0x98   :  { %vm135_vm10 = vcmp.eq.s32.totalorder %v105_v38, %v30550_v21  ;;  %vm136_vm11 = vcmp.eq.s32.totalorder %v108_v37, %v30550_v21  ;;  %v189_v38 = vld [vmem:[%s36986_s26 + $0x60] sm:$0xff] }
  0x99   :  { %v26348_v40 = vsel %vm135_vm10, 1.0, %v36924_v11  ;;  %v26349_v43 = vsel %vm136_vm11, 1.0, %v36924_v11 }
  0x9a   :  { %27966 = vmatmul.mubr.msk.f32.gmra.mxu0 %vm193_vm1, %v26347_v39 }
  0x9b   :  { %v114_v41 = vpop.permute.xlu1 %113  ;;  %27968 = vmatprep.mubr.msk.f32.mxu0 %vm193_vm1, %v26348_v40  ;;  %v111_v42 = vpop.permute.xlu0 %110 }
  0x9c   :  { %vm137_vm12 = vcmp.eq.s32.totalorder %v111_v42, %v30550_v21  ;;  %vm138_vm13 = vcmp.eq.s32.totalorder %v114_v41, %v30550_v21  ;;  %v190_v42 = vld [vmem:[%s36986_s26 + $0x68] sm:$0xff] }
  0x9d   :  { %v26350_v44 = vsel %vm137_vm12, 1.0, %v36924_v11  ;;  %v26351_v47 = vsel %vm138_vm13, 1.0, %v36924_v11 }
  0x9e   :  { %27969 = vmatmul.mubr.msk.f32.gmra.mxu0 %vm193_vm1, %v26349_v43 }
  0x9f   :  { %v120_v45 = vpop.permute.xlu1 %119  ;;  %27971 = vmatprep.mubr.msk.f32.mxu0 %vm193_vm1, %v26350_v44  ;;  %v117_v46 = vpop.permute.xlu0 %116 }
  0xa0   :  { %vm139_vm14 = vcmp.eq.s32.totalorder %v117_v46, %v30550_v21  ;;  %vm140_vm15 = vcmp.eq.s32.totalorder %v120_v45, %v30550_v21  ;;  %v191_v46 = vld [vmem:[%s36986_s26 + $0x70] sm:$0xff] }
  0xa1   :  { %v26352_v48 = vsel %vm139_vm14, 1.0, %v36924_v11  ;;  %v26353_v51 = vsel %vm140_vm15, 1.0, %v36924_v11 }
  0xa2   :  { %27972 = vmatmul.mubr.msk.f32.gmra.mxu0 %vm193_vm1, %v26351_v47 }
  0xa3   :  { %v126_v49 = vpop.permute.xlu1 %125  ;;  %27974 = vmatprep.mubr.msk.f32.mxu0 %vm193_vm1, %v26352_v48  ;;  %v123_v50 = vpop.permute.xlu0 %122 }
  0xa4   :  { %vm141_vm0 = vcmp.eq.s32.totalorder %v123_v50, %v30550_v21  ;;  %vm142_vm2 = vcmp.eq.s32.totalorder %v126_v49, %v30550_v21  ;;  %v192_v50 = vld [vmem:[%s36986_s26 + $0x78] sm:$0xff]  ;;  %s30387_s26 = smov 92  }
  0xa5   :  { %v26354_v52 = vsel %vm141_vm0, 1.0, %v36924_v11  ;;  %v26355_v53 = vsel %vm142_vm2, 1.0, %v36924_v11 }
  0xa6   :  { %27975 = vmatmul.mubr.msk.f32.gmra.mxu0 %vm193_vm1, %v26353_v51 }
  0xa7   :  { %27977 = vmatprep.mubr.msk.f32.mxu0 %vm193_vm1, %v26354_v52 }
  0xaa   :  { %27978 = vmatmul.mubr.msk.f32.gmra.mxu0 %vm193_vm1, %v26355_v53  ;;  %vm30381_vm1 = vmmov 0  }
  0xab   :  { %28010 = vmatprep.mubr.msk.f32.mxu0 %vm30381_vm1, %v36924_v11 }
 0x14e   :  { %v27958_v55 = vpop.f32.mrf.mxu0 }
 0x14f   :  { %v30606_v57 = vadd.f32 %v27958_v55, %v178_v54 }
 0x150   :  { %v312_v58 = vpop.f32.mrf.mxu0 }
 0x151   :  { %36987 = vst [vmem:[#allocation2_spill] sm:$0xff] %v30606_v57  ;;  %v30608_v59 = vadd.f32 %v312_v58, %v177_v56  ;;  %v401_v60 = vsel %vm397_vm3, %v30606_v57, 0.0 }
 0x152   :  { %402 = vadd.xlane.f32.xlu1 %v401_v60  ;;  %v27961_v61 = vpop.f32.mrf.mxu0 }
 0x153   :  { %36988 = vst [vmem:[#allocation3_spill] sm:$0xff] %v30608_v59  ;;  %v398_v63 = vsel %vm397_vm3, %v30608_v59, 0.0  ;;  %v30625_v5 = vadd.f32 %v27961_v61, %v180_v0 }
 0x154   :  { %v322_v1 = vpop.f32.mrf.mxu0  ;;  %399 = vadd.xlane.f32.xlu0 %v398_v63 }
 0x155   :  { %v30620_v2 = vadd.f32 %v322_v1, %v179_v62  ;;  %36990 = vst [vmem:[#allocation5_spill] sm:$0xff] %v30625_v5  ;;  %v407_v14 = vsel %vm397_vm3, %v30625_v5, 0.0 }
 0x156   :  { %v27964_v3 = vpop.f32.mrf.mxu0 }
 0x157   :  { %36989 = vst [vmem:[#allocation4_spill] sm:$0xff] %v30620_v2  ;;  %v404_v6 = vsel %vm397_vm3, %v30620_v2, 0.0  ;;  %v30637_v13 = vadd.f32 %v27964_v3, %v182_v7 }
 0x158   :  { %405 = vadd.xlane.f32.xlu0 %v404_v6  ;;  %v332_v8 = vpop.f32.mrf.mxu0 }
 0x159   :  { %v30632_v9 = vadd.f32 %v332_v8, %v181_v4  ;;  %36992 = vst [vmem:[#allocation7_spill] sm:$0xff] %v30637_v13  ;;  %v413_v24 = vsel %vm397_vm3, %v30637_v13, 0.0 }
 0x15a   :  { %v27967_v10 = vpop.f32.mrf.mxu0 }
 0x15b   :  { %36991 = vst [vmem:[#allocation6_spill] sm:$0xff] %v30632_v9  ;;  %v410_v15 = vsel %vm397_vm3, %v30632_v9, 0.0  ;;  %v30651_v23 = vadd.f32 %v27967_v10, %v184_v16 }
 0x15c   :  { %408 = vadd.xlane.f32.xlu0 %v407_v14  ;;  %411 = vadd.xlane.f32.xlu1 %v410_v15  ;;  %v342_v17 = vpop.f32.mrf.mxu0 }
 0x15d   :  { %v30646_v18 = vadd.f32 %v342_v17, %v183_v12  ;;  %36994 = vst [vmem:[#allocation9_spill] sm:$0xff] %v30651_v23  ;;  %v419_v32 = vsel %vm397_vm3, %v30651_v23, 0.0 }
 0x15e   :  { %v27970_v19 = vpop.f32.mrf.mxu0 }
 0x15f   :  { %36993 = vst [vmem:[#allocation8_spill] sm:$0xff] %v30646_v18  ;;  %v416_v25 = vsel %vm397_vm3, %v30646_v18, 0.0  ;;  %v30665_v31 = vadd.f32 %v27970_v19, %v186_v26 }
 0x160   :  { %414 = vadd.xlane.f32.xlu0 %v413_v24  ;;  %417 = vadd.xlane.f32.xlu1 %v416_v25  ;;  %v352_v27 = vpop.f32.mrf.mxu0 }
 0x161   :  { %v30660_v28 = vadd.f32 %v352_v27, %v185_v22  ;;  %36996 = vst [vmem:[#allocation11_spill] sm:$0xff] %v30665_v31  ;;  %v425_v40 = vsel %vm397_vm3, %v30665_v31, 0.0 }
 0x162   :  { %v27973_v29 = vpop.f32.mrf.mxu0 }
 0x163   :  { %36995 = vst [vmem:[#allocation10_spill] sm:$0xff] %v30660_v28  ;;  %v422_v33 = vsel %vm397_vm3, %v30660_v28, 0.0  ;;  %v30679_v39 = vadd.f32 %v27973_v29, %v188_v34 }
 0x164   :  { %420 = vadd.xlane.f32.xlu0 %v419_v32  ;;  %423 = vadd.xlane.f32.xlu1 %v422_v33  ;;  %v362_v35 = vpop.f32.mrf.mxu0 }
 0x165   :  { %v30674_v36 = vadd.f32 %v362_v35, %v187_v30  ;;  %36998 = vst [vmem:[#allocation13_spill] sm:$0xff] %v30679_v39  ;;  %v431_v48 = vsel %vm397_vm3, %v30679_v39, 0.0 }
 0x166   :  { %v27976_v37 = vpop.f32.mrf.mxu0 }
 0x167   :  { %36997 = vst [vmem:[#allocation12_spill] sm:$0xff] %v30674_v36  ;;  %v428_v41 = vsel %vm397_vm3, %v30674_v36, 0.0  ;;  %v30693_v47 = vadd.f32 %v27976_v37, %v190_v42 }
 0x168   :  { %426 = vadd.xlane.f32.xlu0 %v425_v40  ;;  %429 = vadd.xlane.f32.xlu1 %v428_v41  ;;  %v372_v43 = vpop.f32.mrf.mxu0 }
 0x169   :  { %v30688_v44 = vadd.f32 %v372_v43, %v189_v38  ;;  %37000 = vst [vmem:[#allocation15_spill] sm:$0xff] %v30693_v47  ;;  %v437_v54 = vsel %vm397_vm3, %v30693_v47, 0.0 }
 0x16a   :  { %v27979_v45 = vpop.f32.mrf.mxu0 }
 0x16b   :  { %36999 = vst [vmem:[#allocation14_spill] sm:$0xff] %v30688_v44  ;;  %v434_v49 = vsel %vm397_vm3, %v30688_v44, 0.0  ;;  %v30704_v53 = vadd.f32 %v27979_v45, %v192_v50 }
 0x16c   :  { %432 = vadd.xlane.f32.xlu0 %v431_v48  ;;  %435 = vadd.xlane.f32.xlu1 %v434_v49  ;;  %v382_v51 = vpop.f32.mrf.mxu0 }
 0x16d   :  { %v30702_v52 = vadd.f32 %v382_v51, %v191_v46  ;;  %37002 = vst [vmem:[#allocation17_spill] sm:$0xff] %v30704_v53  ;;  %v443_v56 = vsel %vm397_vm3, %v30704_v53, 0.0 }
 0x16f   :  { %37001 = vst [vmem:[#allocation16_spill] sm:$0xff] %v30702_v52  ;;  %v440_v55 = vsel %vm397_vm3, %v30702_v52, 0.0 }
 0x170   :  { %438 = vadd.xlane.f32.xlu0 %v437_v54  ;;  %441 = vadd.xlane.f32.xlu1 %v440_v55 }
 0x174   :  { %444 = vadd.xlane.f32.xlu0 %v443_v56 }
 0x1db   :  { %v403_v58 = vpop.xlane.xlu1 %402 }
 0x1dc   :  { %v448_v60 = vmul.f32 0.0625, %v403_v58 }
 0x1dd   :  { %v400_v61 = vpop.xlane.xlu0 %399 }
 0x1de   :  { %v30713_v62 = vsub.f32 %v30606_v57, %v448_v60  ;;  %v447_v63 = vmul.f32 0.0625, %v400_v61 }
 0x1e0   :  { %v30716_v0 = vsub.f32 %v30608_v59, %v447_v63  ;;  %v480_v1 = vmul.f32 %v30713_v62, %v30713_v62 }
 0x1e1   :  { %v406_v3 = vpop.xlane.xlu0 %405 }
 0x1e2   :  { %v449_v4 = vmul.f32 0.0625, %v406_v3  ;;  %v498_v6 = vsel %vm397_vm3, %v480_v1, 0.0  ;;  %v479_v7 = vmul.f32 %v30716_v0, %v30716_v0 }
 0x1e3   :  { %499 = vadd.xlane.f32.xlu0 %v498_v6 }
 0x1e4   :  { %v30724_v8 = vsub.f32 %v30620_v2, %v449_v4  ;;  %v495_v10 = vsel %vm397_vm3, %v479_v7, 0.0 }
 0x1e5   :  { %v412_v12 = vpop.xlane.xlu1 %411  ;;  %496 = vadd.xlane.f32.xlu1 %v495_v10  ;;  %v409_v14 = vpop.xlane.xlu0 %408 }
 0x1e6   :  { %v451_v15 = vmul.f32 0.0625, %v412_v12  ;;  %v450_v16 = vmul.f32 0.0625, %v409_v14  ;;  %v481_v17 = vmul.f32 %v30724_v8, %v30724_v8 }
 0x1e8   :  { %v30730_v19 = vsub.f32 %v30632_v9, %v451_v15  ;;  %v30733_v22 = vsub.f32 %v30625_v5, %v450_v16  ;;  %v501_v24 = vsel %vm397_vm3, %v481_v17, 0.0 }
 0x1e9   :  { %v418_v25 = vpop.xlane.xlu1 %417  ;;  %502 = vadd.xlane.f32.xlu1 %v501_v24  ;;  %v415_v26 = vpop.xlane.xlu0 %414 }
 0x1ea   :  { %v453_v27 = vmul.f32 0.0625, %v418_v25  ;;  %v452_v29 = vmul.f32 0.0625, %v415_v26  ;;  %v483_v30 = vmul.f32 %v30730_v19, %v30730_v19  ;;  %v482_v32 = vmul.f32 %v30733_v22, %v30733_v22 }
 0x1ec   :  { %v30741_v33 = vsub.f32 %v30646_v18, %v453_v27  ;;  %v30744_v34 = vsub.f32 %v30637_v13, %v452_v29  ;;  %v507_v35 = vsel %vm397_vm3, %v483_v30, 0.0  ;;  %v504_v37 = vsel %vm397_vm3, %v482_v32, 0.0 }
 0x1ed   :  { %v424_v38 = vpop.xlane.xlu1 %423  ;;  %508 = vadd.xlane.f32.xlu1 %v507_v35  ;;  %505 = vadd.xlane.f32.xlu0 %v504_v37  ;;  %v421_v40 = vpop.xlane.xlu0 %420 }
 0x1ee   :  { %v455_v41 = vmul.f32 0.0625, %v424_v38  ;;  %v454_v42 = vmul.f32 0.0625, %v421_v40  ;;  %v485_v43 = vmul.f32 %v30741_v33, %v30741_v33  ;;  %v484_v45 = vmul.f32 %v30744_v34, %v30744_v34 }
 0x1f0   :  { %v30753_v46 = vsub.f32 %v30660_v28, %v455_v41  ;;  %v30756_v48 = vsub.f32 %v30651_v23, %v454_v42  ;;  %v513_v49 = vsel %vm397_vm3, %v485_v43, 0.0  ;;  %v510_v50 = vsel %vm397_vm3, %v484_v45, 0.0 }
 0x1f1   :  { %v430_v51 = vpop.xlane.xlu1 %429  ;;  %514 = vadd.xlane.f32.xlu1 %v513_v49  ;;  %511 = vadd.xlane.f32.xlu0 %v510_v50  ;;  %v427_v54 = vpop.xlane.xlu0 %426 }
 0x1f2   :  { %v457_v55 = vmul.f32 0.0625, %v430_v51  ;;  %v456_v56 = vmul.f32 0.0625, %v427_v54  ;;  %v487_v58 = vmul.f32 %v30753_v46, %v30753_v46  ;;  %v486_v60 = vmul.f32 %v30756_v48, %v30756_v48 }
 0x1f4   :  { %v30765_v61 = vsub.f32 %v30674_v36, %v457_v55  ;;  %v30768_v63 = vsub.f32 %v30665_v31, %v456_v56  ;;  %v519_v1 = vsel %vm397_vm3, %v487_v58, 0.0  ;;  %v516_v3 = vsel %vm397_vm3, %v486_v60, 0.0  ;;  %v648_v56 = vld [vmem:[%s37003_s0 + $0x8] sm:$0xff]  ;;  %v647_v58 = vld [vmem:[%s37003_s0] sm:$0xff] }
 0x1f5   :  { %v436_v4 = vpop.xlane.xlu1 %435  ;;  %520 = vadd.xlane.f32.xlu1 %v519_v1  ;;  %517 = vadd.xlane.f32.xlu0 %v516_v3  ;;  %v433_v6 = vpop.xlane.xlu0 %432 }
 0x1f6   :  { %v459_v7 = vmul.f32 0.0625, %v436_v4  ;;  %v458_v10 = vmul.f32 0.0625, %v433_v6  ;;  %v489_v12 = vmul.f32 %v30765_v61, %v30765_v61  ;;  %v488_v14 = vmul.f32 %v30768_v63, %v30768_v63  ;;  %27980 = vmatprep.subr.mxu1 %v648_v56 }
 0x1f7   :  { %27981 = vmatpush3.msra.mxu1 %v648_v56 }
 0x1f8   :  { %v30777_v15 = vsub.f32 %v30688_v44, %v459_v7  ;;  %v30780_v16 = vsub.f32 %v30679_v39, %v458_v10  ;;  %v525_v17 = vsel %vm397_vm3, %v489_v12, 0.0  ;;  %v522_v24 = vsel %vm397_vm3, %v488_v14, 0.0  ;;  %27982 = vmatprep.subr.mxu1 %v647_v58 }
 0x1f9   :  { %v442_v25 = vpop.xlane.xlu1 %441  ;;  %526 = vadd.xlane.f32.xlu1 %v525_v17  ;;  %523 = vadd.xlane.f32.xlu0 %v522_v24  ;;  %v439_v26 = vpop.xlane.xlu0 %438 }
 0x1fa   :  { %v461_v27 = vmul.f32 0.0625, %v442_v25  ;;  %v460_v29 = vmul.f32 0.0625, %v439_v26  ;;  %v491_v30 = vmul.f32 %v30777_v15, %v30777_v15  ;;  %v490_v32 = vmul.f32 %v30780_v16, %v30780_v16  ;;  %27983 = vmatpush3.msra.mxu1 %v647_v58 }
 0x1fb   :  { %28013 = vmatprep.subr.mxu1 %v36924_v11 }
 0x1fc   :  { %v30789_v35 = vsub.f32 %v30702_v52, %v461_v27  ;;  %v30792_v37 = vsub.f32 %v30693_v47, %v460_v29  ;;  %v531_v38 = vsel %vm397_vm3, %v491_v30, 0.0  ;;  %v528_v40 = vsel %vm397_vm3, %v490_v32, 0.0 }
 0x1fd   :  { %532 = vadd.xlane.f32.xlu1 %v531_v38  ;;  %529 = vadd.xlane.f32.xlu0 %v528_v40  ;;  %v445_v41 = vpop.xlane.xlu0 %444 }
 0x1fe   :  { %v462_v42 = vmul.f32 0.0625, %v445_v41  ;;  %v493_v43 = vmul.f32 %v30789_v35, %v30789_v35  ;;  %v492_v45 = vmul.f32 %v30792_v37, %v30792_v37 }
 0x200   :  { %v30801_v49 = vsub.f32 %v30704_v53, %v462_v42  ;;  %v537_v50 = vsel %vm397_vm3, %v493_v43, 0.0  ;;  %v534_v51 = vsel %vm397_vm3, %v492_v45, 0.0 }
 0x201   :  { %538 = vadd.xlane.f32.xlu1 %v537_v50  ;;  %535 = vadd.xlane.f32.xlu0 %v534_v51 }
 0x202   :  { %v494_v54 = vmul.f32 %v30801_v49, %v30801_v49 }
 0x204   :  { %v540_v55 = vsel %vm397_vm3, %v494_v54, 0.0 }
 0x205   :  { %541 = vadd.xlane.f32.xlu0 %v540_v55  ;;  %v30818_v55 = vld [vmem:[%s36904_s3] ss:$0 sm:$0xff] }
 0x26c   :  { %v500_v60 = vpop.xlane.xlu0 %499 }
 0x26d   :  { %v544_v1 = vmul.f32 0.0625, %v500_v60 }
 0x26e   :  { %v497_v3 = vpop.xlane.xlu1 %496 }
 0x26f   :  { %v560_v4 = vadd.f32 1e-05, %v544_v1  ;;  %v543_v6 = vmul.f32 0.0625, %v497_v3 }
 0x271   :  { %29705 = vrsqrt.f32 %v560_v4  ;;  %v559_v7 = vadd.f32 1e-05, %v543_v6 }
 0x272   :  { %v503_v10 = vpop.xlane.xlu1 %502 }
 0x273   :  { %29707 = vrsqrt.f32 %v559_v7  ;;  %v545_v12 = vmul.f32 0.0625, %v503_v10 }
 0x275   :  { %v561_v14 = vadd.f32 1e-05, %v545_v12 }
 0x276   :  { %v509_v17 = vpop.xlane.xlu1 %508  ;;  %v506_v24 = vpop.xlane.xlu0 %505 }
 0x277   :  { %29709 = vrsqrt.f32 %v561_v14  ;;  %v547_v25 = vmul.f32 0.0625, %v509_v17  ;;  %v546_v26 = vmul.f32 0.0625, %v506_v24  ;;  %v30826_v14 = vld [vmem:[%s36905_s4] ss:$0 sm:$0xff] }
 0x279   :  { %v563_v27 = vadd.f32 1e-05, %v547_v25  ;;  %v562_v29 = vadd.f32 1e-05, %v546_v26 }
 0x27a   :  { %v515_v30 = vpop.xlane.xlu1 %514  ;;  %v512_v32 = vpop.xlane.xlu0 %511 }
 0x27b   :  { %29711 = vrsqrt.f32 %v563_v27  ;;  %v549_v38 = vmul.f32 0.0625, %v515_v30  ;;  %v548_v40 = vmul.f32 0.0625, %v512_v32 }
 0x27c   :  { %29713 = vrsqrt.f32 %v562_v29 }
 0x27d   :  { %v565_v41 = vadd.f32 1e-05, %v549_v38  ;;  %v564_v42 = vadd.f32 1e-05, %v548_v40 }
 0x27e   :  { %v29706_v43 = vpop.eup %29705  ;;  %v521_v45 = vpop.xlane.xlu1 %520 }
 0x27f   :  { %v518_v50 = vpop.xlane.xlu0 %517  ;;  %29715 = vrsqrt.f32 %v565_v41  ;;  %v551_v51 = vmul.f32 0.0625, %v521_v45  ;;  %v592_v56 = vmul.f32 %v29706_v43, %v30713_v62 }
 0x280   :  { %v550_v54 = vmul.f32 0.0625, %v518_v50  ;;  %v29708_v58 = vpop.eup %29707  ;;  %29717 = vrsqrt.f32 %v564_v42 }
 0x281   :  { %v567_v60 = vadd.f32 1e-05, %v551_v51  ;;  %v591_v3 = vmul.f32 %v29708_v58, %v30716_v0  ;;  %v612_v7 = vmul.f32 %v30818_v55, %v592_v56 }
 0x282   :  { %v566_v1 = vadd.f32 1e-05, %v550_v54  ;;  %v527_v4 = vpop.xlane.xlu1 %526 }
 0x283   :  { %v524_v6 = vpop.xlane.xlu0 %523  ;;  %29719 = vrsqrt.f32 %v567_v60  ;;  %v553_v10 = vmul.f32 0.0625, %v527_v4  ;;  %v611_v62 = vmul.f32 %v30818_v55, %v591_v3  ;;  %v632_v30 = vadd.f32 %v30826_v14, %v612_v7 }
 0x284   :  { %v552_v12 = vmul.f32 0.0625, %v524_v6  ;;  %v29710_v17 = vpop.eup %29709  ;;  %29721 = vrsqrt.f32 %v566_v1 }
 0x285   :  { %v569_v24 = vadd.f32 1e-05, %v553_v10  ;;  %v631_v0 = vadd.f32 %v30826_v14, %v611_v62  ;;  %v593_v26 = vmul.f32 %v29710_v17, %v30724_v8 }
 0x286   :  { %v568_v25 = vadd.f32 1e-05, %v552_v12  ;;  %v533_v27 = vpop.xlane.xlu1 %532 }
 0x287   :  { %v530_v29 = vpop.xlane.xlu0 %529  ;;  %29723 = vrsqrt.f32 %v569_v24  ;;  %v555_v32 = vmul.f32 0.0625, %v533_v27  ;;  %27984 = vmatprep.mubr.msk.f32.mxu1 %vm397_vm3, %v631_v0  ;;  %v613_v40 = vmul.f32 %v30818_v55, %v593_v26 }
 0x288   :  { %v554_v38 = vmul.f32 0.0625, %v530_v29  ;;  %v29712_v41 = vpop.eup %29711  ;;  %29725 = vrsqrt.f32 %v568_v25  ;;  %27985 = vmatmul.mubr.msk.f32.vlgmr.msra.gmra.mxu1 %vm397_vm3, %v632_v30 }
 0x289   :  { %v29714_v42 = vpop.eup %29713  ;;  %v571_v43 = vadd.f32 1e-05, %v555_v32  ;;  %v633_v8 = vadd.f32 %v30826_v14, %v613_v40  ;;  %v595_v50 = vmul.f32 %v29712_v41, %v30730_v19 }
 0x28a   :  { %v570_v45 = vadd.f32 1e-05, %v554_v38  ;;  %v539_v51 = vpop.xlane.xlu1 %538  ;;  %v594_v56 = vmul.f32 %v29714_v42, %v30733_v22 }
 0x28b   :  { %v536_v54 = vpop.xlane.xlu0 %535  ;;  %29727 = vrsqrt.f32 %v571_v43  ;;  %v557_v58 = vmul.f32 0.0625, %v539_v51  ;;  %27987 = vmatprep.mubr.msk.f32.mxu1 %vm397_vm3, %v633_v8  ;;  %v615_v1 = vmul.f32 %v30818_v55, %v595_v50 }
 0x28c   :  { %v556_v60 = vmul.f32 0.0625, %v536_v54  ;;  %v29716_v3 = vpop.eup %29715  ;;  %29729 = vrsqrt.f32 %v570_v45  ;;  %v614_v4 = vmul.f32 %v30818_v55, %v594_v56 }
 0x28d   :  { %v29718_v6 = vpop.eup %29717  ;;  %v573_v7 = vadd.f32 1e-05, %v557_v58  ;;  %v635_v19 = vadd.f32 %v30826_v14, %v615_v1  ;;  %v597_v12 = vmul.f32 %v29716_v3, %v30741_v33 }
 0x28e   :  { %v572_v10 = vadd.f32 1e-05, %v556_v60  ;;  %v634_v22 = vadd.f32 %v30826_v14, %v614_v4  ;;  %v596_v17 = vmul.f32 %v29718_v6, %v30744_v34 }
 0x28f   :  { %v542_v62 = vpop.xlane.xlu0 %541  ;;  %29731 = vrsqrt.f32 %v573_v7  ;;  %v617_v25 = vmul.f32 %v30818_v55, %v597_v12 }
 0x290   :  { %v558_v24 = vmul.f32 0.0625, %v542_v62  ;;  %v29720_v0 = vpop.eup %29719  ;;  %29733 = vrsqrt.f32 %v572_v10  ;;  %27988 = vmatmul.mubr.msk.f32.gmra.mxu1 %vm397_vm3, %v634_v22  ;;  %v616_v26 = vmul.f32 %v30818_v55, %v596_v17 }
 0x291   :  { %v29722_v27 = vpop.eup %29721  ;;  %27990 = vmatprep.mubr.msk.f32.mxu1 %vm397_vm3, %v635_v19  ;;  %v637_v33 = vadd.f32 %v30826_v14, %v617_v25  ;;  %v599_v30 = vmul.f32 %v29720_v0, %v30753_v46 }
 0x292   :  { %v574_v29 = vadd.f32 1e-05, %v558_v24  ;;  %v636_v34 = vadd.f32 %v30826_v14, %v616_v26  ;;  %v598_v32 = vmul.f32 %v29722_v27, %v30756_v48 }
 0x293   :  { %v619_v38 = vmul.f32 %v30818_v55, %v599_v30 }
 0x294   :  { %29735 = vrsqrt.f32 %v574_v29  ;;  %v29724_v40 = vpop.eup %29723  ;;  %27991 = vmatmul.mubr.msk.f32.gmra.mxu1 %vm397_vm3, %v636_v34  ;;  %v618_v41 = vmul.f32 %v30818_v55, %v598_v32 }
 0x295   :  { %v29726_v42 = vpop.eup %29725  ;;  %27993 = vmatprep.mubr.msk.f32.mxu1 %vm397_vm3, %v637_v33  ;;  %v639_v43 = vadd.f32 %v30826_v14, %v619_v38  ;;  %v601_v45 = vmul.f32 %v29724_v40, %v30765_v61 }
 0x296   :  { %v638_v46 = vadd.f32 %v30826_v14, %v618_v41  ;;  %v600_v8 = vmul.f32 %v29726_v42, %v30768_v63 }
 0x297   :  { %v621_v48 = vmul.f32 %v30818_v55, %v601_v45 }
 0x298   :  { %v29728_v50 = vpop.eup %29727  ;;  %27994 = vmatmul.mubr.msk.f32.gmra.mxu1 %vm397_vm3, %v638_v46  ;;  %v620_v51 = vmul.f32 %v30818_v55, %v600_v8 }
 0x299   :  { %v29730_v54 = vpop.eup %29729  ;;  %27996 = vmatprep.mubr.msk.f32.mxu1 %vm397_vm3, %v639_v43  ;;  %v641_v56 = vadd.f32 %v30826_v14, %v621_v48  ;;  %v603_v58 = vmul.f32 %v29728_v50, %v30777_v15 }
 0x29a   :  { %v640_v61 = vadd.f32 %v30826_v14, %v620_v51  ;;  %v602_v60 = vmul.f32 %v29730_v54, %v30780_v16 }
 0x29b   :  { %v623_v63 = vmul.f32 %v30818_v55, %v603_v58 }
 0x29c   :  { %v29732_v1 = vpop.eup %29731  ;;  %27997 = vmatmul.mubr.msk.f32.gmra.mxu1 %vm397_vm3, %v640_v61  ;;  %v622_v3 = vmul.f32 %v30818_v55, %v602_v60 }
 0x29d   :  { %v29734_v4 = vpop.eup %29733  ;;  %27999 = vmatprep.mubr.msk.f32.mxu1 %vm397_vm3, %v641_v56  ;;  %v643_v6 = vadd.f32 %v30826_v14, %v623_v63  ;;  %v605_v7 = vmul.f32 %v29732_v1, %v30789_v35 }
 0x29e   :  { %v642_v15 = vadd.f32 %v30826_v14, %v622_v3  ;;  %v604_v10 = vmul.f32 %v29734_v4, %v30792_v37 }
 0x29f   :  { %v625_v16 = vmul.f32 %v30818_v55, %v605_v7  ;;  %v392_v7 = vshrl.u32 %v77_v20, 7 }
 0x2a0   :  { %28000 = vmatmul.mubr.msk.f32.gmra.mxu1 %vm397_vm3, %v642_v15  ;;  %v624_v12 = vmul.f32 %v30818_v55, %v604_v10  ;;  %v30386_v15 = vmov -1e+30  }
 0x2a1   :  { %v29736_v19 = vpop.eup %29735  ;;  %28002 = vmatprep.mubr.msk.f32.mxu1 %vm397_vm3, %v643_v6  ;;  %v645_v62 = vadd.f32 %v30826_v14, %v625_v16  ;;  %vm393_vm5 = vcmp.le.s32.totalorder %v30550_v21, %v392_v7 }
 0x2a2   :  { %v606_v22 = vmul.f32 %v29736_v19, %v30801_v49  ;;  %v644_v17 = vadd.f32 %v30826_v14, %v624_v12  ;;  %v31107_v10 = vsel %vm393_vm5, 0.0, %v30386_v15 }
 0x2a4   :  { %v626_v35 = vmul.f32 %v30818_v55, %v606_v22  ;;  %28003 = vmatmul.mubr.msk.f32.gmra.mxu1 %vm397_vm3, %v644_v17 }
 0x2a5   :  { %28005 = vmatprep.mubr.msk.f32.mxu1 %vm397_vm3, %v645_v62 }
 0x2a6   :  { %v646_v37 = vadd.f32 %v30826_v14, %v626_v35 }
 0x2a8   :  { %28006 = vmatmul.mubr.msk.f32.gmra.mxu1 %vm397_vm3, %v646_v37 }
 0x2a9   :  { %28015 = vmatprep.mubr.msk.f32.mxu1 %vm30381_vm1, %v36924_v11 }
 0x348   :  { %v30893_v49 = vpop.f32.mrf.mxu1 }
 0x349   :  { %923 = vrot.lane.b32.xlu0 %v30893_v49, %s30382_s24 }
 0x34a   :  { %v30897_v55 = vpop.f32.mrf.mxu1 }
 0x34b   :  { %37004 = vst [vmem:[#allocation18_spill] sm:$0xff] %v30897_v55  ;;  %845 = vrot.lane.b32.xlu1 %v30897_v55, %s30382_s24 }
 0x350   :  { %v30901_v14 = vpop.f32.mrf.mxu1 }
 0x351   :  { %37005 = vst [vmem:[#allocation19_spill] sm:$0xff] %v30901_v14 }
 0x352   :  { %v30903_v24 = vpop.f32.mrf.mxu1 }
 0x353   :  { %37006 = vst [vmem:[#allocation20_spill] sm:$0xff] %v30903_v24  ;;  %1000 = vrot.lane.b32.xlu1 %v30903_v24, %s30382_s24 }
 0x354   :  { %v30907_v25 = vpop.f32.mrf.mxu1 }
 0x355   :  { %37007 = vst [vmem:[#allocation21_spill] sm:$0xff] %v30907_v25 }
 0x356   :  { %v30909_v0 = vpop.f32.mrf.mxu1 }
 0x357   :  { %37008 = vst [vmem:[#allocation22_spill] sm:$0xff] %v30909_v0  ;;  %1077 = vrot.lane.b32.xlu1 %v30901_v14, %s30382_s24  ;;  %1154 = vrot.lane.b32.xlu0 %v30909_v0, %s30382_s24 }
 0x358   :  { %v30915_v26 = vpop.f32.mrf.mxu1 }
 0x35a   :  { %v30917_v27 = vpop.f32.mrf.mxu1 }
 0x35b   :  { %37009 = vst [vmem:[#allocation23_spill] sm:$0xff] %v30917_v27  ;;  %1231 = vrot.lane.b32.xlu1 %v30907_v25, %s30382_s24  ;;  %1308 = vrot.lane.b32.xlu0 %v30917_v27, %s30382_s24 }
 0x35c   :  { %v30923_v29 = vpop.f32.mrf.mxu1 }
 0x35e   :  { %v30925_v33 = vpop.f32.mrf.mxu1 }
 0x35f   :  { %1385 = vrot.lane.b32.xlu1 %v30915_v26, %s30382_s24  ;;  %1462 = vrot.lane.b32.xlu0 %v30925_v33, %s30382_s24 }
 0x360   :  { %v30931_v30 = vpop.f32.mrf.mxu1 }
 0x362   :  { %v30933_v34 = vpop.f32.mrf.mxu1 }
 0x363   :  { %1539 = vrot.lane.b32.xlu1 %v30923_v29, %s30382_s24  ;;  %1616 = vrot.lane.b32.xlu0 %v30933_v34, %s30382_s24 }
 0x364   :  { %v30939_v32 = vpop.f32.mrf.mxu1 }
 0x366   :  { %v30941_v38 = vpop.f32.mrf.mxu1 }
 0x367   :  { %1693 = vrot.lane.b32.xlu1 %v30931_v30, %s30382_s24  ;;  %1770 = vrot.lane.b32.xlu0 %v30941_v38, %s30382_s24 }
 0x368   :  { %v30947_v40 = vpop.f32.mrf.mxu1 }
 0x36a   :  { %v30949_v41 = vpop.f32.mrf.mxu1 }
 0x36b   :  { %1847 = vrot.lane.b32.xlu1 %v30939_v32, %s30382_s24  ;;  %1924 = vrot.lane.b32.xlu0 %v30949_v41, %s30382_s24 }
 0x36f   :  { %2001 = vrot.lane.b32.xlu1 %v30947_v40, %s30382_s24  ;;  %2378 = vrot.lane.b32.xlu0 %v30893_v49, %s30383_s25 }
 0x373   :  { %2302 = vrot.lane.b32.xlu1 %v30897_v55, %s30383_s25  ;;  %2454 = vrot.lane.b32.xlu0 %v30903_v24, %s30383_s25 }
 0x377   :  { %2986 = vrot.lane.b32.xlu1 %v30923_v29, %s30383_s25  ;;  %2530 = vrot.lane.b32.xlu0 %v30901_v14, %s30383_s25 }
 0x37b   :  { %3520 = vrot.lane.b32.xlu1 %v30897_v55, %s30384_s20  ;;  %2606 = vrot.lane.b32.xlu0 %v30909_v0, %s30383_s25 }
 0x37f   :  { %3518 = vrot.lane.b32.xlu1 %v30897_v55, %s30385_s5  ;;  %2682 = vrot.lane.b32.xlu0 %v30907_v25, %s30383_s25 }
 0x383   :  { %3676 = vrot.lane.b32.xlu1 %v30903_v24, %s30384_s20  ;;  %2758 = vrot.lane.b32.xlu0 %v30917_v27, %s30383_s25 }
 0x387   :  { %3674 = vrot.lane.b32.xlu1 %v30903_v24, %s30385_s5  ;;  %2834 = vrot.lane.b32.xlu0 %v30915_v26, %s30383_s25 }
 0x38b   :  { %3832 = vrot.lane.b32.xlu1 %v30909_v0, %s30384_s20  ;;  %2910 = vrot.lane.b32.xlu0 %v30925_v33, %s30383_s25 }
 0x38f   :  { %3366 = vrot.lane.b32.xlu1 %v30949_v41, %s30383_s25  ;;  %3062 = vrot.lane.b32.xlu0 %v30933_v34, %s30383_s25 }
 0x393   :  { %3138 = vrot.lane.b32.xlu0 %v30931_v30, %s30383_s25 }
 0x397   :  { %3214 = vrot.lane.b32.xlu0 %v30941_v38, %s30383_s25 }
 0x39b   :  { %3290 = vrot.lane.b32.xlu0 %v30939_v32, %s30383_s25 }
 0x39f   :  { %3442 = vrot.lane.b32.xlu0 %v30947_v40, %s30383_s25 }
 0x3a3   :  { %3598 = vrot.lane.b32.xlu0 %v30893_v49, %s30384_s20 }
 0x3a7   :  { %3596 = vrot.lane.b32.xlu0 %v30893_v49, %s30385_s5 }
 0x3ab   :  { %3754 = vrot.lane.b32.xlu0 %v30901_v14, %s30384_s20 }
 0x3af   :  { %3752 = vrot.lane.b32.xlu0 %v30901_v14, %s30385_s5 }
 0x3bb   :  { %v924_v42 = vpop.permute.xlu0 %923 }
 0x3bc   :  { %28014 = vmatpush3.xpose.msk.msra.mxu1 %vm847_vm4, %v924_v42 }
 0x3bd   :  { %v846_v43 = vpop.permute.xlu1 %845  ;;  %28023 = vmatprep.subr.mxu1 %v36924_v11 }
 0x3be   :  { %28009 = vmatpush3.xpose.msk.msra.mxu0 %vm847_vm4, %v846_v43 }
 0x3bf   :  { %28016 = vmatmul.mubr.msk.f32.vlgmr.msra.gmra.mxu1 %vm847_vm4, %v30893_v49  ;;  %28018 = vmatprep.subr.mxu0 %v36924_v11 }
 0x3c0   :  { %28025 = vmatprep.mubr.msk.f32.mxu1 %vm30381_vm1, %v36924_v11 }
 0x3c1   :  { %28011 = vmatmul.mubr.msk.f32.vlgmr.msra.gmra.mxu0 %vm847_vm4, %v30897_v55 }
 0x3c2   :  { %28020 = vmatprep.mubr.msk.f32.mxu0 %vm30381_vm1, %v36924_v11 }
 0x3c5   :  { %v1001_v45 = vpop.permute.xlu1 %1000 }
 0x3c6   :  { %28019 = vmatpush3.xpose.msk.msra.mxu0 %vm847_vm4, %v1001_v45 }
 0x3c7   :  { %28028 = vmatprep.subr.mxu0 %v36924_v11 }
 0x3c9   :  { %28021 = vmatmul.mubr.msk.f32.vlgmr.msra.gmra.mxu0 %vm847_vm4, %v30903_v24  ;;  %v1078_v46 = vpop.permute.xlu1 %1077  ;;  %v1155_v8 = vpop.permute.xlu0 %1154 }
 0x3ca   :  { %28024 = vmatpush3.xpose.msk.msra.mxu1 %vm847_vm4, %v1078_v46  ;;  %28029 = vmatpush3.xpose.msk.msra.mxu0 %vm847_vm4, %v1155_v8 }
 0x3cb   :  { %28030 = vmatprep.mubr.msk.f32.mxu0 %vm30381_vm1, %v36924_v11  ;;  %28033 = vmatprep.subr.mxu1 %v36924_v11 }
 0x3cc   :  { %28038 = vmatprep.subr.mxu0 %v36924_v11 }
 0x3cd   :  { %v1232_v48 = vpop.permute.xlu1 %1231  ;;  %28026 = vmatmul.mubr.msk.f32.vlgmr.msra.gmra.mxu1 %vm847_vm4, %v30901_v14  ;;  %28031 = vmatmul.mubr.msk.f32.vlgmr.msra.gmra.mxu0 %vm847_vm4, %v30909_v0  ;;  %v1309_v50 = vpop.permute.xlu0 %1308 }
 0x3ce   :  { %28034 = vmatpush3.xpose.msk.msra.mxu1 %vm847_vm4, %v1232_v48  ;;  %28039 = vmatpush3.xpose.msk.msra.mxu0 %vm847_vm4, %v1309_v50 }
 0x3cf   :  { %28035 = vmatprep.mubr.msk.f32.mxu1 %vm30381_vm1, %v36924_v11  ;;  %28040 = vmatprep.mubr.msk.f32.mxu0 %vm30381_vm1, %v36924_v11 }
 0x3d0   :  { %28043 = vmatprep.subr.mxu1 %v36924_v11  ;;  %28048 = vmatprep.subr.mxu0 %v36924_v11 }
 0x3d1   :  { %v1386_v51 = vpop.permute.xlu1 %1385  ;;  %28036 = vmatmul.mubr.msk.f32.vlgmr.msra.gmra.mxu1 %vm847_vm4, %v30907_v25  ;;  %28041 = vmatmul.mubr.msk.f32.vlgmr.msra.gmra.mxu0 %vm847_vm4, %v30917_v27  ;;  %v1463_v54 = vpop.permute.xlu0 %1462 }
 0x3d2   :  { %28044 = vmatpush3.xpose.msk.msra.mxu1 %vm847_vm4, %v1386_v51  ;;  %28049 = vmatpush3.xpose.msk.msra.mxu0 %vm847_vm4, %v1463_v54 }
 0x3d3   :  { %28045 = vmatprep.mubr.msk.f32.mxu1 %vm30381_vm1, %v36924_v11  ;;  %28050 = vmatprep.mubr.msk.f32.mxu0 %vm30381_vm1, %v36924_v11 }
 0x3d4   :  { %28053 = vmatprep.subr.mxu1 %v36924_v11  ;;  %28058 = vmatprep.subr.mxu0 %v36924_v11 }
 0x3d5   :  { %v1540_v56 = vpop.permute.xlu1 %1539  ;;  %28046 = vmatmul.mubr.msk.f32.vlgmr.msra.gmra.mxu1 %vm847_vm4, %v30915_v26  ;;  %28051 = vmatmul.mubr.msk.f32.vlgmr.msra.gmra.mxu0 %vm847_vm4, %v30925_v33  ;;  %v1617_v58 = vpop.permute.xlu0 %1616 }
 0x3d6   :  { %28054 = vmatpush3.xpose.msk.msra.mxu1 %vm847_vm4, %v1540_v56  ;;  %28059 = vmatpush3.xpose.msk.msra.mxu0 %vm847_vm4, %v1617_v58 }
 0x3d7   :  { %28055 = vmatprep.mubr.msk.f32.mxu1 %vm30381_vm1, %v36924_v11  ;;  %28060 = vmatprep.mubr.msk.f32.mxu0 %vm30381_vm1, %v36924_v11 }
 0x3d8   :  { %28063 = vmatprep.subr.mxu1 %v36924_v11  ;;  %28068 = vmatprep.subr.mxu0 %v36924_v11 }
 0x3d9   :  { %v1694_v61 = vpop.permute.xlu1 %1693  ;;  %28056 = vmatmul.mubr.msk.f32.vlgmr.msra.gmra.mxu1 %vm847_vm4, %v30923_v29  ;;  %28061 = vmatmul.mubr.msk.f32.vlgmr.msra.gmra.mxu0 %vm847_vm4, %v30933_v34  ;;  %v1771_v60 = vpop.permute.xlu0 %1770 }
 0x3da   :  { %28064 = vmatpush3.xpose.msk.msra.mxu1 %vm847_vm4, %v1694_v61  ;;  %28069 = vmatpush3.xpose.msk.msra.mxu0 %vm847_vm4, %v1771_v60 }
 0x3db   :  { %28065 = vmatprep.mubr.msk.f32.mxu1 %vm30381_vm1, %v36924_v11  ;;  %28070 = vmatprep.mubr.msk.f32.mxu0 %vm30381_vm1, %v36924_v11 }
 0x3dc   :  { %28073 = vmatprep.subr.mxu1 %v36924_v11  ;;  %28078 = vmatprep.subr.mxu0 %v36924_v11 }
 0x3dd   :  { %v1848_v63 = vpop.permute.xlu1 %1847  ;;  %28066 = vmatmul.mubr.msk.f32.vlgmr.msra.gmra.mxu1 %vm847_vm4, %v30931_v30  ;;  %28071 = vmatmul.mubr.msk.f32.vlgmr.msra.gmra.mxu0 %vm847_vm4, %v30941_v38  ;;  %v1925_v1 = vpop.permute.xlu0 %1924 }
 0x3de   :  { %28074 = vmatpush3.xpose.msk.msra.mxu1 %vm847_vm4, %v1848_v63  ;;  %28079 = vmatpush3.xpose.msk.msra.mxu0 %vm847_vm4, %v1925_v1 }
 0x3df   :  { %28075 = vmatprep.mubr.msk.f32.mxu1 %vm30381_vm1, %v36924_v11  ;;  %28080 = vmatprep.mubr.msk.f32.mxu0 %vm30381_vm1, %v36924_v11 }
 0x3e0   :  { %28083 = vmatprep.subr.mxu1 %v36924_v11  ;;  %28088 = vmatprep.subr.mxu0 %v36924_v11 }
 0x3e1   :  { %v2002_v3 = vpop.permute.xlu1 %2001  ;;  %28076 = vmatmul.mubr.msk.f32.vlgmr.msra.gmra.mxu1 %vm847_vm4, %v30939_v32  ;;  %28081 = vmatmul.mubr.msk.f32.vlgmr.msra.gmra.mxu0 %vm847_vm4, %v30949_v41  ;;  %v2379_v4 = vpop.permute.xlu0 %2378 }
 0x3e2   :  { %28084 = vmatpush3.xpose.msk.msra.mxu1 %vm847_vm4, %v2002_v3  ;;  %28085 = vmatprep.mubr.msk.f32.mxu1 %vm30381_vm1, %v36924_v11 }
 0x3e3   :  { %28093 = vmatprep.subr.mxu1 %v36924_v11  ;;  %28090 = vmatprep.mubr.msk.f32.mxu0 %vm30381_vm1, %v36924_v11 }
 0x3e5   :  { %v2303_v6 = vpop.permute.xlu1 %2302  ;;  %28086 = vmatmul.mubr.msk.f32.vlgmr.msra.gmra.mxu1 %vm847_vm4, %v30947_v40 }
 0x3e6   :  { %28089 = vmatpush3.msra.mxu0 %v2303_v6  ;;  %28094 = vmatpush3.msra.mxu1 %v2379_v4 }
 0x3e7   :  { %28095 = vmatprep.mubr.msk.f32.mxu1 %vm30381_vm1, %v36924_v11  ;;  %28103 = vmatprep.subr.mxu1 %v36924_v11 }
 0x3e8   :  { %28098 = vmatprep.subr.mxu0 %v36924_v11 }
 0x47f   :  { %v995_v16 = vpop.f32.mrf.mxu1 }
 0x480   :  { %v2078_v19 = vmul.f32 0.5, %v995_v16 }
 0x481   :  { %v918_v12 = vpop.f32.mrf.mxu0  ;;  %v28017_v62 = vpop.f32.mrf.mxu1 }
 0x482   :  { %v2077_v22 = vmul.f32 0.5, %v918_v12  ;;  %v31110_v17 = vadd.f32 %v2078_v19, %v31107_v10 }
 0x483   :  { %v28012_v35 = vpop.f32.mrf.mxu0 }
 0x484   :  { %v31113_v37 = vadd.f32 %v2077_v22, %v31107_v10  ;;  %v2113_v20 = vsel %vm2109_vm6, %v31110_v17, -inf }
 0x485   :  { %2114 = vmax.xlane.f32.xlu1 %v2113_v20 }
 0x486   :  { %v2110_v21 = vsel %vm2109_vm6, %v31113_v37, -inf }
 0x487   :  { %2111 = vmax.xlane.f32.xlu0 %v2110_v21 }
 0x489   :  { %v1072_v42 = vpop.f32.mrf.mxu0 }
 0x48a   :  { %v2079_v45 = vmul.f32 0.5, %v1072_v42 }
 0x48b   :  { %v28022_v43 = vpop.f32.mrf.mxu0 }
 0x48c   :  { %v31126_v61 = vadd.f32 %v2079_v45, %v31107_v10 }
 0x48d   :  { %v1149_v46 = vpop.f32.mrf.mxu1  ;;  %v1226_v8 = vpop.f32.mrf.mxu0 }
 0x48e   :  { %v2080_v48 = vmul.f32 0.5, %v1149_v46  ;;  %v2081_v50 = vmul.f32 0.5, %v1226_v8  ;;  %v2116_v62 = vsel %vm2109_vm6, %v31126_v61, -inf }
 0x48f   :  { %v28027_v51 = vpop.f32.mrf.mxu1  ;;  %v28032_v54 = vpop.f32.mrf.mxu0 }
 0x490   :  { %v31120_v56 = vadd.f32 %v2080_v48, %v31107_v10  ;;  %v31123_v58 = vadd.f32 %v2081_v50, %v31107_v10 }
 0x491   :  { %v1303_v60 = vpop.f32.mrf.mxu1  ;;  %v1380_v63 = vpop.f32.mrf.mxu0 }
 0x492   :  { %v2082_v1 = vmul.f32 0.5, %v1303_v60  ;;  %v2083_v3 = vmul.f32 0.5, %v1380_v63  ;;  %v2119_v4 = vsel %vm2109_vm6, %v31120_v56, -inf  ;;  %v2122_v6 = vsel %vm2109_vm6, %v31123_v58, -inf }
 0x493   :  { %2120 = vmax.xlane.f32.xlu0 %v2119_v4  ;;  %v28037_v7 = vpop.f32.mrf.mxu1  ;;  %2123 = vmax.xlane.f32.xlu1 %v2122_v6  ;;  %v28042_v15 = vpop.f32.mrf.mxu0 }
 0x494   :  { %v31133_v16 = vadd.f32 %v2083_v3, %v31107_v10  ;;  %v31138_v22 = vadd.f32 %v2082_v1, %v31107_v10 }
 0x495   :  { %v1457_v19 = vpop.f32.mrf.mxu1  ;;  %v1534_v12 = vpop.f32.mrf.mxu0 }
 0x496   :  { %v2084_v35 = vmul.f32 0.5, %v1457_v19  ;;  %v2085_v20 = vmul.f32 0.5, %v1534_v12  ;;  %v2128_v21 = vsel %vm2109_vm6, %v31133_v16, -inf  ;;  %v2125_v54 = vsel %vm2109_vm6, %v31138_v22, -inf }
 0x497   :  { %2117 = vmax.xlane.f32.xlu0 %v2116_v62  ;;  %v28047_v42 = vpop.f32.mrf.mxu1  ;;  %2129 = vmax.xlane.f32.xlu1 %v2128_v21  ;;  %v28052_v43 = vpop.f32.mrf.mxu0 }
 0x498   :  { %v31143_v45 = vadd.f32 %v2085_v20, %v31107_v10  ;;  %v31146_v46 = vadd.f32 %v2084_v35, %v31107_v10 }
 0x499   :  { %v1611_v8 = vpop.f32.mrf.mxu1  ;;  %v1688_v48 = vpop.f32.mrf.mxu0 }
 0x49a   :  { %v2086_v50 = vmul.f32 0.5, %v1611_v8  ;;  %v2087_v51 = vmul.f32 0.5, %v1688_v48  ;;  %v2134_v60 = vsel %vm2109_vm6, %v31143_v45, -inf  ;;  %v2131_v7 = vsel %vm2109_vm6, %v31146_v46, -inf }
 0x49b   :  { %2126 = vmax.xlane.f32.xlu0 %v2125_v54  ;;  %v28057_v63 = vpop.f32.mrf.mxu1  ;;  %2135 = vmax.xlane.f32.xlu1 %v2134_v60  ;;  %v28062_v1 = vpop.f32.mrf.mxu0 }
 0x49c   :  { %v31153_v3 = vadd.f32 %v2087_v51, %v31107_v10  ;;  %v31158_v15 = vadd.f32 %v2086_v50, %v31107_v10 }
 0x49d   :  { %v1765_v4 = vpop.f32.mrf.mxu1  ;;  %v1842_v6 = vpop.f32.mrf.mxu0 }
 0x49e   :  { %v2088_v19 = vmul.f32 0.5, %v1765_v4  ;;  %v2089_v12 = vmul.f32 0.5, %v1842_v6  ;;  %v2140_v62 = vsel %vm2109_vm6, %v31153_v3, -inf  ;;  %v2137_v50 = vsel %vm2109_vm6, %v31158_v15, -inf }
 0x49f   :  { %2132 = vmax.xlane.f32.xlu0 %v2131_v7  ;;  %v28067_v35 = vpop.f32.mrf.mxu1  ;;  %2141 = vmax.xlane.f32.xlu1 %v2140_v62  ;;  %v28072_v20 = vpop.f32.mrf.mxu0 }
 0x4a0   :  { %v31163_v21 = vadd.f32 %v2089_v12, %v31107_v10  ;;  %v31166_v8 = vadd.f32 %v2088_v19, %v31107_v10  ;;  %v31184_v35 = vpop.permute.xlu0 %2454 }
 0x4a1   :  { %v1919_v42 = vpop.f32.mrf.mxu1  ;;  %v1996_v43 = vpop.f32.mrf.mxu0 }
 0x4a2   :  { %v2090_v48 = vmul.f32 0.5, %v1919_v42  ;;  %v2146_v51 = vsel %vm2109_vm6, %v31163_v21, -inf  ;;  %v2143_v6 = vsel %vm2109_vm6, %v31166_v8, -inf }
 0x4a3   :  { %2138 = vmax.xlane.f32.xlu0 %v2137_v50  ;;  %v28077_v54 = vpop.f32.mrf.mxu1  ;;  %2147 = vmax.xlane.f32.xlu1 %v2146_v51  ;;  %v28082_v60 = vpop.f32.mrf.mxu0  ;;  %v2091_v51 = vmul.f32 0.5, %v1996_v43 }
 0x4a4   :  { %v31173_v1 = vadd.f32 %v2090_v48, %v31107_v10  ;;  %v31188_v20 = vpop.permute.xlu0 %2530 }
 0x4a5   :  { %v2073_v63 = vpop.f32.mrf.mxu1  ;;  %v31205_v60 = vadd.f32 %v2091_v51, %v31107_v10 }
 0x4a6   :  { %v2092_v4 = vmul.f32 0.5, %v2073_v63  ;;  %v2149_v12 = vsel %vm2109_vm6, %v31173_v1, -inf }
 0x4a7   :  { %2144 = vmax.xlane.f32.xlu0 %v2143_v6  ;;  %v28087_v7 = vpop.f32.mrf.mxu1 }
 0x4a8   :  { %v31178_v19 = vadd.f32 %v2092_v4, %v31107_v10  ;;  %v31190_v42 = vpop.permute.xlu0 %2606  ;;  %v2152_v4 = vsel %vm2109_vm6, %v31205_v60, -inf }
 0x4aa   :  { %v2155_v62 = vsel %vm2109_vm6, %v31178_v19, -inf }
 0x4ab   :  { %2150 = vmax.xlane.f32.xlu0 %v2149_v12  ;;  %v31215_v12 = vpop.permute.xlu1 %2986 }
 0x4ac   :  { %v31192_v48 = vpop.permute.xlu0 %2682 }
 0x4af   :  { %2156 = vmax.xlane.f32.xlu0 %v2155_v62  ;;  %v31221_v43 = vpop.permute.xlu1 %3520 }
 0x4b0   :  { %v31198_v50 = vpop.permute.xlu0 %2758 }
 0x4b3   :  { %v31227_v11 = vpop.permute.xlu1 %3518 }
 0x4b4   :  { %3830 = vrot.lane.b32.xlu1 %v30909_v0, %s30385_s5  ;;  %v31202_v54 = vpop.permute.xlu0 %2834 }
 0x4b7   :  { %v31231_v52 = vpop.permute.xlu1 %3676 }
 0x4b8   :  { %v31207_v63 = vpop.permute.xlu0 %2910 }
 0x4bb   :  { %v31235_v44 = vpop.permute.xlu1 %3674 }
 0x4bc   :  { %v31211_v6 = vpop.permute.xlu0 %3062 }
 0x4bf   :  { %v31239_v36 = vpop.permute.xlu1 %3832 }
 0x4c0   :  { %v31213_v7 = vpop.permute.xlu0 %3138 }
 0x4c3   :  { %v31243_v28 = vpop.permute.xlu1 %3366 }
 0x4c4   :  { %v31217_v62 = vpop.permute.xlu0 %3214 }
 0x4c5   :  { %3910 = vrot.lane.b32.xlu0 %v30907_v25, %s30384_s20 }
 0x4c8   :  { %v31225_v51 = vpop.permute.xlu0 %3290 }
 0x4c9   :  { %3908 = vrot.lane.b32.xlu0 %v30907_v25, %s30385_s5 }
 0x4cd   :  { %4066 = vrot.lane.b32.xlu0 %v30915_v26, %s30384_s20 }
 0x4d8   :  { %2153 = vmax.xlane.f32.xlu1 %v2152_v4  ;;  %v31229_v4 = vpop.permute.xlu0 %3442 }
 0x4dc   :  { %v31233_v53 = vpop.permute.xlu0 %3598 }
 0x4e0   :  { %v31237_v47 = vpop.permute.xlu0 %3596 }
 0x4e4   :  { %v31241_v39 = vpop.permute.xlu0 %3754 }
 0x4e8   :  { %v31245_v31 = vpop.permute.xlu0 %3752 }
 0x4e9   :  { %3988 = vrot.lane.b32.xlu1 %v30917_v27, %s30384_s20 }
 0x4ed   :  { %3986 = vrot.lane.b32.xlu1 %v30917_v27, %s30385_s5 }
 0x50e   :  { %v2115_v18 = vpop.xlane.xlu1 %2114 }
 0x50f   :  { %v2159_v23 = vsub.f32 %v31110_v17, %v2115_v18 }
 0x510   :  { %v2112_v9 = vpop.xlane.xlu0 %2111 }
 0x511   :  { %v2176_v13 = vmul.f32 1.442695, %v2159_v23  ;;  %v2158_v2 = vsub.f32 %v31113_v37, %v2112_v9 }
 0x513   :  { %29737 = vpow2.f32 %v2176_v13  ;;  %v2174_v5 = vmul.f32 1.442695, %v2158_v2 }
 0x515   :  { %29739 = vpow2.f32 %v2174_v5 }
 0x51c   :  { %v2124_v59 = vpop.xlane.xlu1 %2123  ;;  %v2121_v57 = vpop.xlane.xlu0 %2120 }
 0x51d   :  { %v2161_v27 = vsub.f32 %v31120_v56, %v2121_v57  ;;  %v2162_v14 = vsub.f32 %v31123_v58, %v2124_v59 }
 0x51f   :  { %v2180_v25 = vmul.f32 1.442695, %v2161_v27  ;;  %v2182_v5 = vmul.f32 1.442695, %v2162_v14 }
 0x520   :  { %v31250_v0 = vpop.eup %29737  ;;  %v2130_v55 = vpop.xlane.xlu1 %2129 }
 0x521   :  { %v2118_v24 = vpop.xlane.xlu0 %2117  ;;  %v2209_v23 = vsel %vm2109_vm6, %v31250_v0, 0.0  ;;  %29741 = vpow2.f32 %v2180_v25  ;;  %v2164_v13 = vsub.f32 %v31133_v16, %v2130_v55 }
 0x522   :  { %v2160_v18 = vsub.f32 %v31126_v61, %v2118_v24  ;;  %v31256_v9 = vpop.eup %29739  ;;  %2210 = vadd.xlane.f32.xlu0 %v2209_v23 }
 0x523   :  { %v2206_v57 = vsel %vm2109_vm6, %v31256_v9, 0.0  ;;  %v2186_v37 = vmul.f32 1.442695, %v2164_v13 }
 0x524   :  { %v2178_v2 = vmul.f32 1.442695, %v2160_v18  ;;  %v2136_v27 = vpop.xlane.xlu1 %2135  ;;  %2207 = vadd.xlane.f32.xlu1 %v2206_v57 }
 0x525   :  { %v2127_v59 = vpop.xlane.xlu0 %2126  ;;  %v2166_v56 = vsub.f32 %v31143_v45, %v2136_v27 }
 0x526   :  { %v2163_v17 = vsub.f32 %v31138_v22, %v2127_v59  ;;  %29743 = vpow2.f32 %v2178_v2 }
 0x527   :  { %29745 = vpow2.f32 %v2182_v5  ;;  %v2190_v14 = vmul.f32 1.442695, %v2166_v56 }
 0x528   :  { %v2184_v24 = vmul.f32 1.442695, %v2163_v17  ;;  %v2142_v25 = vpop.xlane.xlu1 %2141 }
 0x529   :  { %v2133_v58 = vpop.xlane.xlu0 %2132  ;;  %v2168_v55 = vsub.f32 %v31153_v3, %v2142_v25 }
 0x52a   :  { %v2165_v61 = vsub.f32 %v31146_v46, %v2133_v58  ;;  %29747 = vpow2.f32 %v2184_v24 }
 0x52b   :  { %29749 = vpow2.f32 %v2186_v37  ;;  %v2194_v45 = vmul.f32 1.442695, %v2168_v55 }
 0x52c   :  { %v2188_v18 = vmul.f32 1.442695, %v2165_v61  ;;  %v2148_v23 = vpop.xlane.xlu1 %2147 }
 0x52d   :  { %v2139_v16 = vpop.xlane.xlu0 %2138  ;;  %v2170_v5 = vsub.f32 %v31163_v21, %v2148_v23 }
 0x52e   :  { %v2167_v22 = vsub.f32 %v31158_v15, %v2139_v16  ;;  %29751 = vpow2.f32 %v2188_v18  ;;  %v31266_v2 = vpop.eup %29741 }
 0x52f   :  { %29753 = vpow2.f32 %v2190_v14  ;;  %v2215_v46 = vsel %vm2109_vm6, %v31266_v2, 0.0  ;;  %v2198_v15 = vmul.f32 1.442695, %v2170_v5 }
 0x530   :  { %v2192_v57 = vmul.f32 1.442695, %v2167_v22  ;;  %2216 = vadd.xlane.f32.xlu0 %v2215_v46 }
 0x531   :  { %v2145_v13 = vpop.xlane.xlu0 %2144 }
 0x532   :  { %v2169_v27 = vsub.f32 %v31166_v8, %v2145_v13  ;;  %29755 = vpow2.f32 %v2192_v57 }
 0x533   :  { %v31272_v3 = vpop.eup %29743  ;;  %29757 = vpow2.f32 %v2194_v45 }
 0x534   :  { %v2196_v59 = vmul.f32 1.442695, %v2169_v27  ;;  %v2212_v17 = vsel %vm2109_vm6, %v31272_v3, 0.0  ;;  %v31276_v37 = vpop.eup %29745 }
 0x535   :  { %v2151_v24 = vpop.xlane.xlu0 %2150  ;;  %2213 = vadd.xlane.f32.xlu1 %v2212_v17  ;;  %v2218_v8 = vsel %vm2109_vm6, %v31276_v37, 0.0 }
 0x536   :  { %29759 = vpow2.f32 %v2196_v59  ;;  %v2171_v21 = vsub.f32 %v31173_v1, %v2151_v24 }
 0x537   :  { %v31279_v56 = vpop.eup %29747  ;;  %29761 = vpow2.f32 %v2198_v15 }
 0x538   :  { %v2200_v25 = vmul.f32 1.442695, %v2171_v21  ;;  %v2221_v58 = vsel %vm2109_vm6, %v31279_v56, 0.0  ;;  %v31285_v18 = vpop.eup %29749 }
 0x539   :  { %v2157_v61 = vpop.xlane.xlu0 %2156  ;;  %2219 = vadd.xlane.f32.xlu1 %v2218_v8  ;;  %2222 = vadd.xlane.f32.xlu0 %v2221_v58  ;;  %v2224_v16 = vsel %vm2109_vm6, %v31285_v18, 0.0  ;;  %v31322_v8 = vpop.permute.xlu1 %3830 }
 0x53a   :  { %29763 = vpow2.f32 %v2200_v25  ;;  %v2173_v14 = vsub.f32 %v31178_v19, %v2157_v61 }
 0x53b   :  { %v31288_v55 = vpop.eup %29751 }
 0x53c   :  { %v2204_v1 = vmul.f32 1.442695, %v2173_v14  ;;  %v2227_v23 = vsel %vm2109_vm6, %v31288_v55, 0.0  ;;  %v31294_v22 = vpop.eup %29753 }
 0x53d   :  { %2225 = vadd.xlane.f32.xlu1 %v2224_v16  ;;  %2228 = vadd.xlane.f32.xlu0 %v2227_v23  ;;  %v2230_v45 = vsel %vm2109_vm6, %v31294_v22, 0.0  ;;  %v31353_v16 = vpop.permute.xlu0 %3910 }
 0x53e   :  { %29765 = vpow2.f32 %v2204_v1 }
 0x53f   :  { %v31296_v57 = vpop.eup %29755 }
 0x540   :  { %v2233_v19 = vsel %vm2109_vm6, %v31296_v57, 0.0  ;;  %v31302_v5 = vpop.eup %29757 }
 0x541   :  { %2231 = vadd.xlane.f32.xlu1 %v2230_v45  ;;  %2234 = vadd.xlane.f32.xlu0 %v2233_v19  ;;  %v2236_v27 = vsel %vm2109_vm6, %v31302_v5, 0.0  ;;  %v31359_v23 = vpop.permute.xlu0 %3908 }
 0x543   :  { %v31304_v46 = vpop.eup %29759 }
 0x544   :  { %v2239_v13 = vsel %vm2109_vm6, %v31304_v46, 0.0  ;;  %v31310_v59 = vpop.eup %29761 }
 0x545   :  { %2237 = vadd.xlane.f32.xlu1 %v2236_v27  ;;  %2240 = vadd.xlane.f32.xlu0 %v2239_v13  ;;  %v2242_v24 = vsel %vm2109_vm6, %v31310_v59, 0.0  ;;  %v31365_v19 = vpop.permute.xlu0 %4066 }
 0x547   :  { %v31312_v15 = vpop.eup %29763 }
 0x548   :  { %v2245_v17 = vsel %vm2109_vm6, %v31312_v15, 0.0 }
 0x549   :  { %2243 = vadd.xlane.f32.xlu1 %v2242_v24  ;;  %2246 = vadd.xlane.f32.xlu0 %v2245_v17 }
 0x54b   :  { %v31318_v21 = vpop.eup %29765 }
 0x54c   :  { %v2251_v25 = vsel %vm2109_vm6, %v31318_v21, 0.0 }
 0x54d   :  { %2252 = vadd.xlane.f32.xlu1 %v2251_v25 }
 0x55e   :  { %4144 = vrot.lane.b32.xlu1 %v30925_v33, %s30384_s20 }
 0x561   :  { %v2154_v58 = vpop.xlane.xlu1 %2153 }
 0x562   :  { %v2172_v61 = vsub.f32 %v31205_v60, %v2154_v58  ;;  %4142 = vrot.lane.b32.xlu1 %v30925_v33, %s30385_s5 }
 0x564   :  { %v2202_v14 = vmul.f32 1.442695, %v2172_v61 }
 0x565   :  { %v31361_v45 = vpop.permute.xlu1 %3988 }
 0x566   :  { %29767 = vpow2.f32 %v2202_v14  ;;  %4300 = vrot.lane.b32.xlu1 %v30933_v34, %s30384_s20 }
 0x569   :  { %v31369_v13 = vpop.permute.xlu1 %3986 }
 0x56a   :  { %4298 = vrot.lane.b32.xlu1 %v30933_v34, %s30385_s5 }
 0x56e   :  { %4456 = vrot.lane.b32.xlu1 %v30941_v38, %s30384_s20 }
 0x572   :  { %4454 = vrot.lane.b32.xlu1 %v30941_v38, %s30385_s5 }
 0x573   :  { %v31337_v1 = vpop.eup %29767 }
 0x574   :  { %v2248_v60 = vsel %vm2109_vm6, %v31337_v1, 0.0 }
 0x575   :  { %2249 = vadd.xlane.f32.xlu0 %v2248_v60  ;;  %v37010_v60 = vmov 0.0  }
 0x576   :  { %4612 = vrot.lane.b32.xlu1 %v30949_v41, %s30384_s20 }
 0x57a   :  { %4610 = vrot.lane.b32.xlu1 %v30949_v41, %s30385_s5 }
 0x58b   :  { %4064 = vrot.lane.b32.xlu0 %v30915_v26, %s30385_s5 }
 0x58f   :  { %4222 = vrot.lane.b32.xlu0 %v30923_v29, %s30384_s20 }
 0x593   :  { %4220 = vrot.lane.b32.xlu0 %v30923_v29, %s30385_s5 }
 0x597   :  { %4378 = vrot.lane.b32.xlu0 %v30931_v30, %s30384_s20 }
 0x59b   :  { %4376 = vrot.lane.b32.xlu0 %v30931_v30, %s30385_s5 }
 0x59f   :  { %4534 = vrot.lane.b32.xlu0 %v30939_v32, %s30384_s20 }
 0x5a3   :  { %4532 = vrot.lane.b32.xlu0 %v30939_v32, %s30385_s5 }
 0x5a7   :  { %4690 = vrot.lane.b32.xlu0 %v30947_v40, %s30384_s20 }
 0x5ab   :  { %4688 = vrot.lane.b32.xlu0 %v30947_v40, %s30385_s5  ;;  %v2211_v27 = vpop.xlane.xlu0 %2210 }
 0x5ac   :  { %29769 = vrcp.f32 %v2211_v27 }
 0x5ad   :  { %v2208_v17 = vpop.xlane.xlu1 %2207 }
 0x5ae   :  { %29771 = vrcp.f32 %v2208_v17 }
 0x5b9   :  { %v29770_v24 = vpop.eup %29769  ;;  %v2217_v25 = vpop.xlane.xlu0 %2216 }
 0x5ba   :  { %v2257_v58 = vmul.f32 %v29770_v24, %v31250_v0  ;;  %29773 = vrcp.f32 %v2217_v25 }
 0x5bb   :  { %v29772_v61 = vpop.eup %29771 }
 0x5bc   :  { %2287 = vst.msk [vmem:[%s36906_s19 + $0x8] sm:$0xff] %vm2109_vm6, %v2257_v58  ;;  %28096 = vmatmul.mubr.msk.f32.vlgmr.msra.gmra.mxu1 %vm2109_vm6, %v2257_v58  ;;  %v2255_v14 = vmul.f32 %v29772_v61, %v31256_v9 }
 0x5bd   :  { %28104 = vmatpush3.msra.mxu1 %v31188_v20  ;;  %28105 = vmatprep.mubr.msk.f32.mxu1 %vm30381_vm1, %v37010_v60 }
 0x5be   :  { %v2214_v27 = vpop.xlane.xlu1 %2213  ;;  %2286 = vst.msk [vmem:[%s36906_s19] sm:$0xff] %vm2109_vm6, %v2255_v14  ;;  %28091 = vmatmul.mubr.msk.f32.vlgmr.msra.gmra.mxu0 %vm2109_vm6, %v2255_v14  ;;  %28113 = vmatprep.subr.mxu1 %v37010_v60 }
 0x5bf   :  { %29775 = vrcp.f32 %v2214_v27  ;;  %28099 = vmatpush3.msra.mxu0 %v31184_v35  ;;  %28100 = vmatprep.mubr.msk.f32.mxu0 %vm30381_vm1, %v37010_v60 }
 0x5c0   :  { %28108 = vmatprep.subr.mxu0 %v37010_v60 }
 0x5c2   :  { %v2220_v0 = vpop.xlane.xlu1 %2219  ;;  %v2223_v20 = vpop.xlane.xlu0 %2222 }
 0x5c3   :  { %29777 = vrcp.f32 %v2220_v0 }
 0x5c4   :  { %29779 = vrcp.f32 %v2223_v20 }
 0x5c6   :  { %v2226_v9 = vpop.xlane.xlu1 %2225  ;;  %v2229_v17 = vpop.xlane.xlu0 %2228 }
 0x5c7   :  { %29781 = vrcp.f32 %v2226_v9  ;;  %v29774_v24 = vpop.eup %29773 }
 0x5c8   :  { %29783 = vrcp.f32 %v2229_v17  ;;  %v2261_v25 = vmul.f32 %v29774_v24, %v31266_v2 }
 0x5ca   :  { %v2232_v58 = vpop.xlane.xlu1 %2231  ;;  %v2235_v61 = vpop.xlane.xlu0 %2234  ;;  %2289 = vst.msk [vmem:[%s36906_s19 + $0x18] sm:$0xff] %vm2109_vm6, %v2261_v25  ;;  %28106 = vmatmul.mubr.msk.f32.vlgmr.msra.gmra.mxu1 %vm2109_vm6, %v2261_v25 }
 0x5cb   :  { %29785 = vrcp.f32 %v2232_v58  ;;  %28114 = vmatpush3.msra.mxu1 %v31192_v48  ;;  %28115 = vmatprep.mubr.msk.f32.mxu1 %vm30381_vm1, %v37010_v60 }
 0x5cc   :  { %v29776_v35 = vpop.eup %29775  ;;  %29787 = vrcp.f32 %v2235_v61  ;;  %28123 = vmatprep.subr.mxu1 %v37010_v60 }
 0x5cd   :  { %v2259_v14 = vmul.f32 %v29776_v35, %v31272_v3 }
 0x5ce   :  { %v2238_v2 = vpop.xlane.xlu1 %2237  ;;  %v2241_v27 = vpop.xlane.xlu0 %2240 }
 0x5cf   :  { %29789 = vrcp.f32 %v2238_v2  ;;  %2288 = vst.msk [vmem:[%s36906_s19 + $0x10] sm:$0xff] %vm2109_vm6, %v2259_v14  ;;  %28101 = vmatmul.mubr.msk.f32.vlgmr.msra.gmra.mxu0 %vm2109_vm6, %v2259_v14 }
 0x5d0   :  { %v29778_v0 = vpop.eup %29777  ;;  %29791 = vrcp.f32 %v2241_v27  ;;  %28109 = vmatpush3.msra.mxu0 %v31190_v42  ;;  %28110 = vmatprep.mubr.msk.f32.mxu0 %vm30381_vm1, %v37010_v60 }
 0x5d1   :  { %v29780_v48 = vpop.eup %29779  ;;  %28118 = vmatprep.subr.mxu0 %v37010_v60  ;;  %v2263_v3 = vmul.f32 %v29778_v0, %v31276_v37 }
 0x5d2   :  { %v2244_v20 = vpop.xlane.xlu1 %2243  ;;  %v2247_v9 = vpop.xlane.xlu0 %2246  ;;  %v2265_v17 = vmul.f32 %v29780_v48, %v31279_v56 }
 0x5d3   :  { %29793 = vrcp.f32 %v2244_v20  ;;  %2290 = vst.msk [vmem:[%s36906_s19 + $0x20] sm:$0xff] %vm2109_vm6, %v2263_v3  ;;  %28111 = vmatmul.mubr.msk.f32.vlgmr.msra.gmra.mxu0 %vm2109_vm6, %v2263_v3 }
 0x5d4   :  { %v29782_v42 = vpop.eup %29781  ;;  %29795 = vrcp.f32 %v2247_v9  ;;  %2291 = vst.msk [vmem:[%s36906_s19 + $0x28] sm:$0xff] %vm2109_vm6, %v2265_v17  ;;  %28116 = vmatmul.mubr.msk.f32.vlgmr.msra.gmra.mxu1 %vm2109_vm6, %v2265_v17  ;;  %28119 = vmatpush3.msra.mxu0 %v31198_v50 }
 0x5d5   :  { %v29784_v37 = vpop.eup %29783  ;;  %28124 = vmatpush3.msra.mxu1 %v31202_v54  ;;  %28120 = vmatprep.mubr.msk.f32.mxu0 %vm30381_vm1, %v37010_v60  ;;  %v2267_v56 = vmul.f32 %v29782_v42, %v31285_v18 }
 0x5d6   :  { %28128 = vmatprep.subr.mxu0 %v37010_v60  ;;  %v2253_v24 = vpop.xlane.xlu1 %2252  ;;  %28125 = vmatprep.mubr.msk.f32.mxu1 %vm30381_vm1, %v37010_v60  ;;  %v2269_v25 = vmul.f32 %v29784_v37, %v31288_v55 }
 0x5d7   :  { %29797 = vrcp.f32 %v2253_v24  ;;  %28133 = vmatprep.subr.mxu1 %v37010_v60  ;;  %2292 = vst.msk [vmem:[%s36906_s19 + $0x30] sm:$0xff] %vm2109_vm6, %v2267_v56  ;;  %28121 = vmatmul.mubr.msk.f32.vlgmr.msra.gmra.mxu0 %vm2109_vm6, %v2267_v56 }
 0x5d8   :  { %v29786_v50 = vpop.eup %29785  ;;  %2293 = vst.msk [vmem:[%s36906_s19 + $0x38] sm:$0xff] %vm2109_vm6, %v2269_v25  ;;  %28126 = vmatmul.mubr.msk.f32.vlgmr.msra.gmra.mxu1 %vm2109_vm6, %v2269_v25  ;;  %28129 = vmatpush3.msra.mxu0 %v31207_v63 }
 0x5d9   :  { %v29788_v54 = vpop.eup %29787  ;;  %28134 = vmatpush3.msra.mxu1 %v31215_v12  ;;  %28130 = vmatprep.mubr.msk.f32.mxu0 %vm30381_vm1, %v37010_v60  ;;  %v2271_v18 = vmul.f32 %v29786_v50, %v31294_v22 }
 0x5da   :  { %28138 = vmatprep.subr.mxu0 %v37010_v60  ;;  %28135 = vmatprep.mubr.msk.f32.mxu1 %vm30381_vm1, %v37010_v60  ;;  %v2273_v55 = vmul.f32 %v29788_v54, %v31296_v57 }
 0x5db   :  { %28143 = vmatprep.subr.mxu1 %v37010_v60  ;;  %2294 = vst.msk [vmem:[%s36906_s19 + $0x40] sm:$0xff] %vm2109_vm6, %v2271_v18  ;;  %28131 = vmatmul.mubr.msk.f32.vlgmr.msra.gmra.mxu0 %vm2109_vm6, %v2271_v18 }
 0x5dc   :  { %v29790_v63 = vpop.eup %29789  ;;  %2295 = vst.msk [vmem:[%s36906_s19 + $0x48] sm:$0xff] %vm2109_vm6, %v2273_v55  ;;  %28136 = vmatmul.mubr.msk.f32.vlgmr.msra.gmra.mxu1 %vm2109_vm6, %v2273_v55  ;;  %28139 = vmatpush3.msra.mxu0 %v31211_v6 }
 0x5dd   :  { %v29792_v12 = vpop.eup %29791  ;;  %28144 = vmatpush3.msra.mxu1 %v31213_v7  ;;  %28140 = vmatprep.mubr.msk.f32.mxu0 %vm30381_vm1, %v37010_v60  ;;  %v2275_v22 = vmul.f32 %v29790_v63, %v31302_v5 }
 0x5de   :  { %28148 = vmatprep.subr.mxu0 %v37010_v60  ;;  %28145 = vmatprep.mubr.msk.f32.mxu1 %vm30381_vm1, %v37010_v60  ;;  %v2277_v57 = vmul.f32 %v29792_v12, %v31304_v46 }
 0x5df   :  { %28153 = vmatprep.subr.mxu1 %v37010_v60  ;;  %2296 = vst.msk [vmem:[%s36906_s19 + $0x50] sm:$0xff] %vm2109_vm6, %v2275_v22  ;;  %28141 = vmatmul.mubr.msk.f32.vlgmr.msra.gmra.mxu0 %vm2109_vm6, %v2275_v22 }
 0x5e0   :  { %v29794_v6 = vpop.eup %29793  ;;  %2297 = vst.msk [vmem:[%s36906_s19 + $0x58] sm:$0xff] %vm2109_vm6, %v2277_v57  ;;  %28146 = vmatmul.mubr.msk.f32.vlgmr.msra.gmra.mxu1 %vm2109_vm6, %v2277_v57  ;;  %28149 = vmatpush3.msra.mxu0 %v31217_v62 }
 0x5e1   :  { %v29796_v7 = vpop.eup %29795  ;;  %28154 = vmatpush3.msra.mxu1 %v31225_v51  ;;  %28150 = vmatprep.mubr.msk.f32.mxu0 %vm30381_vm1, %v37010_v60  ;;  %v2279_v5 = vmul.f32 %v29794_v6, %v31310_v59 }
 0x5e2   :  { %28158 = vmatprep.subr.mxu0 %v37010_v60  ;;  %28155 = vmatprep.mubr.msk.f32.mxu1 %vm30381_vm1, %v37010_v60  ;;  %v2281_v46 = vmul.f32 %v29796_v7, %v31312_v15 }
 0x5e3   :  { %28163 = vmatprep.subr.mxu1 %v37010_v60  ;;  %2298 = vst.msk [vmem:[%s36906_s19 + $0x60] sm:$0xff] %vm2109_vm6, %v2279_v5  ;;  %28151 = vmatmul.mubr.msk.f32.vlgmr.msra.gmra.mxu0 %vm2109_vm6, %v2279_v5 }
 0x5e4   :  { %v29798_v62 = vpop.eup %29797  ;;  %2299 = vst.msk [vmem:[%s36906_s19 + $0x68] sm:$0xff] %vm2109_vm6, %v2281_v46  ;;  %28156 = vmatmul.mubr.msk.f32.vlgmr.msra.gmra.mxu1 %vm2109_vm6, %v2281_v46  ;;  %28159 = vmatpush3.msra.mxu0 %v31243_v28 }
 0x5e5   :  { %28164 = vmatpush3.msra.mxu1 %v31229_v4  ;;  %28165 = vmatprep.mubr.msk.f32.mxu1 %vm30381_vm1, %v37010_v60  ;;  %v2285_v51 = vmul.f32 %v29798_v62, %v31318_v21 }
 0x5e6   :  { %28173 = vmatprep.subr.mxu1 %v37010_v60  ;;  %28160 = vmatprep.mubr.msk.f32.mxu0 %vm30381_vm1, %v37010_v60 }
 0x5e7   :  { %2301 = vst.msk [vmem:[%s36906_s19 + $0x78] sm:$0xff] %vm2109_vm6, %v2285_v51  ;;  %28168 = vmatprep.subr.mxu0 %v37010_v60 }
 0x5e8   :  { %28166 = vmatmul.mubr.msk.f32.vlgmr.msra.gmra.mxu1 %vm2109_vm6, %v2285_v51 }
 0x5e9   :  { %28174 = vmatpush3.xpose.msk.msra.mxu1 %vm847_vm4, %v31233_v53  ;;  %28175 = vmatprep.mubr.msk.f32.mxu1 %vm30381_vm1, %v37010_v60 }
 0x5ea   :  { %28183 = vmatprep.subr.mxu1 %v37010_v60 }
 0x5ec   :  { %28176 = vmatmul.mubr.msk.f32.vlgmr.msra.gmra.mxu1 %vm847_vm4, %v31237_v47 }
 0x5ed   :  { %28184 = vmatpush3.xpose.msk.msra.mxu1 %vm847_vm4, %v31241_v39  ;;  %28185 = vmatprep.mubr.msk.f32.mxu1 %vm30381_vm1, %v37010_v60  ;;  %v4145_v39 = vpop.permute.xlu1 %4144 }
 0x5ee   :  { %28193 = vmatprep.subr.mxu1 %v37010_v60 }
 0x5f0   :  { %28186 = vmatmul.mubr.msk.f32.vlgmr.msra.gmra.mxu1 %vm847_vm4, %v31245_v31 }
 0x5f1   :  { %28194 = vmatpush3.xpose.msk.msra.mxu1 %vm847_vm4, %v31353_v16  ;;  %28195 = vmatprep.mubr.msk.f32.mxu1 %vm30381_vm1, %v37010_v60  ;;  %v4143_v53 = vpop.permute.xlu1 %4142 }
 0x5f2   :  { %28203 = vmatprep.subr.mxu1 %v37010_v60 }
 0x5f4   :  { %28196 = vmatmul.mubr.msk.f32.vlgmr.msra.gmra.mxu1 %vm847_vm4, %v31359_v23 }
 0x5f5   :  { %28204 = vmatpush3.xpose.msk.msra.mxu1 %vm847_vm4, %v31365_v19  ;;  %28205 = vmatprep.mubr.msk.f32.mxu1 %vm30381_vm1, %v37010_v60  ;;  %v4301_v16 = vpop.permute.xlu1 %4300 }
 0x5f6   :  { %28213 = vmatprep.subr.mxu1 %v37010_v60 }
 0x5fe   :  { %v2250_v28 = vpop.xlane.xlu0 %2249 }
 0x5ff   :  { %29799 = vrcp.f32 %v2250_v28 }
 0x602   :  { %v4065_v31 = vpop.permute.xlu0 %4064 }
 0x603   :  { %28206 = vmatmul.mubr.msk.f32.vlgmr.msra.gmra.mxu1 %vm847_vm4, %v4065_v31 }
 0x604   :  { %28215 = vmatprep.mubr.msk.f32.mxu1 %vm30381_vm1, %v37010_v60 }
 0x606   :  { %v4223_v47 = vpop.permute.xlu0 %4222 }
 0x607   :  { %28214 = vmatpush3.xpose.msk.msra.mxu1 %vm847_vm4, %v4223_v47 }
 0x608   :  { %28223 = vmatprep.subr.mxu1 %v37010_v60 }
 0x60a   :  { %v4221_v4 = vpop.permute.xlu0 %4220 }
 0x60b   :  { %28216 = vmatmul.mubr.msk.f32.vlgmr.msra.gmra.mxu1 %vm847_vm4, %v4221_v4 }
 0x60c   :  { %v29800_v59 = vpop.eup %29799  ;;  %28225 = vmatprep.mubr.msk.f32.mxu1 %vm30381_vm1, %v37010_v60 }
 0x60d   :  { %v2283_v15 = vmul.f32 %v29800_v59, %v31337_v1 }
 0x60e   :  { %v4379_v21 = vpop.permute.xlu0 %4378 }
 0x60f   :  { %2300 = vst.msk [vmem:[%s36906_s19 + $0x70] sm:$0xff] %vm2109_vm6, %v2283_v15  ;;  %28161 = vmatmul.mubr.msk.f32.vlgmr.msra.gmra.mxu0 %vm2109_vm6, %v2283_v15  ;;  %28224 = vmatpush3.xpose.msk.msra.mxu1 %vm847_vm4, %v4379_v21 }
 0x610   :  { %28169 = vmatpush3.xpose.msk.msra.mxu0 %vm847_vm4, %v31221_v43  ;;  %28170 = vmatprep.mubr.msk.f32.mxu0 %vm30381_vm1, %v37010_v60  ;;  %v4299_v43 = vpop.permute.xlu1 %4298 }
 0x611   :  { %28178 = vmatprep.subr.mxu0 %v37010_v60  ;;  %28233 = vmatprep.subr.mxu1 %v37010_v60 }
 0x612   :  { %v4377_v1 = vpop.permute.xlu0 %4376 }
 0x613   :  { %28171 = vmatmul.mubr.msk.f32.vlgmr.msra.gmra.mxu0 %vm847_vm4, %v31227_v11  ;;  %28226 = vmatmul.mubr.msk.f32.vlgmr.msra.gmra.mxu1 %vm847_vm4, %v4377_v1 }
 0x614   :  { %28179 = vmatpush3.xpose.msk.msra.mxu0 %vm847_vm4, %v31231_v52  ;;  %28180 = vmatprep.mubr.msk.f32.mxu0 %vm30381_vm1, %v37010_v60  ;;  %v4457_v52 = vpop.permute.xlu1 %4456 }
 0x615   :  { %28188 = vmatprep.subr.mxu0 %v37010_v60  ;;  %28235 = vmatprep.mubr.msk.f32.mxu1 %vm30381_vm1, %v37010_v60 }
 0x616   :  { %v4535_v23 = vpop.permute.xlu0 %4534 }
 0x617   :  { %28181 = vmatmul.mubr.msk.f32.vlgmr.msra.gmra.mxu0 %vm847_vm4, %v31235_v44  ;;  %28234 = vmatpush3.xpose.msk.msra.mxu1 %vm847_vm4, %v4535_v23 }
 0x618   :  { %28189 = vmatpush3.xpose.msk.msra.mxu0 %vm847_vm4, %v31239_v36  ;;  %28190 = vmatprep.mubr.msk.f32.mxu0 %vm30381_vm1, %v37010_v60  ;;  %v4455_v44 = vpop.permute.xlu1 %4454 }
 0x619   :  { %28198 = vmatprep.subr.mxu0 %v37010_v60  ;;  %28243 = vmatprep.subr.mxu1 %v37010_v60 }
 0x61a   :  { %v4533_v11 = vpop.permute.xlu0 %4532 }
 0x61b   :  { %28191 = vmatmul.mubr.msk.f32.vlgmr.msra.gmra.mxu0 %vm847_vm4, %v31322_v8  ;;  %28236 = vmatmul.mubr.msk.f32.vlgmr.msra.gmra.mxu1 %vm847_vm4, %v4533_v11 }
 0x61c   :  { %28199 = vmatpush3.xpose.msk.msra.mxu0 %vm847_vm4, %v31361_v45  ;;  %28200 = vmatprep.mubr.msk.f32.mxu0 %vm30381_vm1, %v37010_v60  ;;  %v4613_v45 = vpop.permute.xlu1 %4612 }
 0x61d   :  { %28208 = vmatprep.subr.mxu0 %v37010_v60  ;;  %28245 = vmatprep.mubr.msk.f32.mxu1 %vm30381_vm1, %v37010_v60 }
 0x61e   :  { %v4691_v36 = vpop.permute.xlu0 %4690 }
 0x61f   :  { %28201 = vmatmul.mubr.msk.f32.vlgmr.msra.gmra.mxu0 %vm847_vm4, %v31369_v13  ;;  %28244 = vmatpush3.xpose.msk.msra.mxu1 %vm847_vm4, %v4691_v36 }
 0x620   :  { %28209 = vmatpush3.xpose.msk.msra.mxu0 %vm847_vm4, %v4145_v39  ;;  %28210 = vmatprep.mubr.msk.f32.mxu0 %vm30381_vm1, %v37010_v60  ;;  %v4611_v19 = vpop.permute.xlu1 %4610 }
 0x621   :  { %28218 = vmatprep.subr.mxu0 %v37010_v60  ;;  %28253 = vmatprep.subr.mxu1 %v37010_v60 }
 0x622   :  { %v4689_v8 = vpop.permute.xlu0 %4688 }
 0x623   :  { %28211 = vmatmul.mubr.msk.f32.vlgmr.msra.gmra.mxu0 %vm847_vm4, %v4143_v53  ;;  %28246 = vmatmul.mubr.msk.f32.vlgmr.msra.gmra.mxu1 %vm847_vm4, %v4689_v8 }
 0x624   :  { %28219 = vmatpush3.xpose.msk.msra.mxu0 %vm847_vm4, %v4301_v16  ;;  %28220 = vmatprep.mubr.msk.f32.mxu0 %vm30381_vm1, %v37010_v60 }
 0x625   :  { %28228 = vmatprep.subr.mxu0 %v37010_v60  ;;  %28255 = vmatprep.mubr.msk.f32.mxu1 %vm30381_vm1, %v37010_v60 }
 0x627   :  { %28221 = vmatmul.mubr.msk.f32.vlgmr.msra.gmra.mxu0 %vm847_vm4, %v4299_v43 }
 0x628   :  { %28229 = vmatpush3.xpose.msk.msra.mxu0 %vm847_vm4, %v4457_v52  ;;  %28230 = vmatprep.mubr.msk.f32.mxu0 %vm30381_vm1, %v37010_v60 }
 0x629   :  { %28238 = vmatprep.subr.mxu0 %v37010_v60 }
 0x62b   :  { %28231 = vmatmul.mubr.msk.f32.vlgmr.msra.gmra.mxu0 %vm847_vm4, %v4455_v44 }
 0x62c   :  { %28239 = vmatpush3.xpose.msk.msra.mxu0 %vm847_vm4, %v4613_v45  ;;  %28240 = vmatprep.mubr.msk.f32.mxu0 %vm30381_vm1, %v37010_v60 }
 0x62d   :  { %28248 = vmatprep.subr.mxu0 %v37010_v60 }
 0x62f   :  { %28241 = vmatmul.mubr.msk.f32.vlgmr.msra.gmra.mxu0 %vm847_vm4, %v4611_v19 }
 0x630   :  { %28250 = vmatprep.mubr.msk.f32.mxu0 %vm30381_vm1, %v37010_v60 }
 0x67c   :  { %v31624_v13 = vpop.f32.mrf.mxu1 }
 0x67e   :  { %v31626_v58 = vpop.f32.mrf.mxu0  ;;  %v28097_v61 = vpop.f32.mrf.mxu1 }
 0x680   :  { %v28092_v35 = vpop.f32.mrf.mxu0 }
 0x68a   :  { %v31628_v14 = vpop.f32.mrf.mxu1 }
 0x68c   :  { %v28107_v2 = vpop.f32.mrf.mxu1 }
 0x68f   :  { %v31630_v27 = vpop.f32.mrf.mxu0 }
 0x691   :  { %v28102_v0 = vpop.f32.mrf.mxu0 }
 0x693   :  { %v31632_v48 = vpop.f32.mrf.mxu0 }
 0x694   :  { %v31634_v3 = vpop.f32.mrf.mxu1 }
 0x695   :  { %v28112_v20 = vpop.f32.mrf.mxu0 }
 0x696   :  { %v28117_v9 = vpop.f32.mrf.mxu1 }
 0x697   :  { %v31636_v17 = vpop.f32.mrf.mxu0 }
 0x698   :  { %v31638_v42 = vpop.f32.mrf.mxu1 }
 0x699   :  { %v28122_v37 = vpop.f32.mrf.mxu0 }
 0x69a   :  { %v28127_v56 = vpop.f32.mrf.mxu1 }
 0x69b   :  { %v31640_v24 = vpop.f32.mrf.mxu0 }
 0x69c   :  { %v31642_v25 = vpop.f32.mrf.mxu1 }
 0x69d   :  { %v28132_v50 = vpop.f32.mrf.mxu0 }
 0x69e   :  { %v28137_v54 = vpop.f32.mrf.mxu1 }
 0x69f   :  { %v31644_v18 = vpop.f32.mrf.mxu0 }
 0x6a0   :  { %v31646_v55 = vpop.f32.mrf.mxu1 }
 0x6a1   :  { %v28142_v63 = vpop.f32.mrf.mxu0 }
 0x6a2   :  { %v28147_v12 = vpop.f32.mrf.mxu1 }
 0x6a3   :  { %v31648_v22 = vpop.f32.mrf.mxu0 }
 0x6a4   :  { %v31650_v57 = vpop.f32.mrf.mxu1 }
 0x6a5   :  { %v28152_v6 = vpop.f32.mrf.mxu0 }
 0x6a6   :  { %v28157_v7 = vpop.f32.mrf.mxu1 }
 0x6a8   :  { %v31652_v5 = vpop.f32.mrf.mxu1 }
 0x6aa   :  { %v28167_v46 = vpop.f32.mrf.mxu1 }
 0x6ac   :  { %v3670_v62 = vpop.f32.mrf.mxu1 }
 0x6ad   :  { %v4767_v51 = vmul.f32 0.5, %v3670_v62 }
 0x6ae   :  { %v28177_v28 = vpop.f32.mrf.mxu1 }
 0x6af   :  { %v31655_v31 = vadd.f32 %v4767_v51, %v31107_v10 }
 0x6b0   :  { %v3826_v39 = vpop.f32.mrf.mxu1 }
 0x6b1   :  { %v4801_v47 = vsel %vm2109_vm6, %v31655_v31, -inf  ;;  %v4769_v36 = vmul.f32 0.5, %v3826_v39 }
 0x6b2   :  { %4802 = vmax.xlane.f32.xlu0 %v4801_v47  ;;  %v28187_v53 = vpop.f32.mrf.mxu1 }
 0x6b3   :  { %v31665_v2 = vadd.f32 %v4769_v36, %v31107_v10 }
 0x6b4   :  { %v3982_v4 = vpop.f32.mrf.mxu1 }
 0x6b5   :  { %v4771_v61 = vmul.f32 0.5, %v3982_v4  ;;  %v4807_v6 = vsel %vm2109_vm6, %v31665_v2, -inf }
 0x6b6   :  { %v28197_v59 = vpop.f32.mrf.mxu1 }
 0x6b7   :  { %v31673_v56 = vadd.f32 %v4771_v61, %v31107_v10 }
 0x6b9   :  { %v4813_v39 = vsel %vm2109_vm6, %v31673_v56, -inf }
 0x6c3   :  { %v4138_v15 = vpop.f32.mrf.mxu1 }
 0x6c4   :  { %v4773_v63 = vmul.f32 0.5, %v4138_v15 }
 0x6c5   :  { %v28207_v21 = vpop.f32.mrf.mxu1 }
 0x6c6   :  { %v31685_v47 = vadd.f32 %v4773_v63, %v31107_v10 }
 0x6cb   :  { %v4294_v16 = vpop.f32.mrf.mxu1 }
 0x6cc   :  { %v4775_v53 = vmul.f32 0.5, %v4294_v16 }
 0x6cd   :  { %v28217_v1 = vpop.f32.mrf.mxu1 }
 0x6ce   :  { %v31693_v36 = vadd.f32 %v4775_v53, %v31107_v10 }
 0x6cf   :  { %v31659_v43 = vpop.f32.mrf.mxu0 }
 0x6d0   :  { %v4825_v63 = vsel %vm2109_vm6, %v31693_v36, -inf }
 0x6d1   :  { %v28162_v23 = vpop.f32.mrf.mxu0 }
 0x6d3   :  { %v3592_v11 = vpop.f32.mrf.mxu0  ;;  %v4450_v52 = vpop.f32.mrf.mxu1 }
 0x6d4   :  { %v4766_v44 = vmul.f32 0.5, %v3592_v11  ;;  %v4777_v1 = vmul.f32 0.5, %v4450_v52 }
 0x6d5   :  { %v28172_v8 = vpop.f32.mrf.mxu0  ;;  %v28227_v45 = vpop.f32.mrf.mxu1 }
 0x6d6   :  { %v31662_v19 = vadd.f32 %v4766_v44, %v31107_v10  ;;  %v4819_v8 = vsel %vm2109_vm6, %v31685_v47, -inf  ;;  %v31703_v52 = vadd.f32 %v4777_v1, %v31107_v10 }
 0x6d7   :  { %v3748_v35 = vpop.f32.mrf.mxu0 }
 0x6d8   :  { %v4768_v0 = vmul.f32 0.5, %v3748_v35  ;;  %v4798_v20 = vsel %vm2109_vm6, %v31662_v19, -inf }
 0x6d9   :  { %4799 = vmax.xlane.f32.xlu1 %v4798_v20  ;;  %v28182_v9 = vpop.f32.mrf.mxu0 }
 0x6da   :  { %v31670_v37 = vadd.f32 %v4768_v0, %v31107_v10 }
 0x6db   :  { %v3904_v50 = vpop.f32.mrf.mxu0  ;;  %v4606_v54 = vpop.f32.mrf.mxu1 }
 0x6dc   :  { %v4770_v12 = vmul.f32 0.5, %v3904_v50  ;;  %v4804_v7 = vsel %vm2109_vm6, %v31670_v37, -inf  ;;  %v4779_v20 = vmul.f32 0.5, %v4606_v54 }
 0x6dd   :  { %4808 = vmax.xlane.f32.xlu1 %v4807_v6  ;;  %4805 = vmax.xlane.f32.xlu0 %v4804_v7  ;;  %v28192_v46 = vpop.f32.mrf.mxu0  ;;  %v28237_v62 = vpop.f32.mrf.mxu1 }
 0x6de   :  { %v31680_v51 = vadd.f32 %v4770_v12, %v31107_v10  ;;  %v4831_v46 = vsel %vm2109_vm6, %v31703_v52, -inf  ;;  %v31715_v62 = vadd.f32 %v4779_v20, %v31107_v10  ;;  %v37013_v20 = vld [vmem:[#allocation19_spill] sm:$0xff] }
 0x6df   :  { %v4060_v28 = vpop.f32.mrf.mxu0 }
 0x6e0   :  { %v4772_v4 = vmul.f32 0.5, %v4060_v28  ;;  %v4810_v59 = vsel %vm2109_vm6, %v31680_v51, -inf }
 0x6e1   :  { %4814 = vmax.xlane.f32.xlu1 %v4813_v39  ;;  %4811 = vmax.xlane.f32.xlu0 %v4810_v59  ;;  %v28202_v15 = vpop.f32.mrf.mxu0 }
 0x6e2   :  { %v31690_v21 = vadd.f32 %v4772_v4, %v31107_v10 }
 0x6e3   :  { %v4216_v23 = vpop.f32.mrf.mxu0  ;;  %v4762_v11 = vpop.f32.mrf.mxu1 }
 0x6e4   :  { %v4774_v44 = vmul.f32 0.5, %v4216_v23  ;;  %v4816_v16 = vsel %vm2109_vm6, %v31690_v21, -inf  ;;  %v4781_v54 = vmul.f32 0.5, %v4762_v11  ;;  %v4837_v11 = vsel %vm2109_vm6, %v31715_v62, -inf }
 0x6e5   :  { %4817 = vmax.xlane.f32.xlu0 %v4816_v16  ;;  %v28212_v45 = vpop.f32.mrf.mxu0  ;;  %4820 = vmax.xlane.f32.xlu1 %v4819_v8  ;;  %v28247_v61 = vpop.f32.mrf.mxu1 }
 0x6e6   :  { %v31700_v35 = vadd.f32 %v4774_v44, %v31107_v10  ;;  %v31723_v15 = vadd.f32 %v4781_v54, %v31107_v10  ;;  %v37011_v61 = vld [vmem:[#allocation20_spill] sm:$0xff] }
 0x6e7   :  { %v4372_v0 = vpop.f32.mrf.mxu0 }
 0x6e8   :  { %v4776_v9 = vmul.f32 0.5, %v4372_v0  ;;  %v4822_v50 = vsel %vm2109_vm6, %v31700_v35, -inf  ;;  %v4843_v45 = vsel %vm2109_vm6, %v31723_v15, -inf  ;;  %v37012_v0 = vld [vmem:[#allocation18_spill] sm:$0xff] }
 0x6e9   :  { %4823 = vmax.xlane.f32.xlu0 %v4822_v50  ;;  %v28222_v12 = vpop.f32.mrf.mxu0  ;;  %4826 = vmax.xlane.f32.xlu1 %v4825_v63  ;;  %v37015_v50 = vld [vmem:[#allocation21_spill] sm:$0xff]  ;;  %v37016_v63 = vld [vmem:[#allocation23_spill] sm:$0xff] }
 0x6ea   :  { %v31710_v6 = vadd.f32 %v4776_v9, %v31107_v10  ;;  %v37014_v9 = vld [vmem:[#allocation22_spill] sm:$0xff] }
 0x6eb   :  { %v4528_v7 = vpop.f32.mrf.mxu0 }
 0x6ec   :  { %v4778_v28 = vmul.f32 0.5, %v4528_v7  ;;  %v4828_v39 = vsel %vm2109_vm6, %v31710_v6, -inf }
 0x6ed   :  { %4829 = vmax.xlane.f32.xlu0 %v4828_v39  ;;  %v28232_v53 = vpop.f32.mrf.mxu0  ;;  %4832 = vmax.xlane.f32.xlu1 %v4831_v46 }
 0x6ee   :  { %v31720_v4 = vadd.f32 %v4778_v28, %v31107_v10 }
 0x6ef   :  { %v4684_v59 = vpop.f32.mrf.mxu0 }
 0x6f0   :  { %v4780_v1 = vmul.f32 0.5, %v4684_v59  ;;  %v4834_v23 = vsel %vm2109_vm6, %v31720_v4, -inf }
 0x6f1   :  { %4835 = vmax.xlane.f32.xlu0 %v4834_v23  ;;  %v28242_v44 = vpop.f32.mrf.mxu0  ;;  %4838 = vmax.xlane.f32.xlu1 %v4837_v11 }
 0x6f2   :  { %v31730_v16 = vadd.f32 %v4780_v1, %v31107_v10 }
 0x6f4   :  { %v4840_v8 = vsel %vm2109_vm6, %v31730_v16, -inf }
 0x6f5   :  { %4841 = vmax.xlane.f32.xlu0 %v4840_v8  ;;  %4844 = vmax.xlane.f32.xlu1 %v4843_v45 }
 0x706   :  { %5067 = vrot.lane.b32.xlu1 %v30893_v49, %s30387_s26 }
 0x70a   :  { %5143 = vrot.lane.b32.xlu1 %v37011_v61, %s30387_s26 }
 0x70b   :  { %4991 = vrot.lane.b32.xlu0 %v37012_v0, %s30387_s26 }
 0x70e   :  { %5219 = vrot.lane.b32.xlu1 %v37013_v20, %s30387_s26 }
 0x712   :  { %5295 = vrot.lane.b32.xlu1 %v37014_v9, %s30387_s26 }
 0x716   :  { %5371 = vrot.lane.b32.xlu1 %v37015_v50, %s30387_s26 }
 0x71a   :  { %5447 = vrot.lane.b32.xlu1 %v37016_v63, %s30387_s26 }
 0x71e   :  { %5523 = vrot.lane.b32.xlu1 %v30915_v26, %s30387_s26 }
 0x722   :  { %5599 = vrot.lane.b32.xlu1 %v30925_v33, %s30387_s26 }
 0x726   :  { %5675 = vrot.lane.b32.xlu1 %v30923_v29, %s30387_s26 }
 0x73b   :  { %v4803_v12 = vpop.xlane.xlu0 %4802 }
 0x73c   :  { %v4847_v7 = vsub.f32 %v31655_v31, %v4803_v12 }
 0x73e   :  { %v4864_v46 = vmul.f32 1.442695, %v4847_v7 }
 0x740   :  { %29801 = vpow2.f32 %v4864_v46 }
 0x74d   :  { %v31757_v54 = vpop.eup %29801 }
 0x74e   :  { %v4897_v28 = vsel %vm2109_vm6, %v31757_v54, 0.0 }
 0x74f   :  { %4898 = vadd.xlane.f32.xlu1 %v4897_v28 }
 0x762   :  { %v4800_v39 = vpop.xlane.xlu1 %4799 }
 0x763   :  { %v4846_v53 = vsub.f32 %v31662_v19, %v4800_v39 }
 0x765   :  { %v4862_v59 = vmul.f32 1.442695, %v4846_v53 }
 0x766   :  { %v4809_v1 = vpop.xlane.xlu1 %4808  ;;  %v4806_v23 = vpop.xlane.xlu0 %4805 }
 0x767   :  { %29803 = vpow2.f32 %v4862_v59  ;;  %v4849_v11 = vsub.f32 %v31665_v2, %v4809_v1  ;;  %v4848_v44 = vsub.f32 %v31670_v37, %v4806_v23 }
 0x769   :  { %v4868_v31 = vmul.f32 1.442695, %v4849_v11  ;;  %v4866_v8 = vmul.f32 1.442695, %v4848_v44 }
 0x76a   :  { %v4815_v45 = vpop.xlane.xlu1 %4814  ;;  %v4812_v12 = vpop.xlane.xlu0 %4811 }
 0x76b   :  { %29805 = vpow2.f32 %v4868_v31  ;;  %v4851_v7 = vsub.f32 %v31673_v56, %v4815_v45  ;;  %v4850_v46 = vsub.f32 %v31680_v51, %v4812_v12 }
 0x76c   :  { %29807 = vpow2.f32 %v4866_v8 }
 0x76d   :  { %v4872_v28 = vmul.f32 1.442695, %v4851_v7  ;;  %v4870_v19 = vmul.f32 1.442695, %v4850_v46 }
 0x76e   :  { %v4821_v39 = vpop.xlane.xlu1 %4820  ;;  %v4818_v53 = vpop.xlane.xlu0 %4817 }
 0x76f   :  { %29809 = vpow2.f32 %v4872_v28  ;;  %v4853_v59 = vsub.f32 %v31685_v47, %v4821_v39  ;;  %v4852_v2 = vsub.f32 %v31690_v21, %v4818_v53 }
 0x770   :  { %29811 = vpow2.f32 %v4870_v19 }
 0x771   :  { %v4876_v37 = vmul.f32 1.442695, %v4853_v59  ;;  %v4874_v1 = vmul.f32 1.442695, %v4852_v2 }
 0x772   :  { %v4827_v23 = vpop.xlane.xlu1 %4826  ;;  %v4824_v11 = vpop.xlane.xlu0 %4823 }
 0x773   :  { %29813 = vpow2.f32 %v4876_v37  ;;  %v4855_v56 = vsub.f32 %v31693_v36, %v4827_v23  ;;  %v4854_v51 = vsub.f32 %v31700_v35, %v4824_v11 }
 0x774   :  { %v31770_v44 = vpop.eup %29803  ;;  %29815 = vpow2.f32 %v4874_v1 }
 0x775   :  { %v4880_v31 = vmul.f32 1.442695, %v4855_v56  ;;  %v4878_v8 = vmul.f32 1.442695, %v4854_v51  ;;  %v4894_v47 = vsel %vm2109_vm6, %v31770_v44, 0.0 }
 0x776   :  { %4895 = vadd.xlane.f32.xlu0 %v4894_v47  ;;  %v4833_v21 = vpop.xlane.xlu1 %4832  ;;  %v4830_v45 = vpop.xlane.xlu0 %4829 }
 0x777   :  { %29817 = vpow2.f32 %v4880_v31  ;;  %v4857_v12 = vsub.f32 %v31703_v52, %v4833_v21  ;;  %v4856_v7 = vsub.f32 %v31710_v6, %v4830_v45 }
 0x778   :  { %v31776_v46 = vpop.eup %29805  ;;  %29819 = vpow2.f32 %v4878_v8 }
 0x779   :  { %v31778_v36 = vpop.eup %29807  ;;  %v4884_v35 = vmul.f32 1.442695, %v4857_v12  ;;  %v4882_v28 = vmul.f32 1.442695, %v4856_v7  ;;  %v4903_v19 = vsel %vm2109_vm6, %v31776_v46, 0.0 }
 0x77a   :  { %v4839_v39 = vpop.xlane.xlu1 %4838  ;;  %4904 = vadd.xlane.f32.xlu1 %v4903_v19  ;;  %v4900_v53 = vsel %vm2109_vm6, %v31778_v36, 0.0  ;;  %v4836_v59 = vpop.xlane.xlu0 %4835 }
 0x77b   :  { %29821 = vpow2.f32 %v4884_v35  ;;  %v4859_v52 = vsub.f32 %v31715_v62, %v4839_v39  ;;  %4901 = vadd.xlane.f32.xlu0 %v4900_v53  ;;  %v4858_v6 = vsub.f32 %v31720_v4, %v4836_v59 }
 0x77c   :  { %v31786_v2 = vpop.eup %29809  ;;  %29823 = vpow2.f32 %v4882_v28 }
 0x77d   :  { %v31788_v37 = vpop.eup %29811  ;;  %v4888_v1 = vmul.f32 1.442695, %v4859_v52  ;;  %v4886_v23 = vmul.f32 1.442695, %v4858_v6  ;;  %v4909_v11 = vsel %vm2109_vm6, %v31786_v2, 0.0 }
 0x77e   :  { %v4845_v56 = vpop.xlane.xlu1 %4844  ;;  %4910 = vadd.xlane.f32.xlu1 %v4909_v11  ;;  %v4906_v51 = vsel %vm2109_vm6, %v31788_v37, 0.0  ;;  %v4842_v31 = vpop.xlane.xlu0 %4841 }
 0x77f   :  { %29825 = vpow2.f32 %v4888_v1  ;;  %v4861_v62 = vsub.f32 %v31723_v15, %v4845_v56  ;;  %4907 = vadd.xlane.f32.xlu0 %v4906_v51 }
 0x780   :  { %v31795_v4 = vpop.eup %29813  ;;  %29827 = vpow2.f32 %v4886_v23 }
 0x781   :  { %v31797_v8 = vpop.eup %29815  ;;  %v4892_v47 = vmul.f32 1.442695, %v4861_v62  ;;  %v4915_v21 = vsel %vm2109_vm6, %v31795_v4, 0.0 }
 0x782   :  { %v5068_v45 = vpop.permute.xlu1 %5067  ;;  %4916 = vadd.xlane.f32.xlu1 %v4915_v21  ;;  %v4912_v12 = vsel %vm2109_vm6, %v31797_v8, 0.0  ;;  %v4992_v7 = vpop.permute.xlu0 %4991  ;;  %v4860_v21 = vsub.f32 %v31730_v16, %v4842_v31 }
 0x783   :  { %29829 = vpow2.f32 %v4892_v47  ;;  %4913 = vadd.xlane.f32.xlu0 %v4912_v12  ;;  %28249 = vmatpush3.msra.mxu0 %v4992_v7 }
 0x784   :  { %v31803_v15 = vpop.eup %29817  ;;  %28254 = vmatpush3.msra.mxu1 %v5068_v45  ;;  %28258 = vmatprep.subr.mxu0 %v37010_v60  ;;  %v4890_v12 = vmul.f32 1.442695, %v4860_v21 }
 0x785   :  { %v31806_v35 = vpop.eup %29819  ;;  %v4921_v28 = vsel %vm2109_vm6, %v31803_v15, 0.0  ;;  %28263 = vmatprep.subr.mxu1 %v37010_v60 }
 0x786   :  { %4922 = vadd.xlane.f32.xlu1 %v4921_v28  ;;  %v4918_v19 = vsel %vm2109_vm6, %v31806_v35, 0.0  ;;  %v31841_v62 = vpop.permute.xlu1 %5143  ;;  %29831 = vpow2.f32 %v4890_v12 }
 0x787   :  { %4919 = vadd.xlane.f32.xlu0 %v4918_v19 }
 0x788   :  { %v31813_v39 = vpop.eup %29821 }
 0x789   :  { %v31815_v53 = vpop.eup %29823  ;;  %v4927_v59 = vsel %vm2109_vm6, %v31813_v39, 0.0 }
 0x78a   :  { %4928 = vadd.xlane.f32.xlu1 %v4927_v59  ;;  %v4924_v52 = vsel %vm2109_vm6, %v31815_v53, 0.0  ;;  %v5220_v47 = vpop.permute.xlu1 %5219 }
 0x78b   :  { %4925 = vadd.xlane.f32.xlu0 %v4924_v52 }
 0x78c   :  { %v31821_v6 = vpop.eup %29825 }
 0x78d   :  { %v31823_v1 = vpop.eup %29827  ;;  %v4933_v23 = vsel %vm2109_vm6, %v31821_v6, 0.0 }
 0x78e   :  { %4934 = vadd.xlane.f32.xlu1 %v4933_v23  ;;  %v4930_v11 = vsel %vm2109_vm6, %v31823_v1, 0.0  ;;  %v31852_v45 = vpop.permute.xlu1 %5295 }
 0x78f   :  { %4931 = vadd.xlane.f32.xlu0 %v4930_v11 }
 0x790   :  { %v31829_v56 = vpop.eup %29829 }
 0x791   :  { %v4939_v51 = vsel %vm2109_vm6, %v31829_v56, 0.0 }
 0x792   :  { %v31856_v7 = vpop.permute.xlu1 %5371 }
 0x793   :  { %4940 = vadd.xlane.f32.xlu0 %v4939_v51  ;;  %v31870_v31 = vpop.eup %29831 }
 0x794   :  { %v4936_v59 = vsel %vm2109_vm6, %v31870_v31, 0.0 }
 0x796   :  { %v31862_v28 = vpop.permute.xlu1 %5447 }
 0x79a   :  { %v31866_v16 = vpop.permute.xlu1 %5523 }
 0x79e   :  { %v31874_v19 = vpop.permute.xlu1 %5599 }
 0x79f   :  { %5827 = vrot.lane.b32.xlu1 %v30931_v30, %s30387_s26 }
 0x7a2   :  { %v31880_v52 = vpop.permute.xlu1 %5675 }
 0x7a3   :  { %5903 = vrot.lane.b32.xlu1 %v30941_v38, %s30387_s26 }
 0x7a7   :  { %5979 = vrot.lane.b32.xlu1 %v30939_v32, %s30387_s26 }
 0x7a9   :  { %5751 = vrot.lane.b32.xlu0 %v30933_v34, %s30387_s26 }
 0x7ab   :  { %6055 = vrot.lane.b32.xlu1 %v30949_v41, %s30387_s26 }
 0x7ad   :  { %6602 = vrot.lane.b32.xlu0 %v37012_v0, %s30388_s29 }
 0x7b1   :  { %6600 = vrot.lane.b32.xlu0 %v37012_v0, %s36962_s30 }
 0x7b5   :  { %6758 = vrot.lane.b32.xlu0 %v37011_v61, %s30388_s29 }
 0x7b9   :  { %6756 = vrot.lane.b32.xlu0 %v37011_v61, %s36962_s30 }
 0x7bd   :  { %6914 = vrot.lane.b32.xlu0 %v37014_v9, %s30388_s29 }
 0x7c1   :  { %6912 = vrot.lane.b32.xlu0 %v37014_v9, %s36962_s30 }
 0x7c5   :  { %7070 = vrot.lane.b32.xlu0 %v37016_v63, %s30388_s29 }
 0x7c9   :  { %7068 = vrot.lane.b32.xlu0 %v37016_v63, %s36962_s30 }
 0x7cd   :  { %7226 = vrot.lane.b32.xlu0 %v30925_v33, %s30388_s29 }
 0x7cf   :  { %4937 = vadd.xlane.f32.xlu1 %v4936_v59 }
 0x7d1   :  { %7224 = vrot.lane.b32.xlu0 %v30925_v33, %s36962_s30 }
 0x7d5   :  { %7382 = vrot.lane.b32.xlu0 %v30933_v34, %s30388_s29 }
 0x7d8   :  { %v4899_v23 = vpop.xlane.xlu1 %4898 }
 0x7d9   :  { %29833 = vrcp.f32 %v4899_v23  ;;  %7380 = vrot.lane.b32.xlu0 %v30933_v34, %s36962_s30 }
 0x7dd   :  { %7538 = vrot.lane.b32.xlu0 %v30941_v38, %s30388_s29 }
 0x7e0   :  { %6131 = vrot.lane.b32.xlu1 %v30947_v40, %s30387_s26 }
 0x7e1   :  { %7536 = vrot.lane.b32.xlu0 %v30941_v38, %s36962_s30 }
 0x7e4   :  { %6680 = vrot.lane.b32.xlu1 %v30893_v49, %s30388_s29 }
 0x7e5   :  { %7694 = vrot.lane.b32.xlu0 %v30949_v41, %s30388_s29 }
 0x7e6   :  { %v29834_v11 = vpop.eup %29833 }
 0x7e7   :  { %v4945_v51 = vmul.f32 %v29834_v11, %v31757_v54 }
 0x7e8   :  { %6678 = vrot.lane.b32.xlu1 %v30893_v49, %s36962_s30 }
 0x7e9   :  { %26472 = vst.msk [vmem:[%s36906_s19 + $0x88] sm:$0xff] %vm2109_vm6, %v4945_v51  ;;  %28256 = vmatmul.mubr.msk.f32.vlgmr.msra.gmra.mxu1 %vm2109_vm6, %v4945_v51  ;;  %7692 = vrot.lane.b32.xlu0 %v30949_v41, %s36962_s30 }
 0x7ea   :  { %28264 = vmatpush3.msra.mxu1 %v5220_v47  ;;  %28265 = vmatprep.mubr.msk.f32.mxu1 %vm30381_vm1, %v37010_v60 }
 0x7eb   :  { %28273 = vmatprep.subr.mxu1 %v37010_v60 }
 0x7ec   :  { %6836 = vrot.lane.b32.xlu1 %v37013_v20, %s30388_s29 }
 0x7f0   :  { %6834 = vrot.lane.b32.xlu1 %v37013_v20, %s36962_s30 }
 0x7f4   :  { %6992 = vrot.lane.b32.xlu1 %v37015_v50, %s30388_s29 }
 0x7f8   :  { %6990 = vrot.lane.b32.xlu1 %v37015_v50, %s36962_s30 }
 0x7fc   :  { %7148 = vrot.lane.b32.xlu1 %v30915_v26, %s30388_s29 }
 0x7ff   :  { %v4896_v54 = vpop.xlane.xlu0 %4895 }
 0x800   :  { %29835 = vrcp.f32 %v4896_v54  ;;  %7146 = vrot.lane.b32.xlu1 %v30915_v26, %s36962_s30 }
 0x803   :  { %v4905_v47 = vpop.xlane.xlu1 %4904 }
 0x804   :  { %29837 = vrcp.f32 %v4905_v47  ;;  %v4902_v21 = vpop.xlane.xlu0 %4901  ;;  %7304 = vrot.lane.b32.xlu1 %v30923_v29, %s30388_s29 }
 0x805   :  { %29839 = vrcp.f32 %v4902_v21 }
 0x807   :  { %v4911_v12 = vpop.xlane.xlu1 %4910 }
 0x808   :  { %29841 = vrcp.f32 %v4911_v12  ;;  %v4908_v59 = vpop.xlane.xlu0 %4907  ;;  %7302 = vrot.lane.b32.xlu1 %v30923_v29, %s36962_s30 }
 0x809   :  { %29843 = vrcp.f32 %v4908_v59 }
 0x80b   :  { %v4917_v23 = vpop.xlane.xlu1 %4916 }
 0x80c   :  { %29845 = vrcp.f32 %v4917_v23  ;;  %v4914_v11 = vpop.xlane.xlu0 %4913  ;;  %7460 = vrot.lane.b32.xlu1 %v30931_v30, %s30388_s29 }
 0x80d   :  { %v29836_v51 = vpop.eup %29835  ;;  %29847 = vrcp.f32 %v4914_v11 }
 0x80e   :  { %v4943_v54 = vmul.f32 %v29836_v51, %v31770_v44 }
 0x80f   :  { %v4923_v47 = vpop.xlane.xlu1 %4922 }
 0x810   :  { %29849 = vrcp.f32 %v4923_v47  ;;  %v4920_v21 = vpop.xlane.xlu0 %4919  ;;  %7458 = vrot.lane.b32.xlu1 %v30931_v30, %s36962_s30  ;;  %26471 = vst.msk [vmem:[%s36906_s19 + $0x80] sm:$0xff] %vm2109_vm6, %v4943_v54  ;;  %28251 = vmatmul.mubr.msk.f32.vlgmr.msra.gmra.mxu0 %vm2109_vm6, %v4943_v54 }
 0x811   :  { %v29838_v12 = vpop.eup %29837  ;;  %29851 = vrcp.f32 %v4920_v21  ;;  %28259 = vmatpush3.msra.mxu0 %v31841_v62  ;;  %28260 = vmatprep.mubr.msk.f32.mxu0 %vm30381_vm1, %v37010_v60 }
 0x812   :  { %v29840_v44 = vpop.eup %29839  ;;  %28268 = vmatprep.subr.mxu0 %v37010_v60  ;;  %v4949_v59 = vmul.f32 %v29838_v12, %v31776_v46 }
 0x813   :  { %v4929_v23 = vpop.xlane.xlu1 %4928  ;;  %v4947_v11 = vmul.f32 %v29840_v44, %v31778_v36 }
 0x814   :  { %29853 = vrcp.f32 %v4929_v23  ;;  %v4926_v51 = vpop.xlane.xlu0 %4925  ;;  %26474 = vst.msk [vmem:[%s36906_s19 + $0x98] sm:$0xff] %vm2109_vm6, %v4949_v59  ;;  %28266 = vmatmul.mubr.msk.f32.vlgmr.msra.gmra.mxu1 %vm2109_vm6, %v4949_v59  ;;  %7616 = vrot.lane.b32.xlu1 %v30939_v32, %s30388_s29 }
 0x815   :  { %v29842_v62 = vpop.eup %29841  ;;  %29855 = vrcp.f32 %v4926_v51  ;;  %28274 = vmatpush3.msra.mxu1 %v31856_v7  ;;  %26473 = vst.msk [vmem:[%s36906_s19 + $0x90] sm:$0xff] %vm2109_vm6, %v4947_v11  ;;  %28261 = vmatmul.mubr.msk.f32.vlgmr.msra.gmra.mxu0 %vm2109_vm6, %v4947_v11 }
 0x816   :  { %v29844_v46 = vpop.eup %29843  ;;  %28269 = vmatpush3.msra.mxu0 %v31852_v45  ;;  %28275 = vmatprep.mubr.msk.f32.mxu1 %vm30381_vm1, %v37010_v60  ;;  %v4953_v36 = vmul.f32 %v29842_v62, %v31786_v2 }
 0x817   :  { %28283 = vmatprep.subr.mxu1 %v37010_v60  ;;  %v4935_v54 = vpop.xlane.xlu1 %4934  ;;  %28270 = vmatprep.mubr.msk.f32.mxu0 %vm30381_vm1, %v37010_v60  ;;  %v4951_v7 = vmul.f32 %v29844_v46, %v31788_v37  ;;  %v842_v46 = vld [vmem:[%s36907_s6] sm:$0xff] }
 0x818   :  { %29857 = vrcp.f32 %v4935_v54  ;;  %28278 = vmatprep.subr.mxu0 %v37010_v60  ;;  %v4932_v47 = vpop.xlane.xlu0 %4931  ;;  %26476 = vst.msk [vmem:[%s36906_s19 + $0xa8] sm:$0xff] %vm2109_vm6, %v4953_v36  ;;  %28276 = vmatmul.mubr.msk.f32.vlgmr.msra.gmra.mxu1 %vm2109_vm6, %v4953_v36 }
 0x819   :  { %v29846_v2 = vpop.eup %29845  ;;  %29859 = vrcp.f32 %v4932_v47  ;;  %28284 = vmatpush3.msra.mxu1 %v31866_v16  ;;  %7614 = vrot.lane.b32.xlu1 %v30939_v32, %s36962_s30  ;;  %26475 = vst.msk [vmem:[%s36906_s19 + $0xa0] sm:$0xff] %vm2109_vm6, %v4951_v7 }
 0x81a   :  { %v29848_v37 = vpop.eup %29847  ;;  %28271 = vmatmul.mubr.msk.f32.vlgmr.msra.gmra.mxu0 %vm2109_vm6, %v4951_v7  ;;  %28285 = vmatprep.mubr.msk.f32.mxu1 %vm30381_vm1, %v37010_v60  ;;  %v4957_v45 = vmul.f32 %v29846_v2, %v31795_v4 }
 0x81b   :  { %28279 = vmatpush3.msra.mxu0 %v31862_v28  ;;  %28293 = vmatprep.subr.mxu1 %v37010_v60  ;;  %v5828_v16 = vpop.permute.xlu1 %5827  ;;  %v4955_v21 = vmul.f32 %v29848_v37, %v31797_v8 }
 0x81c   :  { %28280 = vmatprep.mubr.msk.f32.mxu0 %vm30381_vm1, %v37010_v60  ;;  %28288 = vmatprep.subr.mxu0 %v37010_v60  ;;  %v4941_v12 = vpop.xlane.xlu0 %4940  ;;  %26478 = vst.msk [vmem:[%s36906_s19 + $0xb8] sm:$0xff] %vm2109_vm6, %v4957_v45 }
 0x81d   :  { %v29850_v44 = vpop.eup %29849  ;;  %29861 = vrcp.f32 %v4941_v12  ;;  %28286 = vmatmul.mubr.msk.f32.vlgmr.msra.gmra.mxu1 %vm2109_vm6, %v4957_v45  ;;  %7772 = vrot.lane.b32.xlu1 %v30947_v40, %s30388_s29  ;;  %26477 = vst.msk [vmem:[%s36906_s19 + $0xb0] sm:$0xff] %vm2109_vm6, %v4955_v21 }
 0x81e   :  { %v29852_v4 = vpop.eup %29851  ;;  %28294 = vmatpush3.msra.mxu1 %v31880_v52  ;;  %28281 = vmatmul.mubr.msk.f32.vlgmr.msra.gmra.mxu0 %vm2109_vm6, %v4955_v21  ;;  %v4961_v8 = vmul.f32 %v29850_v44, %v31803_v15 }
 0x81f   :  { %28289 = vmatpush3.msra.mxu0 %v31874_v19  ;;  %28295 = vmatprep.mubr.msk.f32.mxu1 %vm30381_vm1, %v37010_v60  ;;  %v5904_v28 = vpop.permute.xlu1 %5903  ;;  %v4959_v59 = vmul.f32 %v29852_v4, %v31806_v35 }
 0x820   :  { %28303 = vmatprep.subr.mxu1 %v37010_v60  ;;  %28290 = vmatprep.mubr.msk.f32.mxu0 %vm30381_vm1, %v37010_v60  ;;  %26480 = vst.msk [vmem:[%s36906_s19 + $0xc8] sm:$0xff] %vm2109_vm6, %v4961_v8  ;;  %v5752_v15 = vpop.permute.xlu0 %5751 }
 0x821   :  { %v29854_v52 = vpop.eup %29853  ;;  %28298 = vmatprep.subr.mxu0 %v37010_v60  ;;  %28296 = vmatmul.mubr.msk.f32.vlgmr.msra.gmra.mxu1 %vm2109_vm6, %v4961_v8  ;;  %26479 = vst.msk [vmem:[%s36906_s19 + $0xc0] sm:$0xff] %vm2109_vm6, %v4959_v59 }
 0x822   :  { %v29856_v35 = vpop.eup %29855  ;;  %28304 = vmatpush3.msra.mxu1 %v5828_v16  ;;  %7770 = vrot.lane.b32.xlu1 %v30947_v40, %s36962_s30  ;;  %v4965_v19 = vmul.f32 %v29854_v52, %v31813_v39 }
 0x823   :  { %28291 = vmatmul.mubr.msk.f32.vlgmr.msra.gmra.mxu0 %vm2109_vm6, %v4959_v59  ;;  %28305 = vmatprep.mubr.msk.f32.mxu1 %vm30381_vm1, %v37010_v60  ;;  %v5980_v23 = vpop.permute.xlu1 %5979  ;;  %v4963_v11 = vmul.f32 %v29856_v35, %v31815_v53 }
 0x824   :  { %28299 = vmatpush3.msra.mxu0 %v5752_v15  ;;  %28313 = vmatprep.subr.mxu1 %v37010_v60  ;;  %26482 = vst.msk [vmem:[%s36906_s19 + $0xd8] sm:$0xff] %vm2109_vm6, %v4965_v19  ;;  %v6603_v16 = vpop.permute.xlu0 %6602 }
 0x825   :  { %v29858_v51 = vpop.eup %29857  ;;  %28300 = vmatprep.mubr.msk.f32.mxu0 %vm30381_vm1, %v37010_v60  ;;  %28308 = vmatprep.subr.mxu0 %v37010_v60  ;;  %26481 = vst.msk [vmem:[%s36906_s19 + $0xd0] sm:$0xff] %vm2109_vm6, %v4963_v11 }
 0x826   :  { %v29860_v39 = vpop.eup %29859  ;;  %28306 = vmatmul.mubr.msk.f32.vlgmr.msra.gmra.mxu1 %vm2109_vm6, %v4965_v19  ;;  %v4969_v53 = vmul.f32 %v29858_v51, %v31821_v6  ;;  %v6208_v6 = vrot.slane %v842_v46, 4 }
 0x827   :  { %28301 = vmatmul.mubr.msk.f32.vlgmr.msra.gmra.mxu0 %vm2109_vm6, %v4963_v11  ;;  %28314 = vmatpush3.msra.mxu1 %v5980_v23  ;;  %v4967_v62 = vmul.f32 %v29860_v39, %v31823_v1  ;;  %v6056_v36 = vpop.permute.xlu1 %6055 }
 0x828   :  { %28309 = vmatpush3.msra.mxu0 %v5904_v28  ;;  %28315 = vmatprep.mubr.msk.f32.mxu1 %vm30381_vm1, %v37010_v60  ;;  %26484 = vst.msk [vmem:[%s36906_s19 + $0xe8] sm:$0xff] %vm2109_vm6, %v4969_v53 }
 0x829   :  { %28310 = vmatprep.mubr.msk.f32.mxu0 %vm30381_vm1, %v37010_v60  ;;  %28318 = vmatprep.subr.mxu0 %v37010_v60  ;;  %26483 = vst.msk [vmem:[%s36906_s19 + $0xe0] sm:$0xff] %vm2109_vm6, %v4967_v62 }
 0x82a   :  { %v29862_v1 = vpop.eup %29861  ;;  %28316 = vmatmul.mubr.msk.f32.vlgmr.msra.gmra.mxu1 %vm2109_vm6, %v4969_v53  ;;  %28323 = vmatprep.subr.mxu1 %v37010_v60 }
 0x82b   :  { %28311 = vmatmul.mubr.msk.f32.vlgmr.msra.gmra.mxu0 %vm2109_vm6, %v4967_v62  ;;  %28325 = vmatprep.mubr.msk.f32.mxu1 %vm30381_vm1, %v37010_v60  ;;  %v4973_v54 = vmul.f32 %v29862_v1, %v31829_v56 }
 0x82c   :  { %28319 = vmatpush3.msra.mxu0 %v6056_v36  ;;  %28320 = vmatprep.mubr.msk.f32.mxu0 %vm30381_vm1, %v37010_v60 }
 0x82d   :  { %26486 = vst.msk [vmem:[%s36906_s19 + $0xf8] sm:$0xff] %vm2109_vm6, %v4973_v54  ;;  %28328 = vmatprep.subr.msk.mxu0 %vm6257_vm7, %v6208_v6 }
 0x858   :  { %v4938_v7 = vpop.xlane.xlu1 %4937 }
 0x859   :  { %29863 = vrcp.f32 %v4938_v7 }
 0x85c   :  { %v6132_v47 = vpop.permute.xlu1 %6131 }
 0x85d   :  { %28324 = vmatpush3.msra.mxu1 %v6132_v47 }
 0x85e   :  { %28326 = vmatmul.mubr.msk.f32.vlgmr.msra.gmra.mxu1 %vm2109_vm6, %v4973_v54  ;;  %28354 = vmatprep.subr.msk.mxu1 %vm6257_vm7, %v842_v46 }
 0x85f   :  { %28356 = vmatprep.mubr.msk.f32.mxu1 %vm847_vm4, %v31626_v58  ;;  %28355 = vmatpush3.msk.msra.mxu1 %vm6257_vm7, %v842_v46 }
 0x860   :  { %v6681_v56 = vpop.permute.xlu1 %6680  ;;  %28385 = vmatprep.subr.mxu1 %v37010_v60 }
 0x862   :  { %28357 = vmatmul.mubr.msk.f32.vlgmr.msra.gmra.mxu1 %vm847_vm4, %v31624_v13 }
 0x863   :  { %28386 = vmatpush3.xpose.msk.msra.mxu1 %vm847_vm4, %v6681_v56  ;;  %28359 = vmatprep.mubr.msk.f32.mxu1 %vm847_vm4, %v31630_v27 }
 0x864   :  { %v6679_v2 = vpop.permute.xlu1 %6678  ;;  %28395 = vmatprep.subr.mxu1 %v37010_v60 }
 0x866   :  { %v29864_v37 = vpop.eup %29863  ;;  %28360 = vmatmul.mubr.msk.f32.gmra.mxu1 %vm847_vm4, %v31628_v14 }
 0x867   :  { %28362 = vmatprep.mubr.msk.f32.mxu1 %vm847_vm4, %v31632_v48  ;;  %v4971_v58 = vmul.f32 %v29864_v37, %v31870_v31 }
 0x868   :  { %v6837_v45 = vpop.permute.xlu1 %6836 }
 0x869   :  { %26485 = vst.msk [vmem:[%s36906_s19 + $0xf0] sm:$0xff] %vm2109_vm6, %v4971_v58  ;;  %28321 = vmatmul.mubr.msk.f32.vlgmr.msra.gmra.mxu0 %vm2109_vm6, %v4971_v58 }
 0x86a   :  { %28363 = vmatmul.mubr.msk.f32.gmra.mxu1 %vm847_vm4, %v31634_v3  ;;  %28329 = vmatpush3.msk.msra.mxu0 %vm6257_vm7, %v6208_v6 }
 0x86b   :  { %28365 = vmatprep.mubr.msk.f32.mxu1 %vm847_vm4, %v31636_v17  ;;  %28380 = vmatprep.subr.mxu0 %v37010_v60 }
 0x86c   :  { %v6835_v13 = vpop.permute.xlu1 %6834 }
 0x86e   :  { %28366 = vmatmul.mubr.msk.f32.gmra.mxu1 %vm847_vm4, %v31638_v42 }
 0x86f   :  { %28368 = vmatprep.mubr.msk.f32.mxu1 %vm847_vm4, %v31640_v24 }
 0x870   :  { %v6993_v14 = vpop.permute.xlu1 %6992 }
 0x872   :  { %28369 = vmatmul.mubr.msk.f32.gmra.mxu1 %vm847_vm4, %v31642_v25 }
 0x873   :  { %28371 = vmatprep.mubr.msk.f32.mxu1 %vm847_vm4, %v31644_v18 }
 0x874   :  { %v6991_v27 = vpop.permute.xlu1 %6990 }
 0x876   :  { %28372 = vmatmul.mubr.msk.f32.gmra.mxu1 %vm847_vm4, %v31646_v55 }
 0x877   :  { %28374 = vmatprep.mubr.msk.f32.mxu1 %vm847_vm4, %v31648_v22 }
 0x878   :  { %v7149_v48 = vpop.permute.xlu1 %7148 }
 0x87a   :  { %28375 = vmatmul.mubr.msk.f32.gmra.mxu1 %vm847_vm4, %v31650_v57 }
 0x87b   :  { %28377 = vmatprep.mubr.msk.f32.mxu1 %vm847_vm4, %v31659_v43 }
 0x87c   :  { %v7147_v3 = vpop.permute.xlu1 %7146 }
 0x87e   :  { %28378 = vmatmul.mubr.msk.f32.gmra.mxu1 %vm847_vm4, %v31652_v5 }
 0x87f   :  { %28387 = vmatprep.mubr.msk.f32.mxu1 %vm30381_vm1, %v37010_v60 }
 0x880   :  { %v7305_v17 = vpop.permute.xlu1 %7304 }
 0x882   :  { %28388 = vmatmul.mubr.msk.f32.vlgmr.msra.gmra.mxu1 %vm847_vm4, %v6679_v2  ;;  %v6601_v2 = vpop.permute.xlu0 %6600 }
 0x883   :  { %28396 = vmatpush3.xpose.msk.msra.mxu1 %vm847_vm4, %v6837_v45  ;;  %28397 = vmatprep.mubr.msk.f32.mxu1 %vm30381_vm1, %v37010_v60 }
 0x884   :  { %v7303_v42 = vpop.permute.xlu1 %7302  ;;  %28405 = vmatprep.subr.mxu1 %v37010_v60 }
 0x886   :  { %28398 = vmatmul.mubr.msk.f32.vlgmr.msra.gmra.mxu1 %vm847_vm4, %v6835_v13  ;;  %v6759_v37 = vpop.permute.xlu0 %6758 }
 0x887   :  { %28406 = vmatpush3.xpose.msk.msra.mxu1 %vm847_vm4, %v6993_v14  ;;  %28407 = vmatprep.mubr.msk.f32.mxu1 %vm30381_vm1, %v37010_v60 }
 0x888   :  { %v7461_v24 = vpop.permute.xlu1 %7460  ;;  %28415 = vmatprep.subr.mxu1 %v37010_v60 }
 0x88a   :  { %28408 = vmatmul.mubr.msk.f32.vlgmr.msra.gmra.mxu1 %vm847_vm4, %v6991_v27  ;;  %v6757_v58 = vpop.permute.xlu0 %6756 }
 0x88b   :  { %28416 = vmatpush3.xpose.msk.msra.mxu1 %vm847_vm4, %v7149_v48  ;;  %28417 = vmatprep.mubr.msk.f32.mxu1 %vm30381_vm1, %v37010_v60 }
 0x88c   :  { %v7459_v25 = vpop.permute.xlu1 %7458  ;;  %28425 = vmatprep.subr.mxu1 %v37010_v60 }
 0x88e   :  { %28418 = vmatmul.mubr.msk.f32.vlgmr.msra.gmra.mxu1 %vm847_vm4, %v7147_v3  ;;  %v6915_v45 = vpop.permute.xlu0 %6914 }
 0x88f   :  { %28426 = vmatpush3.xpose.msk.msra.mxu1 %vm847_vm4, %v7305_v17  ;;  %28427 = vmatprep.mubr.msk.f32.mxu1 %vm30381_vm1, %v37010_v60 }
 0x890   :  { %v7617_v18 = vpop.permute.xlu1 %7616  ;;  %28435 = vmatprep.subr.mxu1 %v37010_v60 }
 0x892   :  { %28428 = vmatmul.mubr.msk.f32.vlgmr.msra.gmra.mxu1 %vm847_vm4, %v7303_v42  ;;  %v6913_v13 = vpop.permute.xlu0 %6912 }
 0x893   :  { %28436 = vmatpush3.xpose.msk.msra.mxu1 %vm847_vm4, %v7461_v24  ;;  %28437 = vmatprep.mubr.msk.f32.mxu1 %vm30381_vm1, %v37010_v60 }
 0x894   :  { %v7615_v55 = vpop.permute.xlu1 %7614  ;;  %28445 = vmatprep.subr.mxu1 %v37010_v60 }
 0x896   :  { %28438 = vmatmul.mubr.msk.f32.vlgmr.msra.gmra.mxu1 %vm847_vm4, %v7459_v25  ;;  %v7071_v14 = vpop.permute.xlu0 %7070 }
 0x897   :  { %28446 = vmatpush3.xpose.msk.msra.mxu1 %vm847_vm4, %v7617_v18  ;;  %28447 = vmatprep.mubr.msk.f32.mxu1 %vm30381_vm1, %v37010_v60 }
 0x898   :  { %v7773_v22 = vpop.permute.xlu1 %7772  ;;  %28455 = vmatprep.subr.mxu1 %v37010_v60 }
 0x89a   :  { %28448 = vmatmul.mubr.msk.f32.vlgmr.msra.gmra.mxu1 %vm847_vm4, %v7615_v55  ;;  %v7069_v27 = vpop.permute.xlu0 %7068 }
 0x89b   :  { %28456 = vmatpush3.xpose.msk.msra.mxu1 %vm847_vm4, %v7773_v22  ;;  %28457 = vmatprep.mubr.msk.f32.mxu1 %vm30381_vm1, %v37010_v60 }
 0x89c   :  { %v7771_v57 = vpop.permute.xlu1 %7770  ;;  %28465 = vmatprep.subr.mxu1 %v37010_v60 }
 0x89e   :  { %28458 = vmatmul.mubr.msk.f32.vlgmr.msra.gmra.mxu1 %vm847_vm4, %v7771_v57  ;;  %v7227_v3 = vpop.permute.xlu0 %7226 }
 0x89f   :  { %28467 = vmatprep.mubr.msk.f32.mxu1 %vm30381_vm1, %v37010_v60 }
 0x8a2   :  { %v7225_v25 = vpop.permute.xlu0 %7224 }
 0x8a9   :  { %v5139_v5 = vpop.f32.mrf.mxu1 }
 0x8ab   :  { %v28257_v43 = vpop.f32.mrf.mxu1 }
 0x8ac   :  { %v7383_v43 = vpop.permute.xlu0 %7382 }
 0x8d0   :  { %v5063_v31 = vpop.f32.mrf.mxu0 }
 0x8d1   :  { %28330 = vmatprep.mubr.msk.f32.mxu0 %vm847_vm4, %v5063_v31 }
 0x8d2   :  { %v28252_v21 = vpop.f32.mrf.mxu0  ;;  %28331 = vmatmul.mubr.msk.f32.vlgmr.msra.gmra.mxu0 %vm847_vm4, %v5139_v5 }
 0x8d3   :  { %28381 = vmatpush3.xpose.msk.msra.mxu0 %vm847_vm4, %v6603_v16 }
 0x8d4   :  { %v5291_v12 = vpop.f32.mrf.mxu1  ;;  %28390 = vmatprep.subr.mxu0 %v37010_v60 }
 0x8d5   :  { %v5215_v44 = vpop.f32.mrf.mxu0 }
 0x8d6   :  { %28333 = vmatprep.mubr.msk.f32.mxu0 %vm847_vm4, %v5215_v44  ;;  %v28267_v4 = vpop.f32.mrf.mxu1 }
 0x8d7   :  { %v28262_v8 = vpop.f32.mrf.mxu0  ;;  %28334 = vmatmul.mubr.msk.f32.gmra.mxu0 %vm847_vm4, %v5291_v12  ;;  %v7381_v12 = vpop.permute.xlu0 %7380 }
 0x8d8   :  { %v5443_v28 = vpop.f32.mrf.mxu1 }
 0x8da   :  { %v5367_v59 = vpop.f32.mrf.mxu0  ;;  %v28277_v52 = vpop.f32.mrf.mxu1 }
 0x8db   :  { %28336 = vmatprep.mubr.msk.f32.mxu0 %vm847_vm4, %v5367_v59 }
 0x8dc   :  { %v28272_v15 = vpop.f32.mrf.mxu0  ;;  %28337 = vmatmul.mubr.msk.f32.gmra.mxu0 %vm847_vm4, %v5443_v28  ;;  %v7539_v28 = vpop.permute.xlu0 %7538 }
 0x8dd   :  { %v5595_v35 = vpop.f32.mrf.mxu1 }
 0x8de   :  { %v5519_v19 = vpop.f32.mrf.mxu0 }
 0x8df   :  { %28339 = vmatprep.mubr.msk.f32.mxu0 %vm847_vm4, %v5519_v19  ;;  %v28287_v23 = vpop.f32.mrf.mxu1 }
 0x8e0   :  { %v28282_v11 = vpop.f32.mrf.mxu0  ;;  %28340 = vmatmul.mubr.msk.f32.gmra.mxu0 %vm847_vm4, %v5595_v35  ;;  %v7537_v35 = vpop.permute.xlu0 %7536 }
 0x8e1   :  { %v5747_v51 = vpop.f32.mrf.mxu1 }
 0x8e3   :  { %v5671_v39 = vpop.f32.mrf.mxu0  ;;  %v28297_v53 = vpop.f32.mrf.mxu1 }
 0x8e4   :  { %28342 = vmatprep.mubr.msk.f32.mxu0 %vm847_vm4, %v5671_v39  ;;  %v7695_v39 = vpop.permute.xlu0 %7694 }
 0x8e5   :  { %v28292_v62 = vpop.f32.mrf.mxu0  ;;  %28343 = vmatmul.mubr.msk.f32.gmra.mxu0 %vm847_vm4, %v5747_v51 }
 0x8e6   :  { %v5899_v46 = vpop.f32.mrf.mxu1 }
 0x8e7   :  { %v5823_v36 = vpop.f32.mrf.mxu0 }
 0x8e8   :  { %28345 = vmatprep.mubr.msk.f32.mxu0 %vm847_vm4, %v5823_v36  ;;  %v28307_v6 = vpop.f32.mrf.mxu1 }
 0x8e9   :  { %v28302_v1 = vpop.f32.mrf.mxu0  ;;  %28346 = vmatmul.mubr.msk.f32.gmra.mxu0 %vm847_vm4, %v5899_v46 }
 0x8ea   :  { %v6051_v54 = vpop.f32.mrf.mxu1 }
 0x8eb   :  { %v5975_v7 = vpop.f32.mrf.mxu0 }
 0x8ec   :  { %28348 = vmatprep.mubr.msk.f32.mxu0 %vm847_vm4, %v5975_v7  ;;  %v28317_v47 = vpop.f32.mrf.mxu1  ;;  %v7693_v7 = vpop.permute.xlu0 %7692 }
 0x8ed   :  { %v28312_v56 = vpop.f32.mrf.mxu0  ;;  %28349 = vmatmul.mubr.msk.f32.gmra.mxu0 %vm847_vm4, %v6051_v54 }
 0x91e   :  { %v6203_v48 = vpop.f32.mrf.mxu1 }
 0x920   :  { %v28327_v17 = vpop.f32.mrf.mxu1 }
 0x922   :  { %v32170_v42 = vpop.f32.mrf.mxu1 }
 0x924   :  { %v32172_v24 = vpop.f32.mrf.mxu1 }
 0x926   :  { %v32174_v18 = vpop.f32.mrf.mxu1 }
 0x928   :  { %v32176_v55 = vpop.f32.mrf.mxu1 }
 0x929   :  { %37017 = vst [vmem:[#allocation20_spill] sm:$0xff] %v32176_v55  ;;  %v6127_v22 = vpop.f32.mrf.mxu0 }
 0x92a   :  { %28351 = vmatprep.mubr.msk.f32.mxu0 %vm847_vm4, %v6127_v22  ;;  %v32179_v57 = vpop.f32.mrf.mxu1 }
 0x92b   :  { %v28322_v5 = vpop.f32.mrf.mxu0  ;;  %28352 = vmatmul.mubr.msk.f32.gmra.mxu0 %vm847_vm4, %v6203_v48 }
 0x92c   :  { %v32182_v31 = vpop.f32.mrf.mxu1  ;;  %28382 = vmatprep.mubr.msk.f32.mxu0 %vm30381_vm1, %v37010_v60 }
 0x92d   :  { %37018 = vst [vmem:[#allocation18_spill] sm:$0xff] %v32182_v31 }
 0x92e   :  { %v32186_v16 = vpop.f32.mrf.mxu1 }
 0x92f   :  { %28383 = vmatmul.mubr.msk.f32.vlgmr.msra.gmra.mxu0 %vm847_vm4, %v6601_v2 }
 0x930   :  { %28391 = vmatpush3.xpose.msk.msra.mxu0 %vm847_vm4, %v6759_v37  ;;  %v32190_v21 = vpop.f32.mrf.mxu1  ;;  %28392 = vmatprep.mubr.msk.f32.mxu0 %vm30381_vm1, %v37010_v60 }
 0x931   :  { %37019 = vst [vmem:[#allocation19_spill] sm:$0xff] %v32190_v21  ;;  %28400 = vmatprep.subr.mxu0 %v37010_v60 }
 0x932   :  { %v32195_v44 = vpop.f32.mrf.mxu1 }
 0x933   :  { %28393 = vmatmul.mubr.msk.f32.vlgmr.msra.gmra.mxu0 %vm847_vm4, %v6757_v58 }
 0x934   :  { %28401 = vmatpush3.xpose.msk.msra.mxu0 %vm847_vm4, %v6915_v45  ;;  %v32199_v4 = vpop.f32.mrf.mxu1  ;;  %28402 = vmatprep.mubr.msk.f32.mxu0 %vm30381_vm1, %v37010_v60 }
 0x935   :  { %37020 = vst [vmem:[#allocation22_spill] sm:$0xff] %v32199_v4  ;;  %28410 = vmatprep.subr.mxu0 %v37010_v60 }
 0x936   :  { %v32204_v8 = vpop.f32.mrf.mxu1 }
 0x937   :  { %28403 = vmatmul.mubr.msk.f32.vlgmr.msra.gmra.mxu0 %vm847_vm4, %v6913_v13 }
 0x938   :  { %28411 = vmatpush3.xpose.msk.msra.mxu0 %vm847_vm4, %v7071_v14  ;;  %v32208_v59 = vpop.f32.mrf.mxu1  ;;  %28412 = vmatprep.mubr.msk.f32.mxu0 %vm30381_vm1, %v37010_v60 }
 0x939   :  { %37021 = vst [vmem:[#allocation21_spill] sm:$0xff] %v32208_v59  ;;  %28420 = vmatprep.subr.mxu0 %v37010_v60 }
 0x93a   :  { %v32213_v52 = vpop.f32.mrf.mxu1 }
 0x93b   :  { %28413 = vmatmul.mubr.msk.f32.vlgmr.msra.gmra.mxu0 %vm847_vm4, %v7069_v27 }
 0x93c   :  { %28421 = vmatpush3.xpose.msk.msra.mxu0 %vm847_vm4, %v7227_v3  ;;  %v32217_v15 = vpop.f32.mrf.mxu1  ;;  %28422 = vmatprep.mubr.msk.f32.mxu0 %vm30381_vm1, %v37010_v60 }
 0x93d   :  { %37022 = vst [vmem:[#allocation23_spill] sm:$0xff] %v32217_v15  ;;  %28430 = vmatprep.subr.mxu0 %v37010_v60 }
 0x93e   :  { %v32222_v19 = vpop.f32.mrf.mxu1 }
 0x93f   :  { %28423 = vmatmul.mubr.msk.f32.vlgmr.msra.gmra.mxu0 %vm847_vm4, %v7225_v25 }
 0x940   :  { %28431 = vmatpush3.xpose.msk.msra.mxu0 %vm847_vm4, %v7383_v43  ;;  %v32226_v23 = vpop.f32.mrf.mxu1  ;;  %28432 = vmatprep.mubr.msk.f32.mxu0 %vm30381_vm1, %v37010_v60 }
 0x941   :  { %37023 = vst [vmem:[#allocation24_spill] sm:$0xff] %v32226_v23  ;;  %28440 = vmatprep.subr.mxu0 %v37010_v60 }
 0x942   :  { %v6752_v11 = vpop.f32.mrf.mxu1 }
 0x943   :  { %v7849_v51 = vmul.f32 0.5, %v6752_v11  ;;  %28433 = vmatmul.mubr.msk.f32.vlgmr.msra.gmra.mxu0 %vm847_vm4, %v7381_v12 }
 0x944   :  { %28441 = vmatpush3.xpose.msk.msra.mxu0 %vm847_vm4, %v7539_v28  ;;  %v28389_v53 = vpop.f32.mrf.mxu1  ;;  %28442 = vmatprep.mubr.msk.f32.mxu0 %vm30381_vm1, %v37010_v60 }
 0x945   :  { %v32236_v62 = vadd.f32 %v7849_v51, %v31107_v10  ;;  %28450 = vmatprep.subr.mxu0 %v37010_v60 }
 0x946   :  { %v6908_v46 = vpop.f32.mrf.mxu1 }
 0x947   :  { %v7851_v36 = vmul.f32 0.5, %v6908_v46  ;;  %28443 = vmatmul.mubr.msk.f32.vlgmr.msra.gmra.mxu0 %vm847_vm4, %v7537_v35  ;;  %v7883_v6 = vsel %vm2109_vm6, %v32236_v62, -inf }
 0x948   :  { %28451 = vmatpush3.xpose.msk.msra.mxu0 %vm847_vm4, %v7695_v39  ;;  %7884 = vmax.xlane.f32.xlu1 %v7883_v6  ;;  %v28399_v1 = vpop.f32.mrf.mxu1 }
 0x949   :  { %v32244_v54 = vadd.f32 %v7851_v36, %v31107_v10  ;;  %28452 = vmatprep.mubr.msk.f32.mxu0 %vm30381_vm1, %v37010_v60  ;;  %28460 = vmatprep.subr.mxu0 %v37010_v60 }
 0x94a   :  { %v7064_v47 = vpop.f32.mrf.mxu1 }
 0x94b   :  { %v7853_v56 = vmul.f32 0.5, %v7064_v47  ;;  %28453 = vmatmul.mubr.msk.f32.vlgmr.msra.gmra.mxu0 %vm847_vm4, %v7693_v7  ;;  %v7889_v2 = vsel %vm2109_vm6, %v32244_v54, -inf }
 0x94c   :  { %7890 = vmax.xlane.f32.xlu0 %v7889_v2  ;;  %v28409_v37 = vpop.f32.mrf.mxu1  ;;  %28462 = vmatprep.mubr.msk.f32.mxu0 %vm30381_vm1, %v37010_v60 }
 0x94d   :  { %v7869_v58 = vadd.f32 %v7853_v56, %v31107_v10 }
 0x94e   :  { %v7220_v45 = vpop.f32.mrf.mxu1 }
 0x94f   :  { %v7855_v13 = vmul.f32 0.5, %v7220_v45  ;;  %v7895_v14 = vsel %vm2109_vm6, %v7869_v58, -inf }
 0x950   :  { %7896 = vmax.xlane.f32.xlu0 %v7895_v14  ;;  %v28419_v27 = vpop.f32.mrf.mxu1 }
 0x951   :  { %v32257_v48 = vadd.f32 %v7855_v13, %v31107_v10 }
 0x952   :  { %v7376_v3 = vpop.f32.mrf.mxu1 }
 0x953   :  { %v7857_v17 = vmul.f32 0.5, %v7376_v3  ;;  %v7901_v25 = vsel %vm2109_vm6, %v32257_v48, -inf }
 0x954   :  { %7902 = vmax.xlane.f32.xlu0 %v7901_v25  ;;  %v28429_v22 = vpop.f32.mrf.mxu1 }
 0x955   :  { %v32262_v5 = vadd.f32 %v7857_v17, %v31107_v10 }
 0x956   :  { %v7532_v43 = vpop.f32.mrf.mxu1 }
 0x957   :  { %v7859_v12 = vmul.f32 0.5, %v7532_v43  ;;  %v7907_v28 = vsel %vm2109_vm6, %v32262_v5, -inf }
 0x958   :  { %7908 = vmax.xlane.f32.xlu0 %v7907_v28  ;;  %v28439_v35 = vpop.f32.mrf.mxu1 }
 0x959   :  { %v32267_v11 = vadd.f32 %v7859_v12, %v31107_v10  ;;  %8073 = vrot.lane.b32.xlu1 %v37012_v0, %s36958_s28 }
 0x95a   :  { %v7688_v51 = vpop.f32.mrf.mxu1 }
 0x95b   :  { %v7861_v39 = vmul.f32 0.5, %v7688_v51  ;;  %v7913_v53 = vsel %vm2109_vm6, %v32267_v11, -inf }
 0x95c   :  { %7914 = vmax.xlane.f32.xlu0 %v7913_v53  ;;  %v28449_v46 = vpop.f32.mrf.mxu1 }
 0x95d   :  { %v32274_v36 = vadd.f32 %v7861_v39, %v31107_v10 }
 0x95e   :  { %v7844_v6 = vpop.f32.mrf.mxu1 }
 0x95f   :  { %v7863_v1 = vmul.f32 0.5, %v7844_v6  ;;  %v7919_v7 = vsel %vm2109_vm6, %v32274_v36, -inf }
 0x960   :  { %7920 = vmax.xlane.f32.xlu0 %v7919_v7  ;;  %v28459_v47 = vpop.f32.mrf.mxu1 }
 0x961   :  { %v32279_v56 = vadd.f32 %v7863_v1, %v31107_v10 }
 0x963   :  { %v7925_v2 = vsel %vm2109_vm6, %v32279_v56, -inf }
 0x964   :  { %7926 = vmax.xlane.f32.xlu0 %v7925_v2 }
 0x992   :  { %v32283_v37 = vpop.f32.mrf.mxu0 }
 0x994   :  { %v32285_v45 = vpop.f32.mrf.mxu0 }
 0x997   :  { %v32287_v13 = vpop.f32.mrf.mxu0 }
 0x999   :  { %v32289_v14 = vpop.f32.mrf.mxu0 }
 0x99a   :  { %37024 = vst [vmem:[#allocation25_spill] sm:$0xff] %v32289_v14 }
 0x99c   :  { %v32291_v27 = vpop.f32.mrf.mxu0 }
 0x99e   :  { %v32293_v3 = vpop.f32.mrf.mxu0 }
 0x99f   :  { %37025 = vst [vmem:[#allocation26_spill] sm:$0xff] %v32293_v3 }
 0x9a0   :  { %v32295_v17 = vpop.f32.mrf.mxu0 }
 0x9a2   :  { %v32297_v25 = vpop.f32.mrf.mxu0 }
 0x9a3   :  { %37026 = vst [vmem:[#allocation27_spill] sm:$0xff] %v32297_v25 }
 0x9a5   :  { %v32300_v12 = vpop.f32.mrf.mxu0 }
 0x9a7   :  { %v32304_v46 = vpop.f32.mrf.mxu0 }
 0x9a8   :  { %37027 = vst [vmem:[#allocation28_spill] sm:$0xff] %v32304_v46 }
 0x9a9   :  { %v32306_v1 = vpop.f32.mrf.mxu0 }
 0x9d1   :  { %v7885_v22 = vpop.xlane.xlu1 %7884 }
 0x9d2   :  { %v7929_v43 = vsub.f32 %v32236_v62, %v7885_v22  ;;  %v32308_v62 = vpop.f32.mrf.mxu0 }
 0x9d3   :  { %37028 = vst [vmem:[#allocation29_spill] sm:$0xff] %v32308_v62 }
 0x9d4   :  { %v7946_v28 = vmul.f32 1.442695, %v7929_v43  ;;  %v32316_v43 = vpop.f32.mrf.mxu0 }
 0x9d5   :  { %v8074_v35 = vpop.permute.xlu1 %8073  ;;  %v7891_v51 = vpop.xlane.xlu0 %7890 }
 0x9d6   :  { %29865 = vpow2.f32 %v7946_v28  ;;  %v7931_v39 = vsub.f32 %v32244_v54, %v7891_v51  ;;  %28461 = vmatpush3.msra.mxu0 %v8074_v35  ;;  %v32324_v51 = vpop.f32.mrf.mxu0 }
 0x9d7   :  { %28470 = vmatprep.subr.mxu0 %v37010_v60  ;;  %37029 = vst [vmem:[#allocation30_spill] sm:$0xff] %v32324_v51 }
 0x9d8   :  { %v7950_v53 = vmul.f32 1.442695, %v7931_v39 }
 0x9d9   :  { %v7897_v6 = vpop.xlane.xlu0 %7896 }
 0x9da   :  { %29867 = vpow2.f32 %v7950_v53  ;;  %v7933_v7 = vsub.f32 %v7869_v58, %v7897_v6 }
 0x9dc   :  { %v7954_v22 = vmul.f32 1.442695, %v7933_v7 }
 0x9dd   :  { %v32310_v47 = vpop.xlane.xlu0 %7902 }
 0x9de   :  { %29869 = vpow2.f32 %v7954_v22 }
 0x9e1   :  { %v32320_v35 = vpop.xlane.xlu0 %7908 }
 0x9e3   :  { %v32312_v2 = vpop.eup %29865 }
 0x9e4   :  { %v7979_v54 = vsel %vm2109_vm6, %v32312_v2, 0.0 }
 0x9e5   :  { %7980 = vadd.xlane.f32.xlu0 %v7979_v54  ;;  %v32328_v53 = vpop.xlane.xlu0 %7914 }
 0x9e7   :  { %v32318_v28 = vpop.eup %29867 }
 0x9e8   :  { %v7985_v58 = vsel %vm2109_vm6, %v32318_v28, 0.0 }
 0x9e9   :  { %7986 = vadd.xlane.f32.xlu0 %v7985_v58  ;;  %v32335_v59 = vpop.xlane.xlu0 %7920 }
 0x9eb   :  { %v32326_v39 = vpop.f32.mrf.mxu0  ;;  %v32339_v58 = vpop.eup %29869 }
 0x9ed   :  { %v32330_v6 = vpop.f32.mrf.mxu0 }
 0x9ee   :  { %37030 = vst [vmem:[#allocation31_spill] sm:$0xff] %v32330_v6 }
 0x9ef   :  { %v6674_v7 = vpop.f32.mrf.mxu0 }
 0x9f0   :  { %v7848_v23 = vmul.f32 0.5, %v6674_v7 }
 0x9f1   :  { %v28384_v54 = vpop.f32.mrf.mxu0 }
 0x9f2   :  { %v32333_v15 = vadd.f32 %v7848_v23, %v31107_v10  ;;  %v7991_v23 = vsel %vm2109_vm6, %v32339_v58, 0.0  ;;  %v7927_v54 = vpop.xlane.xlu0 %7926 }
 0x9f3   :  { %v6830_v22 = vpop.f32.mrf.mxu0  ;;  %v7943_v31 = vsub.f32 %v32279_v56, %v7927_v54 }
 0x9f4   :  { %v7850_v62 = vmul.f32 0.5, %v6830_v22  ;;  %v7880_v51 = vsel %vm2109_vm6, %v32333_v15, -inf }
 0x9f5   :  { %v28394_v4 = vpop.f32.mrf.mxu0  ;;  %7881 = vmax.xlane.f32.xlu0 %v7880_v51 }
 0x9f6   :  { %v32342_v6 = vadd.f32 %v7850_v62, %v31107_v10 }
 0x9f7   :  { %v6986_v46 = vpop.f32.mrf.mxu0 }
 0x9f8   :  { %v7852_v7 = vmul.f32 0.5, %v6986_v46  ;;  %v7886_v62 = vsel %vm2109_vm6, %v32342_v6, -inf }
 0x9f9   :  { %v28404_v21 = vpop.f32.mrf.mxu0  ;;  %7992 = vadd.xlane.f32.xlu0 %v7991_v23  ;;  %v7974_v23 = vmul.f32 1.442695, %v7943_v31 }
 0x9fa   :  { %v32347_v22 = vadd.f32 %v7852_v7, %v31107_v10 }
 0x9fb   :  { %v7142_v25 = vpop.f32.mrf.mxu0  ;;  %29871 = vpow2.f32 %v7974_v23 }
 0x9fc   :  { %v7854_v3 = vmul.f32 0.5, %v7142_v25  ;;  %v7892_v4 = vsel %vm2109_vm6, %v32347_v22, -inf }
 0x9fd   :  { %7893 = vmax.xlane.f32.xlu1 %v7892_v4  ;;  %v28414_v46 = vpop.f32.mrf.mxu0  ;;  %7887 = vmax.xlane.f32.xlu0 %v7886_v62 }
 0x9fe   :  { %v32355_v51 = vadd.f32 %v7854_v3, %v31107_v10 }
 0x9ff   :  { %v7298_v21 = vpop.f32.mrf.mxu0 }
 0xa00   :  { %v7856_v7 = vmul.f32 0.5, %v7298_v21  ;;  %v7898_v55 = vsel %vm2109_vm6, %v32355_v51, -inf }
 0xa01   :  { %7899 = vmax.xlane.f32.xlu1 %v7898_v55  ;;  %v28424_v56 = vpop.f32.mrf.mxu0 }
 0xa02   :  { %v32360_v25 = vadd.f32 %v7856_v7, %v31107_v10 }
 0xa03   :  { %v7454_v54 = vpop.f32.mrf.mxu0 }
 0xa04   :  { %v7858_v14 = vmul.f32 0.5, %v7454_v54  ;;  %v7904_v4 = vsel %vm2109_vm6, %v32360_v25, -inf }
 0xa05   :  { %7905 = vmax.xlane.f32.xlu1 %v7904_v4  ;;  %v28434_v3 = vpop.f32.mrf.mxu0 }
 0xa06   :  { %v32365_v62 = vadd.f32 %v7858_v14, %v31107_v10 }
 0xa07   :  { %v7610_v31 = vpop.f32.mrf.mxu0 }
 0xa08   :  { %v7860_v46 = vmul.f32 0.5, %v7610_v31  ;;  %v7910_v55 = vsel %vm2109_vm6, %v32365_v62, -inf  ;;  %v32379_v31 = vpop.eup %29871 }
 0xa09   :  { %7911 = vmax.xlane.f32.xlu1 %v7910_v55  ;;  %v28444_v21 = vpop.f32.mrf.mxu0  ;;  %v7935_v55 = vsub.f32 %v32257_v48, %v32310_v47 }
 0xa0a   :  { %v32370_v7 = vadd.f32 %v7860_v46, %v31107_v10  ;;  %v8021_v46 = vsel %vm2109_vm6, %v32379_v31, 0.0 }
 0xa0b   :  { %v7766_v23 = vpop.f32.mrf.mxu0  ;;  %v7958_v21 = vmul.f32 1.442695, %v7935_v55 }
 0xa0c   :  { %v7862_v56 = vmul.f32 0.5, %v7766_v23  ;;  %v7916_v54 = vsel %vm2109_vm6, %v32370_v7, -inf  ;;  %v7937_v23 = vsub.f32 %v32262_v5, %v32320_v35 }
 0xa0d   :  { %7917 = vmax.xlane.f32.xlu1 %v7916_v54  ;;  %v28454_v4 = vpop.f32.mrf.mxu0  ;;  %29873 = vpow2.f32 %v7958_v21  ;;  %v7939_v54 = vsub.f32 %v32267_v11, %v32328_v53 }
 0xa0e   :  { %v32375_v14 = vadd.f32 %v7862_v56, %v31107_v10  ;;  %v7962_v56 = vmul.f32 1.442695, %v7937_v23 }
 0xa0f   :  { %v7966_v4 = vmul.f32 1.442695, %v7939_v54 }
 0xa10   :  { %v7922_v3 = vsel %vm2109_vm6, %v32375_v14, -inf  ;;  %29875 = vpow2.f32 %v7962_v56 }
 0xa11   :  { %7923 = vmax.xlane.f32.xlu1 %v7922_v3  ;;  %v7941_v3 = vsub.f32 %v32274_v36, %v32335_v59  ;;  %29877 = vpow2.f32 %v7966_v4 }
 0xa13   :  { %8149 = vrot.lane.b32.xlu0 %v30893_v49, %s36958_s28 }
 0xa15   :  { %8022 = vadd.xlane.f32.xlu1 %v8021_v46  ;;  %v7970_v46 = vmul.f32 1.442695, %v7941_v3 }
 0xa17   :  { %29879 = vpow2.f32 %v7970_v46 }
 0xa1a   :  { %v32395_v48 = vpop.eup %29873 }
 0xa1b   :  { %v7997_v5 = vsel %vm2109_vm6, %v32395_v48, 0.0 }
 0xa1d   :  { %v32399_v47 = vpop.eup %29875 }
 0xa1e   :  { %v8003_v11 = vsel %vm2109_vm6, %v32399_v47, 0.0  ;;  %v32403_v35 = vpop.eup %29877 }
 0xa1f   :  { %v8009_v59 = vsel %vm2109_vm6, %v32403_v35, 0.0 }
 0xa24   :  { %v32407_v36 = vpop.eup %29879 }
 0xa25   :  { %v8015_v53 = vsel %vm2109_vm6, %v32407_v36, 0.0 }
 0xa26   :  { %8757 = vrot.lane.b32.xlu1 %v30923_v29, %s36958_s28 }
 0xa32   :  { %7998 = vadd.xlane.f32.xlu0 %v7997_v5 }
 0xa36   :  { %8004 = vadd.xlane.f32.xlu0 %v8003_v11 }
 0xa3a   :  { %8010 = vadd.xlane.f32.xlu0 %v8009_v59 }
 0xa3e   :  { %8016 = vadd.xlane.f32.xlu0 %v8015_v53 }
 0xa54   :  { %8225 = vrot.lane.b32.xlu0 %v37011_v61, %s36958_s28 }
 0xa58   :  { %8301 = vrot.lane.b32.xlu0 %v37013_v20, %s36958_s28 }
 0xa5c   :  { %8377 = vrot.lane.b32.xlu0 %v37014_v9, %s36958_s28 }
 0xa60   :  { %8453 = vrot.lane.b32.xlu0 %v37015_v50, %s36958_s28 }
 0xa64   :  { %8529 = vrot.lane.b32.xlu0 %v37016_v63, %s36958_s28 }
 0xa68   :  { %8605 = vrot.lane.b32.xlu0 %v30915_v26, %s36958_s28 }
 0xa6c   :  { %8681 = vrot.lane.b32.xlu0 %v30925_v33, %s36958_s28 }
 0xa6e   :  { %v7981_v55 = vpop.xlane.xlu0 %7980 }
 0xa6f   :  { %29881 = vrcp.f32 %v7981_v55 }
 0xa70   :  { %8833 = vrot.lane.b32.xlu0 %v30933_v34, %s36958_s28 }
 0xa72   :  { %v7987_v21 = vpop.xlane.xlu0 %7986 }
 0xa73   :  { %29883 = vrcp.f32 %v7987_v21 }
 0xa74   :  { %8909 = vrot.lane.b32.xlu0 %v30931_v30, %s36958_s28 }
 0xa78   :  { %8985 = vrot.lane.b32.xlu0 %v30941_v38, %s36958_s28 }
 0xa7c   :  { %v29882_v23 = vpop.eup %29881  ;;  %9061 = vrot.lane.b32.xlu0 %v30939_v32, %s36958_s28 }
 0xa7d   :  { %v8027_v56 = vmul.f32 %v29882_v23, %v32312_v2 }
 0xa7e   :  { %v7882_v54 = vpop.xlane.xlu0 %7881 }
 0xa7f   :  { %26570 = vst.msk [vmem:[%s36906_s19 + $0x108] sm:$0xff] %vm2109_vm6, %v8027_v56  ;;  %v7928_v4 = vsub.f32 %v32333_v15, %v7882_v54 }
 0xa80   :  { %v29884_v3 = vpop.eup %29883 }
 0xa81   :  { %v32440_v46 = vmul.f32 %v29884_v3, %v32318_v28  ;;  %v7944_v5 = vmul.f32 1.442695, %v7928_v4 }
 0xa82   :  { %v7993_v11 = vpop.xlane.xlu0 %7992 }
 0xa83   :  { %26572 = vst.msk [vmem:[%s36906_s19 + $0x118] sm:$0xff] %vm2109_vm6, %v32440_v46  ;;  %29885 = vpow2.f32 %v7944_v5 }
 0xa84   :  { %29887 = vrcp.f32 %v7993_v11 }
 0xa86   :  { %v7894_v2 = vpop.xlane.xlu1 %7893  ;;  %v7888_v59 = vpop.xlane.xlu0 %7887 }
 0xa87   :  { %v7932_v53 = vsub.f32 %v32347_v22, %v7894_v2  ;;  %v7930_v15 = vsub.f32 %v32342_v6, %v7888_v59 }
 0xa89   :  { %v7948_v55 = vmul.f32 1.442695, %v7930_v15  ;;  %v7952_v21 = vmul.f32 1.442695, %v7932_v53 }
 0xa8a   :  { %v7900_v28 = vpop.xlane.xlu1 %7899  ;;  %v8150_v23 = vpop.permute.xlu0 %8149 }
 0xa8b   :  { %v7934_v54 = vsub.f32 %v32355_v51, %v7900_v28  ;;  %28466 = vmatpush3.msra.mxu1 %v8150_v23  ;;  %29889 = vpow2.f32 %v7948_v55 }
 0xa8c   :  { %28468 = vmatmul.mubr.msk.f32.vlgmr.msra.gmra.mxu1 %vm2109_vm6, %v8027_v56  ;;  %28475 = vmatprep.subr.mxu1 %v37010_v60  ;;  %29891 = vpow2.f32 %v7952_v21 }
 0xa8d   :  { %28477 = vmatprep.mubr.msk.f32.mxu1 %vm30381_vm1, %v37010_v60  ;;  %v7956_v4 = vmul.f32 1.442695, %v7934_v54 }
 0xa8e   :  { %v7906_v22 = vpop.xlane.xlu1 %7905 }
 0xa8f   :  { %v7936_v6 = vsub.f32 %v32360_v25, %v7906_v22  ;;  %29893 = vpow2.f32 %v7956_v4 }
 0xa90   :  { %v32455_v3 = vpop.eup %29885 }
 0xa91   :  { %v29888_v5 = vpop.eup %29887  ;;  %v7976_v51 = vsel %vm2109_vm6, %v32455_v3, 0.0  ;;  %v7960_v56 = vmul.f32 1.442695, %v7936_v6 }
 0xa92   :  { %v32460_v11 = vmul.f32 %v29888_v5, %v32339_v58  ;;  %v7912_v2 = vpop.xlane.xlu1 %7911  ;;  %7977 = vadd.xlane.f32.xlu1 %v7976_v51 }
 0xa93   :  { %v7938_v59 = vsub.f32 %v32365_v62, %v7912_v2  ;;  %29895 = vpow2.f32 %v7960_v56 }
 0xa94   :  { %26574 = vst.msk [vmem:[%s36906_s19 + $0x128] sm:$0xff] %vm2109_vm6, %v32460_v11 }
 0xa95   :  { %v7964_v25 = vmul.f32 1.442695, %v7938_v59 }
 0xa96   :  { %v7918_v53 = vpop.xlane.xlu1 %7917 }
 0xa97   :  { %v7940_v15 = vsub.f32 %v32370_v7, %v7918_v53  ;;  %29897 = vpow2.f32 %v7964_v25 }
 0xa98   :  { %v32469_v55 = vpop.eup %29889 }
 0xa99   :  { %v7968_v58 = vmul.f32 1.442695, %v7940_v15  ;;  %v7982_v28 = vsel %vm2109_vm6, %v32469_v55, 0.0  ;;  %v32473_v62 = vpop.eup %29891 }
 0xa9a   :  { %v7924_v21 = vpop.xlane.xlu1 %7923  ;;  %7983 = vadd.xlane.f32.xlu1 %v7982_v28  ;;  %v7988_v22 = vsel %vm2109_vm6, %v32473_v62, 0.0 }
 0xa9b   :  { %v7942_v23 = vsub.f32 %v32375_v14, %v7924_v21  ;;  %29899 = vpow2.f32 %v7968_v58 }
 0xa9c   :  { %v32478_v7 = vpop.eup %29893 }
 0xa9d   :  { %v7972_v54 = vmul.f32 1.442695, %v7942_v23  ;;  %v7994_v6 = vsel %vm2109_vm6, %v32478_v7, 0.0 }
 0xa9e   :  { %v8023_v4 = vpop.xlane.xlu1 %8022  ;;  %7989 = vadd.xlane.f32.xlu1 %v7988_v22 }
 0xa9f   :  { %29901 = vpow2.f32 %v7972_v54 }
 0xaa0   :  { %29903 = vrcp.f32 %v8023_v4  ;;  %v32482_v5 = vpop.eup %29895 }
 0xaa1   :  { %v8000_v14 = vsel %vm2109_vm6, %v32482_v5, 0.0 }
 0xaa2   :  { %7995 = vadd.xlane.f32.xlu1 %v7994_v6 }
 0xaa4   :  { %v32486_v51 = vpop.eup %29897 }
 0xaa5   :  { %v8006_v56 = vsel %vm2109_vm6, %v32486_v51, 0.0 }
 0xaa6   :  { %8001 = vadd.xlane.f32.xlu1 %v8000_v14 }
 0xaa8   :  { %v32490_v2 = vpop.eup %29899 }
 0xaa9   :  { %v8012_v58 = vsel %vm2109_vm6, %v32490_v2, 0.0 }
 0xaaa   :  { %8007 = vadd.xlane.f32.xlu1 %v8006_v56 }
 0xaac   :  { %v32492_v59 = vpop.eup %29901 }
 0xaad   :  { %v29904_v25 = vpop.eup %29903  ;;  %v8018_v53 = vsel %vm2109_vm6, %v32492_v59, 0.0 }
 0xaae   :  { %v32497_v15 = vmul.f32 %v29904_v25, %v32379_v31  ;;  %8019 = vadd.xlane.f32.xlu0 %v8018_v53  ;;  %8013 = vadd.xlane.f32.xlu1 %v8012_v58 }
 0xab0   :  { %26584 = vst.msk [vmem:[%s36906_s19 + $0x178] sm:$0xff] %vm2109_vm6, %v32497_v15 }
 0xabb   :  { %v7999_v21 = vpop.xlane.xlu0 %7998 }
 0xabc   :  { %29905 = vrcp.f32 %v7999_v21 }
 0xabf   :  { %v8005_v28 = vpop.xlane.xlu0 %8004  ;;  %9137 = vrot.lane.b32.xlu1 %v30949_v41, %s36958_s28 }
 0xac0   :  { %29907 = vrcp.f32 %v8005_v28 }
 0xac3   :  { %v8011_v31 = vpop.xlane.xlu0 %8010  ;;  %9503 = vrot.lane.b32.xlu1 %v37012_v0, %s36956_s22 }
 0xac4   :  { %29909 = vrcp.f32 %v8011_v31  ;;  %9213 = vrot.lane.b32.xlu0 %v30947_v40, %s36958_s28 }
 0xac7   :  { %v8017_v23 = vpop.xlane.xlu0 %8016  ;;  %9581 = vrot.lane.b32.xlu1 %v30893_v49, %s36956_s22 }
 0xac8   :  { %29911 = vrcp.f32 %v8017_v23  ;;  %9501 = vrot.lane.b32.xlu0 %v37012_v0, %s36954_s2 }
 0xac9   :  { %v29906_v54 = vpop.eup %29905 }
 0xaca   :  { %v8039_v4 = vmul.f32 %v29906_v54, %v32395_v48 }
 0xacb   :  { %v32517_v22 = vpop.permute.xlu0 %8225  ;;  %9659 = vrot.lane.b32.xlu1 %v37011_v61, %s36956_s22 }
 0xacc   :  { %26576 = vst.msk [vmem:[%s36906_s19 + $0x138] sm:$0xff] %vm2109_vm6, %v8039_v4  ;;  %9579 = vrot.lane.b32.xlu0 %v30893_v49, %s36954_s2 }
 0xacd   :  { %v29908_v6 = vpop.eup %29907 }
 0xace   :  { %v8043_v14 = vmul.f32 %v29908_v6, %v32399_v47 }
 0xacf   :  { %v8302_v56 = vpop.permute.xlu0 %8301  ;;  %9737 = vrot.lane.b32.xlu1 %v37013_v20, %s36956_s22 }
 0xad0   :  { %26578 = vst.msk [vmem:[%s36906_s19 + $0x148] sm:$0xff] %vm2109_vm6, %v8043_v14  ;;  %9657 = vrot.lane.b32.xlu0 %v37011_v61, %s36954_s2  ;;  %28476 = vmatpush3.msra.mxu1 %v8302_v56 }
 0xad1   :  { %v29910_v48 = vpop.eup %29909  ;;  %28478 = vmatmul.mubr.msk.f32.vlgmr.msra.gmra.mxu1 %vm2109_vm6, %v32440_v46  ;;  %28485 = vmatprep.subr.mxu1 %v37010_v60 }
 0xad2   :  { %v8047_v25 = vmul.f32 %v29910_v48, %v32403_v35  ;;  %28487 = vmatprep.mubr.msk.f32.mxu1 %vm30381_vm1, %v37010_v60 }
 0xad3   :  { %v32540_v47 = vpop.permute.xlu0 %8377  ;;  %9815 = vrot.lane.b32.xlu1 %v37014_v9, %s36956_s22 }
 0xad4   :  { %26580 = vst.msk [vmem:[%s36906_s19 + $0x158] sm:$0xff] %vm2109_vm6, %v8047_v25  ;;  %9735 = vrot.lane.b32.xlu0 %v37013_v20, %s36954_s2 }
 0xad5   :  { %v29912_v35 = vpop.eup %29911 }
 0xad6   :  { %v8051_v46 = vmul.f32 %v29912_v35, %v32407_v36 }
 0xad7   :  { %v8454_v53 = vpop.permute.xlu0 %8453  ;;  %9893 = vrot.lane.b32.xlu1 %v37015_v50, %s36956_s22 }
 0xad8   :  { %26582 = vst.msk [vmem:[%s36906_s19 + $0x168] sm:$0xff] %vm2109_vm6, %v8051_v46  ;;  %9813 = vrot.lane.b32.xlu0 %v37014_v9, %s36954_s2  ;;  %28486 = vmatpush3.msra.mxu1 %v8454_v53 }
 0xad9   :  { %28488 = vmatmul.mubr.msk.f32.vlgmr.msra.gmra.mxu1 %vm2109_vm6, %v32460_v11  ;;  %28495 = vmatprep.subr.mxu1 %v37010_v60  ;;  %v8758_v11 = vpop.permute.xlu1 %8757 }
 0xada   :  { %28497 = vmatprep.mubr.msk.f32.mxu1 %vm30381_vm1, %v37010_v60 }
 0xadb   :  { %v32564_v58 = vpop.permute.xlu0 %8529  ;;  %9971 = vrot.lane.b32.xlu1 %v37016_v63, %s36956_s22 }
 0xadc   :  { %9891 = vrot.lane.b32.xlu0 %v37015_v50, %s36954_s2 }
 0xadf   :  { %v8606_v36 = vpop.permute.xlu0 %8605  ;;  %10049 = vrot.lane.b32.xlu1 %v30915_v26, %s36956_s22 }
 0xae0   :  { %9969 = vrot.lane.b32.xlu0 %v37016_v63, %s36954_s2  ;;  %28496 = vmatpush3.msra.mxu1 %v8606_v36 }
 0xae1   :  { %28498 = vmatmul.mubr.msk.f32.vlgmr.msra.gmra.mxu1 %vm2109_vm6, %v8039_v4  ;;  %28505 = vmatprep.subr.mxu1 %v37010_v60 }
 0xae2   :  { %28506 = vmatpush3.msra.mxu1 %v8758_v11  ;;  %28507 = vmatprep.mubr.msk.f32.mxu1 %vm30381_vm1, %v37010_v60 }
 0xae3   :  { %v32578_v21 = vpop.permute.xlu0 %8681  ;;  %10127 = vrot.lane.b32.xlu1 %v30925_v33, %s36956_s22  ;;  %28515 = vmatprep.subr.mxu1 %v37010_v60 }
 0xae4   :  { %10047 = vrot.lane.b32.xlu0 %v30915_v26, %s36954_s2 }
 0xae5   :  { %28508 = vmatmul.mubr.msk.f32.vlgmr.msra.gmra.mxu1 %vm2109_vm6, %v8043_v14 }
 0xae6   :  { %28517 = vmatprep.mubr.msk.f32.mxu1 %vm30381_vm1, %v37010_v60 }
 0xae7   :  { %v32588_v28 = vpop.permute.xlu0 %8833  ;;  %10125 = vrot.lane.b32.xlu1 %v30925_v33, %s36954_s2 }
 0xae8   :  { %10205 = vrot.lane.b32.xlu0 %v30923_v29, %s36956_s22 }
 0xaeb   :  { %v8910_v31 = vpop.permute.xlu0 %8909  ;;  %10283 = vrot.lane.b32.xlu1 %v30933_v34, %s36956_s22 }
 0xaec   :  { %10203 = vrot.lane.b32.xlu0 %v30923_v29, %s36954_s2  ;;  %28516 = vmatpush3.msra.mxu1 %v8910_v31 }
 0xaed   :  { %28518 = vmatmul.mubr.msk.f32.vlgmr.msra.gmra.mxu1 %vm2109_vm6, %v8047_v25  ;;  %28525 = vmatprep.subr.mxu1 %v37010_v60 }
 0xaee   :  { %28527 = vmatprep.mubr.msk.f32.mxu1 %vm30381_vm1, %v37010_v60 }
 0xaef   :  { %v32602_v23 = vpop.permute.xlu0 %8985  ;;  %10281 = vrot.lane.b32.xlu1 %v30933_v34, %s36954_s2 }
 0xaf0   :  { %10361 = vrot.lane.b32.xlu0 %v30931_v30, %s36956_s22 }
 0xaf3   :  { %v9062_v54 = vpop.permute.xlu0 %9061  ;;  %10439 = vrot.lane.b32.xlu1 %v30941_v38, %s36956_s22 }
 0xaf4   :  { %10359 = vrot.lane.b32.xlu0 %v30931_v30, %s36954_s2  ;;  %28526 = vmatpush3.msra.mxu1 %v9062_v54 }
 0xaf5   :  { %28528 = vmatmul.mubr.msk.f32.vlgmr.msra.gmra.mxu1 %vm2109_vm6, %v8051_v46  ;;  %28535 = vmatprep.subr.mxu1 %v37010_v60 }
 0xaf6   :  { %28537 = vmatprep.mubr.msk.f32.mxu1 %vm30381_vm1, %v37010_v60 }
 0xaf7   :  { %10437 = vrot.lane.b32.xlu1 %v30941_v38, %s36954_s2 }
 0xaf8   :  { %10517 = vrot.lane.b32.xlu0 %v30939_v32, %s36956_s22 }
 0xafb   :  { %10595 = vrot.lane.b32.xlu1 %v30949_v41, %s36956_s22 }
 0xafc   :  { %10515 = vrot.lane.b32.xlu0 %v30939_v32, %s36954_s2 }
 0xaff   :  { %10593 = vrot.lane.b32.xlu1 %v30949_v41, %s36954_s2 }
 0xb00   :  { %10673 = vrot.lane.b32.xlu0 %v30947_v40, %s36956_s22  ;;  %s36960_s22 = smov 84  }
 0xb04   :  { %10671 = vrot.lane.b32.xlu0 %v30947_v40, %s36954_s2 }
 0xb1b   :  { %v7978_v4 = vpop.xlane.xlu1 %7977 }
 0xb1c   :  { %29913 = vrcp.f32 %v7978_v4 }
 0xb23   :  { %v7984_v6 = vpop.xlane.xlu1 %7983 }
 0xb24   :  { %29915 = vrcp.f32 %v7984_v6 }
 0xb27   :  { %v7990_v14 = vpop.xlane.xlu1 %7989 }
 0xb28   :  { %29917 = vrcp.f32 %v7990_v14 }
 0xb29   :  { %v29914_v56 = vpop.eup %29913 }
 0xb2a   :  { %v8025_v48 = vmul.f32 %v29914_v56, %v32455_v3 }
 0xb2b   :  { %v7996_v25 = vpop.xlane.xlu1 %7995 }
 0xb2c   :  { %26569 = vst.msk [vmem:[%s36906_s19 + $0x100] sm:$0xff] %vm2109_vm6, %v8025_v48  ;;  %28463 = vmatmul.mubr.msk.f32.vlgmr.msra.gmra.mxu0 %vm2109_vm6, %v8025_v48  ;;  %29919 = vrcp.f32 %v7996_v25 }
 0xb2d   :  { %28471 = vmatpush3.msra.mxu0 %v32517_v22  ;;  %28472 = vmatprep.mubr.msk.f32.mxu0 %vm30381_vm1, %v37010_v60 }
 0xb2e   :  { %28480 = vmatprep.subr.mxu0 %v37010_v60 }
 0xb2f   :  { %v8002_v35 = vpop.xlane.xlu1 %8001 }
 0xb30   :  { %29921 = vrcp.f32 %v8002_v35 }
 0xb31   :  { %v29916_v46 = vpop.eup %29915 }
 0xb32   :  { %v8029_v3 = vmul.f32 %v29916_v46, %v32469_v55 }
 0xb33   :  { %v8008_v53 = vpop.xlane.xlu1 %8007 }
 0xb34   :  { %26571 = vst.msk [vmem:[%s36906_s19 + $0x110] sm:$0xff] %vm2109_vm6, %v8029_v3  ;;  %29923 = vrcp.f32 %v8008_v53  ;;  %28473 = vmatmul.mubr.msk.f32.vlgmr.msra.gmra.mxu0 %vm2109_vm6, %v8029_v3 }
 0xb35   :  { %v29918_v22 = vpop.eup %29917  ;;  %28481 = vmatpush3.msra.mxu0 %v32540_v47  ;;  %28482 = vmatprep.mubr.msk.f32.mxu0 %vm30381_vm1, %v37010_v60 }
 0xb36   :  { %v8033_v36 = vmul.f32 %v29918_v22, %v32473_v62  ;;  %28490 = vmatprep.subr.mxu0 %v37010_v60 }
 0xb37   :  { %v8020_v55 = vpop.xlane.xlu0 %8019  ;;  %v8014_v11 = vpop.xlane.xlu1 %8013 }
 0xb38   :  { %29925 = vrcp.f32 %v8020_v55  ;;  %26573 = vst.msk [vmem:[%s36906_s19 + $0x120] sm:$0xff] %vm2109_vm6, %v8033_v36  ;;  %28483 = vmatmul.mubr.msk.f32.vlgmr.msra.gmra.mxu0 %vm2109_vm6, %v8033_v36 }
 0xb39   :  { %29927 = vrcp.f32 %v8014_v11  ;;  %v29920_v31 = vpop.eup %29919  ;;  %28491 = vmatpush3.msra.mxu0 %v32564_v58  ;;  %28492 = vmatprep.mubr.msk.f32.mxu0 %vm30381_vm1, %v37010_v60 }
 0xb3a   :  { %v8037_v62 = vmul.f32 %v29920_v31, %v32478_v7  ;;  %28500 = vmatprep.subr.mxu0 %v37010_v60 }
 0xb3b   :  { %v9214_v47 = vpop.permute.xlu0 %9213  ;;  %v9138_v54 = vpop.permute.xlu1 %9137 }
 0xb3c   :  { %28536 = vmatpush3.msra.mxu1 %v9214_v47  ;;  %26575 = vst.msk [vmem:[%s36906_s19 + $0x130] sm:$0xff] %vm2109_vm6, %v8037_v62  ;;  %28493 = vmatmul.mubr.msk.f32.vlgmr.msra.gmra.mxu0 %vm2109_vm6, %v8037_v62 }
 0xb3d   :  { %28538 = vmatmul.mubr.msk.f32.vlgmr.msra.gmra.mxu1 %vm2109_vm6, %v32497_v15  ;;  %v29922_v58 = vpop.eup %29921  ;;  %28501 = vmatpush3.msra.mxu0 %v32578_v21 }
 0xb3e   :  { %28502 = vmatprep.mubr.msk.f32.mxu0 %vm30381_vm1, %v37010_v60  ;;  %v8041_v7 = vmul.f32 %v29922_v58, %v32482_v5  ;;  %28510 = vmatprep.subr.mxu0 %v37010_v60 }
 0xb3f   :  { %28566 = vmatprep.subr.mxu1 %v37010_v60  ;;  %v9502_v4 = vpop.permute.xlu0 %9501  ;;  %v9504_v6 = vpop.permute.xlu1 %9503  ;;  %28568 = vmatprep.mubr.msk.f32.mxu1 %vm30381_vm1, %v37010_v60 }
 0xb40   :  { %26577 = vst.msk [vmem:[%s36906_s19 + $0x140] sm:$0xff] %vm2109_vm6, %v8041_v7  ;;  %28503 = vmatmul.mubr.msk.f32.vlgmr.msra.gmra.mxu0 %vm2109_vm6, %v8041_v7  ;;  %28567 = vmatpush3.xpose.msk.msra.mxu1 %vm847_vm4, %v9504_v6 }
 0xb41   :  { %v29924_v15 = vpop.eup %29923  ;;  %28511 = vmatpush3.msra.mxu0 %v32588_v28  ;;  %28512 = vmatprep.mubr.msk.f32.mxu0 %vm30381_vm1, %v37010_v60 }
 0xb42   :  { %v8045_v5 = vmul.f32 %v29924_v15, %v32486_v51  ;;  %28520 = vmatprep.subr.mxu0 %v37010_v60  ;;  %28571 = vmatprep.subr.mxu1 %v37010_v60 }
 0xb43   :  { %v9580_v21 = vpop.permute.xlu0 %9579  ;;  %v9582_v14 = vpop.permute.xlu1 %9581  ;;  %28569 = vmatmul.mubr.msk.f32.vlgmr.msra.gmra.mxu1 %vm847_vm4, %v9502_v4 }
 0xb44   :  { %26579 = vst.msk [vmem:[%s36906_s19 + $0x150] sm:$0xff] %vm2109_vm6, %v8045_v5  ;;  %28513 = vmatmul.mubr.msk.f32.vlgmr.msra.gmra.mxu0 %vm2109_vm6, %v8045_v5  ;;  %28572 = vmatpush3.xpose.msk.msra.mxu1 %vm847_vm4, %v9582_v14 }
 0xb45   :  { %v29926_v56 = vpop.eup %29925  ;;  %28521 = vmatpush3.msra.mxu0 %v32602_v23  ;;  %28573 = vmatprep.mubr.msk.f32.mxu1 %vm30381_vm1, %v37010_v60 }
 0xb46   :  { %v29928_v28 = vpop.eup %29927  ;;  %v8053_v51 = vmul.f32 %v29926_v56, %v32492_v59  ;;  %28522 = vmatprep.mubr.msk.f32.mxu0 %vm30381_vm1, %v37010_v60  ;;  %28530 = vmatprep.subr.mxu0 %v37010_v60 }
 0xb47   :  { %v8049_v48 = vmul.f32 %v29928_v28, %v32490_v2  ;;  %v9658_v25 = vpop.permute.xlu0 %9657  ;;  %v9660_v35 = vpop.permute.xlu1 %9659  ;;  %28574 = vmatmul.mubr.msk.f32.vlgmr.msra.gmra.mxu1 %vm847_vm4, %v9580_v21  ;;  %28576 = vmatprep.subr.mxu1 %v37010_v60  ;;  %v843_v2 = vld [vmem:[%s36907_s6 + $0x8] sm:$0xff] }
 0xb48   :  { %26583 = vst.msk [vmem:[%s36906_s19 + $0x170] sm:$0xff] %vm2109_vm6, %v8053_v51  ;;  %28577 = vmatpush3.xpose.msk.msra.mxu1 %vm847_vm4, %v9660_v35  ;;  %28578 = vmatprep.mubr.msk.f32.mxu1 %vm30381_vm1, %v37010_v60 }
 0xb49   :  { %26581 = vst.msk [vmem:[%s36906_s19 + $0x160] sm:$0xff] %vm2109_vm6, %v8049_v48  ;;  %28523 = vmatmul.mubr.msk.f32.vlgmr.msra.gmra.mxu0 %vm2109_vm6, %v8049_v48  ;;  %28581 = vmatprep.subr.mxu1 %v37010_v60 }
 0xb4a   :  { %28531 = vmatpush3.msra.mxu0 %v9138_v54  ;;  %28532 = vmatprep.mubr.msk.f32.mxu0 %vm30381_vm1, %v37010_v60 }
 0xb4b   :  { %v9736_v59 = vpop.permute.xlu0 %9735  ;;  %v9738_v23 = vpop.permute.xlu1 %9737  ;;  %28579 = vmatmul.mubr.msk.f32.vlgmr.msra.gmra.mxu1 %vm847_vm4, %v9658_v25  ;;  %28540 = vmatprep.subr.msk.mxu0 %vm6257_vm7, %v843_v2 }
 0xb4c   :  { %v32726_v46 = vpop.f32.mrf.mxu1  ;;  %28582 = vmatpush3.xpose.msk.msra.mxu1 %vm847_vm4, %v9738_v23  ;;  %28583 = vmatprep.mubr.msk.f32.mxu1 %vm30381_vm1, %v37010_v60 }
 0xb4d   :  { %28533 = vmatmul.mubr.msk.f32.vlgmr.msra.gmra.mxu0 %vm2109_vm6, %v8053_v51  ;;  %28586 = vmatprep.subr.mxu1 %v37010_v60 }
 0xb4e   :  { %v28469_v3 = vpop.f32.mrf.mxu1  ;;  %28541 = vmatpush3.msk.msra.mxu0 %vm6257_vm7, %v843_v2 }
 0xb4f   :  { %v9814_v53 = vpop.permute.xlu0 %9813  ;;  %v9816_v22 = vpop.permute.xlu1 %9815  ;;  %28584 = vmatmul.mubr.msk.f32.vlgmr.msra.gmra.mxu1 %vm847_vm4, %v9736_v59  ;;  %28606 = vmatprep.subr.mxu0 %v37010_v60 }
 0xb50   :  { %28587 = vmatpush3.xpose.msk.msra.mxu1 %vm847_vm4, %v9816_v22  ;;  %28588 = vmatprep.mubr.msk.f32.mxu1 %vm30381_vm1, %v37010_v60 }
 0xb51   :  { %28591 = vmatprep.subr.mxu1 %v37010_v60 }
 0xb53   :  { %v9892_v36 = vpop.permute.xlu0 %9891  ;;  %v9894_v55 = vpop.permute.xlu1 %9893  ;;  %28589 = vmatmul.mubr.msk.f32.vlgmr.msra.gmra.mxu1 %vm847_vm4, %v9814_v53 }
 0xb54   :  { %28592 = vmatpush3.xpose.msk.msra.mxu1 %vm847_vm4, %v9894_v55  ;;  %28593 = vmatprep.mubr.msk.f32.mxu1 %vm30381_vm1, %v37010_v60 }
 0xb55   :  { %28596 = vmatprep.subr.mxu1 %v37010_v60 }
 0xb57   :  { %v9970_v11 = vpop.permute.xlu0 %9969  ;;  %v9972_v31 = vpop.permute.xlu1 %9971  ;;  %28594 = vmatmul.mubr.msk.f32.vlgmr.msra.gmra.mxu1 %vm847_vm4, %v9892_v36 }
 0xb58   :  { %28597 = vmatpush3.xpose.msk.msra.mxu1 %vm847_vm4, %v9972_v31  ;;  %28598 = vmatprep.mubr.msk.f32.mxu1 %vm30381_vm1, %v37010_v60 }
 0xb59   :  { %28601 = vmatprep.subr.mxu1 %v37010_v60 }
 0xb5b   :  { %v10048_v62 = vpop.permute.xlu0 %10047  ;;  %v10050_v47 = vpop.permute.xlu1 %10049  ;;  %28599 = vmatmul.mubr.msk.f32.vlgmr.msra.gmra.mxu1 %vm847_vm4, %v9970_v11 }
 0xb5c   :  { %28602 = vmatpush3.xpose.msk.msra.mxu1 %vm847_vm4, %v10050_v47  ;;  %28603 = vmatprep.mubr.msk.f32.mxu1 %vm30381_vm1, %v37010_v60 }
 0xb5d   :  { %28611 = vmatprep.subr.mxu1 %v37010_v60 }
 0xb5f   :  { %v10206_v54 = vpop.permute.xlu0 %10205  ;;  %28604 = vmatmul.mubr.msk.f32.vlgmr.msra.gmra.mxu1 %vm847_vm4, %v10048_v62  ;;  %v10128_v36 = vpop.permute.xlu1 %10127 }
 0xb60   :  { %28612 = vmatpush3.xpose.msk.msra.mxu1 %vm847_vm4, %v10206_v54  ;;  %28613 = vmatprep.mubr.msk.f32.mxu1 %vm30381_vm1, %v37010_v60 }
 0xb61   :  { %28621 = vmatprep.subr.mxu1 %v37010_v60 }
 0xb63   :  { %v10204_v58 = vpop.permute.xlu0 %10203  ;;  %v10126_v47 = vpop.permute.xlu1 %10125 }
 0xb64   :  { %28614 = vmatmul.mubr.msk.f32.vlgmr.msra.gmra.mxu1 %vm847_vm4, %v10204_v58 }
 0xb65   :  { %28623 = vmatprep.mubr.msk.f32.mxu1 %vm30381_vm1, %v37010_v60 }
 0xb67   :  { %v10362_v7 = vpop.permute.xlu0 %10361 }
 0xb68   :  { %28622 = vmatpush3.xpose.msk.msra.mxu1 %vm847_vm4, %v10362_v7 }
 0xb69   :  { %28631 = vmatprep.subr.mxu1 %v37010_v60 }
 0xb6b   :  { %v10360_v4 = vpop.permute.xlu0 %10359 }
 0xb6c   :  { %28624 = vmatmul.mubr.msk.f32.vlgmr.msra.gmra.mxu1 %vm847_vm4, %v10360_v4 }
 0xb6d   :  { %28633 = vmatprep.mubr.msk.f32.mxu1 %vm30381_vm1, %v37010_v60 }
 0xb6f   :  { %v10518_v6 = vpop.permute.xlu0 %10517 }
 0xb70   :  { %28632 = vmatpush3.xpose.msk.msra.mxu1 %vm847_vm4, %v10518_v6  ;;  %v10284_v6 = vpop.permute.xlu1 %10283 }
 0xb71   :  { %28641 = vmatprep.subr.mxu1 %v37010_v60 }
 0xb73   :  { %v10516_v15 = vpop.permute.xlu0 %10515 }
 0xb74   :  { %28634 = vmatmul.mubr.msk.f32.vlgmr.msra.gmra.mxu1 %vm847_vm4, %v10516_v15 }
 0xb75   :  { %28643 = vmatprep.mubr.msk.f32.mxu1 %vm30381_vm1, %v37010_v60 }
 0xb77   :  { %v10674_v5 = vpop.permute.xlu0 %10673 }
 0xb78   :  { %28642 = vmatpush3.xpose.msk.msra.mxu1 %vm847_vm4, %v10674_v5 }
 0xb79   :  { %28651 = vmatprep.subr.mxu1 %v37010_v60 }
 0xb7b   :  { %v10672_v21 = vpop.permute.xlu0 %10671 }
 0xb7c   :  { %28644 = vmatmul.mubr.msk.f32.vlgmr.msra.gmra.mxu1 %vm847_vm4, %v10672_v21 }
 0xb7d   :  { %28653 = vmatprep.mubr.msk.f32.mxu1 %vm30381_vm1, %v37010_v60 }
 0xb91   :  { %v8373_v14 = vpop.f32.mrf.mxu1 }
 0xb93   :  { %v28479_v56 = vpop.f32.mrf.mxu1 }
 0xb99   :  { %v8525_v28 = vpop.f32.mrf.mxu1 }
 0xb9b   :  { %v28489_v51 = vpop.f32.mrf.mxu1 }
 0xb9c   :  { %v10282_v51 = vpop.permute.xlu1 %10281 }
 0xba1   :  { %v8677_v48 = vpop.f32.mrf.mxu1 }
 0xba3   :  { %v28499_v25 = vpop.f32.mrf.mxu1 }
 0xba5   :  { %v8829_v35 = vpop.f32.mrf.mxu1 }
 0xba7   :  { %v28509_v2 = vpop.f32.mrf.mxu1 }
 0xbad   :  { %v8981_v59 = vpop.f32.mrf.mxu1 }
 0xbaf   :  { %v28519_v23 = vpop.f32.mrf.mxu1 }
 0xbb5   :  { %v9133_v3 = vpop.f32.mrf.mxu1 }
 0xbb7   :  { %v28529_v53 = vpop.f32.mrf.mxu1 }
 0xbec   :  { %v8145_v22 = vpop.f32.mrf.mxu0 }
 0xbed   :  { %28542 = vmatprep.mubr.msk.f32.mxu0 %vm847_vm4, %v8145_v22 }
 0xbee   :  { %v28464_v55 = vpop.f32.mrf.mxu0  ;;  %28543 = vmatmul.mubr.msk.f32.vlgmr.msra.gmra.mxu0 %vm847_vm4, %v32726_v46 }
 0xbef   :  { %28607 = vmatpush3.xpose.msk.msra.mxu0 %vm847_vm4, %v10128_v36 }
 0xbf0   :  { %28616 = vmatprep.subr.mxu0 %v37010_v60 }
 0xbf4   :  { %v8297_v11 = vpop.f32.mrf.mxu0 }
 0xbf5   :  { %28545 = vmatprep.mubr.msk.f32.mxu0 %vm847_vm4, %v8297_v11  ;;  %v10440_v11 = vpop.permute.xlu1 %10439 }
 0xbf6   :  { %v28474_v31 = vpop.f32.mrf.mxu0  ;;  %28546 = vmatmul.mubr.msk.f32.gmra.mxu0 %vm847_vm4, %v8373_v14 }
 0xbf8   :  { %v8449_v62 = vpop.f32.mrf.mxu0 }
 0xbf9   :  { %28548 = vmatprep.mubr.msk.f32.mxu0 %vm847_vm4, %v8449_v62 }
 0xbfa   :  { %v28484_v54 = vpop.f32.mrf.mxu0  ;;  %28549 = vmatmul.mubr.msk.f32.gmra.mxu0 %vm847_vm4, %v8525_v28 }
 0xbfc   :  { %v8601_v58 = vpop.f32.mrf.mxu0 }
 0xbfd   :  { %v9285_v7 = vpop.f32.mrf.mxu1  ;;  %28551 = vmatprep.mubr.msk.f32.mxu0 %vm847_vm4, %v8601_v58 }
 0xbfe   :  { %v28494_v46 = vpop.f32.mrf.mxu0  ;;  %28552 = vmatmul.mubr.msk.f32.gmra.mxu0 %vm847_vm4, %v8677_v48 }
 0xbff   :  { %v28539_v4 = vpop.f32.mrf.mxu1 }
 0xc00   :  { %v8753_v15 = vpop.f32.mrf.mxu0 }
 0xc01   :  { %28554 = vmatprep.mubr.msk.f32.mxu0 %vm847_vm4, %v8753_v15 }
 0xc02   :  { %v28504_v5 = vpop.f32.mrf.mxu0  ;;  %28555 = vmatmul.mubr.msk.f32.gmra.mxu0 %vm847_vm4, %v8829_v35 }
 0xc03   :  { %v9575_v21 = vpop.f32.mrf.mxu1 }
 0xc04   :  { %v10749_v14 = vmul.f32 0.5, %v9575_v21  ;;  %v8905_v56 = vpop.f32.mrf.mxu0  ;;  %v10438_v21 = vpop.permute.xlu1 %10437 }
 0xc05   :  { %28557 = vmatprep.mubr.msk.f32.mxu0 %vm847_vm4, %v8905_v56  ;;  %v28570_v28 = vpop.f32.mrf.mxu1 }
 0xc06   :  { %v32794_v25 = vadd.f32 %v10749_v14, %v31107_v10  ;;  %v28514_v2 = vpop.f32.mrf.mxu0  ;;  %28558 = vmatmul.mubr.msk.f32.gmra.mxu0 %vm847_vm4, %v8981_v59 }
 0xc07   :  { %v9653_v48 = vpop.f32.mrf.mxu1 }
 0xc08   :  { %v10750_v23 = vmul.f32 0.5, %v9653_v48  ;;  %v10781_v22 = vsel %vm2109_vm6, %v32794_v25, -inf }
 0xc09   :  { %v9057_v53 = vpop.f32.mrf.mxu0  ;;  %10782 = vmax.xlane.f32.xlu1 %v10781_v22  ;;  %v28575_v35 = vpop.f32.mrf.mxu1 }
 0xc0a   :  { %28560 = vmatprep.mubr.msk.f32.mxu0 %vm847_vm4, %v9057_v53  ;;  %v32801_v36 = vadd.f32 %v10750_v23, %v31107_v10 }
 0xc0b   :  { %v28524_v55 = vpop.f32.mrf.mxu0  ;;  %28561 = vmatmul.mubr.msk.f32.gmra.mxu0 %vm847_vm4, %v9133_v3  ;;  %v9731_v31 = vpop.f32.mrf.mxu1 }
 0xc0c   :  { %v10751_v62 = vmul.f32 0.5, %v9731_v31  ;;  %v10784_v54 = vsel %vm2109_vm6, %v32801_v36, -inf }
 0xc0d   :  { %v9209_v59 = vpop.f32.mrf.mxu0  ;;  %10785 = vmax.xlane.f32.xlu0 %v10784_v54  ;;  %v28580_v58 = vpop.f32.mrf.mxu1 }
 0xc0e   :  { %28563 = vmatprep.mubr.msk.f32.mxu0 %vm847_vm4, %v9209_v59  ;;  %v32808_v46 = vadd.f32 %v10751_v62, %v31107_v10 }
 0xc0f   :  { %v28534_v4 = vpop.f32.mrf.mxu0  ;;  %28564 = vmatmul.mubr.msk.f32.gmra.mxu0 %vm847_vm4, %v9285_v7  ;;  %v9809_v15 = vpop.f32.mrf.mxu1 }
 0xc10   :  { %28608 = vmatprep.mubr.msk.f32.mxu0 %vm30381_vm1, %v37010_v60  ;;  %v10752_v3 = vmul.f32 0.5, %v9809_v15  ;;  %v10787_v5 = vsel %vm2109_vm6, %v32808_v46, -inf }
 0xc11   :  { %10788 = vmax.xlane.f32.xlu0 %v10787_v5  ;;  %v28585_v14 = vpop.f32.mrf.mxu1 }
 0xc12   :  { %v32816_v56 = vadd.f32 %v10752_v3, %v31107_v10 }
 0xc13   :  { %28609 = vmatmul.mubr.msk.f32.vlgmr.msra.gmra.mxu0 %vm847_vm4, %v10126_v47  ;;  %v9887_v28 = vpop.f32.mrf.mxu1  ;;  %v10596_v47 = vpop.permute.xlu1 %10595 }
 0xc14   :  { %28617 = vmatpush3.xpose.msk.msra.mxu0 %vm847_vm4, %v10284_v6  ;;  %28618 = vmatprep.mubr.msk.f32.mxu0 %vm30381_vm1, %v37010_v60  ;;  %v10753_v7 = vmul.f32 0.5, %v9887_v28  ;;  %v10790_v2 = vsel %vm2109_vm6, %v32816_v56, -inf }
 0xc15   :  { %28626 = vmatprep.subr.mxu0 %v37010_v60  ;;  %10791 = vmax.xlane.f32.xlu1 %v10790_v2  ;;  %v28590_v48 = vpop.f32.mrf.mxu1 }
 0xc16   :  { %v32826_v23 = vadd.f32 %v10753_v7, %v31107_v10 }
 0xc17   :  { %28619 = vmatmul.mubr.msk.f32.vlgmr.msra.gmra.mxu0 %vm847_vm4, %v10282_v51  ;;  %v9965_v6 = vpop.f32.mrf.mxu1  ;;  %v10594_v62 = vpop.permute.xlu1 %10593 }
 0xc18   :  { %28627 = vmatpush3.xpose.msk.msra.mxu0 %vm847_vm4, %v10440_v11  ;;  %28628 = vmatprep.mubr.msk.f32.mxu0 %vm30381_vm1, %v37010_v60  ;;  %v10754_v53 = vmul.f32 0.5, %v9965_v6  ;;  %v10793_v22 = vsel %vm2109_vm6, %v32826_v23, -inf }
 0xc19   :  { %28636 = vmatprep.subr.mxu0 %v37010_v60  ;;  %10794 = vmax.xlane.f32.xlu0 %v10793_v22  ;;  %v28595_v35 = vpop.f32.mrf.mxu1 }
 0xc1a   :  { %v32836_v55 = vadd.f32 %v10754_v53, %v31107_v10 }
 0xc1b   :  { %28629 = vmatmul.mubr.msk.f32.vlgmr.msra.gmra.mxu0 %vm847_vm4, %v10438_v21  ;;  %v10043_v51 = vpop.f32.mrf.mxu1 }
 0xc1c   :  { %28637 = vmatpush3.xpose.msk.msra.mxu0 %vm847_vm4, %v10596_v47  ;;  %28638 = vmatprep.mubr.msk.f32.mxu0 %vm30381_vm1, %v37010_v60  ;;  %v10755_v11 = vmul.f32 0.5, %v10043_v51  ;;  %v10796_v31 = vsel %vm2109_vm6, %v32836_v55, -inf }
 0xc1d   :  { %28646 = vmatprep.subr.mxu0 %v37010_v60  ;;  %10797 = vmax.xlane.f32.xlu1 %v10796_v31  ;;  %v28600_v59 = vpop.f32.mrf.mxu1 }
 0xc1e   :  { %v32846_v54 = vadd.f32 %v10755_v11, %v31107_v10 }
 0xc1f   :  { %28639 = vmatmul.mubr.msk.f32.vlgmr.msra.gmra.mxu0 %vm847_vm4, %v10594_v62  ;;  %v10121_v58 = vpop.f32.mrf.mxu1 }
 0xc20   :  { %28648 = vmatprep.mubr.msk.f32.mxu0 %vm30381_vm1, %v37010_v60  ;;  %v10756_v4 = vmul.f32 0.5, %v10121_v58  ;;  %v10799_v15 = vsel %vm2109_vm6, %v32846_v54, -inf }
 0xc21   :  { %10800 = vmax.xlane.f32.xlu0 %v10799_v15  ;;  %v28605_v3 = vpop.f32.mrf.mxu1 }
 0xc22   :  { %v10772_v5 = vadd.f32 %v10756_v4, %v31107_v10 }
 0xc24   :  { %v10277_v21 = vpop.f32.mrf.mxu1  ;;  %v10802_v28 = vsel %vm2109_vm6, %v10772_v5, -inf }
 0xc25   :  { %v10758_v14 = vmul.f32 0.5, %v10277_v21  ;;  %10803 = vmax.xlane.f32.xlu1 %v10802_v28 }
 0xc26   :  { %v28615_v7 = vpop.f32.mrf.mxu1 }
 0xc27   :  { %v10774_v2 = vadd.f32 %v10758_v14, %v31107_v10 }
 0xc29   :  { %v10808_v48 = vsel %vm2109_vm6, %v10774_v2, -inf }
 0xc2a   :  { %10809 = vmax.xlane.f32.xlu1 %v10808_v48 }
 0xc2c   :  { %v10433_v47 = vpop.f32.mrf.mxu1 }
 0xc2d   :  { %v10760_v6 = vmul.f32 0.5, %v10433_v47 }
 0xc2e   :  { %v28625_v53 = vpop.f32.mrf.mxu1 }
 0xc2f   :  { %v32858_v22 = vadd.f32 %v10760_v6, %v31107_v10 }
 0xc31   :  { %v10814_v35 = vsel %vm2109_vm6, %v32858_v22, -inf }
 0xc32   :  { %10815 = vmax.xlane.f32.xlu1 %v10814_v35 }
 0xc34   :  { %v10589_v51 = vpop.f32.mrf.mxu1 }
 0xc35   :  { %v10762_v11 = vmul.f32 0.5, %v10589_v51 }
 0xc36   :  { %v28635_v31 = vpop.f32.mrf.mxu1 }
 0xc37   :  { %v32863_v62 = vadd.f32 %v10762_v11, %v31107_v10 }
 0xc39   :  { %v10820_v59 = vsel %vm2109_vm6, %v32863_v62, -inf }
 0xc3a   :  { %10821 = vmax.xlane.f32.xlu1 %v10820_v59 }
 0xc3c   :  { %v10745_v58 = vpop.f32.mrf.mxu1 }
 0xc3d   :  { %v10764_v4 = vmul.f32 0.5, %v10745_v58 }
 0xc3e   :  { %v28645_v15 = vpop.f32.mrf.mxu1 }
 0xc3f   :  { %v32868_v3 = vadd.f32 %v10764_v4, %v31107_v10 }
 0xc41   :  { %v10826_v21 = vsel %vm2109_vm6, %v32868_v3, -inf }
 0xc42   :  { %10827 = vmax.xlane.f32.xlu1 %v10826_v21 }
 0xc92   :  { %v10783_v14 = vpop.xlane.xlu1 %10782 }
 0xc93   :  { %v10829_v28 = vsub.f32 %v32794_v25, %v10783_v14 }
 0xc95   :  { %v10845_v7 = vmul.f32 1.442695, %v10829_v28 }
 0xc96   :  { %v10786_v48 = vpop.xlane.xlu0 %10785 }
 0xc97   :  { %29929 = vpow2.f32 %v10845_v7  ;;  %v10830_v47 = vsub.f32 %v32801_v36, %v10786_v48 }
 0xc99   :  { %v10847_v6 = vmul.f32 1.442695, %v10830_v47 }
 0xc9b   :  { %29931 = vpow2.f32 %v10847_v6 }
 0xc9e   :  { %v10792_v53 = vpop.xlane.xlu1 %10791 }
 0xc9f   :  { %v10832_v35 = vsub.f32 %v32816_v56, %v10792_v53  ;;  %v6527_v56 = vadd.f32 %v32170_v42, %v32283_v37  ;;  %v6537_v42 = vadd.f32 %v32174_v18, %v32287_v13 }
 0xca1   :  { %v10851_v51 = vmul.f32 1.442695, %v10832_v35 }
 0xca3   :  { %29933 = vpow2.f32 %v10851_v51 }
 0xca4   :  { %v32875_v11 = vpop.eup %29929 }
 0xca5   :  { %v10877_v31 = vsel %vm2109_vm6, %v32875_v11, 0.0 }
 0xca6   :  { %v10798_v59 = vpop.xlane.xlu1 %10797  ;;  %10878 = vadd.xlane.f32.xlu0 %v10877_v31 }
 0xca7   :  { %v10834_v25 = vsub.f32 %v32836_v55, %v10798_v59  ;;  %v6547_v59 = vadd.f32 %v32179_v57, %v32291_v27 }
 0xca8   :  { %v32880_v58 = vpop.eup %29931 }
 0xca9   :  { %v10855_v4 = vmul.f32 1.442695, %v10834_v25  ;;  %v10880_v36 = vsel %vm2109_vm6, %v32880_v58, 0.0 }
 0xcaa   :  { %10881 = vadd.xlane.f32.xlu1 %v10880_v36 }
 0xcab   :  { %29935 = vpow2.f32 %v10855_v4 }
 0xcae   :  { %v28544_v15 = vpop.f32.mrf.mxu0  ;;  %v10804_v14 = vpop.xlane.xlu1 %10803 }
 0xcaf   :  { %v32886_v21 = vadd.f32 %v28544_v15, %v6527_v56  ;;  %v10836_v28 = vsub.f32 %v10772_v5, %v10804_v14  ;;  %v6557_v56 = vadd.f32 %v32186_v16, %v32295_v17 }
 0xcb0   :  { %v32888_v7 = vpop.eup %29933  ;;  %v32892_v53 = vpop.f32.mrf.mxu0 }
 0xcb1   :  { %v10859_v48 = vmul.f32 1.442695, %v10836_v28  ;;  %v10886_v55 = vsel %vm2109_vm6, %v32888_v7, 0.0 }
 0xcb2   :  { %10887 = vadd.xlane.f32.xlu1 %v10886_v55 }
 0xcb3   :  { %v10810_v47 = vpop.xlane.xlu1 %10809  ;;  %29937 = vpow2.f32 %v10859_v48  ;;  %v6567_v48 = vadd.f32 %v32195_v44, %v32300_v12 }
 0xcb4   :  { %v10838_v6 = vsub.f32 %v10774_v2, %v10810_v47 }
 0xcb6   :  { %v10863_v37 = vmul.f32 1.442695, %v10838_v6  ;;  %v28547_v35 = vpop.f32.mrf.mxu0 }
 0xcb7   :  { %v32896_v51 = vadd.f32 %v28547_v35, %v6537_v42 }
 0xcb8   :  { %29939 = vpow2.f32 %v10863_v37  ;;  %v32898_v5 = vpop.eup %29935  ;;  %v32900_v31 = vpop.f32.mrf.mxu0  ;;  %v6577_v37 = vadd.f32 %v32204_v8, %v32306_v1  ;;  %v6597_v1 = vadd.f32 %v32222_v19, %v32326_v39 }
 0xcb9   :  { %v10892_v2 = vsel %vm2109_vm6, %v32898_v5, 0.0 }
 0xcba   :  { %v28550_v25 = vpop.f32.mrf.mxu0  ;;  %10893 = vadd.xlane.f32.xlu1 %v10892_v2 }
 0xcbb   :  { %v10816_v4 = vpop.xlane.xlu1 %10815  ;;  %v32906_v36 = vadd.f32 %v28550_v25, %v6547_v59 }
 0xcbc   :  { %v10840_v18 = vsub.f32 %v32858_v22, %v10816_v4  ;;  %v32909_v13 = vpop.f32.mrf.mxu0  ;;  %v10789_v4 = vpop.xlane.xlu0 %10788 }
 0xcbe   :  { %v10867_v15 = vmul.f32 1.442695, %v10840_v18  ;;  %v28553_v14 = vpop.f32.mrf.mxu0 }
 0xcbf   :  { %v32913_v28 = vadd.f32 %v28553_v14, %v6557_v56  ;;  %v10831_v14 = vsub.f32 %v32808_v46, %v10789_v4 }
 0xcc0   :  { %29941 = vpow2.f32 %v10867_v15  ;;  %v32915_v57 = vpop.eup %29937  ;;  %v32917_v27 = vpop.f32.mrf.mxu0 }
 0xcc1   :  { %v10898_v22 = vsel %vm2109_vm6, %v32915_v57, 0.0 }
 0xcc2   :  { %v28556_v55 = vpop.f32.mrf.mxu0  ;;  %10899 = vadd.xlane.f32.xlu1 %v10898_v22 }
 0xcc3   :  { %v10822_v47 = vpop.xlane.xlu1 %10821  ;;  %v32923_v6 = vadd.f32 %v28556_v55, %v6567_v48  ;;  %v10849_v55 = vmul.f32 1.442695, %v10831_v14 }
 0xcc4   :  { %v10842_v16 = vsub.f32 %v32863_v62, %v10822_v47  ;;  %v32928_v42 = vpop.f32.mrf.mxu0  ;;  %v6587_v62 = vadd.f32 %v32213_v52, %v32316_v43  ;;  %v10795_v52 = vpop.xlane.xlu0 %10794 }
 0xcc5   :  { %v32926_v17 = vpop.eup %29939 }
 0xcc6   :  { %v10871_v35 = vmul.f32 1.442695, %v10842_v16  ;;  %v10904_v44 = vsel %vm2109_vm6, %v32926_v17, 0.0  ;;  %v28559_v12 = vpop.f32.mrf.mxu0  ;;  %v10833_v16 = vsub.f32 %v32826_v23, %v10795_v52 }
 0xcc7   :  { %10905 = vadd.xlane.f32.xlu1 %v10904_v44  ;;  %v32934_v59 = vadd.f32 %v28559_v12, %v6577_v37 }
 0xcc8   :  { %29943 = vpow2.f32 %v10871_v35  ;;  %v32936_v2 = vpop.f32.mrf.mxu0  ;;  %v10801_v19 = vpop.xlane.xlu0 %10800 }
 0xcc9   :  { %29945 = vpow2.f32 %v10849_v55 }
 0xccb   :  { %v28562_v25 = vpop.f32.mrf.mxu0 }
 0xccc   :  { %v32940_v18 = vadd.f32 %v28562_v25, %v6587_v62  ;;  %v10853_v62 = vmul.f32 1.442695, %v10833_v16  ;;  %v10835_v25 = vsub.f32 %v32846_v54, %v10801_v19 }
 0xccd   :  { %v32942_v56 = vpop.eup %29941  ;;  %v32944_v8 = vpop.f32.mrf.mxu0 }
 0xcce   :  { %v10910_v15 = vsel %vm2109_vm6, %v32942_v56, 0.0  ;;  %29947 = vpow2.f32 %v10853_v62 }
 0xccf   :  { %v28565_v48 = vpop.f32.mrf.mxu0  ;;  %10911 = vadd.xlane.f32.xlu1 %v10910_v15 }
 0xcd0   :  { %v32951_v22 = vadd.f32 %v28565_v48, %v6597_v1  ;;  %v10857_v48 = vmul.f32 1.442695, %v10835_v25 }
 0xcd1   :  { %v32953_v43 = vpop.f32.mrf.mxu0 }
 0xcd2   :  { %29949 = vpow2.f32 %v10857_v48 }
 0xcd3   :  { %v10199_v47 = vpop.f32.mrf.mxu0 }
 0xcd4   :  { %v10757_v37 = vmul.f32 0.5, %v10199_v47 }
 0xcd5   :  { %v32956_v35 = vpop.eup %29943  ;;  %v28610_v39 = vpop.f32.mrf.mxu0 }
 0xcd6   :  { %v32959_v44 = vadd.f32 %v10757_v37, %v31107_v10  ;;  %v10916_v46 = vsel %vm2109_vm6, %v32956_v35, 0.0 }
 0xcd7   :  { %v10355_v12 = vpop.f32.mrf.mxu0  ;;  %10917 = vadd.xlane.f32.xlu1 %v10916_v46 }
 0xcd8   :  { %v10759_v4 = vmul.f32 0.5, %v10355_v12  ;;  %v10805_v23 = vsel %vm2109_vm6, %v32959_v44, -inf  ;;  %v32979_v12 = vpop.eup %29945 }
 0xcd9   :  { %v28620_v1 = vpop.f32.mrf.mxu0  ;;  %10806 = vmax.xlane.f32.xlu0 %v10805_v23  ;;  %v10883_v25 = vsel %vm2109_vm6, %v32979_v12, 0.0 }
 0xcda   :  { %v32967_v15 = vadd.f32 %v10759_v4, %v31107_v10 }
 0xcdb   :  { %v10511_v14 = vpop.f32.mrf.mxu0  ;;  %v32987_v4 = vpop.eup %29947 }
 0xcdc   :  { %v10761_v52 = vmul.f32 0.5, %v10511_v14  ;;  %v10811_v55 = vsel %vm2109_vm6, %v32967_v15, -inf  ;;  %v10889_v23 = vsel %vm2109_vm6, %v32987_v4, 0.0 }
 0xcdd   :  { %v28630_v47 = vpop.f32.mrf.mxu0  ;;  %10812 = vmax.xlane.f32.xlu0 %v10811_v55 }
 0xcde   :  { %v32972_v54 = vadd.f32 %v10761_v52, %v31107_v10 }
 0xcdf   :  { %v10667_v16 = vpop.f32.mrf.mxu0  ;;  %v32993_v1 = vpop.eup %29949 }
 0xce0   :  { %v10763_v37 = vmul.f32 0.5, %v10667_v16  ;;  %v10817_v19 = vsel %vm2109_vm6, %v32972_v54, -inf }
 0xce1   :  { %v28640_v39 = vpop.f32.mrf.mxu0  ;;  %10818 = vmax.xlane.f32.xlu0 %v10817_v19 }
 0xce2   :  { %v32977_v46 = vadd.f32 %v10763_v37, %v31107_v10 }
 0xce4   :  { %v10823_v62 = vsel %vm2109_vm6, %v32977_v46, -inf }
 0xce5   :  { %10824 = vmax.xlane.f32.xlu0 %v10823_v62 }
 0xce8   :  { %11050 = vrot.lane.b32.xlu1 %v30893_v49, %s36960_s22  ;;  %v10895_v49 = vsel %vm2109_vm6, %v32993_v1, 0.0 }
 0xce9   :  { %10884 = vadd.xlane.f32.xlu0 %v10883_v25 }
 0xcec   :  { %11126 = vrot.lane.b32.xlu1 %v37011_v61, %s36960_s22  ;;  %v10828_v61 = vpop.xlane.xlu1 %10827 }
 0xced   :  { %10890 = vadd.xlane.f32.xlu0 %v10889_v23 }
 0xcf0   :  { %11202 = vrot.lane.b32.xlu1 %v37013_v20, %s36960_s22  ;;  %v10844_v20 = vsub.f32 %v32868_v3, %v10828_v61 }
 0xcf1   :  { %10896 = vadd.xlane.f32.xlu0 %v10895_v49 }
 0xcf4   :  { %11278 = vrot.lane.b32.xlu1 %v37014_v9, %s36960_s22  ;;  %v10875_v9 = vmul.f32 1.442695, %v10844_v20 }
 0xcf6   :  { %29951 = vpow2.f32 %v10875_v9 }
 0xcf8   :  { %11354 = vrot.lane.b32.xlu1 %v37015_v50, %s36960_s22 }
 0xcfc   :  { %11430 = vrot.lane.b32.xlu1 %v37016_v63, %s36960_s22 }
 0xd00   :  { %11506 = vrot.lane.b32.xlu1 %v30915_v26, %s36960_s22 }
 0xd03   :  { %v33022_v26 = vpop.eup %29951 }
 0xd04   :  { %11582 = vrot.lane.b32.xlu1 %v30925_v33, %s36960_s22 }
 0xd07   :  { %10974 = vrot.lane.b32.xlu0 %v37012_v0, %s36960_s22 }
 0xd08   :  { %11658 = vrot.lane.b32.xlu1 %v30923_v29, %s36960_s22  ;;  %v10922_v29 = vsel %vm2109_vm6, %v33022_v26, 0.0 }
 0xd0c   :  { %11810 = vrot.lane.b32.xlu1 %v30931_v30, %s36960_s22 }
 0xd10   :  { %11886 = vrot.lane.b32.xlu1 %v30941_v38, %s36960_s22 }
 0xd14   :  { %11962 = vrot.lane.b32.xlu1 %v30939_v32, %s36960_s22 }
 0xd18   :  { %12038 = vrot.lane.b32.xlu1 %v30949_v41, %s36960_s22 }
 0xd26   :  { %10923 = vadd.xlane.f32.xlu0 %v10922_v29 }
 0xd2f   :  { %v10879_v33 = vpop.xlane.xlu0 %10878 }
 0xd30   :  { %29953 = vrcp.f32 %v10879_v33 }
 0xd33   :  { %v10882_v30 = vpop.xlane.xlu1 %10881 }
 0xd34   :  { %29955 = vrcp.f32 %v10882_v30 }
 0xd3b   :  { %v10888_v0 = vpop.xlane.xlu1 %10887 }
 0xd3c   :  { %29957 = vrcp.f32 %v10888_v0 }
 0xd3d   :  { %v29954_v38 = vpop.eup %29953 }
 0xd3e   :  { %v33027_v50 = vmul.f32 %v29954_v38, %v32875_v11 }
 0xd40   :  { %26650 = vst.msk [vmem:[%s36906_s19 + $0x180] sm:$0xff] %vm2109_vm6, %v33027_v50 }
 0xd41   :  { %v29956_v32 = vpop.eup %29955 }
 0xd42   :  { %v10928_v41 = vmul.f32 %v29956_v32, %v32880_v58 }
 0xd43   :  { %v10894_v63 = vpop.xlane.xlu1 %10893 }
 0xd44   :  { %26651 = vst.msk [vmem:[%s36906_s19 + $0x188] sm:$0xff] %vm2109_vm6, %v10928_v41  ;;  %29959 = vrcp.f32 %v10894_v63 }
 0xd49   :  { %v29958_v3 = vpop.eup %29957 }
 0xd4a   :  { %v10932_v11 = vmul.f32 %v29958_v3, %v32888_v7 }
 0xd4b   :  { %v10900_v14 = vpop.xlane.xlu1 %10899 }
 0xd4c   :  { %26653 = vst.msk [vmem:[%s36906_s19 + $0x198] sm:$0xff] %vm2109_vm6, %v10932_v11  ;;  %29961 = vrcp.f32 %v10900_v14 }
 0xd50   :  { %v10906_v48 = vpop.xlane.xlu1 %10905 }
 0xd51   :  { %29963 = vrcp.f32 %v10906_v48  ;;  %v29960_v58 = vpop.eup %29959 }
 0xd52   :  { %v10936_v52 = vmul.f32 %v29960_v58, %v32898_v5 }
 0xd54   :  { %26655 = vst.msk [vmem:[%s36906_s19 + $0x1a8] sm:$0xff] %vm2109_vm6, %v10936_v52 }
 0xd58   :  { %v10912_v55 = vpop.xlane.xlu1 %10911 }
 0xd59   :  { %29965 = vrcp.f32 %v10912_v55  ;;  %v29962_v7 = vpop.eup %29961 }
 0xd5a   :  { %v33050_v47 = vmul.f32 %v29962_v7, %v32915_v57 }
 0xd5c   :  { %26657 = vst.msk [vmem:[%s36906_s19 + $0x1b8] sm:$0xff] %vm2109_vm6, %v33050_v47 }
 0xd5e   :  { %v29964_v16 = vpop.eup %29963 }
 0xd5f   :  { %v33058_v5 = vmul.f32 %v29964_v16, %v32926_v17 }
 0xd60   :  { %v10918_v37 = vpop.xlane.xlu1 %10917 }
 0xd61   :  { %26659 = vst.msk [vmem:[%s36906_s19 + $0x1c8] sm:$0xff] %vm2109_vm6, %v33058_v5  ;;  %29967 = vrcp.f32 %v10918_v37 }
 0xd62   :  { %v10807_v57 = vpop.xlane.xlu0 %10806 }
 0xd63   :  { %v10837_v19 = vsub.f32 %v32959_v44, %v10807_v57 }
 0xd64   :  { %v11051_v39 = vpop.permute.xlu1 %11050 }
 0xd65   :  { %v10861_v62 = vmul.f32 1.442695, %v10837_v19  ;;  %28652 = vmatpush3.msra.mxu1 %v11051_v39 }
 0xd66   :  { %v29966_v25 = vpop.eup %29965  ;;  %v10813_v23 = vpop.xlane.xlu0 %10812  ;;  %28654 = vmatmul.mubr.msk.f32.vlgmr.msra.gmra.mxu1 %vm2109_vm6, %v10928_v41  ;;  %28661 = vmatprep.subr.mxu1 %v37010_v60 }
 0xd67   :  { %v33069_v17 = vmul.f32 %v29966_v25, %v32942_v56  ;;  %29969 = vpow2.f32 %v10861_v62  ;;  %v10839_v49 = vsub.f32 %v32967_v15, %v10813_v23  ;;  %28663 = vmatprep.mubr.msk.f32.mxu1 %vm30381_vm1, %v37010_v60 }
 0xd68   :  { %v11127_v61 = vpop.permute.xlu1 %11126 }
 0xd69   :  { %26661 = vst.msk [vmem:[%s36906_s19 + $0x1d8] sm:$0xff] %vm2109_vm6, %v33069_v17  ;;  %v10865_v44 = vmul.f32 1.442695, %v10839_v49 }
 0xd6a   :  { %v10819_v20 = vpop.xlane.xlu0 %10818 }
 0xd6b   :  { %29971 = vpow2.f32 %v10865_v44  ;;  %v10841_v9 = vsub.f32 %v32972_v54, %v10819_v20 }
 0xd6c   :  { %v11203_v56 = vpop.permute.xlu1 %11202 }
 0xd6d   :  { %v10869_v29 = vmul.f32 1.442695, %v10841_v9  ;;  %28662 = vmatpush3.msra.mxu1 %v11203_v56 }
 0xd6e   :  { %v29968_v33 = vpop.eup %29967  ;;  %v10825_v15 = vpop.xlane.xlu0 %10824  ;;  %28664 = vmatmul.mubr.msk.f32.vlgmr.msra.gmra.mxu1 %vm2109_vm6, %v10932_v11  ;;  %28671 = vmatprep.subr.mxu1 %v37010_v60 }
 0xd6f   :  { %v33083_v30 = vmul.f32 %v29968_v33, %v32956_v35  ;;  %29973 = vpow2.f32 %v10869_v29  ;;  %v10843_v0 = vsub.f32 %v32977_v46, %v10825_v15  ;;  %28673 = vmatprep.mubr.msk.f32.mxu1 %vm30381_vm1, %v37010_v60 }
 0xd70   :  { %v11279_v38 = vpop.permute.xlu1 %11278 }
 0xd71   :  { %26663 = vst.msk [vmem:[%s36906_s19 + $0x1e8] sm:$0xff] %vm2109_vm6, %v33083_v30  ;;  %v10873_v54 = vmul.f32 1.442695, %v10843_v0  ;;  %v30377_v0 = vld [vmem:[%s36907_s6 + $0x8] sm:$0xff] }
 0xd72   :  { %v10885_v32 = vpop.xlane.xlu0 %10884 }
 0xd73   :  { %29975 = vpow2.f32 %v10873_v54 }
 0xd74   :  { %v33093_v41 = vpop.eup %29969  ;;  %29977 = vrcp.f32 %v10885_v32  ;;  %v11355_v35 = vpop.permute.xlu1 %11354 }
 0xd75   :  { %28672 = vmatpush3.msra.mxu1 %v11355_v35  ;;  %v10901_v46 = vsel %vm2109_vm6, %v33093_v41, 0.0 }
 0xd76   :  { %10902 = vadd.xlane.f32.xlu0 %v10901_v46  ;;  %v10891_v63 = vpop.xlane.xlu0 %10890  ;;  %28674 = vmatmul.mubr.msk.f32.vlgmr.msra.gmra.mxu1 %vm2109_vm6, %v10936_v52 }
 0xd77   :  { %29979 = vrcp.f32 %v10891_v63  ;;  %28681 = vmatprep.subr.mxu1 %v37010_v60  ;;  %28683 = vmatprep.mubr.msk.f32.mxu1 %vm30381_vm1, %v37010_v60 }
 0xd78   :  { %v33101_v3 = vpop.eup %29971  ;;  %v11431_v11 = vpop.permute.xlu1 %11430 }
 0xd79   :  { %v10907_v14 = vsel %vm2109_vm6, %v33101_v3, 0.0 }
 0xd7a   :  { %10908 = vadd.xlane.f32.xlu0 %v10907_v14  ;;  %v10897_v48 = vpop.xlane.xlu0 %10896 }
 0xd7b   :  { %29981 = vrcp.f32 %v10897_v48 }
 0xd7c   :  { %v33105_v58 = vpop.eup %29973  ;;  %v11507_v55 = vpop.permute.xlu1 %11506 }
 0xd7d   :  { %28682 = vmatpush3.msra.mxu1 %v11507_v55  ;;  %v10913_v52 = vsel %vm2109_vm6, %v33105_v58, 0.0 }
 0xd7e   :  { %10914 = vadd.xlane.f32.xlu0 %v10913_v52  ;;  %v10975_v7 = vpop.permute.xlu0 %10974  ;;  %28684 = vmatmul.mubr.msk.f32.vlgmr.msra.gmra.mxu1 %vm2109_vm6, %v33050_v47 }
 0xd7f   :  { %28647 = vmatpush3.msra.mxu0 %v10975_v7  ;;  %28691 = vmatprep.subr.mxu1 %v37010_v60 }
 0xd80   :  { %v33112_v16 = vpop.eup %29975  ;;  %28649 = vmatmul.mubr.msk.f32.vlgmr.msra.gmra.mxu0 %vm2109_vm6, %v33027_v50  ;;  %28656 = vmatprep.subr.mxu0 %v37010_v60  ;;  %v11583_v37 = vpop.permute.xlu1 %11582 }
 0xd81   :  { %v29978_v57 = vpop.eup %29977  ;;  %28657 = vmatpush3.msra.mxu0 %v11127_v61  ;;  %v10919_v19 = vsel %vm2109_vm6, %v33112_v16, 0.0  ;;  %28658 = vmatprep.mubr.msk.f32.mxu0 %vm30381_vm1, %v37010_v60 }
 0xd82   :  { %v10930_v47 = vmul.f32 %v29978_v57, %v32979_v12  ;;  %10920 = vadd.xlane.f32.xlu1 %v10919_v19  ;;  %28666 = vmatprep.subr.mxu0 %v37010_v60 }
 0xd83   :  { %28693 = vmatprep.mubr.msk.f32.mxu1 %vm30381_vm1, %v37010_v60 }
 0xd84   :  { %v29980_v50 = vpop.eup %29979  ;;  %26652 = vst.msk [vmem:[%s36906_s19 + $0x190] sm:$0xff] %vm2109_vm6, %v10930_v47  ;;  %28659 = vmatmul.mubr.msk.f32.vlgmr.msra.gmra.mxu0 %vm2109_vm6, %v10930_v47  ;;  %v11659_v39 = vpop.permute.xlu1 %11658 }
 0xd85   :  { %v10934_v62 = vmul.f32 %v29980_v50, %v32987_v4  ;;  %28667 = vmatpush3.msra.mxu0 %v11279_v38  ;;  %28692 = vmatpush3.msra.mxu1 %v11659_v39  ;;  %v12190_v38 = vrot.slane %v30377_v0, 4  ;;  %v37032_v0 = vld [vmem:[#allocation20_spill] sm:$0xff] }
 0xd86   :  { %28668 = vmatprep.mubr.msk.f32.mxu0 %vm30381_vm1, %v37010_v60  ;;  %28676 = vmatprep.subr.mxu0 %v37010_v60 }
 0xd87   :  { %26654 = vst.msk [vmem:[%s36906_s19 + $0x1a0] sm:$0xff] %vm2109_vm6, %v10934_v62  ;;  %28694 = vmatmul.mubr.msk.f32.vlgmr.msra.gmra.mxu1 %vm2109_vm6, %v33058_v5  ;;  %28701 = vmatprep.subr.mxu1 %v37010_v60 }
 0xd88   :  { %v29982_v12 = vpop.eup %29981  ;;  %28669 = vmatmul.mubr.msk.f32.vlgmr.msra.gmra.mxu0 %vm2109_vm6, %v10934_v62  ;;  %v11811_v4 = vpop.permute.xlu1 %11810  ;;  %28703 = vmatprep.mubr.msk.f32.mxu1 %vm30381_vm1, %v37010_v60 }
 0xd89   :  { %v10938_v25 = vmul.f32 %v29982_v12, %v32993_v1  ;;  %28677 = vmatpush3.msra.mxu0 %v11431_v11  ;;  %28702 = vmatpush3.msra.mxu1 %v11811_v4 }
 0xd8a   :  { %28678 = vmatprep.mubr.msk.f32.mxu0 %vm30381_vm1, %v37010_v60  ;;  %28686 = vmatprep.subr.mxu0 %v37010_v60 }
 0xd8b   :  { %26656 = vst.msk [vmem:[%s36906_s19 + $0x1b0] sm:$0xff] %vm2109_vm6, %v10938_v25  ;;  %28704 = vmatmul.mubr.msk.f32.vlgmr.msra.gmra.mxu1 %vm2109_vm6, %v33069_v17  ;;  %28711 = vmatprep.subr.mxu1 %v37010_v60 }
 0xd8c   :  { %28679 = vmatmul.mubr.msk.f32.vlgmr.msra.gmra.mxu0 %vm2109_vm6, %v10938_v25  ;;  %v11887_v1 = vpop.permute.xlu1 %11886  ;;  %28713 = vmatprep.mubr.msk.f32.mxu1 %vm30381_vm1, %v37010_v60 }
 0xd8d   :  { %28687 = vmatpush3.msra.mxu0 %v11583_v37  ;;  %28688 = vmatprep.mubr.msk.f32.mxu0 %vm30381_vm1, %v37010_v60 }
 0xd8e   :  { %28696 = vmatprep.subr.mxu0 %v37010_v60 }
 0xd90   :  { %v11963_v5 = vpop.permute.xlu1 %11962 }
 0xd91   :  { %28712 = vmatpush3.msra.mxu1 %v11963_v5 }
 0xd92   :  { %28714 = vmatmul.mubr.msk.f32.vlgmr.msra.gmra.mxu1 %vm2109_vm6, %v33083_v30  ;;  %28721 = vmatprep.subr.mxu1 %v37010_v60 }
 0xd93   :  { %12114 = vrot.lane.b32.xlu1 %v30947_v40, %s36960_s22  ;;  %28723 = vmatprep.mubr.msk.f32.mxu1 %vm30381_vm1, %v37010_v60 }
 0xd94   :  { %11734 = vrot.lane.b32.xlu0 %v30933_v34, %s36960_s22  ;;  %v12039_v40 = vpop.permute.xlu1 %12038 }
 0xdaf   :  { %v10924_v23 = vpop.xlane.xlu0 %10923 }
 0xdb0   :  { %29983 = vrcp.f32 %v10924_v23 }
 0xdbd   :  { %v29984_v17 = vpop.eup %29983 }
 0xdbe   :  { %v10956_v49 = vmul.f32 %v29984_v17, %v33022_v26 }
 0xdc0   :  { %26665 = vst.msk [vmem:[%s36906_s19 + $0x1f8] sm:$0xff] %vm2109_vm6, %v10956_v49 }
 0xdff   :  { %v10903_v61 = vpop.xlane.xlu0 %10902 }
 0xe00   :  { %29985 = vrcp.f32 %v10903_v61 }
 0xe03   :  { %v10909_v44 = vpop.xlane.xlu0 %10908 }
 0xe04   :  { %29987 = vrcp.f32 %v10909_v44 }
 0xe07   :  { %v10915_v20 = vpop.xlane.xlu0 %10914 }
 0xe08   :  { %29989 = vrcp.f32 %v10915_v20 }
 0xe0b   :  { %v10921_v9 = vpop.xlane.xlu1 %10920  ;;  %v11735_v26 = vpop.permute.xlu0 %11734 }
 0xe0c   :  { %29991 = vrcp.f32 %v10921_v9 }
 0xe0d   :  { %v29986_v34 = vpop.eup %29985 }
 0xe0e   :  { %v10942_v56 = vmul.f32 %v29986_v34, %v33093_v41  ;;  %v6522_v34 = vadd.f32 %v32172_v24, %v32285_v45 }
 0xe0f   :  { %v12115_v29 = vpop.permute.xlu1 %12114 }
 0xe10   :  { %26658 = vst.msk [vmem:[%s36906_s19 + $0x1c0] sm:$0xff] %vm2109_vm6, %v10942_v56  ;;  %28689 = vmatmul.mubr.msk.f32.vlgmr.msra.gmra.mxu0 %vm2109_vm6, %v10942_v56  ;;  %28722 = vmatpush3.msra.mxu1 %v12115_v29  ;;  %v9485_v29 = vadd.f32 %v32892_v53, %v6522_v34  ;;  %v37034_v53 = vld [vmem:[#allocation3_spill] sm:$0xff]  ;;  %v37043_v34 = vld [vmem:[#allocation9_spill] sm:$0xff] }
 0xe11   :  { %v29988_v33 = vpop.eup %29987  ;;  %28697 = vmatpush3.msra.mxu0 %v11735_v26  ;;  %28724 = vmatmul.mubr.msk.f32.vlgmr.msra.gmra.mxu1 %vm2109_vm6, %v10956_v49 }
 0xe12   :  { %v10946_v15 = vmul.f32 %v29988_v33, %v33101_v3  ;;  %28698 = vmatprep.mubr.msk.f32.mxu0 %vm30381_vm1, %v37010_v60  ;;  %28706 = vmatprep.subr.mxu0 %v37010_v60  ;;  %v33236_v33 = vld [vmem:[%s36908_s7] ss:$0 sm:$0xff] }
 0xe14   :  { %26660 = vst.msk [vmem:[%s36906_s19 + $0x1d0] sm:$0xff] %vm2109_vm6, %v10946_v15  ;;  %28699 = vmatmul.mubr.msk.f32.vlgmr.msra.gmra.mxu0 %vm2109_vm6, %v10946_v15 }
 0xe15   :  { %v29990_v30 = vpop.eup %29989  ;;  %28707 = vmatpush3.msra.mxu0 %v11887_v1  ;;  %28708 = vmatprep.mubr.msk.f32.mxu0 %vm30381_vm1, %v37010_v60 }
 0xe16   :  { %v10950_v54 = vmul.f32 %v29990_v30, %v33105_v58  ;;  %28716 = vmatprep.subr.mxu0 %v37010_v60  ;;  %v37031_v30 = vld [vmem:[#allocation25_spill] sm:$0xff] }
 0xe18   :  { %26662 = vst.msk [vmem:[%s36906_s19 + $0x1e0] sm:$0xff] %vm2109_vm6, %v10950_v54  ;;  %28709 = vmatmul.mubr.msk.f32.vlgmr.msra.gmra.mxu0 %vm2109_vm6, %v10950_v54  ;;  %v37033_v54 = vld [vmem:[#allocation2_spill] sm:$0xff] }
 0xe19   :  { %v29992_v32 = vpop.eup %29991  ;;  %28717 = vmatpush3.msra.mxu0 %v12039_v40  ;;  %28718 = vmatprep.mubr.msk.f32.mxu0 %vm30381_vm1, %v37010_v60 }
 0xe1a   :  { %v10954_v41 = vmul.f32 %v29992_v32, %v33112_v16  ;;  %28726 = vmatprep.subr.msk.mxu0 %vm6257_vm7, %v12190_v38 }
 0xe1c   :  { %26664 = vst.msk [vmem:[%s36906_s19 + $0x1f0] sm:$0xff] %vm2109_vm6, %v10954_v41  ;;  %28719 = vmatmul.mubr.msk.f32.vlgmr.msra.gmra.mxu0 %vm2109_vm6, %v10954_v41 }
 0xe1d   :  { %28727 = vmatpush3.msk.msra.mxu0 %vm6257_vm7, %v12190_v38  ;;  %v6532_v38 = vadd.f32 %v37032_v0, %v37031_v30 }
 0xe1f   :  { %v9487_v24 = vadd.f32 %v32900_v31, %v6532_v38 }
 0xe26   :  { %v11122_v35 = vpop.f32.mrf.mxu1 }
 0xe28   :  { %v28655_v46 = vpop.f32.mrf.mxu1 }
 0xe2e   :  { %v11274_v63 = vpop.f32.mrf.mxu1 }
 0xe30   :  { %v28665_v3 = vpop.f32.mrf.mxu1 }
 0xe31   :  { %v37035_v3 = vld [vmem:[#allocation26_spill] sm:$0xff] }
 0xe36   :  { %v11426_v11 = vpop.f32.mrf.mxu1 }
 0xe38   :  { %v28675_v14 = vpop.f32.mrf.mxu1 }
 0xe3e   :  { %v11578_v48 = vpop.f32.mrf.mxu1 }
 0xe40   :  { %v11046_v58 = vpop.f32.mrf.mxu0  ;;  %v28685_v55 = vpop.f32.mrf.mxu1 }
 0xe41   :  { %28728 = vmatprep.mubr.msk.f32.mxu0 %vm847_vm4, %v11046_v58 }
 0xe42   :  { %v28650_v52 = vpop.f32.mrf.mxu0  ;;  %28729 = vmatmul.mubr.msk.f32.vlgmr.msra.gmra.mxu0 %vm847_vm4, %v11122_v35 }
 0xe43   :  { %v37037_v52 = vld [vmem:[#allocation5_spill] sm:$0xff] }
 0xe44   :  { %v11198_v7 = vpop.f32.mrf.mxu0 }
 0xe45   :  { %28731 = vmatprep.mubr.msk.f32.mxu0 %vm847_vm4, %v11198_v7 }
 0xe46   :  { %v28660_v16 = vpop.f32.mrf.mxu0  ;;  %28732 = vmatmul.mubr.msk.f32.gmra.mxu0 %vm847_vm4, %v11274_v63 }
 0xe47   :  { %v11730_v37 = vpop.f32.mrf.mxu1 }
 0xe48   :  { %v11350_v57 = vpop.f32.mrf.mxu0 }
 0xe49   :  { %v28695_v19 = vpop.f32.mrf.mxu1  ;;  %28734 = vmatprep.mubr.msk.f32.mxu0 %vm847_vm4, %v11350_v57 }
 0xe4a   :  { %v28670_v47 = vpop.f32.mrf.mxu0  ;;  %28735 = vmatmul.mubr.msk.f32.gmra.mxu0 %vm847_vm4, %v11426_v11  ;;  %v37036_v11 = vld [vmem:[#allocation18_spill] sm:$0xff] }
 0xe4b   :  { %v11882_v50 = vpop.f32.mrf.mxu1  ;;  %v6542_v14 = vadd.f32 %v37036_v11, %v37035_v3  ;;  %v37039_v47 = vld [vmem:[#allocation27_spill] sm:$0xff]  ;;  %v37048_v3 = vld [vmem:[#allocation21_spill] sm:$0xff] }
 0xe4c   :  { %v11502_v39 = vpop.f32.mrf.mxu0 }
 0xe4d   :  { %v28705_v62 = vpop.f32.mrf.mxu1  ;;  %28737 = vmatprep.mubr.msk.f32.mxu0 %vm847_vm4, %v11502_v39  ;;  %v9489_v16 = vadd.f32 %v32909_v13, %v6542_v14  ;;  %v37049_v14 = vld [vmem:[#allocation11_spill] sm:$0xff] }
 0xe4e   :  { %v28680_v12 = vpop.f32.mrf.mxu0  ;;  %28738 = vmatmul.mubr.msk.f32.gmra.mxu0 %vm847_vm4, %v11578_v48 }
 0xe52   :  { %v12034_v4 = vpop.f32.mrf.mxu1 }
 0xe54   :  { %v28715_v25 = vpop.f32.mrf.mxu1 }
 0xed0   :  { %v11654_v1 = vpop.f32.mrf.mxu0 }
 0xed1   :  { %v12186_v5 = vpop.f32.mrf.mxu1  ;;  %28740 = vmatprep.mubr.msk.f32.mxu0 %vm847_vm4, %v11654_v1 }
 0xed2   :  { %v28690_v23 = vpop.f32.mrf.mxu0  ;;  %28741 = vmatmul.mubr.msk.f32.gmra.mxu0 %vm847_vm4, %v11730_v37  ;;  %v37038_v37 = vld [vmem:[#allocation4_spill] sm:$0xff] }
 0xed3   :  { %v28725_v17 = vpop.f32.mrf.mxu1  ;;  %v37042_v23 = vld [vmem:[#allocation6_spill] sm:$0xff] }
 0xed4   :  { %v11806_v49 = vpop.f32.mrf.mxu0 }
 0xed5   :  { %28743 = vmatprep.mubr.msk.f32.mxu0 %vm847_vm4, %v11806_v49 }
 0xed6   :  { %v28700_v61 = vpop.f32.mrf.mxu0  ;;  %28744 = vmatmul.mubr.msk.f32.gmra.mxu0 %vm847_vm4, %v11882_v50  ;;  %v37040_v50 = vld [vmem:[#allocation19_spill] sm:$0xff] }
 0xed7   :  { %v6552_v39 = vadd.f32 %v37040_v50, %v37039_v47 }
 0xed8   :  { %v11958_v44 = vpop.f32.mrf.mxu0 }
 0xed9   :  { %28746 = vmatprep.mubr.msk.f32.mxu0 %vm847_vm4, %v11958_v44  ;;  %v9491_v25 = vadd.f32 %v32917_v27, %v6552_v39 }
 0xeda   :  { %v28710_v40 = vpop.f32.mrf.mxu0  ;;  %28747 = vmatmul.mubr.msk.f32.gmra.mxu0 %vm847_vm4, %v12034_v4 }
 0xedc   :  { %v12110_v20 = vpop.f32.mrf.mxu0 }
 0xedd   :  { %28749 = vmatprep.mubr.msk.f32.mxu0 %vm847_vm4, %v12110_v20 }
 0xede   :  { %v28720_v9 = vpop.f32.mrf.mxu0  ;;  %28750 = vmatmul.mubr.msk.f32.gmra.mxu0 %vm847_vm4, %v12186_v5  ;;  %v37041_v5 = vld [vmem:[#allocation7_spill] sm:$0xff] }
 0xf02   :  { %v28730_v56 = vpop.f32.mrf.mxu0 }
 0xf03   :  { %v12387_v26 = vadd.f32 %v28730_v56, %v32886_v21 }
 0xf04   :  { %v12307_v15 = vpop.f32.mrf.mxu0 }
 0xf05   :  { %v12403_v32 = vadd.f32 %v12387_v26, %v37033_v54  ;;  %v12386_v41 = vadd.f32 %v12307_v15, %v9485_v29  ;;  %v37044_v29 = vld [vmem:[#allocation8_spill] sm:$0xff] }
 0xf06   :  { %v28733_v35 = vpop.f32.mrf.mxu0 }
 0xf07   :  { %v33243_v45 = vadd.f32 %v33236_v33, %v12403_v32  ;;  %v12402_v21 = vadd.f32 %v12386_v41, %v37034_v53  ;;  %v12389_v46 = vadd.f32 %v28733_v35, %v32896_v51  ;;  %v37045_v32 = vld [vmem:[#allocation28_spill] sm:$0xff]  ;;  %v37046_v41 = vld [vmem:[#allocation22_spill] sm:$0xff] }
 0xf08   :  { %v12317_v63 = vpop.f32.mrf.mxu0  ;;  %v6562_v35 = vadd.f32 %v37046_v41, %v37045_v32 }
 0xf09   :  { %v33250_v48 = vadd.f32 %v33236_v33, %v12402_v21  ;;  %v12388_v58 = vadd.f32 %v12317_v63, %v9487_v24  ;;  %v12444_v55 = vsel %vm397_vm3, %v33243_v45, 0.0  ;;  %v12405_v31 = vadd.f32 %v12389_v46, %v37037_v52  ;;  %v37047_v63 = vld [vmem:[#allocation29_spill] sm:$0xff] }
 0xf0a   :  { %12445 = vadd.xlane.f32.xlu1 %v12444_v55  ;;  %v28736_v7 = vpop.f32.mrf.mxu0  ;;  %v9493_v53 = vadd.f32 %v32928_v42, %v6562_v35  ;;  %v6572_v11 = vadd.f32 %v37048_v3, %v37047_v63  ;;  %v37058_v35 = vld [vmem:[#allocation14_spill] sm:$0xff] }
 0xf0b   :  { %v12404_v57 = vadd.f32 %v12388_v58, %v37038_v37  ;;  %v12391_v51 = vadd.f32 %v28736_v7, %v32906_v36  ;;  %v12441_v19 = vsel %vm397_vm3, %v33250_v48, 0.0  ;;  %v33267_v13 = vadd.f32 %v33236_v33, %v12405_v31  ;;  %v37050_v37 = vld [vmem:[#allocation10_spill] sm:$0xff] }
 0xf0c   :  { %12442 = vadd.xlane.f32.xlu0 %v12441_v19  ;;  %v12327_v62 = vpop.f32.mrf.mxu0  ;;  %v9495_v7 = vadd.f32 %v32936_v2, %v6572_v11  ;;  %v37059_v11 = vld [vmem:[#allocation17_spill] sm:$0xff] }
 0xf0d   :  { %v33263_v12 = vadd.f32 %v33236_v33, %v12404_v57  ;;  %v12390_v4 = vadd.f32 %v12327_v62, %v9489_v16  ;;  %v12407_v36 = vadd.f32 %v12391_v51, %v37041_v5  ;;  %v12450_v27 = vsel %vm397_vm3, %v33267_v13, 0.0  ;;  %v37051_v51 = vld [vmem:[#allocation30_spill] sm:$0xff]  ;;  %v37053_v62 = vld [vmem:[#allocation13_spill] sm:$0xff] }
 0xf0e   :  { %v28739_v1 = vpop.f32.mrf.mxu0 }
 0xf0f   :  { %v12406_v17 = vadd.f32 %v12390_v4, %v37042_v23  ;;  %v12393_v49 = vadd.f32 %v28739_v1, %v32913_v28  ;;  %v12447_v61 = vsel %vm397_vm3, %v33263_v12, 0.0  ;;  %v33280_v9 = vadd.f32 %v33236_v33, %v12407_v36  ;;  %v37054_v23 = vld [vmem:[#allocation12_spill] sm:$0xff] }
 0xf10   :  { %12448 = vadd.xlane.f32.xlu0 %v12447_v61  ;;  %v12337_v44 = vpop.f32.mrf.mxu0 }
 0xf11   :  { %v33275_v40 = vadd.f32 %v33236_v33, %v12406_v17  ;;  %v12392_v20 = vadd.f32 %v12337_v44, %v9491_v25  ;;  %v12409_v56 = vadd.f32 %v12393_v49, %v37043_v34  ;;  %v12456_v0 = vsel %vm397_vm3, %v33280_v9, 0.0  ;;  %v37055_v44 = vld [vmem:[#allocation31_spill] sm:$0xff] }
 0xf13   :  { %v12408_v26 = vadd.f32 %v12392_v20, %v37044_v29  ;;  %v12453_v28 = vsel %vm397_vm3, %v33275_v40, 0.0  ;;  %v33290_v30 = vadd.f32 %v33236_v33, %v12409_v56  ;;  %v37056_v20 = vld [vmem:[#allocation24_spill] sm:$0xff]  ;;  %v37057_v29 = vld [vmem:[#allocation15_spill] sm:$0xff] }
 0xf14   :  { %12451 = vadd.xlane.f32.xlu0 %v12450_v27  ;;  %12454 = vadd.xlane.f32.xlu1 %v12453_v28  ;;  %v6592_v27 = vadd.f32 %v37056_v20, %v37055_v44 }
 0xf15   :  { %v33287_v15 = vadd.f32 %v33236_v33, %v12408_v26  ;;  %v12462_v54 = vsel %vm397_vm3, %v33290_v30, 0.0 }
 0xf17   :  { %v12459_v38 = vsel %vm397_vm3, %v33287_v15, 0.0 }
 0xf18   :  { %12457 = vadd.xlane.f32.xlu0 %v12456_v0  ;;  %12460 = vadd.xlane.f32.xlu1 %v12459_v38 }
 0xf1c   :  { %12463 = vadd.xlane.f32.xlu0 %v12462_v54 }
 0xf92   :  { %v28742_v24 = vpop.f32.mrf.mxu0 }
 0xf93   :  { %v12395_v21 = vadd.f32 %v28742_v24, %v32923_v6  ;;  %v37052_v6 = vld [vmem:[#allocation23_spill] sm:$0xff]  ;;  %v12446_v50 = vpop.xlane.xlu1 %12445 }
 0xf94   :  { %v12347_v46 = vpop.f32.mrf.mxu0  ;;  %v6582_v19 = vadd.f32 %v37052_v6, %v37051_v51  ;;  %v12490_v34 = vmul.f32 0.0625, %v12446_v50 }
 0xf95   :  { %v12411_v58 = vadd.f32 %v12395_v21, %v37049_v14  ;;  %v12394_v55 = vadd.f32 %v12347_v46, %v9493_v53  ;;  %v12443_v52 = vpop.xlane.xlu0 %12442 }
 0xf96   :  { %v28745_v31 = vpop.f32.mrf.mxu0  ;;  %v9497_v5 = vadd.f32 %v32944_v8, %v6582_v19  ;;  %v12489_v54 = vmul.f32 0.0625, %v12443_v52  ;;  %v33344_v46 = vsub.f32 %v33243_v45, %v12490_v34 }
 0xf97   :  { %v33307_v16 = vadd.f32 %v33236_v33, %v12411_v58  ;;  %v12410_v57 = vadd.f32 %v12394_v55, %v37050_v37  ;;  %v12397_v42 = vadd.f32 %v28745_v31, %v32934_v59 }
 0xf98   :  { %v12357_v47 = vpop.f32.mrf.mxu0  ;;  %v12522_v6 = vmul.f32 %v33344_v46, %v33344_v46 }
 0xf99   :  { %v33314_v39 = vadd.f32 %v33236_v33, %v12410_v57  ;;  %v12413_v4 = vadd.f32 %v12397_v42, %v37053_v62  ;;  %v12396_v25 = vadd.f32 %v12357_v47, %v9495_v7  ;;  %v12449_v1 = vpop.xlane.xlu0 %12448  ;;  %v12468_v2 = vsel %vm397_vm3, %v33307_v16, 0.0  ;;  %v37060_v57 = vld [vmem:[#allocation16_spill] sm:$0xff] }
 0xf9a   :  { %12469 = vadd.xlane.f32.xlu0 %v12468_v2  ;;  %v28748_v36 = vpop.f32.mrf.mxu0  ;;  %v12491_v7 = vmul.f32 0.0625, %v12449_v1 }
 0xf9b   :  { %v33321_v59 = vadd.f32 %v33236_v33, %v12413_v4  ;;  %v12412_v17 = vadd.f32 %v12396_v25, %v37054_v23  ;;  %v12399_v49 = vadd.f32 %v28748_v36, %v32940_v18  ;;  %v12465_v61 = vsel %vm397_vm3, %v33314_v39, 0.0 }
 0xf9c   :  { %12466 = vadd.xlane.f32.xlu1 %v12465_v61  ;;  %v12367_v56 = vpop.f32.mrf.mxu0  ;;  %v9499_v18 = vadd.f32 %v32953_v43, %v6592_v27  ;;  %v33372_v25 = vsub.f32 %v33263_v12, %v12491_v7 }
 0xf9d   :  { %v33330_v8 = vadd.f32 %v33236_v33, %v12412_v17  ;;  %v12415_v26 = vadd.f32 %v12399_v49, %v37057_v29  ;;  %v12398_v28 = vadd.f32 %v12367_v56, %v9497_v5  ;;  %v12452_v0 = vpop.xlane.xlu0 %12451  ;;  %v12474_v38 = vsel %vm397_vm3, %v33321_v59, 0.0  ;;  %v12455_v31 = vpop.xlane.xlu1 %12454 }
 0xf9e   :  { %12475 = vadd.xlane.f32.xlu0 %v12474_v38  ;;  %v28751_v32 = vpop.f32.mrf.mxu0  ;;  %v12492_v63 = vmul.f32 0.0625, %v12452_v0  ;;  %v12493_v1 = vmul.f32 0.0625, %v12455_v31  ;;  %v12540_v17 = vsel %vm397_vm3, %v12522_v6, 0.0  ;;  %v12523_v27 = vmul.f32 %v33372_v25, %v33372_v25 }
 0xf9f   :  { %v33337_v41 = vadd.f32 %v33236_v33, %v12415_v26  ;;  %v12414_v24 = vadd.f32 %v12398_v28, %v37058_v35  ;;  %v12401_v53 = vadd.f32 %v28751_v32, %v32951_v22  ;;  %v12471_v21 = vsel %vm397_vm3, %v33330_v8, 0.0 }
 0xfa0   :  { %12472 = vadd.xlane.f32.xlu1 %v12471_v21  ;;  %v12377_v3 = vpop.f32.mrf.mxu0  ;;  %v33353_v22 = vsub.f32 %v33250_v48, %v12489_v54  ;;  %v33364_v19 = vsub.f32 %v33267_v13, %v12492_v63  ;;  %v33385_v61 = vsub.f32 %v33275_v40, %v12493_v1  ;;  %v12543_v28 = vsel %vm397_vm3, %v12523_v27, 0.0  ;;  %v12689_v21 = vld [vmem:[%s36909_s10] sm:$0xff] }
 0xfa1   :  { %v33347_v43 = vadd.f32 %v33236_v33, %v12414_v24  ;;  %v12417_v14 = vadd.f32 %v12401_v53, %v37059_v11  ;;  %v12400_v58 = vadd.f32 %v12377_v3, %v9499_v18  ;;  %v12458_v55 = vpop.xlane.xlu0 %12457  ;;  %v12480_v52 = vsel %vm397_vm3, %v33337_v41, 0.0  ;;  %v12461_v36 = vpop.xlane.xlu1 %12460  ;;  %v12690_v53 = vld [vmem:[%s36909_s10 + $0x8] sm:$0xff] }
 0xfa2   :  { %12481 = vadd.xlane.f32.xlu0 %v12480_v52  ;;  %v12494_v50 = vmul.f32 0.0625, %v12458_v55  ;;  %v12521_v5 = vmul.f32 %v33353_v22, %v33353_v22  ;;  %v12524_v49 = vmul.f32 %v33364_v19, %v33364_v19  ;;  %v12495_v44 = vmul.f32 0.0625, %v12461_v36  ;;  %28752 = vmatprep.subr.mxu1 %v12690_v53 }
 0xfa3   :  { %v33356_v37 = vadd.f32 %v33236_v33, %v12417_v14  ;;  %v12416_v42 = vadd.f32 %v12400_v58, %v37060_v57  ;;  %v12477_v51 = vsel %vm397_vm3, %v33347_v43, 0.0  ;;  %v12525_v0 = vmul.f32 %v33385_v61, %v33385_v61  ;;  %28753 = vmatpush3.msra.mxu1 %v12690_v53 }
 0xfa4   :  { %12478 = vadd.xlane.f32.xlu1 %v12477_v51  ;;  %v12537_v20 = vsel %vm397_vm3, %v12521_v5, 0.0  ;;  %v12546_v56 = vsel %vm397_vm3, %v12524_v49, 0.0  ;;  %v33397_v26 = vsub.f32 %v33287_v15, %v12495_v44  ;;  %28754 = vmatprep.subr.mxu1 %v12689_v21 }
 0xfa5   :  { %v33367_v47 = vadd.f32 %v33236_v33, %v12416_v42  ;;  %v12486_v62 = vsel %vm397_vm3, %v33356_v37, 0.0  ;;  %v12464_v4 = vpop.xlane.xlu0 %12463  ;;  %v33379_v33 = vsub.f32 %v33280_v9, %v12494_v50  ;;  %v12549_v54 = vsel %vm397_vm3, %v12525_v0, 0.0  ;;  %28755 = vmatpush3.msra.mxu1 %v12689_v21 }
 0xfa6   :  { %12487 = vadd.xlane.f32.xlu0 %v12486_v62  ;;  %v12496_v23 = vmul.f32 0.0625, %v12464_v4  ;;  %v12527_v32 = vmul.f32 %v33397_v26, %v33397_v26 }
 0xfa7   :  { %v12483_v2 = vsel %vm397_vm3, %v33367_v47, 0.0  ;;  %v12526_v29 = vmul.f32 %v33379_v33, %v33379_v33 }
 0xfa8   :  { %12484 = vadd.xlane.f32.xlu1 %v12483_v2  ;;  %v33391_v34 = vsub.f32 %v33290_v30, %v12496_v23  ;;  %v12555_v24 = vsel %vm397_vm3, %v12527_v32, 0.0 }
 0xfa9   :  { %v12552_v38 = vsel %vm397_vm3, %v12526_v29, 0.0 }
 0xfaa   :  { %12541 = vadd.xlane.f32.xlu0 %v12540_v17  ;;  %v12528_v18 = vmul.f32 %v33391_v34, %v33391_v34 }
 0xfac   :  { %12538 = vadd.xlane.f32.xlu1 %v12537_v20  ;;  %v12558_v35 = vsel %vm397_vm3, %v12528_v18, 0.0 }
 0xfae   :  { %12547 = vadd.xlane.f32.xlu0 %v12546_v56 }
 0xfb0   :  { %12544 = vadd.xlane.f32.xlu1 %v12543_v28 }
 0xfb2   :  { %12553 = vadd.xlane.f32.xlu0 %v12552_v38 }
 0xfb4   :  { %12550 = vadd.xlane.f32.xlu1 %v12549_v54 }
 0xfb6   :  { %12559 = vadd.xlane.f32.xlu0 %v12558_v35 }
 0xfb8   :  { %12556 = vadd.xlane.f32.xlu1 %v12555_v24 }
0x1023   :  { %v12470_v63 = vpop.xlane.xlu0 %12469 }
0x1024   :  { %v12498_v3 = vmul.f32 0.0625, %v12470_v63 }
0x1025   :  { %v12467_v11 = vpop.xlane.xlu1 %12466 }
0x1026   :  { %v33417_v14 = vsub.f32 %v33307_v16, %v12498_v3  ;;  %v12497_v58 = vmul.f32 0.0625, %v12467_v11 }
0x1027   :  { %v12476_v55 = vpop.xlane.xlu0 %12475 }
0x1028   :  { %v33420_v52 = vsub.f32 %v33314_v39, %v12497_v58  ;;  %v12500_v31 = vmul.f32 0.0625, %v12476_v55  ;;  %v12530_v7 = vmul.f32 %v33417_v14, %v33417_v14 }
0x1029   :  { %v12473_v57 = vpop.xlane.xlu1 %12472 }
0x102a   :  { %v33425_v42 = vsub.f32 %v33321_v59, %v12500_v31  ;;  %v12499_v51 = vmul.f32 0.0625, %v12473_v57  ;;  %v12564_v6 = vsel %vm397_vm3, %v12530_v7, 0.0  ;;  %v12529_v50 = vmul.f32 %v33420_v52, %v33420_v52 }
0x102b   :  { %v12482_v62 = vpop.xlane.xlu0 %12481  ;;  %12565 = vadd.xlane.f32.xlu0 %v12564_v6 }
0x102c   :  { %v33431_v4 = vsub.f32 %v33330_v8, %v12499_v51  ;;  %v12502_v1 = vmul.f32 0.0625, %v12482_v62  ;;  %v12561_v2 = vsel %vm397_vm3, %v12529_v50, 0.0  ;;  %v12532_v5 = vmul.f32 %v33425_v42, %v33425_v42 }
0x102d   :  { %v12479_v36 = vpop.xlane.xlu1 %12478  ;;  %12562 = vadd.xlane.f32.xlu1 %v12561_v2 }
0x102e   :  { %v33437_v23 = vsub.f32 %v33337_v41, %v12502_v1  ;;  %v12501_v17 = vmul.f32 0.0625, %v12479_v36  ;;  %v12570_v49 = vsel %vm397_vm3, %v12532_v5, 0.0  ;;  %v12531_v44 = vmul.f32 %v33431_v4, %v33431_v4 }
0x102f   :  { %12571 = vadd.xlane.f32.xlu0 %v12570_v49  ;;  %v12488_v20 = vpop.xlane.xlu0 %12487 }
0x1030   :  { %v33443_v27 = vsub.f32 %v33347_v43, %v12501_v17  ;;  %v12504_v56 = vmul.f32 0.0625, %v12488_v20  ;;  %v12567_v29 = vsel %vm397_vm3, %v12531_v44, 0.0  ;;  %v12534_v28 = vmul.f32 %v33437_v23, %v33437_v23 }
0x1031   :  { %12568 = vadd.xlane.f32.xlu1 %v12567_v29  ;;  %v12485_v0 = vpop.xlane.xlu1 %12484 }
0x1032   :  { %v33449_v38 = vsub.f32 %v33356_v37, %v12504_v56  ;;  %v12503_v18 = vmul.f32 0.0625, %v12485_v0  ;;  %v12576_v54 = vsel %vm397_vm3, %v12534_v28, 0.0  ;;  %v12533_v32 = vmul.f32 %v33443_v27, %v33443_v27 }
0x1033   :  { %12577 = vadd.xlane.f32.xlu0 %v12576_v54  ;;  %v12542_v35 = vpop.xlane.xlu0 %12541 }
0x1034   :  { %v33455_v24 = vsub.f32 %v33367_v47, %v12503_v18  ;;  %v12586_v53 = vmul.f32 0.0625, %v12542_v35  ;;  %v12573_v21 = vsel %vm397_vm3, %v12533_v32, 0.0  ;;  %v12536_v63 = vmul.f32 %v33449_v38, %v33449_v38  ;;  %v33467_v35 = vld [vmem:[%s36910_s8] ss:$0 sm:$0xff] }
0x1035   :  { %12574 = vadd.xlane.f32.xlu1 %v12573_v21  ;;  %v12539_v3 = vpop.xlane.xlu1 %12538 }
0x1036   :  { %v12602_v11 = vadd.f32 1e-05, %v12586_v53  ;;  %v12585_v58 = vmul.f32 0.0625, %v12539_v3  ;;  %v12582_v55 = vsel %vm397_vm3, %v12536_v63, 0.0  ;;  %v12535_v31 = vmul.f32 %v33455_v24, %v33455_v24 }
0x1037   :  { %12583 = vadd.xlane.f32.xlu0 %v12582_v55  ;;  %v12548_v7 = vpop.xlane.xlu0 %12547 }
0x1038   :  { %29993 = vrsqrt.f32 %v12602_v11  ;;  %v12601_v57 = vadd.f32 1e-05, %v12585_v58  ;;  %v12588_v51 = vmul.f32 0.0625, %v12548_v7  ;;  %v12579_v6 = vsel %vm397_vm3, %v12535_v31, 0.0  ;;  %v33475_v58 = vld [vmem:[%s36911_s9] ss:$0 sm:$0xff] }
0x1039   :  { %12580 = vadd.xlane.f32.xlu1 %v12579_v6  ;;  %v12545_v50 = vpop.xlane.xlu1 %12544 }
0x103a   :  { %29995 = vrsqrt.f32 %v12601_v57  ;;  %v12604_v62 = vadd.f32 1e-05, %v12588_v51  ;;  %v12587_v1 = vmul.f32 0.0625, %v12545_v50 }
0x103b   :  { %v12554_v2 = vpop.xlane.xlu0 %12553 }
0x103c   :  { %29997 = vrsqrt.f32 %v12604_v62  ;;  %v12603_v5 = vadd.f32 1e-05, %v12587_v1  ;;  %v12590_v36 = vmul.f32 0.0625, %v12554_v2 }
0x103d   :  { %v12551_v17 = vpop.xlane.xlu1 %12550 }
0x103e   :  { %29999 = vrsqrt.f32 %v12603_v5  ;;  %v12606_v49 = vadd.f32 1e-05, %v12590_v36  ;;  %v12589_v44 = vmul.f32 0.0625, %v12551_v17 }
0x103f   :  { %v12560_v20 = vpop.xlane.xlu0 %12559 }
0x1040   :  { %30001 = vrsqrt.f32 %v12606_v49  ;;  %v12605_v56 = vadd.f32 1e-05, %v12589_v44  ;;  %v12592_v29 = vmul.f32 0.0625, %v12560_v20 }
0x1041   :  { %v12557_v28 = vpop.xlane.xlu1 %12556 }
0x1042   :  { %30003 = vrsqrt.f32 %v12605_v56  ;;  %v12608_v0 = vadd.f32 1e-05, %v12592_v29  ;;  %v12591_v18 = vmul.f32 0.0625, %v12557_v28 }
0x1044   :  { %30005 = vrsqrt.f32 %v12608_v0  ;;  %v12607_v54 = vadd.f32 1e-05, %v12591_v18  ;;  %v12911_v0 = vld [vmem:[%s36912_s12 + $0x30] sm:$0xff]  ;;  %v12910_v18 = vld [vmem:[%s36912_s12 + $0x28] sm:$0xff] }
0x1045   :  { %v29994_v32 = vpop.eup %29993 }
0x1046   :  { %v12634_v53 = vmul.f32 %v29994_v32, %v33344_v46  ;;  %30007 = vrsqrt.f32 %v12607_v54  ;;  %v12909_v54 = vld [vmem:[%s36912_s12 + $0x20] sm:$0xff]  ;;  %v12908_v32 = vld [vmem:[%s36912_s12 + $0x18] sm:$0xff] }
0x1047   :  { %v29996_v21 = vpop.eup %29995 }
0x1048   :  { %v12633_v63 = vmul.f32 %v29996_v21, %v33353_v22  ;;  %v12654_v11 = vmul.f32 %v33467_v35, %v12634_v53  ;;  %v12907_v53 = vld [vmem:[%s36912_s12 + $0x10] sm:$0xff]  ;;  %v12906_v21 = vld [vmem:[%s36912_s12 + $0x8] sm:$0xff] }
0x1049   :  { %v29998_v3 = vpop.eup %29997 }
0x104a   :  { %v12653_v55 = vmul.f32 %v33467_v35, %v12633_v63  ;;  %v12636_v31 = vmul.f32 %v29998_v3, %v33364_v19  ;;  %v12674_v22 = vadd.f32 %v33475_v58, %v12654_v11  ;;  %v12905_v63 = vld [vmem:[%s36912_s12] sm:$0xff] }
0x104b   :  { %v30000_v7 = vpop.eup %29999 }
0x104c   :  { %v12673_v57 = vadd.f32 %v33475_v58, %v12653_v55  ;;  %v12635_v46 = vmul.f32 %v30000_v7, %v33372_v25  ;;  %v12656_v6 = vmul.f32 %v33467_v35, %v12636_v31 }
0x104d   :  { %v30002_v51 = vpop.eup %30001 }
0x104e   :  { %28756 = vmatprep.mubr.msk.f32.mxu1 %vm397_vm3, %v12673_v57  ;;  %v12655_v50 = vmul.f32 %v33467_v35, %v12635_v46  ;;  %v12638_v62 = vmul.f32 %v30002_v51, %v33379_v33  ;;  %v12676_v25 = vadd.f32 %v33475_v58, %v12656_v6 }
0x104f   :  { %v30004_v1 = vpop.eup %30003  ;;  %28757 = vmatmul.mubr.msk.f32.vlgmr.msra.gmra.mxu1 %vm397_vm3, %v12674_v22 }
0x1050   :  { %v12675_v19 = vadd.f32 %v33475_v58, %v12655_v50  ;;  %v12637_v2 = vmul.f32 %v30004_v1, %v33385_v61  ;;  %v12658_v36 = vmul.f32 %v33467_v35, %v12638_v62 }
0x1051   :  { %v30006_v5 = vpop.eup %30005 }
0x1052   :  { %28759 = vmatprep.mubr.msk.f32.mxu1 %vm397_vm3, %v12675_v19  ;;  %v12657_v17 = vmul.f32 %v33467_v35, %v12637_v2  ;;  %v12640_v49 = vmul.f32 %v30006_v5, %v33391_v34  ;;  %v12678_v61 = vadd.f32 %v33475_v58, %v12658_v36 }
0x1053   :  { %v30008_v44 = vpop.eup %30007  ;;  %28760 = vmatmul.mubr.msk.f32.gmra.mxu1 %vm397_vm3, %v12676_v25 }
0x1054   :  { %v12677_v33 = vadd.f32 %v33475_v58, %v12657_v17  ;;  %v12639_v20 = vmul.f32 %v30008_v44, %v33397_v26  ;;  %v12660_v56 = vmul.f32 %v33467_v35, %v12640_v49  ;;  %v12912_v26 = vld [vmem:[%s36912_s12 + $0x38] sm:$0xff] }
0x1055   :  { %28780 = vmatprep.subr.mxu0 %v12912_v26 }
0x1056   :  { %28762 = vmatprep.mubr.msk.f32.mxu1 %vm397_vm3, %v12677_v33  ;;  %v12659_v29 = vmul.f32 %v33467_v35, %v12639_v20  ;;  %v12680_v34 = vadd.f32 %v33475_v58, %v12660_v56  ;;  %28781 = vmatpush3.msra.mxu0 %v12912_v26 }
0x1057   :  { %28763 = vmatmul.mubr.msk.f32.gmra.mxu1 %vm397_vm3, %v12678_v61  ;;  %28782 = vmatprep.subr.mxu0 %v12911_v0 }
0x1058   :  { %v12679_v28 = vadd.f32 %v33475_v58, %v12659_v29  ;;  %28783 = vmatpush3.msra.mxu0 %v12911_v0 }
0x1059   :  { %28784 = vmatprep.subr.mxu0 %v12910_v18 }
0x105a   :  { %28765 = vmatprep.mubr.msk.f32.mxu1 %vm397_vm3, %v12679_v28  ;;  %28785 = vmatpush3.msra.mxu0 %v12910_v18 }
0x105b   :  { %28766 = vmatmul.mubr.msk.f32.gmra.mxu1 %vm397_vm3, %v12680_v34  ;;  %28786 = vmatprep.subr.mxu0 %v12909_v54 }
0x105c   :  { %28787 = vmatpush3.msra.mxu0 %v12909_v54 }
0x105d   :  { %28788 = vmatprep.subr.mxu0 %v12908_v32 }
0x105e   :  { %28789 = vmatpush3.msra.mxu0 %v12908_v32 }
0x105f   :  { %28790 = vmatprep.subr.mxu0 %v12907_v53 }
0x1060   :  { %28791 = vmatpush3.msra.mxu0 %v12907_v53 }
0x1061   :  { %28792 = vmatprep.subr.mxu0 %v12906_v21 }
0x1062   :  { %28793 = vmatpush3.msra.mxu0 %v12906_v21 }
0x1063   :  { %28794 = vmatprep.subr.mxu0 %v12905_v63 }
0x1064   :  { %28795 = vmatpush3.msra.mxu0 %v12905_v63 }
0x1065   :  { %28848 = vmatprep.subr.mxu0 %v37010_v60 }
0x10b4   :  { %v12566_v3 = vpop.xlane.xlu0 %12565 }
0x10b5   :  { %v12594_v11 = vmul.f32 0.0625, %v12566_v3 }
0x10b6   :  { %v12563_v55 = vpop.xlane.xlu1 %12562 }
0x10b7   :  { %v12610_v31 = vadd.f32 1e-05, %v12594_v11  ;;  %v12593_v7 = vmul.f32 0.0625, %v12563_v55 }
0x10b8   :  { %v12572_v57 = vpop.xlane.xlu0 %12571 }
0x10b9   :  { %30009 = vrsqrt.f32 %v12610_v31  ;;  %v12609_v46 = vadd.f32 1e-05, %v12593_v7  ;;  %v12596_v51 = vmul.f32 0.0625, %v12572_v57 }
0x10ba   :  { %v12569_v22 = vpop.xlane.xlu1 %12568 }
0x10bb   :  { %30011 = vrsqrt.f32 %v12609_v46  ;;  %v12612_v6 = vadd.f32 1e-05, %v12596_v51  ;;  %v12595_v50 = vmul.f32 0.0625, %v12569_v22 }
0x10bc   :  { %v12578_v62 = vpop.xlane.xlu0 %12577 }
0x10bd   :  { %30013 = vrsqrt.f32 %v12612_v6  ;;  %v12611_v1 = vadd.f32 1e-05, %v12595_v50  ;;  %v12598_v19 = vmul.f32 0.0625, %v12578_v62 }
0x10be   :  { %v12575_v2 = vpop.xlane.xlu1 %12574 }
0x10bf   :  { %30015 = vrsqrt.f32 %v12611_v1  ;;  %v12614_v5 = vadd.f32 1e-05, %v12598_v19  ;;  %v12597_v25 = vmul.f32 0.0625, %v12575_v2 }
0x10c0   :  { %v12584_v36 = vpop.xlane.xlu0 %12583 }
0x10c1   :  { %30017 = vrsqrt.f32 %v12614_v5  ;;  %v12613_v17 = vadd.f32 1e-05, %v12597_v25  ;;  %v12600_v49 = vmul.f32 0.0625, %v12584_v36 }
0x10c2   :  { %v12581_v44 = vpop.xlane.xlu1 %12580 }
0x10c3   :  { %30019 = vrsqrt.f32 %v12613_v17  ;;  %v12616_v33 = vadd.f32 1e-05, %v12600_v49  ;;  %v12599_v20 = vmul.f32 0.0625, %v12581_v44 }
0x10c5   :  { %30021 = vrsqrt.f32 %v12616_v33  ;;  %v12615_v61 = vadd.f32 1e-05, %v12599_v20 }
0x10c6   :  { %v30010_v56 = vpop.eup %30009 }
0x10c7   :  { %30023 = vrsqrt.f32 %v12615_v61  ;;  %v12642_v29 = vmul.f32 %v30010_v56, %v33417_v14 }
0x10c8   :  { %v30012_v28 = vpop.eup %30011 }
0x10c9   :  { %v12641_v34 = vmul.f32 %v30012_v28, %v33420_v52  ;;  %v12662_v0 = vmul.f32 %v33467_v35, %v12642_v29 }
0x10ca   :  { %v30014_v26 = vpop.eup %30013 }
0x10cb   :  { %v12661_v18 = vmul.f32 %v33467_v35, %v12641_v34  ;;  %v12644_v54 = vmul.f32 %v30014_v26, %v33425_v42  ;;  %v12682_v3 = vadd.f32 %v33475_v58, %v12662_v0 }
0x10cc   :  { %v30016_v32 = vpop.eup %30015 }
0x10cd   :  { %v12681_v53 = vadd.f32 %v33475_v58, %v12661_v18  ;;  %v12643_v21 = vmul.f32 %v30016_v32, %v33431_v4  ;;  %v12664_v14 = vmul.f32 %v33467_v35, %v12644_v54 }
0x10ce   :  { %v30018_v63 = vpop.eup %30017 }
0x10cf   :  { %28768 = vmatprep.mubr.msk.f32.mxu1 %vm397_vm3, %v12681_v53  ;;  %v12663_v52 = vmul.f32 %v33467_v35, %v12643_v21  ;;  %v12646_v11 = vmul.f32 %v30018_v63, %v33437_v23  ;;  %v12684_v4 = vadd.f32 %v33475_v58, %v12664_v14 }
0x10d0   :  { %v30020_v55 = vpop.eup %30019  ;;  %28769 = vmatmul.mubr.msk.f32.gmra.mxu1 %vm397_vm3, %v12682_v3 }
0x10d1   :  { %v12683_v42 = vadd.f32 %v33475_v58, %v12663_v52  ;;  %v12645_v31 = vmul.f32 %v30020_v55, %v33443_v27  ;;  %v12666_v57 = vmul.f32 %v33467_v35, %v12646_v11 }
0x10d2   :  { %v30022_v7 = vpop.eup %30021 }
0x10d3   :  { %28771 = vmatprep.mubr.msk.f32.mxu1 %vm397_vm3, %v12683_v42  ;;  %v12665_v46 = vmul.f32 %v33467_v35, %v12645_v31  ;;  %v12648_v51 = vmul.f32 %v30022_v7, %v33449_v38  ;;  %v12686_v27 = vadd.f32 %v33475_v58, %v12666_v57 }
0x10d4   :  { %v30024_v22 = vpop.eup %30023  ;;  %28772 = vmatmul.mubr.msk.f32.gmra.mxu1 %vm397_vm3, %v12684_v4 }
0x10d5   :  { %v12685_v23 = vadd.f32 %v33475_v58, %v12665_v46  ;;  %v12647_v6 = vmul.f32 %v30024_v22, %v33455_v24  ;;  %v12668_v50 = vmul.f32 %v33467_v35, %v12648_v51  ;;  %v26702_v24 = vld [vmem:[%s36913_s11] ss:$0 sm:$0xff] }
0x10d7   :  { %28774 = vmatprep.mubr.msk.f32.mxu1 %vm397_vm3, %v12685_v23  ;;  %v12667_v62 = vmul.f32 %v33467_v35, %v12647_v6  ;;  %v12688_v38 = vadd.f32 %v33475_v58, %v12668_v50 }
0x10d8   :  { %28775 = vmatmul.mubr.msk.f32.gmra.mxu1 %vm397_vm3, %v12686_v27 }
0x10d9   :  { %v12687_v1 = vadd.f32 %v33475_v58, %v12667_v62 }
0x10db   :  { %28777 = vmatprep.mubr.msk.f32.mxu1 %vm397_vm3, %v12687_v1 }
0x10dc   :  { %28778 = vmatmul.mubr.msk.f32.gmra.mxu1 %vm397_vm3, %v12688_v38 }
0x110f   :  { %v28758_v19 = vpop.f32.mrf.mxu1 }
0x1110   :  { %v12816_v2 = vadd.f32 %v28758_v19, %v26702_v24 }
0x1111   :  { %v12810_v5 = vpop.f32.mrf.mxu1 }
0x1112   :  { %v12811_v25 = vadd.f32 %v26702_v24, %v12810_v5  ;;  %v12890_v17 = vmax.f32 %v12816_v2, 0.0 }
0x1113   :  { %v28761_v36 = vpop.f32.mrf.mxu1 }
0x1114   :  { %v12889_v35 = vmax.f32 %v12811_v25, 0.0  ;;  %v12826_v49 = vadd.f32 %v28761_v36, %v26702_v24  ;;  %v33587_v25 = vld [vmem:[%s36914_s13] ss:$0 sm:$0xff] }
0x1115   :  { %v12820_v44 = vpop.f32.mrf.mxu1 }
0x1116   :  { %v12821_v33 = vadd.f32 %v26702_v24, %v12820_v44  ;;  %28796 = vmatprep.mubr.msk.f32.mxu0 %vm12918_vm8, %v12889_v35  ;;  %v12892_v61 = vmax.f32 %v12826_v49, 0.0 }
0x1117   :  { %v28764_v58 = vpop.f32.mrf.mxu1  ;;  %28797 = vmatmul.mubr.msk.f32.vlgmr.msra.gmra.mxu0 %vm12918_vm8, %v12890_v17 }
0x1118   :  { %v12891_v20 = vmax.f32 %v12821_v33, 0.0  ;;  %v12836_v56 = vadd.f32 %v28764_v58, %v26702_v24 }
0x1119   :  { %v12830_v29 = vpop.f32.mrf.mxu1 }
0x111a   :  { %v12831_v28 = vadd.f32 %v26702_v24, %v12830_v29  ;;  %28799 = vmatprep.mubr.msk.f32.mxu0 %vm12918_vm8, %v12891_v20  ;;  %v12894_v0 = vmax.f32 %v12836_v56, 0.0 }
0x111b   :  { %v28767_v34 = vpop.f32.mrf.mxu1  ;;  %28800 = vmatmul.mubr.msk.f32.gmra.mxu0 %vm12918_vm8, %v12892_v61 }
0x111c   :  { %v12893_v26 = vmax.f32 %v12831_v28, 0.0  ;;  %v12846_v18 = vadd.f32 %v28767_v34, %v26702_v24 }
0x111d   :  { %v12840_v54 = vpop.f32.mrf.mxu1 }
0x111e   :  { %v12841_v32 = vadd.f32 %v26702_v24, %v12840_v54  ;;  %28802 = vmatprep.mubr.msk.f32.mxu0 %vm12918_vm8, %v12893_v26  ;;  %v12896_v21 = vmax.f32 %v12846_v18, 0.0 }
0x111f   :  { %28803 = vmatmul.mubr.msk.f32.gmra.mxu0 %vm12918_vm8, %v12894_v0 }
0x1120   :  { %v12895_v53 = vmax.f32 %v12841_v32, 0.0 }
0x1122   :  { %28805 = vmatprep.mubr.msk.f32.mxu0 %vm12918_vm8, %v12895_v53 }
0x1123   :  { %28806 = vmatmul.mubr.msk.f32.gmra.mxu0 %vm12918_vm8, %v12896_v21 }
0x1190   :  { %v28770_v63 = vpop.f32.mrf.mxu1 }
0x1191   :  { %v12856_v3 = vadd.f32 %v28770_v63, %v26702_v24 }
0x1192   :  { %v12850_v14 = vpop.f32.mrf.mxu1 }
0x1193   :  { %v12851_v52 = vadd.f32 %v26702_v24, %v12850_v14  ;;  %v12898_v42 = vmax.f32 %v12856_v3, 0.0 }
0x1194   :  { %v28773_v11 = vpop.f32.mrf.mxu1 }
0x1195   :  { %v12897_v55 = vmax.f32 %v12851_v52, 0.0  ;;  %v12866_v31 = vadd.f32 %v28773_v11, %v26702_v24 }
0x1196   :  { %v12860_v7 = vpop.f32.mrf.mxu1 }
0x1197   :  { %v12861_v4 = vadd.f32 %v26702_v24, %v12860_v7  ;;  %28808 = vmatprep.mubr.msk.f32.mxu0 %vm12918_vm8, %v12897_v55  ;;  %v12900_v51 = vmax.f32 %v12866_v31, 0.0 }
0x1198   :  { %v28776_v57 = vpop.f32.mrf.mxu1  ;;  %28809 = vmatmul.mubr.msk.f32.gmra.mxu0 %vm12918_vm8, %v12898_v42 }
0x1199   :  { %v12899_v46 = vmax.f32 %v12861_v4, 0.0  ;;  %v12876_v22 = vadd.f32 %v28776_v57, %v26702_v24 }
0x119a   :  { %v12870_v23 = vpop.f32.mrf.mxu1 }
0x119b   :  { %v12871_v6 = vadd.f32 %v26702_v24, %v12870_v23  ;;  %28811 = vmatprep.mubr.msk.f32.mxu0 %vm12918_vm8, %v12899_v46  ;;  %v12902_v62 = vmax.f32 %v12876_v22, 0.0 }
0x119c   :  { %v28779_v27 = vpop.f32.mrf.mxu1  ;;  %28812 = vmatmul.mubr.msk.f32.gmra.mxu0 %vm12918_vm8, %v12900_v51 }
0x119d   :  { %v12901_v50 = vmax.f32 %v12871_v6, 0.0  ;;  %v12886_v1 = vadd.f32 %v28779_v27, %v26702_v24 }
0x119e   :  { %v12880_v38 = vpop.f32.mrf.mxu1 }
0x119f   :  { %v12881_v19 = vadd.f32 %v26702_v24, %v12880_v38  ;;  %28814 = vmatprep.mubr.msk.f32.mxu0 %vm12918_vm8, %v12901_v50  ;;  %v12904_v5 = vmax.f32 %v12886_v1, 0.0 }
0x11a0   :  { %28815 = vmatmul.mubr.msk.f32.gmra.mxu0 %vm12918_vm8, %v12902_v62 }
0x11a1   :  { %v12903_v2 = vmax.f32 %v12881_v19, 0.0 }
0x11a3   :  { %28817 = vmatprep.mubr.msk.f32.mxu0 %vm12918_vm8, %v12903_v2 }
0x11a4   :  { %28818 = vmatmul.mubr.msk.f32.gmra.mxu0 %vm12918_vm8, %v12904_v5 }
0x11a5   :  { %28850 = vmatprep.mubr.msk.f32.mxu0 %vm30381_vm1, %v37010_v60 }
0x11d7   :  { %v28798_v36 = vpop.f32.mrf.mxu0 }
0x11d8   :  { %v13039_v24 = vadd.f32 %v28798_v36, %v33587_v25 }
0x11d9   :  { %v13033_v35 = vpop.f32.mrf.mxu0 }
0x11da   :  { %v33591_v17 = vadd.f32 %v13039_v24, %v33243_v45  ;;  %v13034_v49 = vadd.f32 %v33587_v25, %v13033_v35 }
0x11db   :  { %v28801_v44 = vpop.f32.mrf.mxu0 }
0x11dc   :  { %37061 = vst [vmem:[#allocation25_spill] sm:$0xff] %v33591_v17  ;;  %v33595_v33 = vadd.f32 %v13034_v49, %v33250_v48  ;;  %v13049_v58 = vadd.f32 %v28801_v44, %v33587_v25  ;;  %v13133_v20 = vsel %vm397_vm3, %v33591_v17, 0.0 }
0x11dd   :  { %13134 = vadd.xlane.f32.xlu0 %v13133_v20  ;;  %v13043_v61 = vpop.f32.mrf.mxu0 }
0x11de   :  { %37062 = vst [vmem:[#allocation20_spill] sm:$0xff] %v33595_v33  ;;  %v33601_v56 = vadd.f32 %v13049_v58, %v33267_v13  ;;  %v13044_v29 = vadd.f32 %v33587_v25, %v13043_v61  ;;  %v13130_v45 = vsel %vm397_vm3, %v33595_v33, 0.0 }
0x11df   :  { %13131 = vadd.xlane.f32.xlu1 %v13130_v45  ;;  %v28804_v28 = vpop.f32.mrf.mxu0 }
0x11e0   :  { %37063 = vst [vmem:[#allocation2_spill] sm:$0xff] %v33601_v56  ;;  %v33607_v48 = vadd.f32 %v13044_v29, %v33263_v12  ;;  %v13059_v34 = vadd.f32 %v28804_v28, %v33587_v25  ;;  %v13139_v26 = vsel %vm397_vm3, %v33601_v56, 0.0 }
0x11e1   :  { %13140 = vadd.xlane.f32.xlu0 %v13139_v26  ;;  %v13053_v0 = vpop.f32.mrf.mxu0 }
0x11e2   :  { %37064 = vst [vmem:[#allocation3_spill] sm:$0xff] %v33607_v48  ;;  %v33613_v13 = vadd.f32 %v13059_v34, %v33280_v9  ;;  %v13054_v18 = vadd.f32 %v33587_v25, %v13053_v0  ;;  %v13136_v54 = vsel %vm397_vm3, %v33607_v48, 0.0 }
0x11e3   :  { %13137 = vadd.xlane.f32.xlu1 %v13136_v54  ;;  %v28807_v32 = vpop.f32.mrf.mxu0 }
0x11e4   :  { %37065 = vst [vmem:[#allocation26_spill] sm:$0xff] %v33613_v13  ;;  %v33619_v12 = vadd.f32 %v13054_v18, %v33275_v40  ;;  %v13069_v53 = vadd.f32 %v28807_v32, %v33587_v25  ;;  %v13145_v21 = vsel %vm397_vm3, %v33613_v13, 0.0 }
0x11e5   :  { %13146 = vadd.xlane.f32.xlu0 %v13145_v21  ;;  %v13063_v63 = vpop.f32.mrf.mxu0 }
0x11e6   :  { %37066 = vst [vmem:[#allocation18_spill] sm:$0xff] %v33619_v12  ;;  %v33625_v9 = vadd.f32 %v13069_v53, %v33290_v30  ;;  %v13064_v3 = vadd.f32 %v33587_v25, %v13063_v63  ;;  %v13142_v14 = vsel %vm397_vm3, %v33619_v12, 0.0 }
0x11e7   :  { %13143 = vadd.xlane.f32.xlu1 %v13142_v14 }
0x11e8   :  { %37067 = vst [vmem:[#allocation5_spill] sm:$0xff] %v33625_v9  ;;  %v33631_v52 = vadd.f32 %v13064_v3, %v33287_v15  ;;  %v13151_v40 = vsel %vm397_vm3, %v33625_v9, 0.0 }
0x11e9   :  { %13152 = vadd.xlane.f32.xlu0 %v13151_v40 }
0x11ea   :  { %37068 = vst [vmem:[#allocation4_spill] sm:$0xff] %v33631_v52  ;;  %v13148_v11 = vsel %vm397_vm3, %v33631_v52, 0.0 }
0x11eb   :  { %13149 = vadd.xlane.f32.xlu1 %v13148_v11 }
0x1258   :  { %v28810_v55 = vpop.f32.mrf.mxu0 }
0x1259   :  { %v13079_v30 = vadd.f32 %v28810_v55, %v33587_v25 }
0x125a   :  { %v13073_v42 = vpop.f32.mrf.mxu0 }
0x125b   :  { %v33639_v31 = vadd.f32 %v13079_v30, %v33307_v16  ;;  %v13074_v7 = vadd.f32 %v33587_v25, %v13073_v42 }
0x125c   :  { %v28813_v4 = vpop.f32.mrf.mxu0 }
0x125d   :  { %37069 = vst [vmem:[#allocation27_spill] sm:$0xff] %v33639_v31  ;;  %v33643_v15 = vadd.f32 %v13074_v7, %v33314_v39  ;;  %v13089_v57 = vadd.f32 %v28813_v4, %v33587_v25  ;;  %v13157_v46 = vsel %vm397_vm3, %v33639_v31, 0.0 }
0x125e   :  { %13158 = vadd.xlane.f32.xlu0 %v13157_v46  ;;  %v13083_v51 = vpop.f32.mrf.mxu0 }
0x125f   :  { %37070 = vst [vmem:[#allocation19_spill] sm:$0xff] %v33643_v15  ;;  %v33649_v22 = vadd.f32 %v13089_v57, %v33321_v59  ;;  %v13084_v23 = vadd.f32 %v33587_v25, %v13083_v51  ;;  %v13154_v16 = vsel %vm397_vm3, %v33643_v15, 0.0 }
0x1260   :  { %13155 = vadd.xlane.f32.xlu1 %v13154_v16  ;;  %v28816_v6 = vpop.f32.mrf.mxu0 }
0x1261   :  { %37071 = vst [vmem:[#allocation7_spill] sm:$0xff] %v33649_v22  ;;  %v33655_v39 = vadd.f32 %v13084_v23, %v33330_v8  ;;  %v13099_v27 = vadd.f32 %v28816_v6, %v33587_v25  ;;  %v13163_v50 = vsel %vm397_vm3, %v33649_v22, 0.0 }
0x1262   :  { %13164 = vadd.xlane.f32.xlu0 %v13163_v50  ;;  %v13093_v62 = vpop.f32.mrf.mxu0 }
0x1263   :  { %37072 = vst [vmem:[#allocation6_spill] sm:$0xff] %v33655_v39  ;;  %v33661_v59 = vadd.f32 %v13099_v27, %v33337_v41  ;;  %v13094_v1 = vadd.f32 %v33587_v25, %v13093_v62  ;;  %v13160_v38 = vsel %vm397_vm3, %v33655_v39, 0.0 }
0x1264   :  { %13161 = vadd.xlane.f32.xlu1 %v13160_v38  ;;  %v28819_v19 = vpop.f32.mrf.mxu0 }
0x1265   :  { %37073 = vst [vmem:[#allocation9_spill] sm:$0xff] %v33661_v59  ;;  %v33667_v8 = vadd.f32 %v13094_v1, %v33347_v43  ;;  %v13109_v2 = vadd.f32 %v28819_v19, %v33587_v25  ;;  %v13169_v5 = vsel %vm397_vm3, %v33661_v59, 0.0 }
0x1266   :  { %v13135_v36 = vpop.xlane.xlu0 %13134  ;;  %13170 = vadd.xlane.f32.xlu0 %v13169_v5  ;;  %v13103_v24 = vpop.f32.mrf.mxu0  ;;  %v26739_v5 = vld [vmem:[%s37003_s0 + $0x18] sm:$0xff] }
0x1267   :  { %37074 = vst [vmem:[#allocation8_spill] sm:$0xff] %v33667_v8  ;;  %v33673_v41 = vadd.f32 %v13109_v2, %v33356_v37  ;;  %v13179_v35 = vmul.f32 0.0625, %v13135_v36  ;;  %v13104_v49 = vadd.f32 %v33587_v25, %v13103_v24  ;;  %v13166_v44 = vsel %vm397_vm3, %v33667_v8, 0.0  ;;  %v26738_v36 = vld [vmem:[%s37003_s0 + $0x10] sm:$0xff]  ;;  %28820 = vmatprep.subr.mxu1 %v26739_v5 }
0x1268   :  { %13167 = vadd.xlane.f32.xlu1 %v13166_v44  ;;  %v13132_v43 = vpop.xlane.xlu1 %13131  ;;  %28821 = vmatpush3.msra.mxu1 %v26739_v5 }
0x1269   :  { %37075 = vst [vmem:[#allocation28_spill] sm:$0xff] %v33673_v41  ;;  %v33679_v58 = vsub.f32 %v33591_v17, %v13179_v35  ;;  %v33682_v20 = vadd.f32 %v13104_v49, %v33367_v47  ;;  %v13178_v61 = vmul.f32 0.0625, %v13132_v43  ;;  %v13175_v29 = vsel %vm397_vm3, %v33673_v41, 0.0  ;;  %28822 = vmatprep.subr.mxu1 %v26738_v36 }
0x126a   :  { %v13141_v37 = vpop.xlane.xlu0 %13140  ;;  %13176 = vadd.xlane.f32.xlu0 %v13175_v29  ;;  %28823 = vmatpush3.msra.mxu1 %v26738_v36 }
0x126b   :  { %37076 = vst [vmem:[#allocation22_spill] sm:$0xff] %v33682_v20  ;;  %v33687_v45 = vsub.f32 %v33595_v33, %v13178_v61  ;;  %v13181_v25 = vmul.f32 0.0625, %v13141_v37  ;;  %v13172_v28 = vsel %vm397_vm3, %v33682_v20, 0.0  ;;  %v13211_v34 = vmul.f32 %v33679_v58, %v33679_v58  ;;  %28853 = vmatprep.subr.mxu1 %v37010_v60 }
0x126c   :  { %13173 = vadd.xlane.f32.xlu1 %v13172_v28  ;;  %v13138_v26 = vpop.xlane.xlu1 %13137 }
0x126d   :  { %v33694_v47 = vsub.f32 %v33601_v56, %v13181_v25  ;;  %v13180_v0 = vmul.f32 0.0625, %v13138_v26  ;;  %v13229_v18 = vsel %vm397_vm3, %v13211_v34, 0.0  ;;  %v13210_v54 = vmul.f32 %v33687_v45, %v33687_v45 }
0x126e   :  { %v13147_v32 = vpop.xlane.xlu0 %13146  ;;  %13230 = vadd.xlane.f32.xlu0 %v13229_v18 }
0x126f   :  { %v33700_v53 = vsub.f32 %v33607_v48, %v13180_v0  ;;  %v13183_v21 = vmul.f32 0.0625, %v13147_v32  ;;  %v13226_v63 = vsel %vm397_vm3, %v13210_v54, 0.0  ;;  %v13213_v3 = vmul.f32 %v33694_v47, %v33694_v47 }
0x1270   :  { %13227 = vadd.xlane.f32.xlu1 %v13226_v63  ;;  %v13144_v14 = vpop.xlane.xlu1 %13143 }
0x1271   :  { %v33706_v40 = vsub.f32 %v33613_v13, %v13183_v21  ;;  %v13182_v11 = vmul.f32 0.0625, %v13144_v14  ;;  %v13235_v55 = vsel %vm397_vm3, %v13213_v3, 0.0  ;;  %v13212_v30 = vmul.f32 %v33700_v53, %v33700_v53 }
0x1272   :  { %v13153_v42 = vpop.xlane.xlu0 %13152  ;;  %13236 = vadd.xlane.f32.xlu0 %v13235_v55 }
0x1273   :  { %v33712_v7 = vsub.f32 %v33619_v12, %v13182_v11  ;;  %v13185_v4 = vmul.f32 0.0625, %v13153_v42  ;;  %v13232_v57 = vsel %vm397_vm3, %v13212_v30, 0.0  ;;  %v13215_v46 = vmul.f32 %v33706_v40, %v33706_v40 }
0x1274   :  { %13233 = vadd.xlane.f32.xlu1 %v13232_v57  ;;  %v13150_v51 = vpop.xlane.xlu1 %13149 }
0x1275   :  { %v33718_v23 = vsub.f32 %v33625_v9, %v13185_v4  ;;  %v13184_v16 = vmul.f32 0.0625, %v13150_v51  ;;  %v13241_v6 = vsel %vm397_vm3, %v13215_v46, 0.0  ;;  %v13214_v27 = vmul.f32 %v33712_v7, %v33712_v7 }
0x1276   :  { %13242 = vadd.xlane.f32.xlu0 %v13241_v6 }
0x1277   :  { %v33724_v50 = vsub.f32 %v33631_v52, %v13184_v16  ;;  %v13238_v62 = vsel %vm397_vm3, %v13214_v27, 0.0  ;;  %v13217_v1 = vmul.f32 %v33718_v23, %v33718_v23 }
0x1278   :  { %13239 = vadd.xlane.f32.xlu1 %v13238_v62 }
0x1279   :  { %v13247_v38 = vsel %vm397_vm3, %v13217_v1, 0.0  ;;  %v13216_v19 = vmul.f32 %v33724_v50, %v33724_v50 }
0x127a   :  { %13248 = vadd.xlane.f32.xlu0 %v13247_v38 }
0x127b   :  { %v13244_v2 = vsel %vm397_vm3, %v13216_v19, 0.0 }
0x127c   :  { %13245 = vadd.xlane.f32.xlu1 %v13244_v2 }
0x12e7   :  { %v13159_v24 = vpop.xlane.xlu0 %13158 }
0x12e8   :  { %v13187_v35 = vmul.f32 0.0625, %v13159_v24 }
0x12e9   :  { %v13156_v49 = vpop.xlane.xlu1 %13155 }
0x12ea   :  { %v33741_v44 = vsub.f32 %v33639_v31, %v13187_v35  ;;  %v13186_v43 = vmul.f32 0.0625, %v13156_v49 }
0x12eb   :  { %v13165_v61 = vpop.xlane.xlu0 %13164 }
0x12ec   :  { %v33744_v29 = vsub.f32 %v33643_v15, %v13186_v43  ;;  %v13189_v37 = vmul.f32 0.0625, %v13165_v61  ;;  %v13219_v25 = vmul.f32 %v33741_v44, %v33741_v44 }
0x12ed   :  { %v13162_v28 = vpop.xlane.xlu1 %13161 }
0x12ee   :  { %v33749_v34 = vsub.f32 %v33649_v22, %v13189_v37  ;;  %v13188_v26 = vmul.f32 0.0625, %v13162_v28  ;;  %v13253_v0 = vsel %vm397_vm3, %v13219_v25, 0.0  ;;  %v13218_v18 = vmul.f32 %v33744_v29, %v33744_v29 }
0x12ef   :  { %v13171_v54 = vpop.xlane.xlu0 %13170  ;;  %13254 = vadd.xlane.f32.xlu0 %v13253_v0 }
0x12f0   :  { %v33755_v32 = vsub.f32 %v33655_v39, %v13188_v26  ;;  %v13191_v21 = vmul.f32 0.0625, %v13171_v54  ;;  %v13250_v63 = vsel %vm397_vm3, %v13218_v18, 0.0  ;;  %v13221_v3 = vmul.f32 %v33749_v34, %v33749_v34 }
0x12f1   :  { %13251 = vadd.xlane.f32.xlu1 %v13250_v63  ;;  %v13168_v14 = vpop.xlane.xlu1 %13167 }
0x12f2   :  { %v33761_v11 = vsub.f32 %v33661_v59, %v13191_v21  ;;  %v13190_v55 = vmul.f32 0.0625, %v13168_v14  ;;  %v13259_v30 = vsel %vm397_vm3, %v13221_v3, 0.0  ;;  %v13220_v42 = vmul.f32 %v33755_v32, %v33755_v32 }
0x12f3   :  { %13260 = vadd.xlane.f32.xlu0 %v13259_v30  ;;  %v13177_v4 = vpop.xlane.xlu0 %13176 }
0x12f4   :  { %v33767_v57 = vsub.f32 %v33667_v8, %v13190_v55  ;;  %v13193_v46 = vmul.f32 0.0625, %v13177_v4  ;;  %v13256_v51 = vsel %vm397_vm3, %v13220_v42, 0.0  ;;  %v13223_v16 = vmul.f32 %v33761_v11, %v33761_v11 }
0x12f5   :  { %13257 = vadd.xlane.f32.xlu1 %v13256_v51  ;;  %v13174_v6 = vpop.xlane.xlu1 %13173 }
0x12f6   :  { %v33773_v27 = vsub.f32 %v33673_v41, %v13193_v46  ;;  %v13192_v62 = vmul.f32 0.0625, %v13174_v6  ;;  %v13265_v1 = vsel %vm397_vm3, %v13223_v16, 0.0  ;;  %v13222_v38 = vmul.f32 %v33767_v57, %v33767_v57 }
0x12f7   :  { %13266 = vadd.xlane.f32.xlu0 %v13265_v1  ;;  %v13231_v19 = vpop.xlane.xlu0 %13230 }
0x12f8   :  { %v33779_v2 = vsub.f32 %v33682_v20, %v13192_v62  ;;  %v13275_v5 = vmul.f32 0.0625, %v13231_v19  ;;  %v13262_v36 = vsel %vm397_vm3, %v13222_v38, 0.0  ;;  %v13225_v24 = vmul.f32 %v33773_v27, %v33773_v27  ;;  %v33791_v19 = vld [vmem:[%s36904_s3 + $0x1] ss:$0 sm:$0xff] }
0x12f9   :  { %13263 = vadd.xlane.f32.xlu1 %v13262_v36  ;;  %v13228_v35 = vpop.xlane.xlu1 %13227 }
0x12fa   :  { %v13291_v49 = vadd.f32 1e-05, %v13275_v5  ;;  %v13274_v43 = vmul.f32 0.0625, %v13228_v35  ;;  %v13271_v61 = vsel %vm397_vm3, %v13225_v24, 0.0  ;;  %v13224_v37 = vmul.f32 %v33779_v2, %v33779_v2 }
0x12fb   :  { %13272 = vadd.xlane.f32.xlu0 %v13271_v61  ;;  %v13237_v25 = vpop.xlane.xlu0 %13236 }
0x12fc   :  { %30025 = vrsqrt.f32 %v13291_v49  ;;  %v13290_v28 = vadd.f32 1e-05, %v13274_v43  ;;  %v13277_v26 = vmul.f32 0.0625, %v13237_v25  ;;  %v13268_v0 = vsel %vm397_vm3, %v13224_v37, 0.0  ;;  %v33799_v43 = vld [vmem:[%s36905_s4 + $0x1] ss:$0 sm:$0xff] }
0x12fd   :  { %13269 = vadd.xlane.f32.xlu1 %v13268_v0  ;;  %v13234_v18 = vpop.xlane.xlu1 %13233 }
0x12fe   :  { %30027 = vrsqrt.f32 %v13290_v28  ;;  %v13293_v54 = vadd.f32 1e-05, %v13277_v26  ;;  %v13276_v21 = vmul.f32 0.0625, %v13234_v18 }
0x12ff   :  { %v13243_v63 = vpop.xlane.xlu0 %13242 }
0x1300   :  { %30029 = vrsqrt.f32 %v13293_v54  ;;  %v13292_v3 = vadd.f32 1e-05, %v13276_v21  ;;  %v13279_v14 = vmul.f32 0.0625, %v13243_v63 }
0x1301   :  { %v13240_v55 = vpop.xlane.xlu1 %13239 }
0x1302   :  { %30031 = vrsqrt.f32 %v13292_v3  ;;  %v13295_v30 = vadd.f32 1e-05, %v13279_v14  ;;  %v13278_v42 = vmul.f32 0.0625, %v13240_v55 }
0x1303   :  { %v13249_v4 = vpop.xlane.xlu0 %13248 }
0x1304   :  { %30033 = vrsqrt.f32 %v13295_v30  ;;  %v13294_v46 = vadd.f32 1e-05, %v13278_v42  ;;  %v13281_v51 = vmul.f32 0.0625, %v13249_v4 }
0x1305   :  { %v13246_v16 = vpop.xlane.xlu1 %13245 }
0x1306   :  { %30035 = vrsqrt.f32 %v13294_v46  ;;  %v13297_v6 = vadd.f32 1e-05, %v13281_v51  ;;  %v13280_v62 = vmul.f32 0.0625, %v13246_v16 }
0x1308   :  { %30037 = vrsqrt.f32 %v13297_v6  ;;  %v13296_v1 = vadd.f32 1e-05, %v13280_v62 }
0x1309   :  { %v30026_v38 = vpop.eup %30025 }
0x130a   :  { %v13323_v5 = vmul.f32 %v30026_v38, %v33679_v58  ;;  %30039 = vrsqrt.f32 %v13296_v1 }
0x130b   :  { %v30028_v36 = vpop.eup %30027 }
0x130c   :  { %v13322_v24 = vmul.f32 %v30028_v36, %v33687_v45  ;;  %v13343_v49 = vmul.f32 %v33791_v19, %v13323_v5 }
0x130d   :  { %v30030_v35 = vpop.eup %30029 }
0x130e   :  { %v13342_v61 = vmul.f32 %v33791_v19, %v13322_v24  ;;  %v13325_v37 = vmul.f32 %v30030_v35, %v33694_v47  ;;  %v13363_v45 = vadd.f32 %v33799_v43, %v13343_v49 }
0x130f   :  { %v30032_v25 = vpop.eup %30031 }
0x1310   :  { %v13362_v28 = vadd.f32 %v33799_v43, %v13342_v61  ;;  %v13324_v58 = vmul.f32 %v30032_v25, %v33700_v53  ;;  %v13345_v0 = vmul.f32 %v33791_v19, %v13325_v37 }
0x1311   :  { %v30034_v26 = vpop.eup %30033 }
0x1312   :  { %28824 = vmatprep.mubr.msk.f32.mxu1 %vm397_vm3, %v13362_v28  ;;  %v13344_v18 = vmul.f32 %v33791_v19, %v13324_v58  ;;  %v13327_v54 = vmul.f32 %v30034_v26, %v33706_v40  ;;  %v13365_v53 = vadd.f32 %v33799_v43, %v13345_v0 }
0x1313   :  { %v30036_v21 = vpop.eup %30035  ;;  %28825 = vmatmul.mubr.msk.f32.vlgmr.msra.gmra.mxu1 %vm397_vm3, %v13363_v45 }
0x1314   :  { %v13364_v47 = vadd.f32 %v33799_v43, %v13344_v18  ;;  %v13326_v63 = vmul.f32 %v30036_v21, %v33712_v7  ;;  %v13347_v14 = vmul.f32 %v33791_v19, %v13327_v54 }
0x1315   :  { %v30038_v3 = vpop.eup %30037 }
0x1316   :  { %28827 = vmatprep.mubr.msk.f32.mxu1 %vm397_vm3, %v13364_v47  ;;  %v13346_v55 = vmul.f32 %v33791_v19, %v13326_v63  ;;  %v13329_v30 = vmul.f32 %v30038_v3, %v33718_v23  ;;  %v13367_v7 = vadd.f32 %v33799_v43, %v13347_v14 }
0x1317   :  { %v30040_v42 = vpop.eup %30039  ;;  %28828 = vmatmul.mubr.msk.f32.gmra.mxu1 %vm397_vm3, %v13365_v53 }
0x1318   :  { %v13366_v40 = vadd.f32 %v33799_v43, %v13346_v55  ;;  %v13328_v4 = vmul.f32 %v30040_v42, %v33724_v50  ;;  %v13349_v46 = vmul.f32 %v33791_v19, %v13329_v30 }
0x131a   :  { %28830 = vmatprep.mubr.msk.f32.mxu1 %vm397_vm3, %v13366_v40  ;;  %v13348_v51 = vmul.f32 %v33791_v19, %v13328_v4  ;;  %v13369_v23 = vadd.f32 %v33799_v43, %v13349_v46 }
0x131b   :  { %28831 = vmatmul.mubr.msk.f32.gmra.mxu1 %vm397_vm3, %v13367_v7 }
0x131c   :  { %v13368_v16 = vadd.f32 %v33799_v43, %v13348_v51 }
0x131e   :  { %28833 = vmatprep.mubr.msk.f32.mxu1 %vm397_vm3, %v13368_v16 }
0x131f   :  { %28834 = vmatmul.mubr.msk.f32.gmra.mxu1 %vm397_vm3, %v13369_v23 }
0x1378   :  { %v13255_v6 = vpop.xlane.xlu0 %13254 }
0x1379   :  { %v13283_v50 = vmul.f32 0.0625, %v13255_v6 }
0x137a   :  { %v13252_v62 = vpop.xlane.xlu1 %13251 }
0x137b   :  { %v13299_v1 = vadd.f32 1e-05, %v13283_v50  ;;  %v13282_v38 = vmul.f32 0.0625, %v13252_v62 }
0x137c   :  { %v13261_v5 = vpop.xlane.xlu0 %13260 }
0x137d   :  { %30041 = vrsqrt.f32 %v13299_v1  ;;  %v13298_v36 = vadd.f32 1e-05, %v13282_v38  ;;  %v13285_v24 = vmul.f32 0.0625, %v13261_v5 }
0x137e   :  { %v13258_v35 = vpop.xlane.xlu1 %13257 }
0x137f   :  { %30043 = vrsqrt.f32 %v13298_v36  ;;  %v13301_v49 = vadd.f32 1e-05, %v13285_v24  ;;  %v13284_v61 = vmul.f32 0.0625, %v13258_v35 }
0x1380   :  { %v13267_v37 = vpop.xlane.xlu0 %13266 }
0x1381   :  { %30045 = vrsqrt.f32 %v13301_v49  ;;  %v13300_v25 = vadd.f32 1e-05, %v13284_v61  ;;  %v13287_v28 = vmul.f32 0.0625, %v13267_v37 }
0x1382   :  { %v13264_v58 = vpop.xlane.xlu1 %13263 }
0x1383   :  { %30047 = vrsqrt.f32 %v13300_v25  ;;  %v13303_v26 = vadd.f32 1e-05, %v13287_v28  ;;  %v13286_v45 = vmul.f32 0.0625, %v13264_v58 }
0x1384   :  { %v13273_v0 = vpop.xlane.xlu0 %13272 }
0x1385   :  { %30049 = vrsqrt.f32 %v13303_v26  ;;  %v13302_v18 = vadd.f32 1e-05, %v13286_v45  ;;  %v13289_v54 = vmul.f32 0.0625, %v13273_v0 }
0x1386   :  { %v13270_v21 = vpop.xlane.xlu1 %13269 }
0x1387   :  { %30051 = vrsqrt.f32 %v13302_v18  ;;  %v13305_v47 = vadd.f32 1e-05, %v13289_v54  ;;  %v13288_v63 = vmul.f32 0.0625, %v13270_v21 }
0x1389   :  { %30053 = vrsqrt.f32 %v13305_v47  ;;  %v13304_v3 = vadd.f32 1e-05, %v13288_v63 }
0x138a   :  { %v30042_v53 = vpop.eup %30041 }
0x138b   :  { %30055 = vrsqrt.f32 %v13304_v3  ;;  %v13331_v14 = vmul.f32 %v30042_v53, %v33741_v44 }
0x138c   :  { %v30044_v55 = vpop.eup %30043 }
0x138d   :  { %v13330_v30 = vmul.f32 %v30044_v55, %v33744_v29  ;;  %v13351_v40 = vmul.f32 %v33791_v19, %v13331_v14 }
0x138e   :  { %v30046_v42 = vpop.eup %30045 }
0x138f   :  { %v13350_v4 = vmul.f32 %v33791_v19, %v13330_v30  ;;  %v13333_v7 = vmul.f32 %v30046_v42, %v33749_v34  ;;  %v13371_v6 = vadd.f32 %v33799_v43, %v13351_v40 }
0x1390   :  { %v30048_v46 = vpop.eup %30047 }
0x1391   :  { %v13370_v51 = vadd.f32 %v33799_v43, %v13350_v4  ;;  %v13332_v16 = vmul.f32 %v30048_v46, %v33755_v32  ;;  %v13353_v44 = vmul.f32 %v33791_v19, %v13333_v7 }
0x1392   :  { %v30050_v23 = vpop.eup %30049 }
0x1393   :  { %28836 = vmatprep.mubr.msk.f32.mxu1 %vm397_vm3, %v13370_v51  ;;  %v13352_v29 = vmul.f32 %v33791_v19, %v13332_v16  ;;  %v13335_v50 = vmul.f32 %v30050_v23, %v33761_v11  ;;  %v13373_v32 = vadd.f32 %v33799_v43, %v13353_v44 }
0x1394   :  { %v30052_v62 = vpop.eup %30051  ;;  %28837 = vmatmul.mubr.msk.f32.gmra.mxu1 %vm397_vm3, %v13371_v6 }
0x1395   :  { %v13372_v34 = vadd.f32 %v33799_v43, %v13352_v29  ;;  %v13334_v1 = vmul.f32 %v30052_v62, %v33767_v57  ;;  %v13355_v5 = vmul.f32 %v33791_v19, %v13335_v50 }
0x1396   :  { %v30054_v38 = vpop.eup %30053 }
0x1397   :  { %28839 = vmatprep.mubr.msk.f32.mxu1 %vm397_vm3, %v13372_v34  ;;  %v13354_v36 = vmul.f32 %v33791_v19, %v13334_v1  ;;  %v13337_v24 = vmul.f32 %v30054_v38, %v33773_v27  ;;  %v13375_v57 = vadd.f32 %v33799_v43, %v13355_v5 }
0x1398   :  { %v30056_v35 = vpop.eup %30055  ;;  %28840 = vmatmul.mubr.msk.f32.gmra.mxu1 %vm397_vm3, %v13373_v32 }
0x1399   :  { %v13374_v11 = vadd.f32 %v33799_v43, %v13354_v36  ;;  %v13336_v49 = vmul.f32 %v30056_v35, %v33779_v2  ;;  %v13357_v61 = vmul.f32 %v33791_v19, %v13337_v24 }
0x139b   :  { %28842 = vmatprep.mubr.msk.f32.mxu1 %vm397_vm3, %v13374_v11  ;;  %v13356_v37 = vmul.f32 %v33791_v19, %v13336_v49  ;;  %v13377_v27 = vadd.f32 %v33799_v43, %v13357_v61 }
0x139c   :  { %28843 = vmatmul.mubr.msk.f32.gmra.mxu1 %vm397_vm3, %v13375_v57 }
0x139d   :  { %v13376_v25 = vadd.f32 %v33799_v43, %v13356_v37 }
0x139f   :  { %28845 = vmatprep.mubr.msk.f32.mxu1 %vm397_vm3, %v13376_v25 }
0x13a0   :  { %28846 = vmatmul.mubr.msk.f32.gmra.mxu1 %vm397_vm3, %v13377_v27 }
0x13a1   :  { %28855 = vmatprep.mubr.msk.f32.mxu1 %vm30381_vm1, %v37010_v60 }
0x13d3   :  { %v33864_v2 = vpop.f32.mrf.mxu1 }
0x13d4   :  { %13655 = vrot.lane.b32.xlu0 %v33864_v2, %s30382_s24 }
0x13d5   :  { %v33868_v28 = vpop.f32.mrf.mxu1 }
0x13d6   :  { %13578 = vrot.lane.b32.xlu1 %v33868_v28, %s30382_s24 }
0x13d7   :  { %v33872_v19 = vpop.f32.mrf.mxu1 }
0x13d9   :  { %v33874_v43 = vpop.f32.mrf.mxu1 }
0x13da   :  { %13732 = vrot.lane.b32.xlu1 %v33874_v43, %s30382_s24 }
0x13db   :  { %v33878_v58 = vpop.f32.mrf.mxu1 }
0x13dd   :  { %v33880_v26 = vpop.f32.mrf.mxu1 }
0x13de   :  { %13809 = vrot.lane.b32.xlu1 %v33872_v19, %s30382_s24  ;;  %13886 = vrot.lane.b32.xlu0 %v33880_v26, %s30382_s24 }
0x13df   :  { %v33886_v45 = vpop.f32.mrf.mxu1 }
0x13e1   :  { %v33888_v0 = vpop.f32.mrf.mxu1 }
0x13e2   :  { %13963 = vrot.lane.b32.xlu1 %v33878_v58, %s30382_s24  ;;  %14040 = vrot.lane.b32.xlu0 %v33888_v0, %s30382_s24 }
0x13e6   :  { %14117 = vrot.lane.b32.xlu1 %v33886_v45, %s30382_s24 }
0x1446   :  { %v13656_v18 = vpop.permute.xlu0 %13655 }
0x1447   :  { %28854 = vmatpush3.xpose.msk.msra.mxu1 %vm847_vm4, %v13656_v18 }
0x1448   :  { %v13579_v54 = vpop.permute.xlu1 %13578  ;;  %28863 = vmatprep.subr.mxu1 %v37010_v60 }
0x1449   :  { %28849 = vmatpush3.xpose.msk.msra.mxu0 %vm847_vm4, %v13579_v54 }
0x144a   :  { %28856 = vmatmul.mubr.msk.f32.vlgmr.msra.gmra.mxu1 %vm847_vm4, %v33864_v2  ;;  %28858 = vmatprep.subr.mxu0 %v37010_v60 }
0x144b   :  { %28865 = vmatprep.mubr.msk.f32.mxu1 %vm30381_vm1, %v37010_v60 }
0x144c   :  { %28851 = vmatmul.mubr.msk.f32.vlgmr.msra.gmra.mxu0 %vm847_vm4, %v33868_v28  ;;  %v13733_v21 = vpop.permute.xlu1 %13732 }
0x144d   :  { %28859 = vmatpush3.xpose.msk.msra.mxu0 %vm847_vm4, %v13733_v21  ;;  %28860 = vmatprep.mubr.msk.f32.mxu0 %vm30381_vm1, %v37010_v60 }
0x144e   :  { %28868 = vmatprep.subr.mxu0 %v37010_v60 }
0x1450   :  { %v13887_v47 = vpop.permute.xlu0 %13886  ;;  %28861 = vmatmul.mubr.msk.f32.vlgmr.msra.gmra.mxu0 %vm847_vm4, %v33874_v43  ;;  %v13810_v63 = vpop.permute.xlu1 %13809 }
0x1451   :  { %28864 = vmatpush3.xpose.msk.msra.mxu1 %vm847_vm4, %v13810_v63  ;;  %28869 = vmatpush3.xpose.msk.msra.mxu0 %vm847_vm4, %v13887_v47 }
0x1452   :  { %28870 = vmatprep.mubr.msk.f32.mxu0 %vm30381_vm1, %v37010_v60  ;;  %28873 = vmatprep.subr.mxu1 %v37010_v60 }
0x1453   :  { %28878 = vmatprep.subr.mxu0 %v37010_v60 }
0x1454   :  { %v14041_v3 = vpop.permute.xlu0 %14040  ;;  %v33918_v53 = vpop.f32.mrf.mxu1  ;;  %28866 = vmatmul.mubr.msk.f32.vlgmr.msra.gmra.mxu1 %vm847_vm4, %v33872_v19  ;;  %28871 = vmatmul.mubr.msk.f32.vlgmr.msra.gmra.mxu0 %vm847_vm4, %v33880_v26 }
0x1455   :  { %v13964_v14 = vpop.permute.xlu1 %13963  ;;  %14271 = vrot.lane.b32.xlu1 %v33918_v53, %s30382_s24  ;;  %28879 = vmatpush3.xpose.msk.msra.mxu0 %vm847_vm4, %v14041_v3 }
0x1456   :  { %28874 = vmatpush3.xpose.msk.msra.mxu1 %vm847_vm4, %v13964_v14  ;;  %v33928_v55 = vpop.f32.mrf.mxu1  ;;  %28875 = vmatprep.mubr.msk.f32.mxu1 %vm30381_vm1, %v37010_v60 }
0x1457   :  { %14194 = vrot.lane.b32.xlu0 %v33928_v55, %s30382_s24  ;;  %28880 = vmatprep.mubr.msk.f32.mxu0 %vm30381_vm1, %v37010_v60 }
0x1458   :  { %v33936_v30 = vpop.f32.mrf.mxu1  ;;  %28881 = vmatmul.mubr.msk.f32.vlgmr.msra.gmra.mxu0 %vm847_vm4, %v33888_v0  ;;  %28883 = vmatprep.subr.mxu1 %v37010_v60 }
0x1459   :  { %28876 = vmatmul.mubr.msk.f32.vlgmr.msra.gmra.mxu1 %vm847_vm4, %v33878_v58  ;;  %v14118_v42 = vpop.permute.xlu1 %14117  ;;  %14425 = vrot.lane.b32.xlu1 %v33936_v30, %s30382_s24 }
0x145a   :  { %28884 = vmatpush3.xpose.msk.msra.mxu1 %vm847_vm4, %v14118_v42  ;;  %v33946_v40 = vpop.f32.mrf.mxu1  ;;  %28885 = vmatprep.mubr.msk.f32.mxu1 %vm30381_vm1, %v37010_v60 }
0x145b   :  { %14348 = vrot.lane.b32.xlu0 %v33946_v40, %s30382_s24  ;;  %28893 = vmatprep.subr.mxu1 %v37010_v60 }
0x145c   :  { %v33953_v4 = vpop.f32.mrf.mxu1  ;;  %28888 = vmatprep.subr.mxu0 %v37010_v60  ;;  %28890 = vmatprep.mubr.msk.f32.mxu0 %vm30381_vm1, %v37010_v60 }
0x145d   :  { %28886 = vmatmul.mubr.msk.f32.vlgmr.msra.gmra.mxu1 %vm847_vm4, %v33886_v45  ;;  %14579 = vrot.lane.b32.xlu1 %v33953_v4, %s30382_s24 }
0x145e   :  { %v33962_v7 = vpop.f32.mrf.mxu1  ;;  %28895 = vmatprep.mubr.msk.f32.mxu1 %vm30381_vm1, %v37010_v60 }
0x145f   :  { %14502 = vrot.lane.b32.xlu0 %v33962_v7, %s30382_s24 }
0x1460   :  { %v33968_v46 = vpop.f32.mrf.mxu1 }
0x1461   :  { %14733 = vrot.lane.b32.xlu1 %v33968_v46, %s30382_s24 }
0x1462   :  { %v33972_v51 = vpop.f32.mrf.mxu1 }
0x1463   :  { %14656 = vrot.lane.b32.xlu0 %v33972_v51, %s30382_s24 }
0x1465   :  { %15034 = vrot.lane.b32.xlu1 %v33868_v28, %s30383_s25 }
0x1467   :  { %15110 = vrot.lane.b32.xlu0 %v33864_v2, %s30383_s25 }
0x1469   :  { %15718 = vrot.lane.b32.xlu1 %v33918_v53, %s30383_s25 }
0x146b   :  { %15186 = vrot.lane.b32.xlu0 %v33874_v43, %s30383_s25 }
0x146d   :  { %16252 = vrot.lane.b32.xlu1 %v33868_v28, %s30384_s20 }
0x146f   :  { %15262 = vrot.lane.b32.xlu0 %v33872_v19, %s30383_s25 }
0x1471   :  { %16098 = vrot.lane.b32.xlu1 %v33972_v51, %s30383_s25 }
0x1473   :  { %15338 = vrot.lane.b32.xlu0 %v33880_v26, %s30383_s25 }
0x1477   :  { %15414 = vrot.lane.b32.xlu0 %v33878_v58, %s30383_s25 }
0x147b   :  { %15490 = vrot.lane.b32.xlu0 %v33888_v0, %s30383_s25 }
0x147f   :  { %15566 = vrot.lane.b32.xlu0 %v33886_v45, %s30383_s25 }
0x1483   :  { %15642 = vrot.lane.b32.xlu0 %v33928_v55, %s30383_s25 }
0x1487   :  { %15794 = vrot.lane.b32.xlu0 %v33946_v40, %s30383_s25 }
0x148b   :  { %15870 = vrot.lane.b32.xlu0 %v33936_v30, %s30383_s25 }
0x148f   :  { %15946 = vrot.lane.b32.xlu0 %v33962_v7, %s30383_s25 }
0x1493   :  { %16022 = vrot.lane.b32.xlu0 %v33953_v4, %s30383_s25 }
0x1497   :  { %16174 = vrot.lane.b32.xlu0 %v33968_v46, %s30383_s25 }
0x14c7   :  { %v14272_v16 = vpop.permute.xlu1 %14271 }
0x14c8   :  { %28894 = vmatpush3.xpose.msk.msra.mxu1 %vm847_vm4, %v14272_v16 }
0x14c9   :  { %v14195_v23 = vpop.permute.xlu0 %14194  ;;  %28903 = vmatprep.subr.mxu1 %v37010_v60 }
0x14ca   :  { %28889 = vmatpush3.xpose.msk.msra.mxu0 %vm847_vm4, %v14195_v23 }
0x14cb   :  { %28896 = vmatmul.mubr.msk.f32.vlgmr.msra.gmra.mxu1 %vm847_vm4, %v33918_v53  ;;  %v14426_v6 = vpop.permute.xlu1 %14425  ;;  %28898 = vmatprep.subr.mxu0 %v37010_v60 }
0x14cc   :  { %28904 = vmatpush3.xpose.msk.msra.mxu1 %vm847_vm4, %v14426_v6  ;;  %28905 = vmatprep.mubr.msk.f32.mxu1 %vm30381_vm1, %v37010_v60 }
0x14cd   :  { %v14349_v44 = vpop.permute.xlu0 %14348  ;;  %28891 = vmatmul.mubr.msk.f32.vlgmr.msra.gmra.mxu0 %vm847_vm4, %v33928_v55  ;;  %28913 = vmatprep.subr.mxu1 %v37010_v60 }
0x14ce   :  { %28899 = vmatpush3.xpose.msk.msra.mxu0 %vm847_vm4, %v14349_v44  ;;  %28900 = vmatprep.mubr.msk.f32.mxu0 %vm30381_vm1, %v37010_v60 }
0x14cf   :  { %28906 = vmatmul.mubr.msk.f32.vlgmr.msra.gmra.mxu1 %vm847_vm4, %v33936_v30  ;;  %v14580_v29 = vpop.permute.xlu1 %14579  ;;  %28908 = vmatprep.subr.mxu0 %v37010_v60 }
0x14d0   :  { %28914 = vmatpush3.xpose.msk.msra.mxu1 %vm847_vm4, %v14580_v29  ;;  %28915 = vmatprep.mubr.msk.f32.mxu1 %vm30381_vm1, %v37010_v60 }
0x14d1   :  { %v14503_v50 = vpop.permute.xlu0 %14502  ;;  %28901 = vmatmul.mubr.msk.f32.vlgmr.msra.gmra.mxu0 %vm847_vm4, %v33946_v40  ;;  %28923 = vmatprep.subr.mxu1 %v37010_v60 }
0x14d2   :  { %28909 = vmatpush3.xpose.msk.msra.mxu0 %vm847_vm4, %v14503_v50  ;;  %28910 = vmatprep.mubr.msk.f32.mxu0 %vm30381_vm1, %v37010_v60 }
0x14d3   :  { %28916 = vmatmul.mubr.msk.f32.vlgmr.msra.gmra.mxu1 %vm847_vm4, %v33953_v4  ;;  %v14734_v62 = vpop.permute.xlu1 %14733  ;;  %28918 = vmatprep.subr.mxu0 %v37010_v60 }
0x14d4   :  { %28924 = vmatpush3.xpose.msk.msra.mxu1 %vm847_vm4, %v14734_v62  ;;  %28925 = vmatprep.mubr.msk.f32.mxu1 %vm30381_vm1, %v37010_v60 }
0x14d5   :  { %v14657_v34 = vpop.permute.xlu0 %14656  ;;  %28911 = vmatmul.mubr.msk.f32.vlgmr.msra.gmra.mxu0 %vm847_vm4, %v33962_v7  ;;  %28933 = vmatprep.subr.mxu1 %v37010_v60 }
0x14d6   :  { %28919 = vmatpush3.xpose.msk.msra.mxu0 %vm847_vm4, %v14657_v34  ;;  %28920 = vmatprep.mubr.msk.f32.mxu0 %vm30381_vm1, %v37010_v60 }
0x14d7   :  { %28926 = vmatmul.mubr.msk.f32.vlgmr.msra.gmra.mxu1 %vm847_vm4, %v33968_v46  ;;  %28928 = vmatprep.subr.mxu0 %v37010_v60  ;;  %v15035_v1 = vpop.permute.xlu1 %15034 }
0x14d8   :  { %28935 = vmatprep.mubr.msk.f32.mxu1 %vm30381_vm1, %v37010_v60 }
0x14d9   :  { %v15111_v38 = vpop.permute.xlu0 %15110  ;;  %28921 = vmatmul.mubr.msk.f32.vlgmr.msra.gmra.mxu0 %vm847_vm4, %v33972_v51 }
0x14da   :  { %28929 = vmatpush3.msra.mxu0 %v15035_v1  ;;  %28934 = vmatpush3.msra.mxu1 %v15111_v38 }
0x14db   :  { %28943 = vmatprep.subr.mxu1 %v37010_v60  ;;  %28930 = vmatprep.mubr.msk.f32.mxu0 %vm30381_vm1, %v37010_v60 }
0x14dc   :  { %28938 = vmatprep.subr.mxu0 %v37010_v60 }
0x150a   :  { %v13727_v32 = vpop.f32.mrf.mxu1 }
0x150b   :  { %v14810_v5 = vmul.f32 0.5, %v13727_v32 }
0x150c   :  { %v13650_v36 = vpop.f32.mrf.mxu0  ;;  %v28857_v24 = vpop.f32.mrf.mxu1 }
0x150d   :  { %v34061_v35 = vadd.f32 %v14810_v5, %v31107_v10  ;;  %v14809_v11 = vmul.f32 0.5, %v13650_v36 }
0x150e   :  { %v28852_v49 = vpop.f32.mrf.mxu0 }
0x150f   :  { %v34064_v57 = vadd.f32 %v14809_v11, %v31107_v10  ;;  %v14844_v61 = vsel %vm2109_vm6, %v34061_v35, -inf }
0x1510   :  { %14845 = vmax.xlane.f32.xlu1 %v14844_v61  ;;  %v13804_v37 = vpop.f32.mrf.mxu0 }
0x1511   :  { %v14841_v25 = vsel %vm2109_vm6, %v34064_v57, -inf  ;;  %v14811_v21 = vmul.f32 0.5, %v13804_v37 }
0x1512   :  { %14842 = vmax.xlane.f32.xlu0 %v14841_v25  ;;  %v28862_v27 = vpop.f32.mrf.mxu0 }
0x1513   :  { %v34077_v6 = vadd.f32 %v14811_v21, %v31107_v10 }
0x1514   :  { %v13881_v18 = vpop.f32.mrf.mxu1  ;;  %v13958_v54 = vpop.f32.mrf.mxu0 }
0x1515   :  { %v14812_v47 = vmul.f32 0.5, %v13881_v18  ;;  %v14813_v63 = vmul.f32 0.5, %v13958_v54  ;;  %v14847_v11 = vsel %vm2109_vm6, %v34077_v6, -inf  ;;  %v34100_v18 = vpop.permute.xlu0 %15186 }
0x1516   :  { %v28867_v3 = vpop.f32.mrf.mxu1  ;;  %v28872_v14 = vpop.f32.mrf.mxu0 }
0x1517   :  { %v34071_v42 = vadd.f32 %v14812_v47, %v31107_v10  ;;  %v34074_v16 = vadd.f32 %v14813_v63, %v31107_v10 }
0x1518   :  { %v14112_v23 = vpop.f32.mrf.mxu0 }
0x1519   :  { %v14035_v44 = vpop.f32.mrf.mxu1  ;;  %v14815_v29 = vmul.f32 0.5, %v14112_v23  ;;  %v14853_v50 = vsel %vm2109_vm6, %v34074_v16, -inf  ;;  %v14850_v62 = vsel %vm2109_vm6, %v34071_v42, -inf  ;;  %v34102_v54 = vpop.permute.xlu0 %15262 }
0x151a   :  { %v14814_v34 = vmul.f32 0.5, %v14035_v44  ;;  %14854 = vmax.xlane.f32.xlu1 %v14853_v50  ;;  %v28882_v1 = vpop.f32.mrf.mxu0  ;;  %14851 = vmax.xlane.f32.xlu0 %v14850_v62 }
0x151b   :  { %v34084_v38 = vadd.f32 %v14815_v29, %v31107_v10  ;;  %v28877_v32 = vpop.f32.mrf.mxu1  ;;  %v34118_v29 = vpop.permute.xlu1 %15718 }
0x151c   :  { %v34087_v5 = vadd.f32 %v14814_v34, %v31107_v10 }
0x151d   :  { %v14189_v36 = vpop.f32.mrf.mxu1  ;;  %v14859_v24 = vsel %vm2109_vm6, %v34084_v38, -inf  ;;  %v34104_v21 = vpop.permute.xlu0 %15338 }
0x151e   :  { %v14816_v49 = vmul.f32 0.5, %v14189_v36  ;;  %14860 = vmax.xlane.f32.xlu1 %v14859_v24  ;;  %14848 = vmax.xlane.f32.xlu0 %v14847_v11  ;;  %v14856_v25 = vsel %vm2109_vm6, %v34087_v5, -inf }
0x151f   :  { %v28887_v61 = vpop.f32.mrf.mxu1  ;;  %v34128_v24 = vpop.permute.xlu1 %16252 }
0x1520   :  { %v34094_v37 = vadd.f32 %v14816_v49, %v31107_v10 }
0x1521   :  { %v34106_v47 = vpop.permute.xlu0 %15414 }
0x1522   :  { %14857 = vmax.xlane.f32.xlu0 %v14856_v25  ;;  %v14862_v27 = vsel %vm2109_vm6, %v34094_v37, -inf }
0x1523   :  { %v34138_v8 = vpop.permute.xlu1 %16098 }
0x1525   :  { %v34108_v63 = vpop.permute.xlu0 %15490 }
0x1526   :  { %14863 = vmax.xlane.f32.xlu0 %v14862_v27 }
0x1529   :  { %v34110_v3 = vpop.permute.xlu0 %15566 }
0x152d   :  { %v34112_v14 = vpop.permute.xlu0 %15642 }
0x1531   :  { %v34114_v23 = vpop.permute.xlu0 %15794 }
0x1535   :  { %v34116_v44 = vpop.permute.xlu0 %15870 }
0x1539   :  { %v34120_v50 = vpop.permute.xlu0 %15946 }
0x153d   :  { %v34130_v11 = vpop.permute.xlu0 %16022 }
0x1541   :  { %v34140_v59 = vpop.permute.xlu0 %16174 }
0x158b   :  { %v34122_v62 = vpop.f32.mrf.mxu1 }
0x158d   :  { %v34124_v34 = vpop.f32.mrf.mxu0  ;;  %v28897_v1 = vpop.f32.mrf.mxu1 }
0x158f   :  { %v28892_v32 = vpop.f32.mrf.mxu0  ;;  %v34126_v36 = vpop.f32.mrf.mxu1 }
0x1591   :  { %v34132_v49 = vpop.f32.mrf.mxu0  ;;  %v28907_v61 = vpop.f32.mrf.mxu1 }
0x1593   :  { %v28902_v25 = vpop.f32.mrf.mxu0  ;;  %v34134_v27 = vpop.f32.mrf.mxu1 }
0x1595   :  { %v34136_v20 = vpop.f32.mrf.mxu0  ;;  %v28917_v41 = vpop.f32.mrf.mxu1 }
0x1597   :  { %v28912_v1 = vpop.f32.mrf.mxu0  ;;  %v34142_v32 = vpop.f32.mrf.mxu1 }
0x1599   :  { %v34144_v39 = vpop.f32.mrf.mxu0  ;;  %v28927_v22 = vpop.f32.mrf.mxu1 }
0x159a   :  { %v14846_v15 = vpop.xlane.xlu1 %14845 }
0x159b   :  { %v14890_v31 = vsub.f32 %v34061_v35, %v14846_v15  ;;  %v14843_v61 = vpop.xlane.xlu0 %14842  ;;  %v28922_v25 = vpop.f32.mrf.mxu0 }
0x159c   :  { %v14889_v52 = vsub.f32 %v34064_v57, %v14843_v61 }
0x159d   :  { %v14907_v9 = vmul.f32 1.442695, %v14890_v31 }
0x159e   :  { %v14905_v12 = vmul.f32 1.442695, %v14889_v52 }
0x159f   :  { %30057 = vpow2.f32 %v14907_v9 }
0x15a0   :  { %30059 = vpow2.f32 %v14905_v12 }
0x15a3   :  { %v14852_v41 = vpop.xlane.xlu0 %14851  ;;  %v14855_v13 = vpop.xlane.xlu1 %14854 }
0x15a4   :  { %v14892_v1 = vsub.f32 %v34071_v42, %v14852_v41  ;;  %v14893_v56 = vsub.f32 %v34074_v16, %v14855_v13 }
0x15a6   :  { %v14911_v48 = vmul.f32 1.442695, %v14892_v1  ;;  %v14913_v35 = vmul.f32 1.442695, %v14893_v56 }
0x15a7   :  { %v14849_v33 = vpop.xlane.xlu0 %14848  ;;  %v14861_v22 = vpop.xlane.xlu1 %14860 }
0x15a8   :  { %30061 = vpow2.f32 %v14911_v48  ;;  %v14891_v15 = vsub.f32 %v34077_v6, %v14849_v33  ;;  %v14895_v57 = vsub.f32 %v34084_v38, %v14861_v22 }
0x15aa   :  { %v14909_v25 = vmul.f32 1.442695, %v14891_v15  ;;  %v14917_v42 = vmul.f32 1.442695, %v14895_v57  ;;  %v14817_v15 = vmul.f32 0.5, %v34124_v34  ;;  %v14819_v34 = vmul.f32 0.5, %v34132_v49 }
0x15ab   :  { %v14858_v31 = vpop.xlane.xlu0 %14857  ;;  %v14821_v49 = vmul.f32 0.5, %v34136_v20 }
0x15ac   :  { %v34152_v52 = vpop.eup %30057  ;;  %30063 = vpow2.f32 %v14909_v25  ;;  %v14894_v12 = vsub.f32 %v34087_v5, %v14858_v31 }
0x15ad   :  { %v34155_v9 = vpop.eup %30059  ;;  %v14940_v13 = vsel %vm2109_vm6, %v34152_v52, 0.0  ;;  %30065 = vpow2.f32 %v14913_v35 }
0x15ae   :  { %v14915_v48 = vmul.f32 1.442695, %v14894_v12  ;;  %14941 = vadd.xlane.f32.xlu0 %v14940_v13  ;;  %v14937_v33 = vsel %vm2109_vm6, %v34155_v9, 0.0  ;;  %v14820_v13 = vmul.f32 0.5, %v34126_v36  ;;  %v34202_v36 = vadd.f32 %v14819_v34, %v31107_v10 }
0x15af   :  { %14938 = vadd.xlane.f32.xlu1 %v14937_v33  ;;  %v14864_v56 = vpop.xlane.xlu0 %14863 }
0x15b0   :  { %30067 = vpow2.f32 %v14915_v48  ;;  %v14896_v16 = vsub.f32 %v34094_v37, %v14864_v56  ;;  %v14818_v37 = vmul.f32 0.5, %v34122_v62  ;;  %v34189_v62 = vadd.f32 %v14817_v15, %v31107_v10 }
0x15b1   :  { %30069 = vpow2.f32 %v14917_v42  ;;  %v34197_v33 = vadd.f32 %v14820_v13, %v31107_v10  ;;  %v14824_v15 = vmul.f32 0.5, %v34142_v32  ;;  %v14823_v32 = vmul.f32 0.5, %v34144_v39 }
0x15b2   :  { %v14919_v6 = vmul.f32 1.442695, %v14896_v16  ;;  %v34185_v12 = vadd.f32 %v14818_v37, %v31107_v10  ;;  %v14822_v16 = vmul.f32 0.5, %v34134_v27  ;;  %v34214_v37 = vadd.f32 %v14821_v49, %v31107_v10 }
0x15b3   :  { %v14871_v27 = vsel %vm2109_vm6, %v34202_v36, -inf  ;;  %v34220_v20 = vadd.f32 %v14824_v15, %v31107_v10  ;;  %v34244_v34 = vadd.f32 %v14823_v32, %v31107_v10 }
0x15b4   :  { %30071 = vpow2.f32 %v14919_v6  ;;  %v14868_v56 = vsel %vm2109_vm6, %v34185_v12, -inf  ;;  %v14865_v6 = vsel %vm2109_vm6, %v34189_v62, -inf }
0x15b5   :  { %v34162_v38 = vpop.eup %30061  ;;  %v14886_v13 = vsel %vm2109_vm6, %v34220_v20, -inf }
0x15b6   :  { %v14946_v5 = vsel %vm2109_vm6, %v34162_v38, 0.0 }
0x15b7   :  { %14947 = vadd.xlane.f32.xlu0 %v14946_v5  ;;  %v14874_v5 = vsel %vm2109_vm6, %v34197_v33, -inf }
0x15b9   :  { %v34166_v61 = vpop.eup %30063 }
0x15ba   :  { %v14943_v41 = vsel %vm2109_vm6, %v34166_v61, 0.0  ;;  %v34170_v1 = vpop.eup %30065 }
0x15bb   :  { %14944 = vadd.xlane.f32.xlu1 %v14943_v41  ;;  %v14949_v25 = vsel %vm2109_vm6, %v34170_v1, 0.0  ;;  %v34211_v41 = vadd.f32 %v14822_v16, %v31107_v10 }
0x15bd   :  { %v34172_v22 = vpop.eup %30067 }
0x15be   :  { %v14952_v35 = vsel %vm2109_vm6, %v34172_v22, 0.0  ;;  %v34180_v57 = vpop.eup %30069 }
0x15bf   :  { %14953 = vadd.xlane.f32.xlu0 %v14952_v35  ;;  %14950 = vadd.xlane.f32.xlu1 %v14949_v25  ;;  %v14955_v48 = vsel %vm2109_vm6, %v34180_v57, 0.0  ;;  %v14880_v35 = vsel %vm2109_vm6, %v34211_v41, -inf  ;;  %v14877_v25 = vsel %vm2109_vm6, %v34214_v37, -inf }
0x15c1   :  { %v34182_v31 = vpop.eup %30071 }
0x15c2   :  { %v14958_v42 = vsel %vm2109_vm6, %v34182_v31, 0.0 }
0x15c3   :  { %14959 = vadd.xlane.f32.xlu0 %v14958_v42  ;;  %14956 = vadd.xlane.f32.xlu1 %v14955_v48  ;;  %v14883_v42 = vsel %vm2109_vm6, %v34244_v34, -inf }
0x15c7   :  { %14869 = vmax.xlane.f32.xlu0 %v14868_v56  ;;  %14866 = vmax.xlane.f32.xlu1 %v14865_v6 }
0x15cb   :  { %14875 = vmax.xlane.f32.xlu0 %v14874_v5  ;;  %14872 = vmax.xlane.f32.xlu1 %v14871_v27 }
0x15cf   :  { %14881 = vmax.xlane.f32.xlu0 %v14880_v35  ;;  %14878 = vmax.xlane.f32.xlu1 %v14877_v25 }
0x15d3   :  { %14887 = vmax.xlane.f32.xlu0 %v14886_v13 }
0x15e0   :  { %16250 = vrot.lane.b32.xlu1 %v33868_v28, %s30385_s5 }
0x15e9   :  { %16330 = vrot.lane.b32.xlu0 %v33864_v2, %s30384_s20 }
0x15ed   :  { %16328 = vrot.lane.b32.xlu0 %v33864_v2, %s30385_s5 }
0x15f1   :  { %16486 = vrot.lane.b32.xlu0 %v33872_v19, %s30384_s20 }
0x15f5   :  { %16484 = vrot.lane.b32.xlu0 %v33872_v19, %s30385_s5 }
0x15f9   :  { %16642 = vrot.lane.b32.xlu0 %v33878_v58, %s30384_s20 }
0x15fd   :  { %16640 = vrot.lane.b32.xlu0 %v33878_v58, %s30385_s5 }
0x1601   :  { %16798 = vrot.lane.b32.xlu0 %v33886_v45, %s30384_s20 }
0x1604   :  { %14884 = vmax.xlane.f32.xlu1 %v14883_v42 }
0x1615   :  { %16408 = vrot.lane.b32.xlu1 %v33874_v43, %s30384_s20 }
0x1619   :  { %16406 = vrot.lane.b32.xlu1 %v33874_v43, %s30385_s5 }
0x161d   :  { %16564 = vrot.lane.b32.xlu1 %v33880_v26, %s30384_s20 }
0x1621   :  { %16562 = vrot.lane.b32.xlu1 %v33880_v26, %s30385_s5 }
0x1625   :  { %16720 = vrot.lane.b32.xlu1 %v33888_v0, %s30384_s20 }
0x1629   :  { %16718 = vrot.lane.b32.xlu1 %v33888_v0, %s30385_s5 }
0x1637   :  { %v14942_v39 = vpop.xlane.xlu0 %14941 }
0x1638   :  { %30073 = vrcp.f32 %v14942_v39  ;;  %v14939_v48 = vpop.xlane.xlu1 %14938 }
0x1639   :  { %30075 = vrcp.f32 %v14939_v48 }
0x1640   :  { %v14948_v56 = vpop.xlane.xlu0 %14947 }
0x1641   :  { %30077 = vrcp.f32 %v14948_v56 }
0x1644   :  { %v14945_v16 = vpop.xlane.xlu1 %14944 }
0x1645   :  { %v30074_v49 = vpop.eup %30073  ;;  %30079 = vrcp.f32 %v14945_v16 }
0x1646   :  { %v30076_v6 = vpop.eup %30075  ;;  %v14988_v5 = vmul.f32 %v30074_v49, %v34152_v52 }
0x1647   :  { %v14986_v15 = vmul.f32 %v30076_v6, %v34155_v9 }
0x1648   :  { %26791 = vst.msk [vmem:[%s36906_s19 + $0x208] sm:$0xff] %vm2109_vm6, %v14988_v5  ;;  %28936 = vmatmul.mubr.msk.f32.vlgmr.msra.gmra.mxu1 %vm2109_vm6, %v14988_v5  ;;  %v14954_v27 = vpop.xlane.xlu0 %14953  ;;  %v14951_v35 = vpop.xlane.xlu1 %14950 }
0x1649   :  { %26790 = vst.msk [vmem:[%s36906_s19 + $0x200] sm:$0xff] %vm2109_vm6, %v14986_v15  ;;  %28944 = vmatpush3.msra.mxu1 %v34102_v54  ;;  %30081 = vrcp.f32 %v14954_v27  ;;  %28931 = vmatmul.mubr.msk.f32.vlgmr.msra.gmra.mxu0 %vm2109_vm6, %v14986_v15 }
0x164a   :  { %30083 = vrcp.f32 %v14951_v35  ;;  %28939 = vmatpush3.msra.mxu0 %v34100_v18  ;;  %28945 = vmatprep.mubr.msk.f32.mxu1 %vm30381_vm1, %v37010_v60 }
0x164b   :  { %28953 = vmatprep.subr.mxu1 %v37010_v60  ;;  %28940 = vmatprep.mubr.msk.f32.mxu0 %vm30381_vm1, %v37010_v60 }
0x164c   :  { %v14960_v52 = vpop.xlane.xlu0 %14959  ;;  %v14957_v9 = vpop.xlane.xlu1 %14956  ;;  %28948 = vmatprep.subr.mxu0 %v37010_v60 }
0x164d   :  { %30085 = vrcp.f32 %v14960_v52 }
0x164e   :  { %v30078_v54 = vpop.eup %30077  ;;  %30087 = vrcp.f32 %v14957_v9 }
0x164f   :  { %v14992_v25 = vmul.f32 %v30078_v54, %v34162_v38 }
0x1650   :  { %v14870_v13 = vpop.xlane.xlu0 %14869  ;;  %v14867_v32 = vpop.xlane.xlu1 %14866 }
0x1651   :  { %26793 = vst.msk [vmem:[%s36906_s19 + $0x218] sm:$0xff] %vm2109_vm6, %v14992_v25  ;;  %v14898_v18 = vsub.f32 %v34185_v12, %v14870_v13  ;;  %v14897_v42 = vsub.f32 %v34189_v62, %v14867_v32  ;;  %28946 = vmatmul.mubr.msk.f32.vlgmr.msra.gmra.mxu1 %vm2109_vm6, %v14992_v25 }
0x1652   :  { %v30080_v39 = vpop.eup %30079  ;;  %28954 = vmatpush3.msra.mxu1 %v34106_v47  ;;  %28955 = vmatprep.mubr.msk.f32.mxu1 %vm30381_vm1, %v37010_v60 }
0x1653   :  { %v14990_v38 = vmul.f32 %v30080_v39, %v34166_v61  ;;  %v14923_v48 = vmul.f32 1.442695, %v14898_v18  ;;  %v14921_v56 = vmul.f32 1.442695, %v14897_v42  ;;  %28963 = vmatprep.subr.mxu1 %v37010_v60 }
0x1654   :  { %v14876_v16 = vpop.xlane.xlu0 %14875  ;;  %v14873_v49 = vpop.xlane.xlu1 %14872 }
0x1655   :  { %26792 = vst.msk [vmem:[%s36906_s19 + $0x210] sm:$0xff] %vm2109_vm6, %v14990_v38  ;;  %30089 = vpow2.f32 %v14923_v48  ;;  %v14900_v12 = vsub.f32 %v34197_v33, %v14876_v16  ;;  %v14899_v47 = vsub.f32 %v34202_v36, %v14873_v49  ;;  %28941 = vmatmul.mubr.msk.f32.vlgmr.msra.gmra.mxu0 %vm2109_vm6, %v14990_v38 }
0x1656   :  { %v30082_v62 = vpop.eup %30081  ;;  %30091 = vpow2.f32 %v14921_v56  ;;  %28949 = vmatpush3.msra.mxu0 %v34104_v21  ;;  %28950 = vmatprep.mubr.msk.f32.mxu0 %vm30381_vm1, %v37010_v60 }
0x1657   :  { %v30084_v61 = vpop.eup %30083  ;;  %v14996_v6 = vmul.f32 %v30082_v62, %v34172_v22  ;;  %v14927_v5 = vmul.f32 1.442695, %v14900_v12  ;;  %v14925_v15 = vmul.f32 1.442695, %v14899_v47  ;;  %28958 = vmatprep.subr.mxu0 %v37010_v60 }
0x1658   :  { %v14994_v33 = vmul.f32 %v30084_v61, %v34170_v1  ;;  %v14882_v27 = vpop.xlane.xlu0 %14881  ;;  %v14879_v36 = vpop.xlane.xlu1 %14878 }
0x1659   :  { %26795 = vst.msk [vmem:[%s36906_s19 + $0x228] sm:$0xff] %vm2109_vm6, %v14996_v6  ;;  %30093 = vpow2.f32 %v14927_v5  ;;  %v14902_v21 = vsub.f32 %v34211_v41, %v14882_v27  ;;  %v14901_v35 = vsub.f32 %v34214_v37, %v14879_v36  ;;  %28956 = vmatmul.mubr.msk.f32.vlgmr.msra.gmra.mxu1 %vm2109_vm6, %v14996_v6 }
0x165a   :  { %v30086_v22 = vpop.eup %30085  ;;  %26794 = vst.msk [vmem:[%s36906_s19 + $0x220] sm:$0xff] %vm2109_vm6, %v14994_v33  ;;  %30095 = vpow2.f32 %v14925_v15  ;;  %28951 = vmatmul.mubr.msk.f32.vlgmr.msra.gmra.mxu0 %vm2109_vm6, %v14994_v33  ;;  %28964 = vmatpush3.msra.mxu1 %v34110_v3 }
0x165b   :  { %v30088_v1 = vpop.eup %30087  ;;  %v15000_v52 = vmul.f32 %v30086_v22, %v34182_v31  ;;  %v14931_v9 = vmul.f32 1.442695, %v14902_v21  ;;  %v14929_v41 = vmul.f32 1.442695, %v14901_v35  ;;  %28959 = vmatpush3.msra.mxu0 %v34108_v63  ;;  %28965 = vmatprep.mubr.msk.f32.mxu1 %vm30381_vm1, %v37010_v60 }
0x165c   :  { %v14998_v37 = vmul.f32 %v30088_v1, %v34180_v57  ;;  %28973 = vmatprep.subr.mxu1 %v37010_v60  ;;  %v14888_v54 = vpop.xlane.xlu0 %14887  ;;  %28960 = vmatprep.mubr.msk.f32.mxu0 %vm30381_vm1, %v37010_v60  ;;  %v34381_v16 = vpop.permute.xlu1 %16250 }
0x165d   :  { %26797 = vst.msk [vmem:[%s36906_s19 + $0x238] sm:$0xff] %vm2109_vm6, %v15000_v52  ;;  %30097 = vpow2.f32 %v14931_v9  ;;  %v14904_v3 = vsub.f32 %v34220_v20, %v14888_v54  ;;  %28968 = vmatprep.subr.mxu0 %v37010_v60  ;;  %28966 = vmatmul.mubr.msk.f32.vlgmr.msra.gmra.mxu1 %vm2109_vm6, %v15000_v52 }
0x165e   :  { %26796 = vst.msk [vmem:[%s36906_s19 + $0x230] sm:$0xff] %vm2109_vm6, %v14998_v37  ;;  %30099 = vpow2.f32 %v14929_v41  ;;  %28961 = vmatmul.mubr.msk.f32.vlgmr.msra.gmra.mxu0 %vm2109_vm6, %v14998_v37  ;;  %28974 = vmatpush3.msra.mxu1 %v34118_v29 }
0x165f   :  { %v14935_v63 = vmul.f32 1.442695, %v14904_v3  ;;  %28969 = vmatpush3.msra.mxu0 %v34112_v14  ;;  %28970 = vmatprep.mubr.msk.f32.mxu0 %vm30381_vm1, %v37010_v60 }
0x1660   :  { %28975 = vmatprep.mubr.msk.f32.mxu1 %vm30381_vm1, %v37010_v60  ;;  %28978 = vmatprep.subr.mxu0 %v37010_v60 }
0x1661   :  { %30101 = vpow2.f32 %v14935_v63  ;;  %28983 = vmatprep.subr.mxu1 %v37010_v60 }
0x1662   :  { %v34349_v57 = vpop.eup %30089 }
0x1663   :  { %v34351_v31 = vpop.eup %30091  ;;  %v14964_v29 = vsel %vm2109_vm6, %v34349_v57, 0.0 }
0x1664   :  { %14965 = vadd.xlane.f32.xlu0 %v14964_v29  ;;  %v14961_v14 = vsel %vm2109_vm6, %v34351_v31, 0.0 }
0x1665   :  { %14962 = vadd.xlane.f32.xlu1 %v14961_v14 }
0x1666   :  { %v34357_v20 = vpop.eup %30093 }
0x1667   :  { %v34359_v25 = vpop.eup %30095  ;;  %v14970_v13 = vsel %vm2109_vm6, %v34357_v20, 0.0 }
0x1668   :  { %14971 = vadd.xlane.f32.xlu0 %v14970_v13  ;;  %v14967_v32 = vsel %vm2109_vm6, %v34359_v25, 0.0 }
0x1669   :  { %14968 = vadd.xlane.f32.xlu1 %v14967_v32 }
0x166a   :  { %v34365_v18 = vpop.eup %30097 }
0x166b   :  { %v34367_v42 = vpop.eup %30099  ;;  %v14976_v39 = vsel %vm2109_vm6, %v34365_v18, 0.0 }
0x166c   :  { %14977 = vadd.xlane.f32.xlu0 %v14976_v39  ;;  %v14973_v38 = vsel %vm2109_vm6, %v34367_v42, 0.0 }
0x166d   :  { %14974 = vadd.xlane.f32.xlu1 %v14973_v38 }
0x166e   :  { %v34373_v48 = vpop.eup %30101 }
0x166f   :  { %v14982_v56 = vsel %vm2109_vm6, %v34373_v48, 0.0 }
0x1671   :  { %14983 = vadd.xlane.f32.xlu1 %v14982_v56 }
0x1682   :  { %16876 = vrot.lane.b32.xlu1 %v33928_v55, %s30384_s20 }
0x1686   :  { %16874 = vrot.lane.b32.xlu1 %v33928_v55, %s30385_s5 }
0x168a   :  { %17032 = vrot.lane.b32.xlu1 %v33946_v40, %s30384_s20 }
0x168d   :  { %v14885_v49 = vpop.xlane.xlu1 %14884 }
0x168e   :  { %17030 = vrot.lane.b32.xlu1 %v33946_v40, %s30385_s5  ;;  %v14903_v12 = vsub.f32 %v34244_v34, %v14885_v49  ;;  %v34408_v34 = vpop.permute.xlu0 %16330 }
0x1690   :  { %v14933_v47 = vmul.f32 1.442695, %v14903_v12 }
0x1691   :  { %v34416_v5 = vpop.permute.xlu1 %16408 }
0x1692   :  { %30103 = vpow2.f32 %v14933_v47  ;;  %17188 = vrot.lane.b32.xlu1 %v33962_v7, %s30384_s20  ;;  %v34412_v6 = vpop.permute.xlu0 %16328 }
0x1695   :  { %v34422_v33 = vpop.permute.xlu1 %16406 }
0x1696   :  { %17186 = vrot.lane.b32.xlu1 %v33962_v7, %s30385_s5  ;;  %v34420_v15 = vpop.permute.xlu0 %16486 }
0x1699   :  { %v34430_v36 = vpop.permute.xlu1 %16564 }
0x169a   :  { %17344 = vrot.lane.b32.xlu1 %v33972_v51, %s30384_s20  ;;  %v34426_v27 = vpop.permute.xlu0 %16484 }
0x169d   :  { %v34434_v35 = vpop.permute.xlu1 %16562 }
0x169e   :  { %17342 = vrot.lane.b32.xlu1 %v33972_v51, %s30385_s5  ;;  %v34432_v21 = vpop.permute.xlu0 %16642 }
0x169f   :  { %v34396_v62 = vpop.eup %30103 }
0x16a0   :  { %v14979_v61 = vsel %vm2109_vm6, %v34396_v62, 0.0 }
0x16a1   :  { %14980 = vadd.xlane.f32.xlu0 %v14979_v61  ;;  %v34438_v1 = vpop.permute.xlu1 %16720 }
0x16a2   :  { %v34436_v22 = vpop.permute.xlu0 %16640 }
0x16a5   :  { %v34442_v9 = vpop.permute.xlu1 %16718 }
0x16a6   :  { %v34440_v52 = vpop.permute.xlu0 %16798 }
0x16b7   :  { %16796 = vrot.lane.b32.xlu0 %v33886_v45, %s30385_s5 }
0x16bb   :  { %16954 = vrot.lane.b32.xlu0 %v33918_v53, %s30384_s20 }
0x16bf   :  { %16952 = vrot.lane.b32.xlu0 %v33918_v53, %s30385_s5 }
0x16c3   :  { %17110 = vrot.lane.b32.xlu0 %v33936_v30, %s30384_s20 }
0x16c7   :  { %17108 = vrot.lane.b32.xlu0 %v33936_v30, %s30385_s5 }
0x16cb   :  { %17266 = vrot.lane.b32.xlu0 %v33953_v4, %s30384_s20 }
0x16cf   :  { %17264 = vrot.lane.b32.xlu0 %v33953_v4, %s30385_s5 }
0x16d3   :  { %17422 = vrot.lane.b32.xlu0 %v33968_v46, %s30384_s20 }
0x16d7   :  { %17420 = vrot.lane.b32.xlu0 %v33968_v46, %s30385_s5  ;;  %s37077_s5 = smov 120  }
0x16ed   :  { %v14966_v41 = vpop.xlane.xlu0 %14965 }
0x16ee   :  { %30105 = vrcp.f32 %v14966_v41  ;;  %v14963_v37 = vpop.xlane.xlu1 %14962 }
0x16ef   :  { %30107 = vrcp.f32 %v14963_v37 }
0x16f1   :  { %v14972_v54 = vpop.xlane.xlu0 %14971 }
0x16f2   :  { %30109 = vrcp.f32 %v14972_v54  ;;  %v14969_v3 = vpop.xlane.xlu1 %14968 }
0x16f3   :  { %30111 = vrcp.f32 %v14969_v3 }
0x16f5   :  { %v14978_v63 = vpop.xlane.xlu0 %14977 }
0x16f6   :  { %30113 = vrcp.f32 %v14978_v63  ;;  %v14975_v29 = vpop.xlane.xlu1 %14974 }
0x16f7   :  { %30115 = vrcp.f32 %v14975_v29 }
0x16fa   :  { %v14984_v14 = vpop.xlane.xlu1 %14983 }
0x16fb   :  { %v30106_v13 = vpop.eup %30105  ;;  %30117 = vrcp.f32 %v14984_v14 }
0x16fc   :  { %v30108_v32 = vpop.eup %30107  ;;  %v15004_v39 = vmul.f32 %v30106_v13, %v34349_v57 }
0x16fd   :  { %v15002_v38 = vmul.f32 %v30108_v32, %v34351_v31 }
0x16fe   :  { %26799 = vst.msk [vmem:[%s36906_s19 + $0x248] sm:$0xff] %vm2109_vm6, %v15004_v39  ;;  %28976 = vmatmul.mubr.msk.f32.vlgmr.msra.gmra.mxu1 %vm2109_vm6, %v15004_v39  ;;  %v16877_v3 = vpop.permute.xlu1 %16876 }
0x16ff   :  { %v30110_v56 = vpop.eup %30109  ;;  %26798 = vst.msk [vmem:[%s36906_s19 + $0x240] sm:$0xff] %vm2109_vm6, %v15002_v38  ;;  %28971 = vmatmul.mubr.msk.f32.vlgmr.msra.gmra.mxu0 %vm2109_vm6, %v15002_v38  ;;  %28984 = vmatpush3.msra.mxu1 %v34116_v44 }
0x1700   :  { %v30112_v57 = vpop.eup %30111  ;;  %v15008_v31 = vmul.f32 %v30110_v56, %v34357_v20  ;;  %28979 = vmatpush3.msra.mxu0 %v34114_v23  ;;  %28980 = vmatprep.mubr.msk.f32.mxu0 %vm30381_vm1, %v37010_v60 }
0x1701   :  { %v15006_v49 = vmul.f32 %v30112_v57, %v34359_v25  ;;  %28985 = vmatprep.mubr.msk.f32.mxu1 %vm30381_vm1, %v37010_v60  ;;  %28988 = vmatprep.subr.mxu0 %v37010_v60 }
0x1702   :  { %26801 = vst.msk [vmem:[%s36906_s19 + $0x258] sm:$0xff] %vm2109_vm6, %v15008_v31  ;;  %28993 = vmatprep.subr.mxu1 %v37010_v60  ;;  %28986 = vmatmul.mubr.msk.f32.vlgmr.msra.gmra.mxu1 %vm2109_vm6, %v15008_v31  ;;  %v16875_v29 = vpop.permute.xlu1 %16874 }
0x1703   :  { %v30114_v23 = vpop.eup %30113  ;;  %26800 = vst.msk [vmem:[%s36906_s19 + $0x250] sm:$0xff] %vm2109_vm6, %v15006_v49  ;;  %28981 = vmatmul.mubr.msk.f32.vlgmr.msra.gmra.mxu0 %vm2109_vm6, %v15006_v49  ;;  %28994 = vmatpush3.msra.mxu1 %v34130_v11 }
0x1704   :  { %v30116_v44 = vpop.eup %30115  ;;  %v15012_v20 = vmul.f32 %v30114_v23, %v34365_v18  ;;  %28989 = vmatpush3.msra.mxu0 %v34120_v50  ;;  %28990 = vmatprep.mubr.msk.f32.mxu0 %vm30381_vm1, %v37010_v60 }
0x1705   :  { %v15010_v25 = vmul.f32 %v30116_v44, %v34367_v42  ;;  %28995 = vmatprep.mubr.msk.f32.mxu1 %vm30381_vm1, %v37010_v60  ;;  %28998 = vmatprep.subr.mxu0 %v37010_v60 }
0x1706   :  { %26803 = vst.msk [vmem:[%s36906_s19 + $0x268] sm:$0xff] %vm2109_vm6, %v15012_v20  ;;  %29003 = vmatprep.subr.mxu1 %v37010_v60  ;;  %28996 = vmatmul.mubr.msk.f32.vlgmr.msra.gmra.mxu1 %vm2109_vm6, %v15012_v20  ;;  %v17033_v38 = vpop.permute.xlu1 %17032 }
0x1707   :  { %26802 = vst.msk [vmem:[%s36906_s19 + $0x260] sm:$0xff] %vm2109_vm6, %v15010_v25  ;;  %28991 = vmatmul.mubr.msk.f32.vlgmr.msra.gmra.mxu0 %vm2109_vm6, %v15010_v25  ;;  %29004 = vmatpush3.msra.mxu1 %v34140_v59 }
0x1708   :  { %v30118_v50 = vpop.eup %30117  ;;  %28999 = vmatpush3.msra.mxu0 %v34138_v8  ;;  %v34498_v11 = vpop.f32.mrf.mxu1  ;;  %29005 = vmatprep.mubr.msk.f32.mxu1 %vm30381_vm1, %v37010_v60 }
0x1709   :  { %v15016_v18 = vmul.f32 %v30118_v50, %v34373_v48  ;;  %v34503_v42 = vpop.f32.mrf.mxu0  ;;  %29013 = vmatprep.subr.mxu1 %v37010_v60  ;;  %29000 = vmatprep.mubr.msk.f32.mxu0 %vm30381_vm1, %v37010_v60 }
0x170a   :  { %v28937_v12 = vpop.f32.mrf.mxu1  ;;  %29008 = vmatprep.subr.mxu0 %v37010_v60 }
0x170b   :  { %26805 = vst.msk [vmem:[%s36906_s19 + $0x278] sm:$0xff] %vm2109_vm6, %v15016_v18  ;;  %29006 = vmatmul.mubr.msk.f32.vlgmr.msra.gmra.mxu1 %vm2109_vm6, %v15016_v18  ;;  %v28932_v59 = vpop.f32.mrf.mxu0 }
0x170c   :  { %29014 = vmatpush3.xpose.msk.msra.mxu1 %vm847_vm4, %v34408_v34  ;;  %29015 = vmatprep.mubr.msk.f32.mxu1 %vm30381_vm1, %v37010_v60 }
0x170d   :  { %29023 = vmatprep.subr.mxu1 %v37010_v60 }
0x170f   :  { %29016 = vmatmul.mubr.msk.f32.vlgmr.msra.gmra.mxu1 %vm847_vm4, %v34412_v6 }
0x1710   :  { %29024 = vmatpush3.xpose.msk.msra.mxu1 %vm847_vm4, %v34420_v15  ;;  %29025 = vmatprep.mubr.msk.f32.mxu1 %vm30381_vm1, %v37010_v60 }
0x1711   :  { %v34525_v8 = vpop.f32.mrf.mxu1  ;;  %29033 = vmatprep.subr.mxu1 %v37010_v60 }
0x1713   :  { %29026 = vmatmul.mubr.msk.f32.vlgmr.msra.gmra.mxu1 %vm847_vm4, %v34426_v27  ;;  %v28947_v48 = vpop.f32.mrf.mxu1 }
0x1714   :  { %29034 = vmatpush3.xpose.msk.msra.mxu1 %vm847_vm4, %v34432_v21  ;;  %29035 = vmatprep.mubr.msk.f32.mxu1 %vm30381_vm1, %v37010_v60 }
0x1715   :  { %v34534_v47 = vpop.f32.mrf.mxu0  ;;  %29043 = vmatprep.subr.mxu1 %v37010_v60 }
0x1717   :  { %29036 = vmatmul.mubr.msk.f32.vlgmr.msra.gmra.mxu1 %vm847_vm4, %v34436_v22  ;;  %v28942_v61 = vpop.f32.mrf.mxu0 }
0x1718   :  { %29044 = vmatpush3.xpose.msk.msra.mxu1 %vm847_vm4, %v34440_v52  ;;  %29045 = vmatprep.mubr.msk.f32.mxu1 %vm30381_vm1, %v37010_v60 }
0x1719   :  { %v34543_v34 = vpop.f32.mrf.mxu1  ;;  %29053 = vmatprep.subr.mxu1 %v37010_v60 }
0x171a   :  { %v34546_v6 = vpop.f32.mrf.mxu0 }
0x171b   :  { %v28957_v15 = vpop.f32.mrf.mxu1 }
0x171c   :  { %v28952_v27 = vpop.f32.mrf.mxu0 }
0x171d   :  { %v34548_v21 = vpop.f32.mrf.mxu1 }
0x171e   :  { %v34550_v41 = vpop.f32.mrf.mxu0 }
0x171f   :  { %v28967_v22 = vpop.f32.mrf.mxu1 }
0x1720   :  { %v28962_v37 = vpop.f32.mrf.mxu0 }
0x172a   :  { %v14981_v54 = vpop.xlane.xlu0 %14980 }
0x172b   :  { %30119 = vrcp.f32 %v14981_v54 }
0x172e   :  { %v16797_v52 = vpop.permute.xlu0 %16796 }
0x172f   :  { %29046 = vmatmul.mubr.msk.f32.vlgmr.msra.gmra.mxu1 %vm847_vm4, %v16797_v52 }
0x1730   :  { %29055 = vmatprep.mubr.msk.f32.mxu1 %vm30381_vm1, %v37010_v60 }
0x1732   :  { %v16955_v63 = vpop.permute.xlu0 %16954 }
0x1733   :  { %29054 = vmatpush3.xpose.msk.msra.mxu1 %vm847_vm4, %v16955_v63 }
0x1734   :  { %29063 = vmatprep.subr.mxu1 %v37010_v60 }
0x1736   :  { %v16953_v14 = vpop.permute.xlu0 %16952 }
0x1737   :  { %29056 = vmatmul.mubr.msk.f32.vlgmr.msra.gmra.mxu1 %vm847_vm4, %v16953_v14 }
0x1738   :  { %v30120_v13 = vpop.eup %30119  ;;  %29065 = vmatprep.mubr.msk.f32.mxu1 %vm30381_vm1, %v37010_v60 }
0x1739   :  { %v15014_v32 = vmul.f32 %v30120_v13, %v34396_v62 }
0x173a   :  { %v17111_v39 = vpop.permute.xlu0 %17110 }
0x173b   :  { %26804 = vst.msk [vmem:[%s36906_s19 + $0x270] sm:$0xff] %vm2109_vm6, %v15014_v32  ;;  %29001 = vmatmul.mubr.msk.f32.vlgmr.msra.gmra.mxu0 %vm2109_vm6, %v15014_v32  ;;  %29064 = vmatpush3.xpose.msk.msra.mxu1 %vm847_vm4, %v17111_v39 }
0x173c   :  { %29009 = vmatpush3.xpose.msk.msra.mxu0 %vm847_vm4, %v34128_v24  ;;  %29010 = vmatprep.mubr.msk.f32.mxu0 %vm30381_vm1, %v37010_v60  ;;  %v17031_v24 = vpop.permute.xlu1 %17030 }
0x173d   :  { %29018 = vmatprep.subr.mxu0 %v37010_v60  ;;  %29073 = vmatprep.subr.mxu1 %v37010_v60 }
0x173e   :  { %v17109_v62 = vpop.permute.xlu0 %17108 }
0x173f   :  { %29011 = vmatmul.mubr.msk.f32.vlgmr.msra.gmra.mxu0 %vm847_vm4, %v34381_v16  ;;  %29066 = vmatmul.mubr.msk.f32.vlgmr.msra.gmra.mxu1 %vm847_vm4, %v17109_v62 }
0x1740   :  { %29019 = vmatpush3.xpose.msk.msra.mxu0 %vm847_vm4, %v34416_v5  ;;  %29020 = vmatprep.mubr.msk.f32.mxu0 %vm30381_vm1, %v37010_v60  ;;  %v17189_v5 = vpop.permute.xlu1 %17188 }
0x1741   :  { %29028 = vmatprep.subr.mxu0 %v37010_v60  ;;  %29075 = vmatprep.mubr.msk.f32.mxu1 %vm30381_vm1, %v37010_v60 }
0x1742   :  { %v17267_v56 = vpop.permute.xlu0 %17266 }
0x1743   :  { %29021 = vmatmul.mubr.msk.f32.vlgmr.msra.gmra.mxu0 %vm847_vm4, %v34422_v33  ;;  %29074 = vmatpush3.xpose.msk.msra.mxu1 %vm847_vm4, %v17267_v56 }
0x1744   :  { %29029 = vmatpush3.xpose.msk.msra.mxu0 %vm847_vm4, %v34430_v36  ;;  %29030 = vmatprep.mubr.msk.f32.mxu0 %vm30381_vm1, %v37010_v60  ;;  %v17187_v36 = vpop.permute.xlu1 %17186 }
0x1745   :  { %29038 = vmatprep.subr.mxu0 %v37010_v60  ;;  %29083 = vmatprep.subr.mxu1 %v37010_v60 }
0x1746   :  { %v17265_v16 = vpop.permute.xlu0 %17264 }
0x1747   :  { %29031 = vmatmul.mubr.msk.f32.vlgmr.msra.gmra.mxu0 %vm847_vm4, %v34434_v35  ;;  %29076 = vmatmul.mubr.msk.f32.vlgmr.msra.gmra.mxu1 %vm847_vm4, %v17265_v16 }
0x1748   :  { %29039 = vmatpush3.xpose.msk.msra.mxu0 %vm847_vm4, %v34438_v1  ;;  %29040 = vmatprep.mubr.msk.f32.mxu0 %vm30381_vm1, %v37010_v60  ;;  %v17345_v1 = vpop.permute.xlu1 %17344 }
0x1749   :  { %29048 = vmatprep.subr.mxu0 %v37010_v60  ;;  %29085 = vmatprep.mubr.msk.f32.mxu1 %vm30381_vm1, %v37010_v60 }
0x174a   :  { %v17423_v33 = vpop.permute.xlu0 %17422 }
0x174b   :  { %29041 = vmatmul.mubr.msk.f32.vlgmr.msra.gmra.mxu0 %vm847_vm4, %v34442_v9  ;;  %29084 = vmatpush3.xpose.msk.msra.mxu1 %vm847_vm4, %v17423_v33 }
0x174c   :  { %29049 = vmatpush3.xpose.msk.msra.mxu0 %vm847_vm4, %v16877_v3  ;;  %29050 = vmatprep.mubr.msk.f32.mxu0 %vm30381_vm1, %v37010_v60  ;;  %v17343_v9 = vpop.permute.xlu1 %17342 }
0x174d   :  { %29058 = vmatprep.subr.mxu0 %v37010_v60  ;;  %29093 = vmatprep.subr.mxu1 %v37010_v60 }
0x174e   :  { %v17421_v35 = vpop.permute.xlu0 %17420 }
0x174f   :  { %29051 = vmatmul.mubr.msk.f32.vlgmr.msra.gmra.mxu0 %vm847_vm4, %v16875_v29  ;;  %29086 = vmatmul.mubr.msk.f32.vlgmr.msra.gmra.mxu1 %vm847_vm4, %v17421_v35 }
0x1750   :  { %29059 = vmatpush3.xpose.msk.msra.mxu0 %vm847_vm4, %v17033_v38  ;;  %29060 = vmatprep.mubr.msk.f32.mxu0 %vm30381_vm1, %v37010_v60 }
0x1751   :  { %29068 = vmatprep.subr.mxu0 %v37010_v60  ;;  %29095 = vmatprep.mubr.msk.f32.mxu1 %vm30381_vm1, %v37010_v60 }
0x1753   :  { %29061 = vmatmul.mubr.msk.f32.vlgmr.msra.gmra.mxu0 %vm847_vm4, %v17031_v24 }
0x1754   :  { %29069 = vmatpush3.xpose.msk.msra.mxu0 %vm847_vm4, %v17189_v5  ;;  %29070 = vmatprep.mubr.msk.f32.mxu0 %vm30381_vm1, %v37010_v60 }
0x1755   :  { %29078 = vmatprep.subr.mxu0 %v37010_v60 }
0x1757   :  { %29071 = vmatmul.mubr.msk.f32.vlgmr.msra.gmra.mxu0 %vm847_vm4, %v17187_v36 }
0x1758   :  { %29079 = vmatpush3.xpose.msk.msra.mxu0 %vm847_vm4, %v17345_v1  ;;  %29080 = vmatprep.mubr.msk.f32.mxu0 %vm30381_vm1, %v37010_v60 }
0x1759   :  { %29088 = vmatprep.subr.mxu0 %v37010_v60 }
0x175b   :  { %29081 = vmatmul.mubr.msk.f32.vlgmr.msra.gmra.mxu0 %vm847_vm4, %v17343_v9 }
0x175c   :  { %29090 = vmatprep.mubr.msk.f32.mxu0 %vm30381_vm1, %v37010_v60 }
0x17be   :  { %v34631_v57 = vpop.f32.mrf.mxu1 }
0x17bf   :  { %v34633_v31 = vpop.f32.mrf.mxu0 }
0x17c0   :  { %v28977_v49 = vpop.f32.mrf.mxu1 }
0x17c1   :  { %v28972_v23 = vpop.f32.mrf.mxu0 }
0x17c2   :  { %v34635_v44 = vpop.f32.mrf.mxu1 }
0x17c3   :  { %v34637_v20 = vpop.f32.mrf.mxu0 }
0x17c4   :  { %v28987_v25 = vpop.f32.mrf.mxu1 }
0x17c5   :  { %v28982_v50 = vpop.f32.mrf.mxu0 }
0x17c6   :  { %v34639_v18 = vpop.f32.mrf.mxu1 }
0x17c7   :  { %v34641_v12 = vpop.f32.mrf.mxu0 }
0x17c8   :  { %v28997_v59 = vpop.f32.mrf.mxu1 }
0x17c9   :  { %v28992_v48 = vpop.f32.mrf.mxu0 }
0x17cb   :  { %v34643_v61 = vpop.f32.mrf.mxu1 }
0x17cd   :  { %v29007_v15 = vpop.f32.mrf.mxu1 }
0x17cf   :  { %v16402_v27 = vpop.f32.mrf.mxu1 }
0x17d0   :  { %v17499_v22 = vmul.f32 0.5, %v16402_v27 }
0x17d1   :  { %v29017_v37 = vpop.f32.mrf.mxu1 }
0x17d2   :  { %v34646_v54 = vadd.f32 %v17499_v22, %v31107_v10 }
0x17d3   :  { %v16558_v52 = vpop.f32.mrf.mxu1 }
0x17d4   :  { %v17533_v3 = vsel %vm2109_vm6, %v34646_v54, -inf  ;;  %v17501_v5 = vmul.f32 0.5, %v16558_v52 }
0x17d5   :  { %17534 = vmax.xlane.f32.xlu0 %v17533_v3  ;;  %v29027_v63 = vpop.f32.mrf.mxu1 }
0x17d6   :  { %v34656_v23 = vadd.f32 %v17501_v5, %v31107_v10 }
0x17d7   :  { %v16714_v29 = vpop.f32.mrf.mxu1 }
0x17d8   :  { %v17503_v9 = vmul.f32 0.5, %v16714_v29  ;;  %v17539_v63 = vsel %vm2109_vm6, %v34656_v23, -inf }
0x17d9   :  { %v29037_v14 = vpop.f32.mrf.mxu1 }
0x17da   :  { %v34664_v15 = vadd.f32 %v17503_v9, %v31107_v10 }
0x17ef   :  { %v16870_v13 = vpop.f32.mrf.mxu1 }
0x17f0   :  { %v17505_v37 = vmul.f32 0.5, %v16870_v13 }
0x17f1   :  { %v29047_v32 = vpop.f32.mrf.mxu1 }
0x17f2   :  { %v34676_v13 = vadd.f32 %v17505_v37, %v31107_v10 }
0x17f7   :  { %v17026_v39 = vpop.f32.mrf.mxu1 }
0x17f9   :  { %v29057_v38 = vpop.f32.mrf.mxu1 }
0x17fb   :  { %v34650_v62 = vpop.f32.mrf.mxu0 }
0x17fd   :  { %v29002_v24 = vpop.f32.mrf.mxu0 }
0x17fe   :  { %v17545_v24 = vsel %vm2109_vm6, %v34664_v15, -inf }
0x17ff   :  { %v16324_v56 = vpop.f32.mrf.mxu0  ;;  %v17182_v16 = vpop.f32.mrf.mxu1 }
0x1800   :  { %v17498_v33 = vmul.f32 0.5, %v16324_v56  ;;  %v17507_v56 = vmul.f32 0.5, %v17026_v39  ;;  %v17509_v9 = vmul.f32 0.5, %v17182_v16 }
0x1801   :  { %v29012_v36 = vpop.f32.mrf.mxu0  ;;  %v29067_v35 = vpop.f32.mrf.mxu1 }
0x1802   :  { %v34653_v1 = vadd.f32 %v17498_v33, %v31107_v10  ;;  %v34694_v16 = vadd.f32 %v17509_v9, %v31107_v10 }
0x1803   :  { %v16480_v49 = vpop.f32.mrf.mxu0 }
0x1804   :  { %v17500_v25 = vmul.f32 0.5, %v16480_v49  ;;  %v17530_v50 = vsel %vm2109_vm6, %v34653_v1, -inf }
0x1805   :  { %17531 = vmax.xlane.f32.xlu1 %v17530_v50  ;;  %v29022_v59 = vpop.f32.mrf.mxu0  ;;  %v34684_v50 = vadd.f32 %v17507_v56, %v31107_v10 }
0x1806   :  { %v34661_v48 = vadd.f32 %v17500_v25, %v31107_v10 }
0x1807   :  { %v16636_v27 = vpop.f32.mrf.mxu0  ;;  %v17338_v22 = vpop.f32.mrf.mxu1 }
0x1808   :  { %v17502_v52 = vmul.f32 0.5, %v16636_v27  ;;  %v17536_v3 = vsel %vm2109_vm6, %v34661_v48, -inf  ;;  %v17551_v27 = vsel %vm2109_vm6, %v34676_v13, -inf }
0x1809   :  { %v29032_v29 = vpop.f32.mrf.mxu0  ;;  %17537 = vmax.xlane.f32.xlu0 %v17536_v3  ;;  %17540 = vmax.xlane.f32.xlu1 %v17539_v63  ;;  %v29077_v14 = vpop.f32.mrf.mxu1 }
0x180a   :  { %v34671_v32 = vadd.f32 %v17502_v52, %v31107_v10  ;;  %v17511_v29 = vmul.f32 0.5, %v17338_v22 }
0x180b   :  { %v16792_v38 = vpop.f32.mrf.mxu0 }
0x180c   :  { %v17504_v5 = vmul.f32 0.5, %v16792_v38  ;;  %v17542_v33 = vsel %vm2109_vm6, %v34671_v32, -inf  ;;  %v17557_v38 = vsel %vm2109_vm6, %v34684_v50, -inf  ;;  %v34706_v9 = vadd.f32 %v17511_v29, %v31107_v10 }
0x180d   :  { %v29042_v36 = vpop.f32.mrf.mxu0  ;;  %17543 = vmax.xlane.f32.xlu0 %v17542_v33  ;;  %17546 = vmax.xlane.f32.xlu1 %v17545_v24 }
0x180e   :  { %v34681_v35 = vadd.f32 %v17504_v5, %v31107_v10  ;;  %v17563_v36 = vsel %vm2109_vm6, %v34694_v16, -inf  ;;  %v17569_v29 = vsel %vm2109_vm6, %v34706_v9, -inf }
0x180f   :  { %v16948_v49 = vpop.f32.mrf.mxu0  ;;  %v17494_v25 = vpop.f32.mrf.mxu1 }
0x1810   :  { %v17506_v59 = vmul.f32 0.5, %v16948_v49  ;;  %v17548_v39 = vsel %vm2109_vm6, %v34681_v35, -inf  ;;  %v17513_v22 = vmul.f32 0.5, %v17494_v25 }
0x1811   :  { %17549 = vmax.xlane.f32.xlu0 %v17548_v39  ;;  %17552 = vmax.xlane.f32.xlu1 %v17551_v27  ;;  %v29052_v37 = vpop.f32.mrf.mxu0  ;;  %v29087_v52 = vpop.f32.mrf.mxu1 }
0x1812   :  { %v34691_v3 = vadd.f32 %v17506_v59, %v31107_v10  ;;  %v34714_v52 = vadd.f32 %v17513_v22, %v31107_v10 }
0x1813   :  { %v17104_v63 = vpop.f32.mrf.mxu0 }
0x1814   :  { %v17508_v14 = vmul.f32 0.5, %v17104_v63  ;;  %v17554_v24 = vsel %vm2109_vm6, %v34691_v3, -inf }
0x1815   :  { %17558 = vmax.xlane.f32.xlu1 %v17557_v38  ;;  %17555 = vmax.xlane.f32.xlu0 %v17554_v24  ;;  %v29062_v56 = vpop.f32.mrf.mxu0  ;;  %v17575_v24 = vsel %vm2109_vm6, %v34714_v52, -inf }
0x1816   :  { %v34701_v5 = vadd.f32 %v17508_v14, %v31107_v10 }
0x1817   :  { %v17260_v33 = vpop.f32.mrf.mxu0 }
0x1818   :  { %v17510_v49 = vmul.f32 0.5, %v17260_v33  ;;  %v17560_v59 = vsel %vm2109_vm6, %v34701_v5, -inf }
0x1819   :  { %17564 = vmax.xlane.f32.xlu1 %v17563_v36  ;;  %17561 = vmax.xlane.f32.xlu0 %v17560_v59  ;;  %v29072_v39 = vpop.f32.mrf.mxu0 }
0x181a   :  { %v34711_v27 = vadd.f32 %v17510_v49, %v31107_v10 }
0x181b   :  { %v17416_v37 = vpop.f32.mrf.mxu0 }
0x181c   :  { %v17512_v63 = vmul.f32 0.5, %v17416_v37  ;;  %v17566_v25 = vsel %vm2109_vm6, %v34711_v27, -inf }
0x181d   :  { %17570 = vmax.xlane.f32.xlu1 %v17569_v29  ;;  %17567 = vmax.xlane.f32.xlu0 %v17566_v25  ;;  %v29082_v14 = vpop.f32.mrf.mxu0 }
0x181e   :  { %v34721_v38 = vadd.f32 %v17512_v63, %v31107_v10 }
0x1820   :  { %v17572_v56 = vsel %vm2109_vm6, %v34721_v38, -inf }
0x1821   :  { %17576 = vmax.xlane.f32.xlu1 %v17575_v24  ;;  %17573 = vmax.xlane.f32.xlu0 %v17572_v56 }
0x1832   :  { %17799 = vrot.lane.b32.xlu1 %v33864_v2, %s30387_s26 }
0x1836   :  { %17875 = vrot.lane.b32.xlu1 %v33874_v43, %s30387_s26 }
0x1837   :  { %17723 = vrot.lane.b32.xlu0 %v33868_v28, %s30387_s26 }
0x183a   :  { %17951 = vrot.lane.b32.xlu1 %v33872_v19, %s30387_s26 }
0x183e   :  { %18027 = vrot.lane.b32.xlu1 %v33880_v26, %s30387_s26 }
0x1842   :  { %18103 = vrot.lane.b32.xlu1 %v33878_v58, %s30387_s26 }
0x1846   :  { %18179 = vrot.lane.b32.xlu1 %v33888_v0, %s30387_s26 }
0x184a   :  { %18255 = vrot.lane.b32.xlu1 %v33886_v45, %s30387_s26 }
0x184e   :  { %18331 = vrot.lane.b32.xlu1 %v33928_v55, %s30387_s26 }
0x1852   :  { %18407 = vrot.lane.b32.xlu1 %v33918_v53, %s30387_s26 }
0x185e   :  { %v17535_v33 = vpop.xlane.xlu0 %17534 }
0x185f   :  { %v17579_v36 = vsub.f32 %v34646_v54, %v17535_v33 }
0x1861   :  { %v17596_v22 = vmul.f32 1.442695, %v17579_v36 }
0x1863   :  { %30121 = vpow2.f32 %v17596_v22 }
0x1870   :  { %v34748_v49 = vpop.eup %30121 }
0x1871   :  { %v17629_v59 = vsel %vm2109_vm6, %v34748_v49, 0.0 }
0x1876   :  { %17630 = vadd.xlane.f32.xlu1 %v17629_v59 }
0x188e   :  { %v17532_v39 = vpop.xlane.xlu1 %17531 }
0x188f   :  { %v17578_v37 = vsub.f32 %v34653_v1, %v17532_v39 }
0x1891   :  { %v17594_v63 = vmul.f32 1.442695, %v17578_v37 }
0x1892   :  { %v17538_v29 = vpop.xlane.xlu0 %17537  ;;  %v17541_v25 = vpop.xlane.xlu1 %17540 }
0x1893   :  { %30123 = vpow2.f32 %v17594_v63  ;;  %v17580_v14 = vsub.f32 %v34661_v48, %v17538_v29  ;;  %v17581_v24 = vsub.f32 %v34656_v23, %v17541_v25 }
0x1895   :  { %v17598_v54 = vmul.f32 1.442695, %v17580_v14  ;;  %v17600_v56 = vmul.f32 1.442695, %v17581_v24 }
0x1896   :  { %v17544_v33 = vpop.xlane.xlu0 %17543  ;;  %v17547_v36 = vpop.xlane.xlu1 %17546 }
0x1897   :  { %30125 = vpow2.f32 %v17598_v54  ;;  %v17582_v22 = vsub.f32 %v34671_v32, %v17544_v33  ;;  %v17583_v59 = vsub.f32 %v34664_v15, %v17547_v36 }
0x1898   :  { %30127 = vpow2.f32 %v17600_v56 }
0x1899   :  { %v17602_v17 = vmul.f32 1.442695, %v17582_v22  ;;  %v17604_v1 = vmul.f32 1.442695, %v17583_v59 }
0x189a   :  { %v17550_v39 = vpop.xlane.xlu0 %17549  ;;  %v17553_v37 = vpop.xlane.xlu1 %17552 }
0x189b   :  { %30129 = vpow2.f32 %v17602_v17  ;;  %v17584_v63 = vsub.f32 %v34681_v35, %v17550_v39  ;;  %v17585_v48 = vsub.f32 %v34676_v13, %v17553_v37 }
0x189c   :  { %30131 = vpow2.f32 %v17604_v1 }
0x189d   :  { %v17606_v23 = vmul.f32 1.442695, %v17584_v63  ;;  %v17608_v29 = vmul.f32 1.442695, %v17585_v48 }
0x189e   :  { %v17556_v25 = vpop.xlane.xlu0 %17555  ;;  %v17559_v14 = vpop.xlane.xlu1 %17558 }
0x189f   :  { %30133 = vpow2.f32 %v17606_v23  ;;  %v17586_v32 = vsub.f32 %v34691_v3, %v17556_v25  ;;  %v17587_v15 = vsub.f32 %v34684_v50, %v17559_v14 }
0x18a0   :  { %v34761_v24 = vpop.eup %30123  ;;  %30135 = vpow2.f32 %v17608_v29 }
0x18a1   :  { %v17610_v54 = vmul.f32 1.442695, %v17586_v32  ;;  %v17612_v56 = vmul.f32 1.442695, %v17587_v15  ;;  %v17626_v17 = vsel %vm2109_vm6, %v34761_v24, 0.0 }
0x18a2   :  { %v17562_v35 = vpop.xlane.xlu0 %17561  ;;  %17627 = vadd.xlane.f32.xlu0 %v17626_v17  ;;  %v17565_v13 = vpop.xlane.xlu1 %17564 }
0x18a3   :  { %30137 = vpow2.f32 %v17610_v54  ;;  %v17588_v33 = vsub.f32 %v34701_v5, %v17562_v35  ;;  %v17589_v36 = vsub.f32 %v34694_v16, %v17565_v13 }
0x18a4   :  { %v34767_v22 = vpop.eup %30125  ;;  %30139 = vpow2.f32 %v17612_v56 }
0x18a5   :  { %v34769_v50 = vpop.eup %30127  ;;  %v17614_v3 = vmul.f32 1.442695, %v17588_v33  ;;  %v17616_v59 = vmul.f32 1.442695, %v17589_v36  ;;  %v17632_v1 = vsel %vm2109_vm6, %v34767_v22, 0.0 }
0x18a6   :  { %v17568_v39 = vpop.xlane.xlu0 %17567  ;;  %17633 = vadd.xlane.f32.xlu0 %v17632_v1  ;;  %v17635_v37 = vsel %vm2109_vm6, %v34769_v50, 0.0  ;;  %v17571_v63 = vpop.xlane.xlu1 %17570 }
0x18a7   :  { %30141 = vpow2.f32 %v17614_v3  ;;  %v17590_v5 = vsub.f32 %v34711_v27, %v17568_v39  ;;  %17636 = vadd.xlane.f32.xlu1 %v17635_v37  ;;  %v17591_v16 = vsub.f32 %v34706_v9, %v17571_v63 }
0x18a8   :  { %v34777_v48 = vpop.eup %30129  ;;  %30143 = vpow2.f32 %v17616_v59 }
0x18a9   :  { %v34779_v23 = vpop.eup %30131  ;;  %v17618_v29 = vmul.f32 1.442695, %v17590_v5  ;;  %v17620_v25 = vmul.f32 1.442695, %v17591_v16  ;;  %v17638_v14 = vsel %vm2109_vm6, %v34777_v48, 0.0 }
0x18aa   :  { %v17574_v32 = vpop.xlane.xlu0 %17573  ;;  %17639 = vadd.xlane.f32.xlu0 %v17638_v14  ;;  %v17641_v15 = vsel %vm2109_vm6, %v34779_v23, 0.0  ;;  %v17577_v54 = vpop.xlane.xlu1 %17576 }
0x18ab   :  { %30145 = vpow2.f32 %v17618_v29  ;;  %17642 = vadd.xlane.f32.xlu1 %v17641_v15  ;;  %v17593_v9 = vsub.f32 %v34714_v52, %v17577_v54 }
0x18ac   :  { %v34786_v27 = vpop.eup %30133  ;;  %30147 = vpow2.f32 %v17620_v25 }
0x18ad   :  { %v34788_v56 = vpop.eup %30135  ;;  %v17624_v17 = vmul.f32 1.442695, %v17593_v9  ;;  %v17644_v35 = vsel %vm2109_vm6, %v34786_v27, 0.0 }
0x18ae   :  { %v17724_v13 = vpop.permute.xlu0 %17723  ;;  %17645 = vadd.xlane.f32.xlu0 %v17644_v35  ;;  %v17647_v33 = vsel %vm2109_vm6, %v34788_v56, 0.0  ;;  %v17800_v36 = vpop.permute.xlu1 %17799 }
0x18af   :  { %17648 = vadd.xlane.f32.xlu1 %v17647_v33  ;;  %29089 = vmatpush3.msra.mxu0 %v17724_v13  ;;  %30149 = vpow2.f32 %v17624_v17  ;;  %v17592_v13 = vsub.f32 %v34721_v38, %v17574_v32 }
0x18b0   :  { %v34794_v3 = vpop.eup %30137  ;;  %29094 = vmatpush3.msra.mxu1 %v17800_v36  ;;  %29098 = vmatprep.subr.mxu0 %v37010_v60 }
0x18b1   :  { %v34797_v52 = vpop.eup %30139  ;;  %v17650_v59 = vsel %vm2109_vm6, %v34794_v3, 0.0  ;;  %29103 = vmatprep.subr.mxu1 %v37010_v60  ;;  %v17622_v36 = vmul.f32 1.442695, %v17592_v13 }
0x18b2   :  { %17651 = vadd.xlane.f32.xlu0 %v17650_v59  ;;  %v17653_v1 = vsel %vm2109_vm6, %v34797_v52, 0.0  ;;  %v34828_v9 = vpop.permute.xlu1 %17875 }
0x18b3   :  { %17654 = vadd.xlane.f32.xlu1 %v17653_v1  ;;  %30151 = vpow2.f32 %v17622_v36 }
0x18b4   :  { %v34804_v39 = vpop.eup %30141 }
0x18b5   :  { %v34806_v37 = vpop.eup %30143  ;;  %v17656_v63 = vsel %vm2109_vm6, %v34804_v39, 0.0 }
0x18b6   :  { %17657 = vadd.xlane.f32.xlu0 %v17656_v63  ;;  %v17659_v5 = vsel %vm2109_vm6, %v34806_v37, 0.0  ;;  %v17952_v17 = vpop.permute.xlu1 %17951 }
0x18b7   :  { %17660 = vadd.xlane.f32.xlu1 %v17659_v5 }
0x18b8   :  { %v34812_v16 = vpop.eup %30145 }
0x18b9   :  { %v34814_v29 = vpop.eup %30147  ;;  %v17662_v25 = vsel %vm2109_vm6, %v34812_v16, 0.0 }
0x18ba   :  { %17663 = vadd.xlane.f32.xlu0 %v17662_v25  ;;  %v17665_v14 = vsel %vm2109_vm6, %v34814_v29, 0.0  ;;  %v34838_v35 = vpop.permute.xlu1 %18027 }
0x18bb   :  { %17666 = vadd.xlane.f32.xlu1 %v17665_v14 }
0x18bc   :  { %v34820_v15 = vpop.eup %30149 }
0x18bd   :  { %v17671_v54 = vsel %vm2109_vm6, %v34820_v15, 0.0 }
0x18be   :  { %17672 = vadd.xlane.f32.xlu0 %v17671_v54  ;;  %v34845_v33 = vpop.permute.xlu1 %18103 }
0x18c0   :  { %v34863_v32 = vpop.eup %30151 }
0x18c1   :  { %v17668_v5 = vsel %vm2109_vm6, %v34863_v32, 0.0 }
0x18c2   :  { %v34849_v59 = vpop.permute.xlu1 %18179 }
0x18c6   :  { %v34855_v1 = vpop.permute.xlu1 %18255 }
0x18ca   :  { %v34859_v38 = vpop.permute.xlu1 %18331 }
0x18cc   :  { %18559 = vrot.lane.b32.xlu1 %v33936_v30, %s30387_s26 }
0x18ce   :  { %v34867_v63 = vpop.permute.xlu1 %18407 }
0x18d0   :  { %18635 = vrot.lane.b32.xlu1 %v33962_v7, %s30387_s26 }
0x18d4   :  { %18711 = vrot.lane.b32.xlu1 %v33953_v4, %s30387_s26  ;;  %18483 = vrot.lane.b32.xlu0 %v33946_v40, %s30387_s26 }
0x18d8   :  { %18787 = vrot.lane.b32.xlu1 %v33972_v51, %s30387_s26  ;;  %19333 = vrot.lane.b32.xlu0 %v33868_v28, %s30388_s29 }
0x18dc   :  { %19331 = vrot.lane.b32.xlu0 %v33868_v28, %s37077_s5 }
0x18e0   :  { %19489 = vrot.lane.b32.xlu0 %v33874_v43, %s30388_s29 }
0x18e4   :  { %19487 = vrot.lane.b32.xlu0 %v33874_v43, %s37077_s5 }
0x18e8   :  { %19645 = vrot.lane.b32.xlu0 %v33880_v26, %s30388_s29 }
0x18ec   :  { %19643 = vrot.lane.b32.xlu0 %v33880_v26, %s37077_s5 }
0x18f0   :  { %19801 = vrot.lane.b32.xlu0 %v33888_v0, %s30388_s29 }
0x18f4   :  { %19799 = vrot.lane.b32.xlu0 %v33888_v0, %s37077_s5 }
0x18f8   :  { %19957 = vrot.lane.b32.xlu0 %v33928_v55, %s30388_s29 }
0x18fc   :  { %17669 = vadd.xlane.f32.xlu1 %v17668_v5  ;;  %19955 = vrot.lane.b32.xlu0 %v33928_v55, %s37077_s5 }
0x18ff   :  { %v17631_v25 = vpop.xlane.xlu1 %17630 }
0x1900   :  { %30153 = vrcp.f32 %v17631_v25  ;;  %20113 = vrot.lane.b32.xlu0 %v33946_v40, %s30388_s29 }
0x1904   :  { %20111 = vrot.lane.b32.xlu0 %v33946_v40, %s37077_s5 }
0x1908   :  { %20269 = vrot.lane.b32.xlu0 %v33962_v7, %s30388_s29 }
0x190c   :  { %20267 = vrot.lane.b32.xlu0 %v33962_v7, %s37077_s5 }
0x190d   :  { %v30154_v14 = vpop.eup %30153  ;;  %18863 = vrot.lane.b32.xlu1 %v33968_v46, %s30387_s26  ;;  %s37085_s26 = smov 88  }
0x190e   :  { %v17677_v54 = vmul.f32 %v30154_v14, %v34748_v49 }
0x1910   :  { %26855 = vst.msk [vmem:[%s36906_s19 + $0x288] sm:$0xff] %vm2109_vm6, %v17677_v54  ;;  %29096 = vmatmul.mubr.msk.f32.vlgmr.msra.gmra.mxu1 %vm2109_vm6, %v17677_v54  ;;  %20425 = vrot.lane.b32.xlu0 %v33972_v51, %s30388_s29 }
0x1911   :  { %19411 = vrot.lane.b32.xlu1 %v33864_v2, %s30388_s29  ;;  %29104 = vmatpush3.msra.mxu1 %v17952_v17 }
0x1912   :  { %29105 = vmatprep.mubr.msk.f32.mxu1 %vm30381_vm1, %v37010_v60  ;;  %29113 = vmatprep.subr.mxu1 %v37010_v60 }
0x1914   :  { %20423 = vrot.lane.b32.xlu0 %v33972_v51, %s37077_s5 }
0x1915   :  { %19409 = vrot.lane.b32.xlu1 %v33864_v2, %s37077_s5 }
0x1919   :  { %19567 = vrot.lane.b32.xlu1 %v33872_v19, %s30388_s29 }
0x191d   :  { %19565 = vrot.lane.b32.xlu1 %v33872_v19, %s37077_s5 }
0x1921   :  { %19723 = vrot.lane.b32.xlu1 %v33878_v58, %s30388_s29 }
0x1925   :  { %19721 = vrot.lane.b32.xlu1 %v33878_v58, %s37077_s5 }
0x1929   :  { %19879 = vrot.lane.b32.xlu1 %v33886_v45, %s30388_s29 }
0x192b   :  { %v17628_v49 = vpop.xlane.xlu0 %17627 }
0x192c   :  { %30155 = vrcp.f32 %v17628_v49 }
0x192d   :  { %19877 = vrot.lane.b32.xlu1 %v33886_v45, %s37077_s5 }
0x192f   :  { %v17634_v17 = vpop.xlane.xlu0 %17633 }
0x1930   :  { %30157 = vrcp.f32 %v17634_v17  ;;  %v17637_v13 = vpop.xlane.xlu1 %17636 }
0x1931   :  { %30159 = vrcp.f32 %v17637_v13  ;;  %20035 = vrot.lane.b32.xlu1 %v33918_v53, %s30388_s29 }
0x1933   :  { %v17640_v36 = vpop.xlane.xlu0 %17639 }
0x1934   :  { %30161 = vrcp.f32 %v17640_v36  ;;  %v17643_v5 = vpop.xlane.xlu1 %17642 }
0x1935   :  { %30163 = vrcp.f32 %v17643_v5  ;;  %20033 = vrot.lane.b32.xlu1 %v33918_v53, %s37077_s5 }
0x1937   :  { %v17646_v25 = vpop.xlane.xlu0 %17645 }
0x1938   :  { %30165 = vrcp.f32 %v17646_v25  ;;  %v17649_v14 = vpop.xlane.xlu1 %17648 }
0x1939   :  { %v30156_v54 = vpop.eup %30155  ;;  %30167 = vrcp.f32 %v17649_v14  ;;  %20191 = vrot.lane.b32.xlu1 %v33936_v30, %s30388_s29 }
0x193a   :  { %v17675_v49 = vmul.f32 %v30156_v54, %v34761_v24 }
0x193b   :  { %v17652_v17 = vpop.xlane.xlu0 %17651 }
0x193c   :  { %26854 = vst.msk [vmem:[%s36906_s19 + $0x280] sm:$0xff] %vm2109_vm6, %v17675_v49  ;;  %30169 = vrcp.f32 %v17652_v17  ;;  %v17655_v13 = vpop.xlane.xlu1 %17654  ;;  %29091 = vmatmul.mubr.msk.f32.vlgmr.msra.gmra.mxu0 %vm2109_vm6, %v17675_v49 }
0x193d   :  { %v30158_v36 = vpop.eup %30157  ;;  %30171 = vrcp.f32 %v17655_v13  ;;  %20189 = vrot.lane.b32.xlu1 %v33936_v30, %s37077_s5  ;;  %29099 = vmatpush3.msra.mxu0 %v34828_v9 }
0x193e   :  { %v30160_v5 = vpop.eup %30159  ;;  %v17679_v24 = vmul.f32 %v30158_v36, %v34767_v22  ;;  %29100 = vmatprep.mubr.msk.f32.mxu0 %vm30381_vm1, %v37010_v60  ;;  %29108 = vmatprep.subr.mxu0 %v37010_v60 }
0x193f   :  { %v17681_v25 = vmul.f32 %v30160_v5, %v34769_v50  ;;  %v17658_v14 = vpop.xlane.xlu0 %17657 }
0x1940   :  { %26856 = vst.msk [vmem:[%s36906_s19 + $0x290] sm:$0xff] %vm2109_vm6, %v17679_v24  ;;  %30173 = vrcp.f32 %v17658_v14  ;;  %v17661_v54 = vpop.xlane.xlu1 %17660  ;;  %29101 = vmatmul.mubr.msk.f32.vlgmr.msra.gmra.mxu0 %vm2109_vm6, %v17679_v24 }
0x1941   :  { %v30162_v9 = vpop.eup %30161  ;;  %26857 = vst.msk [vmem:[%s36906_s19 + $0x298] sm:$0xff] %vm2109_vm6, %v17681_v25  ;;  %30175 = vrcp.f32 %v17661_v54  ;;  %20347 = vrot.lane.b32.xlu1 %v33953_v4, %s30388_s29  ;;  %29106 = vmatmul.mubr.msk.f32.vlgmr.msra.gmra.mxu1 %vm2109_vm6, %v17681_v25 }
0x1942   :  { %v30164_v22 = vpop.eup %30163  ;;  %v17683_v50 = vmul.f32 %v30162_v9, %v34777_v48  ;;  %29109 = vmatpush3.msra.mxu0 %v34838_v35  ;;  %29114 = vmatpush3.msra.mxu1 %v34845_v33 }
0x1943   :  { %v17685_v49 = vmul.f32 %v30164_v22, %v34779_v23  ;;  %v17664_v17 = vpop.xlane.xlu0 %17663  ;;  %29110 = vmatprep.mubr.msk.f32.mxu0 %vm30381_vm1, %v37010_v60  ;;  %29115 = vmatprep.mubr.msk.f32.mxu1 %vm30381_vm1, %v37010_v60 }
0x1944   :  { %26858 = vst.msk [vmem:[%s36906_s19 + $0x2a0] sm:$0xff] %vm2109_vm6, %v17683_v50  ;;  %30177 = vrcp.f32 %v17664_v17  ;;  %29118 = vmatprep.subr.mxu0 %v37010_v60  ;;  %29123 = vmatprep.subr.mxu1 %v37010_v60  ;;  %v17667_v48 = vpop.xlane.xlu1 %17666 }
0x1945   :  { %v30166_v35 = vpop.eup %30165  ;;  %26859 = vst.msk [vmem:[%s36906_s19 + $0x2a8] sm:$0xff] %vm2109_vm6, %v17685_v49  ;;  %30179 = vrcp.f32 %v17667_v48  ;;  %20345 = vrot.lane.b32.xlu1 %v33953_v4, %s37077_s5  ;;  %29111 = vmatmul.mubr.msk.f32.vlgmr.msra.gmra.mxu0 %vm2109_vm6, %v17683_v50 }
0x1946   :  { %v30168_v23 = vpop.eup %30167  ;;  %v17687_v33 = vmul.f32 %v30166_v35, %v34786_v27  ;;  %29116 = vmatmul.mubr.msk.f32.vlgmr.msra.gmra.mxu1 %vm2109_vm6, %v17685_v49  ;;  %29119 = vmatpush3.msra.mxu0 %v34849_v59 }
0x1947   :  { %v17689_v13 = vmul.f32 %v30168_v23, %v34788_v56  ;;  %29124 = vmatpush3.msra.mxu1 %v34855_v1  ;;  %29120 = vmatprep.mubr.msk.f32.mxu0 %vm30381_vm1, %v37010_v60  ;;  %v17673_v36 = vpop.xlane.xlu0 %17672 }
0x1948   :  { %26860 = vst.msk [vmem:[%s36906_s19 + $0x2b0] sm:$0xff] %vm2109_vm6, %v17687_v33  ;;  %29125 = vmatprep.mubr.msk.f32.mxu1 %vm30381_vm1, %v37010_v60  ;;  %29128 = vmatprep.subr.mxu0 %v37010_v60  ;;  %v18560_v27 = vpop.permute.xlu1 %18559  ;;  %30181 = vrcp.f32 %v17673_v36 }
0x1949   :  { %v30170_v59 = vpop.eup %30169  ;;  %26861 = vst.msk [vmem:[%s36906_s19 + $0x2b8] sm:$0xff] %vm2109_vm6, %v17689_v13  ;;  %29133 = vmatprep.subr.mxu1 %v37010_v60  ;;  %20503 = vrot.lane.b32.xlu1 %v33968_v46, %s30388_s29 }
0x194a   :  { %v30172_v56 = vpop.eup %30171  ;;  %v17691_v1 = vmul.f32 %v30170_v59, %v34794_v3  ;;  %29121 = vmatmul.mubr.msk.f32.vlgmr.msra.gmra.mxu0 %vm2109_vm6, %v17687_v33  ;;  %29126 = vmatmul.mubr.msk.f32.vlgmr.msra.gmra.mxu1 %vm2109_vm6, %v17689_v13 }
0x194b   :  { %v17693_v5 = vmul.f32 %v30172_v56, %v34797_v52  ;;  %29129 = vmatpush3.msra.mxu0 %v34859_v38  ;;  %29134 = vmatpush3.msra.mxu1 %v34867_v63  ;;  %v18484_v24 = vpop.permute.xlu0 %18483 }
0x194c   :  { %26862 = vst.msk [vmem:[%s36906_s19 + $0x2c0] sm:$0xff] %vm2109_vm6, %v17691_v1  ;;  %29130 = vmatprep.mubr.msk.f32.mxu0 %vm30381_vm1, %v37010_v60  ;;  %29135 = vmatprep.mubr.msk.f32.mxu1 %vm30381_vm1, %v37010_v60  ;;  %v18636_v3 = vpop.permute.xlu1 %18635 }
0x194d   :  { %v30174_v25 = vpop.eup %30173  ;;  %26863 = vst.msk [vmem:[%s36906_s19 + $0x2c8] sm:$0xff] %vm2109_vm6, %v17693_v5  ;;  %29138 = vmatprep.subr.mxu0 %v37010_v60  ;;  %29143 = vmatprep.subr.mxu1 %v37010_v60 }
0x194e   :  { %v30176_v52 = vpop.eup %30175  ;;  %v17695_v38 = vmul.f32 %v30174_v25, %v34804_v39  ;;  %20501 = vrot.lane.b32.xlu1 %v33968_v46, %s37077_s5  ;;  %29131 = vmatmul.mubr.msk.f32.vlgmr.msra.gmra.mxu0 %vm2109_vm6, %v17691_v1 }
0x194f   :  { %v17697_v63 = vmul.f32 %v30176_v52, %v34806_v37  ;;  %29136 = vmatmul.mubr.msk.f32.vlgmr.msra.gmra.mxu1 %vm2109_vm6, %v17693_v5  ;;  %29139 = vmatpush3.msra.mxu0 %v18484_v24  ;;  %v19334_v13 = vpop.permute.xlu0 %19333 }
0x1950   :  { %26864 = vst.msk [vmem:[%s36906_s19 + $0x2d0] sm:$0xff] %vm2109_vm6, %v17695_v38  ;;  %29144 = vmatpush3.msra.mxu1 %v18560_v27  ;;  %29140 = vmatprep.mubr.msk.f32.mxu0 %vm30381_vm1, %v37010_v60  ;;  %v18712_v39 = vpop.permute.xlu1 %18711 }
0x1951   :  { %v30178_v14 = vpop.eup %30177  ;;  %26865 = vst.msk [vmem:[%s36906_s19 + $0x2d8] sm:$0xff] %vm2109_vm6, %v17697_v63  ;;  %29145 = vmatprep.mubr.msk.f32.mxu1 %vm30381_vm1, %v37010_v60  ;;  %29148 = vmatprep.subr.mxu0 %v37010_v60 }
0x1952   :  { %v30180_v37 = vpop.eup %30179  ;;  %v17699_v54 = vmul.f32 %v30178_v14, %v34812_v16  ;;  %29153 = vmatprep.subr.mxu1 %v37010_v60  ;;  %29141 = vmatmul.mubr.msk.f32.vlgmr.msra.gmra.mxu0 %vm2109_vm6, %v17695_v38  ;;  %v26756_v16 = vld [vmem:[%s36907_s6 + $0x10] sm:$0xff] }
0x1953   :  { %v17701_v9 = vmul.f32 %v30180_v37, %v34814_v29  ;;  %29146 = vmatmul.mubr.msk.f32.vlgmr.msra.gmra.mxu1 %vm2109_vm6, %v17697_v63  ;;  %29149 = vmatpush3.msra.mxu0 %v18636_v3  ;;  %v18940_v29 = vrot.slane %v26756_v16, 4 }
0x1954   :  { %26866 = vst.msk [vmem:[%s36906_s19 + $0x2e0] sm:$0xff] %vm2109_vm6, %v17699_v54  ;;  %29154 = vmatpush3.msra.mxu1 %v18712_v39  ;;  %29150 = vmatprep.mubr.msk.f32.mxu0 %vm30381_vm1, %v37010_v60  ;;  %v18788_v22 = vpop.permute.xlu1 %18787 }
0x1955   :  { %26867 = vst.msk [vmem:[%s36906_s19 + $0x2e8] sm:$0xff] %vm2109_vm6, %v17701_v9  ;;  %29155 = vmatprep.mubr.msk.f32.mxu1 %vm30381_vm1, %v37010_v60  ;;  %29158 = vmatprep.subr.mxu0 %v37010_v60  ;;  %v30182_v50 = vpop.eup %30181 }
0x1956   :  { %29151 = vmatmul.mubr.msk.f32.vlgmr.msra.gmra.mxu0 %vm2109_vm6, %v17699_v54  ;;  %29163 = vmatprep.subr.mxu1 %v37010_v60  ;;  %v17705_v49 = vmul.f32 %v30182_v50, %v34820_v15 }
0x1957   :  { %29156 = vmatmul.mubr.msk.f32.vlgmr.msra.gmra.mxu1 %vm2109_vm6, %v17701_v9  ;;  %29159 = vmatpush3.msra.mxu0 %v18788_v22 }
0x1958   :  { %29165 = vmatprep.mubr.msk.f32.mxu1 %vm30381_vm1, %v37010_v60  ;;  %29160 = vmatprep.mubr.msk.f32.mxu0 %vm30381_vm1, %v37010_v60  ;;  %26869 = vst.msk [vmem:[%s36906_s19 + $0x2f8] sm:$0xff] %vm2109_vm6, %v17705_v49 }
0x1959   :  { %29168 = vmatprep.subr.msk.mxu0 %vm6257_vm7, %v18940_v29 }
0x1985   :  { %v17670_v17 = vpop.xlane.xlu1 %17669 }
0x1986   :  { %30183 = vrcp.f32 %v17670_v17 }
0x1989   :  { %v18864_v48 = vpop.permute.xlu1 %18863 }
0x198a   :  { %29164 = vmatpush3.msra.mxu1 %v18864_v48 }
0x198b   :  { %29166 = vmatmul.mubr.msk.f32.vlgmr.msra.gmra.mxu1 %vm2109_vm6, %v17705_v49  ;;  %29194 = vmatprep.subr.msk.mxu1 %vm6257_vm7, %v26756_v16 }
0x198c   :  { %29196 = vmatprep.mubr.msk.f32.mxu1 %vm847_vm4, %v34503_v42  ;;  %29195 = vmatpush3.msk.msra.mxu1 %vm6257_vm7, %v26756_v16 }
0x198d   :  { %v19412_v15 = vpop.permute.xlu1 %19411  ;;  %29225 = vmatprep.subr.mxu1 %v37010_v60 }
0x198f   :  { %29197 = vmatmul.mubr.msk.f32.vlgmr.msra.gmra.mxu1 %vm847_vm4, %v34498_v11 }
0x1990   :  { %29226 = vmatpush3.xpose.msk.msra.mxu1 %vm847_vm4, %v19412_v15  ;;  %29199 = vmatprep.mubr.msk.f32.mxu1 %vm847_vm4, %v34534_v47 }
0x1991   :  { %v19410_v35 = vpop.permute.xlu1 %19409  ;;  %29235 = vmatprep.subr.mxu1 %v37010_v60 }
0x1993   :  { %v30184_v23 = vpop.eup %30183  ;;  %29200 = vmatmul.mubr.msk.f32.gmra.mxu1 %vm847_vm4, %v34525_v8 }
0x1994   :  { %v17703_v42 = vmul.f32 %v30184_v23, %v34863_v32  ;;  %29202 = vmatprep.mubr.msk.f32.mxu1 %vm847_vm4, %v34546_v6 }
0x1995   :  { %v19568_v33 = vpop.permute.xlu1 %19567 }
0x1996   :  { %26868 = vst.msk [vmem:[%s36906_s19 + $0x2f0] sm:$0xff] %vm2109_vm6, %v17703_v42  ;;  %29161 = vmatmul.mubr.msk.f32.vlgmr.msra.gmra.mxu0 %vm2109_vm6, %v17703_v42 }
0x1997   :  { %29203 = vmatmul.mubr.msk.f32.gmra.mxu1 %vm847_vm4, %v34543_v34  ;;  %29169 = vmatpush3.msk.msra.mxu0 %vm6257_vm7, %v18940_v29 }
0x1998   :  { %29205 = vmatprep.mubr.msk.f32.mxu1 %vm847_vm4, %v34550_v41  ;;  %29220 = vmatprep.subr.mxu0 %v37010_v60 }
0x1999   :  { %v19566_v11 = vpop.permute.xlu1 %19565 }
0x199b   :  { %29206 = vmatmul.mubr.msk.f32.gmra.mxu1 %vm847_vm4, %v34548_v21 }
0x199c   :  { %29208 = vmatprep.mubr.msk.f32.mxu1 %vm847_vm4, %v34633_v31 }
0x199d   :  { %v19724_v8 = vpop.permute.xlu1 %19723 }
0x199f   :  { %29209 = vmatmul.mubr.msk.f32.gmra.mxu1 %vm847_vm4, %v34631_v57 }
0x19a0   :  { %29211 = vmatprep.mubr.msk.f32.mxu1 %vm847_vm4, %v34637_v20 }
0x19a1   :  { %v19722_v47 = vpop.permute.xlu1 %19721 }
0x19a3   :  { %29212 = vmatmul.mubr.msk.f32.gmra.mxu1 %vm847_vm4, %v34635_v44 }
0x19a4   :  { %29214 = vmatprep.mubr.msk.f32.mxu1 %vm847_vm4, %v34641_v12 }
0x19a5   :  { %v19880_v34 = vpop.permute.xlu1 %19879 }
0x19a7   :  { %29215 = vmatmul.mubr.msk.f32.gmra.mxu1 %vm847_vm4, %v34639_v18 }
0x19a8   :  { %29217 = vmatprep.mubr.msk.f32.mxu1 %vm847_vm4, %v34650_v62 }
0x19a9   :  { %v19878_v6 = vpop.permute.xlu1 %19877 }
0x19ab   :  { %29218 = vmatmul.mubr.msk.f32.gmra.mxu1 %vm847_vm4, %v34643_v61 }
0x19ac   :  { %29227 = vmatprep.mubr.msk.f32.mxu1 %vm30381_vm1, %v37010_v60 }
0x19ad   :  { %v20036_v21 = vpop.permute.xlu1 %20035 }
0x19af   :  { %29228 = vmatmul.mubr.msk.f32.vlgmr.msra.gmra.mxu1 %vm847_vm4, %v19410_v35  ;;  %v19332_v35 = vpop.permute.xlu0 %19331 }
0x19b0   :  { %29236 = vmatpush3.xpose.msk.msra.mxu1 %vm847_vm4, %v19568_v33  ;;  %29237 = vmatprep.mubr.msk.f32.mxu1 %vm30381_vm1, %v37010_v60 }
0x19b1   :  { %v20034_v41 = vpop.permute.xlu1 %20033  ;;  %29245 = vmatprep.subr.mxu1 %v37010_v60 }
0x19b3   :  { %29238 = vmatmul.mubr.msk.f32.vlgmr.msra.gmra.mxu1 %vm847_vm4, %v19566_v11  ;;  %v19490_v23 = vpop.permute.xlu0 %19489 }
0x19b4   :  { %29246 = vmatpush3.xpose.msk.msra.mxu1 %vm847_vm4, %v19724_v8  ;;  %29247 = vmatprep.mubr.msk.f32.mxu1 %vm30381_vm1, %v37010_v60 }
0x19b5   :  { %v20192_v57 = vpop.permute.xlu1 %20191  ;;  %29255 = vmatprep.subr.mxu1 %v37010_v60 }
0x19b7   :  { %29248 = vmatmul.mubr.msk.f32.vlgmr.msra.gmra.mxu1 %vm847_vm4, %v19722_v47  ;;  %v19488_v42 = vpop.permute.xlu0 %19487 }
0x19b8   :  { %29256 = vmatpush3.xpose.msk.msra.mxu1 %vm847_vm4, %v19880_v34  ;;  %29257 = vmatprep.mubr.msk.f32.mxu1 %vm30381_vm1, %v37010_v60 }
0x19b9   :  { %v20190_v31 = vpop.permute.xlu1 %20189  ;;  %29265 = vmatprep.subr.mxu1 %v37010_v60 }
0x19bb   :  { %29258 = vmatmul.mubr.msk.f32.vlgmr.msra.gmra.mxu1 %vm847_vm4, %v19878_v6  ;;  %v19646_v33 = vpop.permute.xlu0 %19645 }
0x19bc   :  { %29266 = vmatpush3.xpose.msk.msra.mxu1 %vm847_vm4, %v20036_v21  ;;  %29267 = vmatprep.mubr.msk.f32.mxu1 %vm30381_vm1, %v37010_v60 }
0x19bd   :  { %v20348_v44 = vpop.permute.xlu1 %20347  ;;  %29275 = vmatprep.subr.mxu1 %v37010_v60 }
0x19bf   :  { %29268 = vmatmul.mubr.msk.f32.vlgmr.msra.gmra.mxu1 %vm847_vm4, %v20034_v41  ;;  %v19644_v11 = vpop.permute.xlu0 %19643 }
0x19c0   :  { %29276 = vmatpush3.xpose.msk.msra.mxu1 %vm847_vm4, %v20192_v57  ;;  %29277 = vmatprep.mubr.msk.f32.mxu1 %vm30381_vm1, %v37010_v60 }
0x19c1   :  { %v20346_v20 = vpop.permute.xlu1 %20345  ;;  %29285 = vmatprep.subr.mxu1 %v37010_v60 }
0x19c3   :  { %29278 = vmatmul.mubr.msk.f32.vlgmr.msra.gmra.mxu1 %vm847_vm4, %v20190_v31  ;;  %v19802_v8 = vpop.permute.xlu0 %19801 }
0x19c4   :  { %29286 = vmatpush3.xpose.msk.msra.mxu1 %vm847_vm4, %v20348_v44  ;;  %29287 = vmatprep.mubr.msk.f32.mxu1 %vm30381_vm1, %v37010_v60 }
0x19c5   :  { %v20504_v18 = vpop.permute.xlu1 %20503  ;;  %29295 = vmatprep.subr.mxu1 %v37010_v60 }
0x19c7   :  { %29288 = vmatmul.mubr.msk.f32.vlgmr.msra.gmra.mxu1 %vm847_vm4, %v20346_v20  ;;  %v19800_v47 = vpop.permute.xlu0 %19799 }
0x19c8   :  { %29296 = vmatpush3.xpose.msk.msra.mxu1 %vm847_vm4, %v20504_v18  ;;  %29297 = vmatprep.mubr.msk.f32.mxu1 %vm30381_vm1, %v37010_v60 }
0x19c9   :  { %v20502_v12 = vpop.permute.xlu1 %20501  ;;  %29305 = vmatprep.subr.mxu1 %v37010_v60 }
0x19cb   :  { %29298 = vmatmul.mubr.msk.f32.vlgmr.msra.gmra.mxu1 %vm847_vm4, %v20502_v12  ;;  %v19958_v6 = vpop.permute.xlu0 %19957 }
0x19cc   :  { %29307 = vmatprep.mubr.msk.f32.mxu1 %vm30381_vm1, %v37010_v60 }
0x19cf   :  { %v19956_v31 = vpop.permute.xlu0 %19955 }
0x19d0   :  { %v17871_v61 = vpop.f32.mrf.mxu1 }
0x19d2   :  { %v29097_v62 = vpop.f32.mrf.mxu1 }
0x19d3   :  { %v20114_v62 = vpop.permute.xlu0 %20113 }
0x19fc   :  { %v17795_v32 = vpop.f32.mrf.mxu0 }
0x19fd   :  { %29170 = vmatprep.mubr.msk.f32.mxu0 %vm847_vm4, %v17795_v32 }
0x19fe   :  { %v29092_v36 = vpop.f32.mrf.mxu0  ;;  %29171 = vmatmul.mubr.msk.f32.vlgmr.msra.gmra.mxu0 %vm847_vm4, %v17871_v61 }
0x19ff   :  { %29221 = vmatpush3.xpose.msk.msra.mxu0 %vm847_vm4, %v19334_v13 }
0x1a00   :  { %v17947_v27 = vpop.f32.mrf.mxu0  ;;  %29230 = vmatprep.subr.mxu0 %v37010_v60 }
0x1a01   :  { %v18023_v59 = vpop.f32.mrf.mxu1  ;;  %29173 = vmatprep.mubr.msk.f32.mxu0 %vm847_vm4, %v17947_v27  ;;  %v20112_v27 = vpop.permute.xlu0 %20111 }
0x1a02   :  { %v29102_v56 = vpop.f32.mrf.mxu0  ;;  %29174 = vmatmul.mubr.msk.f32.gmra.mxu0 %vm847_vm4, %v18023_v59 }
0x1a03   :  { %v29107_v1 = vpop.f32.mrf.mxu1 }
0x1a05   :  { %v18099_v5 = vpop.f32.mrf.mxu0 }
0x1a06   :  { %v18175_v24 = vpop.f32.mrf.mxu1  ;;  %29176 = vmatprep.mubr.msk.f32.mxu0 %vm847_vm4, %v18099_v5  ;;  %v20270_v5 = vpop.permute.xlu0 %20269 }
0x1a07   :  { %v29112_v3 = vpop.f32.mrf.mxu0  ;;  %29177 = vmatmul.mubr.msk.f32.gmra.mxu0 %vm847_vm4, %v18175_v24 }
0x1a08   :  { %v29117_v25 = vpop.f32.mrf.mxu1 }
0x1a0a   :  { %v18251_v52 = vpop.f32.mrf.mxu0  ;;  %v18327_v38 = vpop.f32.mrf.mxu1 }
0x1a0b   :  { %29179 = vmatprep.mubr.msk.f32.mxu0 %vm847_vm4, %v18251_v52  ;;  %v20268_v52 = vpop.permute.xlu0 %20267 }
0x1a0c   :  { %v29122_v63 = vpop.f32.mrf.mxu0  ;;  %v29127_v39 = vpop.f32.mrf.mxu1  ;;  %29180 = vmatmul.mubr.msk.f32.gmra.mxu0 %vm847_vm4, %v18327_v38 }
0x1a0e   :  { %v18403_v14 = vpop.f32.mrf.mxu0 }
0x1a0f   :  { %v18479_v37 = vpop.f32.mrf.mxu1  ;;  %29182 = vmatprep.mubr.msk.f32.mxu0 %vm847_vm4, %v18403_v14 }
0x1a10   :  { %v29132_v54 = vpop.f32.mrf.mxu0  ;;  %29183 = vmatmul.mubr.msk.f32.gmra.mxu0 %vm847_vm4, %v18479_v37  ;;  %v20426_v37 = vpop.permute.xlu0 %20425 }
0x1a11   :  { %v29137_v9 = vpop.f32.mrf.mxu1 }
0x1a12   :  { %v18555_v22 = vpop.f32.mrf.mxu0 }
0x1a13   :  { %v18631_v16 = vpop.f32.mrf.mxu1  ;;  %29185 = vmatprep.mubr.msk.f32.mxu0 %vm847_vm4, %v18555_v22 }
0x1a14   :  { %v29142_v29 = vpop.f32.mrf.mxu0  ;;  %29186 = vmatmul.mubr.msk.f32.gmra.mxu0 %vm847_vm4, %v18631_v16 }
0x1a15   :  { %v29147_v50 = vpop.f32.mrf.mxu1 }
0x1a16   :  { %v18707_v49 = vpop.f32.mrf.mxu0 }
0x1a17   :  { %v18783_v17 = vpop.f32.mrf.mxu1  ;;  %29188 = vmatprep.mubr.msk.f32.mxu0 %vm847_vm4, %v18707_v49 }
0x1a18   :  { %v29152_v48 = vpop.f32.mrf.mxu0  ;;  %29189 = vmatmul.mubr.msk.f32.gmra.mxu0 %vm847_vm4, %v18783_v17  ;;  %v20424_v17 = vpop.permute.xlu0 %20423 }
0x1a19   :  { %v29157_v15 = vpop.f32.mrf.mxu1 }
0x1a4b   :  { %v18935_v34 = vpop.f32.mrf.mxu1 }
0x1a4d   :  { %v29167_v21 = vpop.f32.mrf.mxu1 }
0x1a4f   :  { %v35161_v41 = vpop.f32.mrf.mxu1 }
0x1a51   :  { %v35163_v57 = vpop.f32.mrf.mxu1 }
0x1a52   :  { %37078 = vst [vmem:[#allocation29_spill] sm:$0xff] %v35163_v57 }
0x1a53   :  { %v35165_v44 = vpop.f32.mrf.mxu1 }
0x1a55   :  { %v35167_v20 = vpop.f32.mrf.mxu1 }
0x1a56   :  { %37079 = vst [vmem:[#allocation21_spill] sm:$0xff] %v35167_v20  ;;  %v18859_v18 = vpop.f32.mrf.mxu0 }
0x1a57   :  { %29191 = vmatprep.mubr.msk.f32.mxu0 %vm847_vm4, %v18859_v18  ;;  %v35170_v12 = vpop.f32.mrf.mxu1 }
0x1a58   :  { %v29162_v61 = vpop.f32.mrf.mxu0  ;;  %29192 = vmatmul.mubr.msk.f32.gmra.mxu0 %vm847_vm4, %v18935_v34 }
0x1a59   :  { %v35173_v32 = vpop.f32.mrf.mxu1  ;;  %29222 = vmatprep.mubr.msk.f32.mxu0 %vm30381_vm1, %v37010_v60 }
0x1a5a   :  { %37080 = vst [vmem:[#allocation11_spill] sm:$0xff] %v35173_v32 }
0x1a5b   :  { %v35177_v13 = vpop.f32.mrf.mxu1 }
0x1a5c   :  { %29223 = vmatmul.mubr.msk.f32.vlgmr.msra.gmra.mxu0 %vm847_vm4, %v19332_v35 }
0x1a5d   :  { %29231 = vmatpush3.xpose.msk.msra.mxu0 %vm847_vm4, %v19490_v23  ;;  %v35181_v36 = vpop.f32.mrf.mxu1  ;;  %29232 = vmatprep.mubr.msk.f32.mxu0 %vm30381_vm1, %v37010_v60 }
0x1a5e   :  { %37081 = vst [vmem:[#allocation10_spill] sm:$0xff] %v35181_v36  ;;  %29240 = vmatprep.subr.mxu0 %v37010_v60 }
0x1a5f   :  { %v35186_v59 = vpop.f32.mrf.mxu1 }
0x1a60   :  { %29233 = vmatmul.mubr.msk.f32.vlgmr.msra.gmra.mxu0 %vm847_vm4, %v19488_v42 }
0x1a61   :  { %29241 = vmatpush3.xpose.msk.msra.mxu0 %vm847_vm4, %v19646_v33  ;;  %v35190_v56 = vpop.f32.mrf.mxu1  ;;  %29242 = vmatprep.mubr.msk.f32.mxu0 %vm30381_vm1, %v37010_v60 }
0x1a62   :  { %29250 = vmatprep.subr.mxu0 %v37010_v60 }
0x1a63   :  { %v35195_v1 = vpop.f32.mrf.mxu1 }
0x1a64   :  { %29243 = vmatmul.mubr.msk.f32.vlgmr.msra.gmra.mxu0 %vm847_vm4, %v19644_v11 }
0x1a65   :  { %29251 = vmatpush3.xpose.msk.msra.mxu0 %vm847_vm4, %v19802_v8  ;;  %v35199_v24 = vpop.f32.mrf.mxu1  ;;  %29252 = vmatprep.mubr.msk.f32.mxu0 %vm30381_vm1, %v37010_v60 }
0x1a66   :  { %29260 = vmatprep.subr.mxu0 %v37010_v60 }
0x1a67   :  { %v35204_v3 = vpop.f32.mrf.mxu1 }
0x1a68   :  { %29253 = vmatmul.mubr.msk.f32.vlgmr.msra.gmra.mxu0 %vm847_vm4, %v19800_v47 }
0x1a69   :  { %29261 = vmatpush3.xpose.msk.msra.mxu0 %vm847_vm4, %v19958_v6  ;;  %v35208_v25 = vpop.f32.mrf.mxu1  ;;  %29262 = vmatprep.mubr.msk.f32.mxu0 %vm30381_vm1, %v37010_v60 }
0x1a6a   :  { %37082 = vst [vmem:[#allocation30_spill] sm:$0xff] %v35208_v25  ;;  %29270 = vmatprep.subr.mxu0 %v37010_v60 }
0x1a6b   :  { %v35213_v38 = vpop.f32.mrf.mxu1 }
0x1a6c   :  { %37083 = vst [vmem:[#allocation23_spill] sm:$0xff] %v35213_v38  ;;  %29263 = vmatmul.mubr.msk.f32.vlgmr.msra.gmra.mxu0 %vm847_vm4, %v19956_v31 }
0x1a6d   :  { %29271 = vmatpush3.xpose.msk.msra.mxu0 %vm847_vm4, %v20114_v62  ;;  %v35217_v63 = vpop.f32.mrf.mxu1  ;;  %29272 = vmatprep.mubr.msk.f32.mxu0 %vm30381_vm1, %v37010_v60 }
0x1a6e   :  { %37084 = vst [vmem:[#allocation13_spill] sm:$0xff] %v35217_v63  ;;  %29280 = vmatprep.subr.mxu0 %v37010_v60 }
0x1a6f   :  { %v19483_v39 = vpop.f32.mrf.mxu1 }
0x1a70   :  { %v20580_v14 = vmul.f32 0.5, %v19483_v39  ;;  %29273 = vmatmul.mubr.msk.f32.vlgmr.msra.gmra.mxu0 %vm847_vm4, %v20112_v27 }
0x1a71   :  { %29281 = vmatpush3.xpose.msk.msra.mxu0 %vm847_vm4, %v20270_v5  ;;  %v29229_v54 = vpop.f32.mrf.mxu1  ;;  %29282 = vmatprep.mubr.msk.f32.mxu0 %vm30381_vm1, %v37010_v60 }
0x1a72   :  { %v35227_v9 = vadd.f32 %v20580_v14, %v31107_v10  ;;  %29290 = vmatprep.subr.mxu0 %v37010_v60 }
0x1a73   :  { %v19639_v22 = vpop.f32.mrf.mxu1 }
0x1a74   :  { %v20582_v16 = vmul.f32 0.5, %v19639_v22  ;;  %29283 = vmatmul.mubr.msk.f32.vlgmr.msra.gmra.mxu0 %vm847_vm4, %v20268_v52  ;;  %v20614_v29 = vsel %vm2109_vm6, %v35227_v9, -inf }
0x1a75   :  { %29291 = vmatpush3.xpose.msk.msra.mxu0 %vm847_vm4, %v20426_v37  ;;  %20615 = vmax.xlane.f32.xlu1 %v20614_v29  ;;  %v29239_v50 = vpop.f32.mrf.mxu1 }
0x1a76   :  { %v35235_v49 = vadd.f32 %v20582_v16, %v31107_v10  ;;  %29292 = vmatprep.mubr.msk.f32.mxu0 %vm30381_vm1, %v37010_v60  ;;  %29300 = vmatprep.subr.mxu0 %v37010_v60 }
0x1a77   :  { %v19795_v48 = vpop.f32.mrf.mxu1 }
0x1a78   :  { %v20584_v15 = vmul.f32 0.5, %v19795_v48  ;;  %29293 = vmatmul.mubr.msk.f32.vlgmr.msra.gmra.mxu0 %vm847_vm4, %v20424_v17  ;;  %v20620_v35 = vsel %vm2109_vm6, %v35235_v49, -inf }
0x1a79   :  { %20621 = vmax.xlane.f32.xlu0 %v20620_v35  ;;  %v29249_v23 = vpop.f32.mrf.mxu1  ;;  %29302 = vmatprep.mubr.msk.f32.mxu0 %vm30381_vm1, %v37010_v60 }
0x1a7a   :  { %v20600_v42 = vadd.f32 %v20584_v15, %v31107_v10 }
0x1a7b   :  { %v19951_v33 = vpop.f32.mrf.mxu1 }
0x1a7c   :  { %v20586_v11 = vmul.f32 0.5, %v19951_v33  ;;  %v20626_v8 = vsel %vm2109_vm6, %v20600_v42, -inf }
0x1a7d   :  { %20627 = vmax.xlane.f32.xlu0 %v20626_v8  ;;  %v29259_v47 = vpop.f32.mrf.mxu1 }
0x1a7e   :  { %v35248_v34 = vadd.f32 %v20586_v11, %v31107_v10 }
0x1a7f   :  { %v20107_v6 = vpop.f32.mrf.mxu1 }
0x1a80   :  { %v20588_v21 = vmul.f32 0.5, %v20107_v6  ;;  %v20632_v31 = vsel %vm2109_vm6, %v35248_v34, -inf }
0x1a81   :  { %20633 = vmax.xlane.f32.xlu0 %v20632_v31  ;;  %v29269_v18 = vpop.f32.mrf.mxu1 }
0x1a82   :  { %v35253_v61 = vadd.f32 %v20588_v21, %v31107_v10 }
0x1a83   :  { %v20263_v62 = vpop.f32.mrf.mxu1 }
0x1a84   :  { %v20590_v27 = vmul.f32 0.5, %v20263_v62  ;;  %v20638_v5 = vsel %vm2109_vm6, %v35253_v61, -inf }
0x1a85   :  { %20639 = vmax.xlane.f32.xlu0 %v20638_v5  ;;  %v29279_v52 = vpop.f32.mrf.mxu1 }
0x1a86   :  { %v35258_v39 = vadd.f32 %v20590_v27, %v31107_v10  ;;  %20804 = vrot.lane.b32.xlu1 %v33868_v28, %s37085_s26 }
0x1a87   :  { %v20419_v14 = vpop.f32.mrf.mxu1 }
0x1a88   :  { %v20592_v37 = vmul.f32 0.5, %v20419_v14  ;;  %v20644_v54 = vsel %vm2109_vm6, %v35258_v39, -inf }
0x1a89   :  { %20645 = vmax.xlane.f32.xlu0 %v20644_v54  ;;  %v29289_v22 = vpop.f32.mrf.mxu1 }
0x1a8a   :  { %v35265_v16 = vadd.f32 %v20592_v37, %v31107_v10 }
0x1a8b   :  { %v20575_v29 = vpop.f32.mrf.mxu1 }
0x1a8c   :  { %v20594_v50 = vmul.f32 0.5, %v20575_v29  ;;  %v20650_v17 = vsel %vm2109_vm6, %v35265_v16, -inf }
0x1a8d   :  { %20651 = vmax.xlane.f32.xlu0 %v20650_v17  ;;  %v29299_v48 = vpop.f32.mrf.mxu1 }
0x1a8e   :  { %v35270_v15 = vadd.f32 %v20594_v50, %v31107_v10 }
0x1a90   :  { %v20656_v35 = vsel %vm2109_vm6, %v35270_v15, -inf }
0x1a91   :  { %20657 = vmax.xlane.f32.xlu0 %v20656_v35 }
0x1abe   :  { %v35274_v23 = vpop.f32.mrf.mxu0 }
0x1ac0   :  { %v35276_v33 = vpop.f32.mrf.mxu0 }
0x1ac1   :  { %37086 = vst [vmem:[#allocation12_spill] sm:$0xff] %v35276_v33 }
0x1ac2   :  { %v35278_v11 = vpop.f32.mrf.mxu0 }
0x1ac4   :  { %v35280_v8 = vpop.f32.mrf.mxu0 }
0x1ac5   :  { %37087 = vst [vmem:[#allocation31_spill] sm:$0xff] %v35280_v8 }
0x1ac7   :  { %v35282_v47 = vpop.f32.mrf.mxu0 }
0x1ac9   :  { %v35284_v6 = vpop.f32.mrf.mxu0 }
0x1aca   :  { %37088 = vst [vmem:[#allocation24_spill] sm:$0xff] %v35284_v6 }
0x1acc   :  { %v35286_v21 = vpop.f32.mrf.mxu0 }
0x1ace   :  { %v35288_v31 = vpop.f32.mrf.mxu0 }
0x1acf   :  { %37089 = vst [vmem:[#allocation15_spill] sm:$0xff] %v35288_v31 }
0x1ad0   :  { %v35291_v27 = vpop.f32.mrf.mxu0 }
0x1ad2   :  { %v35295_v22 = vpop.f32.mrf.mxu0 }
0x1ad4   :  { %v35297_v50 = vpop.f32.mrf.mxu0 }
0x1afe   :  { %v20616_v18 = vpop.xlane.xlu1 %20615 }
0x1aff   :  { %v20660_v62 = vsub.f32 %v35227_v9, %v20616_v18  ;;  %v35299_v9 = vpop.f32.mrf.mxu0 }
0x1b01   :  { %v20677_v5 = vmul.f32 1.442695, %v20660_v62  ;;  %v35307_v62 = vpop.f32.mrf.mxu0 }
0x1b02   :  { %v20622_v52 = vpop.xlane.xlu0 %20621  ;;  %v20805_v14 = vpop.permute.xlu1 %20804 }
0x1b03   :  { %30185 = vpow2.f32 %v20677_v5  ;;  %v20662_v37 = vsub.f32 %v35235_v49, %v20622_v52  ;;  %29301 = vmatpush3.msra.mxu0 %v20805_v14  ;;  %v35315_v14 = vpop.f32.mrf.mxu0 }
0x1b04   :  { %29310 = vmatprep.subr.mxu0 %v37010_v60  ;;  %37090 = vst [vmem:[#allocation14_spill] sm:$0xff] %v35315_v14 }
0x1b05   :  { %v20681_v54 = vmul.f32 1.442695, %v20662_v37 }
0x1b06   :  { %v20628_v29 = vpop.xlane.xlu0 %20627 }
0x1b07   :  { %30187 = vpow2.f32 %v20681_v54  ;;  %v20664_v17 = vsub.f32 %v20600_v42, %v20628_v29 }
0x1b09   :  { %v20685_v18 = vmul.f32 1.442695, %v20664_v17 }
0x1b0a   :  { %v35301_v48 = vpop.xlane.xlu0 %20633 }
0x1b0b   :  { %30189 = vpow2.f32 %v20685_v18 }
0x1b0e   :  { %v35311_v52 = vpop.xlane.xlu0 %20639 }
0x1b10   :  { %v35303_v35 = vpop.eup %30185 }
0x1b11   :  { %v20710_v49 = vsel %vm2109_vm6, %v35303_v35, 0.0 }
0x1b12   :  { %20711 = vadd.xlane.f32.xlu0 %v20710_v49  ;;  %v35319_v54 = vpop.xlane.xlu0 %20645 }
0x1b14   :  { %v35309_v5 = vpop.eup %30187 }
0x1b15   :  { %v20716_v42 = vsel %vm2109_vm6, %v35309_v5, 0.0 }
0x1b16   :  { %20717 = vadd.xlane.f32.xlu0 %v20716_v42  ;;  %v35326_v32 = vpop.xlane.xlu0 %20651 }
0x1b18   :  { %v35317_v37 = vpop.f32.mrf.mxu0  ;;  %v35330_v42 = vpop.eup %30189 }
0x1b19   :  { %37091 = vst [vmem:[#allocation17_spill] sm:$0xff] %v35317_v37 }
0x1b1a   :  { %v35321_v29 = vpop.f32.mrf.mxu0 }
0x1b1b   :  { %37092 = vst [vmem:[#allocation16_spill] sm:$0xff] %v35321_v29 }
0x1b1c   :  { %v19405_v17 = vpop.f32.mrf.mxu0 }
0x1b1d   :  { %v20579_v36 = vmul.f32 0.5, %v19405_v17 }
0x1b1e   :  { %v29224_v49 = vpop.f32.mrf.mxu0 }
0x1b1f   :  { %v35324_v31 = vadd.f32 %v20579_v36, %v31107_v10  ;;  %v20722_v36 = vsel %vm2109_vm6, %v35330_v42, 0.0  ;;  %v20658_v49 = vpop.xlane.xlu0 %20657 }
0x1b20   :  { %v19561_v18 = vpop.f32.mrf.mxu0  ;;  %v20674_v38 = vsub.f32 %v35270_v15, %v20658_v49 }
0x1b21   :  { %v20581_v6 = vmul.f32 0.5, %v19561_v18  ;;  %v20611_v20 = vsel %vm2109_vm6, %v35324_v31, -inf }
0x1b22   :  { %v29234_v8 = vpop.f32.mrf.mxu0  ;;  %20612 = vmax.xlane.f32.xlu0 %v20611_v20 }
0x1b23   :  { %v35333_v33 = vadd.f32 %v20581_v6, %v31107_v10 }
0x1b24   :  { %v19717_v57 = vpop.f32.mrf.mxu0 }
0x1b25   :  { %v20583_v17 = vmul.f32 0.5, %v19717_v57  ;;  %v20617_v8 = vsel %vm2109_vm6, %v35333_v33, -inf }
0x1b26   :  { %v29244_v63 = vpop.f32.mrf.mxu0  ;;  %20723 = vadd.xlane.f32.xlu0 %v20722_v36  ;;  %v20705_v36 = vmul.f32 1.442695, %v20674_v38 }
0x1b27   :  { %v35338_v18 = vadd.f32 %v20583_v17, %v31107_v10 }
0x1b28   :  { %v19873_v29 = vpop.f32.mrf.mxu0  ;;  %30191 = vpow2.f32 %v20705_v36 }
0x1b29   :  { %v20585_v37 = vmul.f32 0.5, %v19873_v29  ;;  %v20623_v20 = vsel %vm2109_vm6, %v35338_v18, -inf }
0x1b2a   :  { %v29254_v57 = vpop.f32.mrf.mxu0  ;;  %20624 = vmax.xlane.f32.xlu1 %v20623_v20  ;;  %20618 = vmax.xlane.f32.xlu0 %v20617_v8 }
0x1b2b   :  { %v35346_v6 = vadd.f32 %v20585_v37, %v31107_v10 }
0x1b2c   :  { %v20029_v63 = vpop.f32.mrf.mxu0 }
0x1b2d   :  { %v20587_v17 = vmul.f32 0.5, %v20029_v63  ;;  %v20629_v25 = vsel %vm2109_vm6, %v35346_v6, -inf }
0x1b2e   :  { %v29264_v15 = vpop.f32.mrf.mxu0  ;;  %20630 = vmax.xlane.f32.xlu1 %v20629_v25 }
0x1b2f   :  { %v35351_v29 = vadd.f32 %v20587_v17, %v31107_v10 }
0x1b30   :  { %v20185_v49 = vpop.f32.mrf.mxu0 }
0x1b31   :  { %v20589_v14 = vmul.f32 0.5, %v20185_v49  ;;  %v20635_v20 = vsel %vm2109_vm6, %v35351_v29, -inf }
0x1b32   :  { %v29274_v8 = vpop.f32.mrf.mxu0  ;;  %20636 = vmax.xlane.f32.xlu1 %v20635_v20 }
0x1b33   :  { %v35356_v37 = vadd.f32 %v20589_v14, %v31107_v10 }
0x1b34   :  { %v20341_v38 = vpop.f32.mrf.mxu0 }
0x1b35   :  { %v20591_v57 = vmul.f32 0.5, %v20341_v38  ;;  %v20641_v63 = vsel %vm2109_vm6, %v35356_v37, -inf  ;;  %v35370_v38 = vpop.eup %30191 }
0x1b36   :  { %v29284_v25 = vpop.f32.mrf.mxu0  ;;  %20642 = vmax.xlane.f32.xlu1 %v20641_v63  ;;  %v20666_v63 = vsub.f32 %v35248_v34, %v35301_v48 }
0x1b37   :  { %v35361_v17 = vadd.f32 %v20591_v57, %v31107_v10  ;;  %v20752_v57 = vsel %vm2109_vm6, %v35370_v38, 0.0 }
0x1b38   :  { %v20497_v36 = vpop.f32.mrf.mxu0  ;;  %v20689_v25 = vmul.f32 1.442695, %v20666_v63 }
0x1b39   :  { %v20593_v15 = vmul.f32 0.5, %v20497_v36  ;;  %v20647_v49 = vsel %vm2109_vm6, %v35361_v17, -inf  ;;  %v20668_v36 = vsub.f32 %v35253_v61, %v35311_v52 }
0x1b3a   :  { %v29294_v8 = vpop.f32.mrf.mxu0  ;;  %20648 = vmax.xlane.f32.xlu1 %v20647_v49  ;;  %30193 = vpow2.f32 %v20689_v25  ;;  %v20670_v49 = vsub.f32 %v35258_v39, %v35319_v54 }
0x1b3b   :  { %v35366_v14 = vadd.f32 %v20593_v15, %v31107_v10  ;;  %v20693_v15 = vmul.f32 1.442695, %v20668_v36 }
0x1b3c   :  { %v20697_v8 = vmul.f32 1.442695, %v20670_v49 }
0x1b3d   :  { %v20653_v20 = vsel %vm2109_vm6, %v35366_v14, -inf  ;;  %30195 = vpow2.f32 %v20693_v15 }
0x1b3e   :  { %20654 = vmax.xlane.f32.xlu1 %v20653_v20  ;;  %v20672_v20 = vsub.f32 %v35265_v16, %v35326_v32  ;;  %30197 = vpow2.f32 %v20697_v8 }
0x1b40   :  { %20880 = vrot.lane.b32.xlu0 %v33864_v2, %s37085_s26 }
0x1b42   :  { %20753 = vadd.xlane.f32.xlu1 %v20752_v57  ;;  %v20701_v57 = vmul.f32 1.442695, %v20672_v20 }
0x1b44   :  { %30199 = vpow2.f32 %v20701_v57 }
0x1b47   :  { %v35386_v34 = vpop.eup %30193 }
0x1b48   :  { %v20728_v61 = vsel %vm2109_vm6, %v35386_v34, 0.0 }
0x1b4a   :  { %v35390_v48 = vpop.eup %30195 }
0x1b4b   :  { %v20734_v39 = vsel %vm2109_vm6, %v35390_v48, 0.0  ;;  %v35394_v52 = vpop.eup %30197 }
0x1b4c   :  { %v20740_v32 = vsel %vm2109_vm6, %v35394_v52, 0.0 }
0x1b51   :  { %v35398_v16 = vpop.eup %30199 }
0x1b52   :  { %v20746_v54 = vsel %vm2109_vm6, %v35398_v16, 0.0 }
0x1b53   :  { %21488 = vrot.lane.b32.xlu1 %v33918_v53, %s37085_s26 }
0x1b5f   :  { %20729 = vadd.xlane.f32.xlu0 %v20728_v61 }
0x1b63   :  { %20735 = vadd.xlane.f32.xlu0 %v20734_v39 }
0x1b67   :  { %20741 = vadd.xlane.f32.xlu0 %v20740_v32 }
0x1b6b   :  { %20747 = vadd.xlane.f32.xlu0 %v20746_v54 }
0x1b81   :  { %20956 = vrot.lane.b32.xlu0 %v33874_v43, %s37085_s26 }
0x1b85   :  { %21032 = vrot.lane.b32.xlu0 %v33872_v19, %s37085_s26 }
0x1b89   :  { %21108 = vrot.lane.b32.xlu0 %v33880_v26, %s37085_s26 }
0x1b8d   :  { %21184 = vrot.lane.b32.xlu0 %v33878_v58, %s37085_s26 }
0x1b91   :  { %21260 = vrot.lane.b32.xlu0 %v33888_v0, %s37085_s26 }
0x1b95   :  { %21336 = vrot.lane.b32.xlu0 %v33886_v45, %s37085_s26 }
0x1b99   :  { %21412 = vrot.lane.b32.xlu0 %v33928_v55, %s37085_s26 }
0x1b9b   :  { %v20712_v63 = vpop.xlane.xlu0 %20711 }
0x1b9c   :  { %30201 = vrcp.f32 %v20712_v63 }
0x1b9d   :  { %21564 = vrot.lane.b32.xlu0 %v33946_v40, %s37085_s26 }
0x1b9f   :  { %v20718_v25 = vpop.xlane.xlu0 %20717 }
0x1ba0   :  { %30203 = vrcp.f32 %v20718_v25 }
0x1ba1   :  { %21640 = vrot.lane.b32.xlu0 %v33936_v30, %s37085_s26 }
0x1ba5   :  { %21716 = vrot.lane.b32.xlu0 %v33962_v7, %s37085_s26 }
0x1ba9   :  { %v30202_v36 = vpop.eup %30201  ;;  %21792 = vrot.lane.b32.xlu0 %v33953_v4, %s37085_s26 }
0x1baa   :  { %v20758_v15 = vmul.f32 %v30202_v36, %v35303_v35 }
0x1bab   :  { %v20613_v49 = vpop.xlane.xlu0 %20612 }
0x1bac   :  { %26953 = vst.msk [vmem:[%s36906_s19 + $0x308] sm:$0xff] %vm2109_vm6, %v20758_v15  ;;  %v20659_v8 = vsub.f32 %v35324_v31, %v20613_v49 }
0x1bad   :  { %v30204_v20 = vpop.eup %30203 }
0x1bae   :  { %v35431_v57 = vmul.f32 %v30204_v20, %v35309_v5  ;;  %v20675_v61 = vmul.f32 1.442695, %v20659_v8 }
0x1baf   :  { %v20724_v39 = vpop.xlane.xlu0 %20723 }
0x1bb0   :  { %26955 = vst.msk [vmem:[%s36906_s19 + $0x318] sm:$0xff] %vm2109_vm6, %v35431_v57  ;;  %30205 = vpow2.f32 %v20675_v61 }
0x1bb1   :  { %30207 = vrcp.f32 %v20724_v39 }
0x1bb3   :  { %v20619_v35 = vpop.xlane.xlu0 %20618  ;;  %v20625_v32 = vpop.xlane.xlu1 %20624 }
0x1bb4   :  { %v20661_v54 = vsub.f32 %v35333_v33, %v20619_v35  ;;  %v20663_v31 = vsub.f32 %v35338_v18, %v20625_v32 }
0x1bb6   :  { %v20679_v63 = vmul.f32 1.442695, %v20661_v54  ;;  %v20683_v25 = vmul.f32 1.442695, %v20663_v31 }
0x1bb7   :  { %v20881_v5 = vpop.permute.xlu0 %20880  ;;  %v20631_v36 = vpop.xlane.xlu1 %20630 }
0x1bb8   :  { %30209 = vpow2.f32 %v20679_v63  ;;  %v20665_v49 = vsub.f32 %v35346_v6, %v20631_v36  ;;  %29306 = vmatpush3.msra.mxu1 %v20881_v5 }
0x1bb9   :  { %29308 = vmatmul.mubr.msk.f32.vlgmr.msra.gmra.mxu1 %vm2109_vm6, %v20758_v15  ;;  %29315 = vmatprep.subr.mxu1 %v37010_v60  ;;  %30211 = vpow2.f32 %v20683_v25 }
0x1bba   :  { %v20687_v8 = vmul.f32 1.442695, %v20665_v49  ;;  %29317 = vmatprep.mubr.msk.f32.mxu1 %vm30381_vm1, %v37010_v60 }
0x1bbb   :  { %v20637_v33 = vpop.xlane.xlu1 %20636 }
0x1bbc   :  { %v20667_v18 = vsub.f32 %v35351_v29, %v20637_v33  ;;  %30213 = vpow2.f32 %v20687_v8 }
0x1bbd   :  { %v35446_v20 = vpop.eup %30205 }
0x1bbe   :  { %v30208_v61 = vpop.eup %30207  ;;  %v20691_v39 = vmul.f32 1.442695, %v20667_v18  ;;  %v20707_v6 = vsel %vm2109_vm6, %v35446_v20, 0.0 }
0x1bbf   :  { %v35451_v15 = vmul.f32 %v30208_v61, %v35330_v42  ;;  %20708 = vadd.xlane.f32.xlu1 %v20707_v6  ;;  %v20643_v35 = vpop.xlane.xlu1 %20642 }
0x1bc0   :  { %v20669_v32 = vsub.f32 %v35356_v37, %v20643_v35  ;;  %30215 = vpow2.f32 %v20691_v39 }
0x1bc1   :  { %26957 = vst.msk [vmem:[%s36906_s19 + $0x328] sm:$0xff] %vm2109_vm6, %v35451_v15 }
0x1bc2   :  { %v20695_v29 = vmul.f32 1.442695, %v20669_v32 }
0x1bc3   :  { %v20649_v54 = vpop.xlane.xlu1 %20648 }
0x1bc4   :  { %v20671_v31 = vsub.f32 %v35361_v17, %v20649_v54  ;;  %30217 = vpow2.f32 %v20695_v29 }
0x1bc5   :  { %v35460_v63 = vpop.eup %30209 }
0x1bc6   :  { %v20699_v42 = vmul.f32 1.442695, %v20671_v31  ;;  %v20713_v25 = vsel %vm2109_vm6, %v35460_v63, 0.0  ;;  %v35464_v5 = vpop.eup %30211 }
0x1bc7   :  { %20714 = vadd.xlane.f32.xlu1 %v20713_v25  ;;  %v20655_v37 = vpop.xlane.xlu1 %20654  ;;  %v20719_v8 = vsel %vm2109_vm6, %v35464_v5, 0.0 }
0x1bc8   :  { %v20673_v36 = vsub.f32 %v35366_v14, %v20655_v37  ;;  %30219 = vpow2.f32 %v20699_v42 }
0x1bc9   :  { %v35469_v33 = vpop.eup %30213 }
0x1bca   :  { %v20703_v49 = vmul.f32 1.442695, %v20673_v36  ;;  %v20725_v18 = vsel %vm2109_vm6, %v35469_v33, 0.0 }
0x1bcb   :  { %20720 = vadd.xlane.f32.xlu1 %v20719_v8  ;;  %v20754_v17 = vpop.xlane.xlu1 %20753 }
0x1bcc   :  { %30221 = vpow2.f32 %v20703_v49 }
0x1bcd   :  { %30223 = vrcp.f32 %v20754_v17  ;;  %v35473_v61 = vpop.eup %30215 }
0x1bce   :  { %v20731_v14 = vsel %vm2109_vm6, %v35473_v61, 0.0 }
0x1bcf   :  { %20726 = vadd.xlane.f32.xlu1 %v20725_v18 }
0x1bd1   :  { %v35477_v39 = vpop.eup %30217 }
0x1bd2   :  { %v20737_v6 = vsel %vm2109_vm6, %v35477_v39, 0.0 }
0x1bd3   :  { %20732 = vadd.xlane.f32.xlu1 %v20731_v14 }
0x1bd5   :  { %v35481_v35 = vpop.eup %30219 }
0x1bd6   :  { %v20743_v54 = vsel %vm2109_vm6, %v35481_v35, 0.0 }
0x1bd7   :  { %20738 = vadd.xlane.f32.xlu1 %v20737_v6 }
0x1bd9   :  { %v35483_v32 = vpop.eup %30221 }
0x1bda   :  { %v30224_v29 = vpop.eup %30223  ;;  %v20749_v31 = vsel %vm2109_vm6, %v35483_v32, 0.0 }
0x1bdb   :  { %v35490_v42 = vmul.f32 %v30224_v29, %v35370_v38  ;;  %20744 = vadd.xlane.f32.xlu1 %v20743_v54  ;;  %20750 = vadd.xlane.f32.xlu0 %v20749_v31 }
0x1bdd   :  { %26967 = vst.msk [vmem:[%s36906_s19 + $0x378] sm:$0xff] %vm2109_vm6, %v35490_v42 }
0x1be8   :  { %v20730_v25 = vpop.xlane.xlu0 %20729 }
0x1be9   :  { %30225 = vrcp.f32 %v20730_v25 }
0x1bec   :  { %v20736_v37 = vpop.xlane.xlu0 %20735  ;;  %21868 = vrot.lane.b32.xlu1 %v33972_v51, %s37085_s26 }
0x1bed   :  { %30227 = vrcp.f32 %v20736_v37 }
0x1bf0   :  { %v20742_v36 = vpop.xlane.xlu0 %20741  ;;  %22234 = vrot.lane.b32.xlu1 %v33868_v28, %s37093_s27 }
0x1bf1   :  { %30229 = vrcp.f32 %v20742_v36  ;;  %21944 = vrot.lane.b32.xlu0 %v33968_v46, %s37085_s26 }
0x1bf4   :  { %v20748_v38 = vpop.xlane.xlu0 %20747  ;;  %22312 = vrot.lane.b32.xlu1 %v33864_v2, %s37093_s27 }
0x1bf5   :  { %30231 = vrcp.f32 %v20748_v38  ;;  %22232 = vrot.lane.b32.xlu0 %v33868_v28, %s37094_s21 }
0x1bf6   :  { %v30226_v49 = vpop.eup %30225 }
0x1bf7   :  { %v20770_v8 = vmul.f32 %v30226_v49, %v35386_v34 }
0x1bf8   :  { %v35508_v17 = vpop.permute.xlu0 %20956  ;;  %22390 = vrot.lane.b32.xlu1 %v33874_v43, %s37093_s27 }
0x1bf9   :  { %26959 = vst.msk [vmem:[%s36906_s19 + $0x338] sm:$0xff] %vm2109_vm6, %v20770_v8  ;;  %22310 = vrot.lane.b32.xlu0 %v33864_v2, %s37094_s21 }
0x1bfa   :  { %v30228_v18 = vpop.eup %30227 }
0x1bfb   :  { %v20774_v14 = vmul.f32 %v30228_v18, %v35390_v48 }
0x1bfc   :  { %v21033_v6 = vpop.permute.xlu0 %21032  ;;  %22468 = vrot.lane.b32.xlu1 %v33872_v19, %s37093_s27 }
0x1bfd   :  { %26961 = vst.msk [vmem:[%s36906_s19 + $0x348] sm:$0xff] %vm2109_vm6, %v20774_v14  ;;  %29316 = vmatpush3.msra.mxu1 %v21033_v6  ;;  %22388 = vrot.lane.b32.xlu0 %v33874_v43, %s37094_s21 }
0x1bfe   :  { %v30230_v34 = vpop.eup %30229  ;;  %29318 = vmatmul.mubr.msk.f32.vlgmr.msra.gmra.mxu1 %vm2109_vm6, %v35431_v57  ;;  %29325 = vmatprep.subr.mxu1 %v37010_v60 }
0x1bff   :  { %v20778_v48 = vmul.f32 %v30230_v34, %v35394_v52  ;;  %29327 = vmatprep.mubr.msk.f32.mxu1 %vm30381_vm1, %v37010_v60 }
0x1c00   :  { %v35533_v29 = vpop.permute.xlu0 %21108  ;;  %22546 = vrot.lane.b32.xlu1 %v33880_v26, %s37093_s27 }
0x1c01   :  { %26963 = vst.msk [vmem:[%s36906_s19 + $0x358] sm:$0xff] %vm2109_vm6, %v20778_v48  ;;  %22466 = vrot.lane.b32.xlu0 %v33872_v19, %s37094_s21 }
0x1c02   :  { %v30232_v57 = vpop.eup %30231 }
0x1c03   :  { %v20782_v54 = vmul.f32 %v30232_v57, %v35398_v16 }
0x1c04   :  { %v21185_v52 = vpop.permute.xlu0 %21184  ;;  %22624 = vrot.lane.b32.xlu1 %v33878_v58, %s37093_s27 }
0x1c05   :  { %26965 = vst.msk [vmem:[%s36906_s19 + $0x368] sm:$0xff] %vm2109_vm6, %v20782_v54  ;;  %29326 = vmatpush3.msra.mxu1 %v21185_v52  ;;  %22544 = vrot.lane.b32.xlu0 %v33880_v26, %s37094_s21 }
0x1c06   :  { %29328 = vmatmul.mubr.msk.f32.vlgmr.msra.gmra.mxu1 %vm2109_vm6, %v35451_v15  ;;  %29335 = vmatprep.subr.mxu1 %v37010_v60  ;;  %v21489_v15 = vpop.permute.xlu1 %21488 }
0x1c07   :  { %29337 = vmatprep.mubr.msk.f32.mxu1 %vm30381_vm1, %v37010_v60 }
0x1c08   :  { %v35557_v16 = vpop.permute.xlu0 %21260  ;;  %22702 = vrot.lane.b32.xlu1 %v33888_v0, %s37093_s27 }
0x1c09   :  { %22622 = vrot.lane.b32.xlu0 %v33878_v58, %s37094_s21 }
0x1c0c   :  { %v21337_v31 = vpop.permute.xlu0 %21336  ;;  %22780 = vrot.lane.b32.xlu1 %v33886_v45, %s37093_s27 }
0x1c0d   :  { %29336 = vmatpush3.msra.mxu1 %v21337_v31  ;;  %22700 = vrot.lane.b32.xlu0 %v33888_v0, %s37094_s21 }
0x1c0e   :  { %29338 = vmatmul.mubr.msk.f32.vlgmr.msra.gmra.mxu1 %vm2109_vm6, %v20770_v8  ;;  %29345 = vmatprep.subr.mxu1 %v37010_v60 }
0x1c0f   :  { %29346 = vmatpush3.msra.mxu1 %v21489_v15  ;;  %29347 = vmatprep.mubr.msk.f32.mxu1 %vm30381_vm1, %v37010_v60 }
0x1c10   :  { %v35571_v25 = vpop.permute.xlu0 %21412  ;;  %22858 = vrot.lane.b32.xlu1 %v33928_v55, %s37093_s27  ;;  %29355 = vmatprep.subr.mxu1 %v37010_v60 }
0x1c11   :  { %22778 = vrot.lane.b32.xlu0 %v33886_v45, %s37094_s21 }
0x1c12   :  { %29348 = vmatmul.mubr.msk.f32.vlgmr.msra.gmra.mxu1 %vm2109_vm6, %v20774_v14 }
0x1c13   :  { %29357 = vmatprep.mubr.msk.f32.mxu1 %vm30381_vm1, %v37010_v60 }
0x1c14   :  { %v35581_v37 = vpop.permute.xlu0 %21564  ;;  %22856 = vrot.lane.b32.xlu1 %v33928_v55, %s37094_s21 }
0x1c15   :  { %22936 = vrot.lane.b32.xlu0 %v33918_v53, %s37093_s27 }
0x1c18   :  { %v21641_v36 = vpop.permute.xlu0 %21640  ;;  %23014 = vrot.lane.b32.xlu1 %v33946_v40, %s37093_s27 }
0x1c19   :  { %22934 = vrot.lane.b32.xlu0 %v33918_v53, %s37094_s21  ;;  %29356 = vmatpush3.msra.mxu1 %v21641_v36 }
0x1c1a   :  { %29358 = vmatmul.mubr.msk.f32.vlgmr.msra.gmra.mxu1 %vm2109_vm6, %v20778_v48  ;;  %29365 = vmatprep.subr.mxu1 %v37010_v60 }
0x1c1b   :  { %29367 = vmatprep.mubr.msk.f32.mxu1 %vm30381_vm1, %v37010_v60 }
0x1c1c   :  { %v35595_v38 = vpop.permute.xlu0 %21716  ;;  %23012 = vrot.lane.b32.xlu1 %v33946_v40, %s37094_s21 }
0x1c1d   :  { %23092 = vrot.lane.b32.xlu0 %v33936_v30, %s37093_s27 }
0x1c20   :  { %v21793_v49 = vpop.permute.xlu0 %21792  ;;  %23170 = vrot.lane.b32.xlu1 %v33962_v7, %s37093_s27 }
0x1c21   :  { %23090 = vrot.lane.b32.xlu0 %v33936_v30, %s37094_s21  ;;  %29366 = vmatpush3.msra.mxu1 %v21793_v49 }
0x1c22   :  { %29368 = vmatmul.mubr.msk.f32.vlgmr.msra.gmra.mxu1 %vm2109_vm6, %v20782_v54  ;;  %29375 = vmatprep.subr.mxu1 %v37010_v60 }
0x1c23   :  { %29377 = vmatprep.mubr.msk.f32.mxu1 %vm30381_vm1, %v37010_v60 }
0x1c24   :  { %23168 = vrot.lane.b32.xlu1 %v33962_v7, %s37094_s21 }
0x1c25   :  { %23248 = vrot.lane.b32.xlu0 %v33953_v4, %s37093_s27 }
0x1c28   :  { %23326 = vrot.lane.b32.xlu1 %v33972_v51, %s37093_s27 }
0x1c29   :  { %23246 = vrot.lane.b32.xlu0 %v33953_v4, %s37094_s21 }
0x1c2c   :  { %23324 = vrot.lane.b32.xlu1 %v33972_v51, %s37094_s21 }
0x1c2d   :  { %23404 = vrot.lane.b32.xlu0 %v33968_v46, %s37093_s27 }
0x1c31   :  { %23402 = vrot.lane.b32.xlu0 %v33968_v46, %s37094_s21 }
0x1c48   :  { %v20709_v8 = vpop.xlane.xlu1 %20708 }
0x1c49   :  { %30233 = vrcp.f32 %v20709_v8 }
0x1c50   :  { %v20715_v18 = vpop.xlane.xlu1 %20714 }
0x1c51   :  { %30235 = vrcp.f32 %v20715_v18 }
0x1c54   :  { %v20721_v14 = vpop.xlane.xlu1 %20720 }
0x1c55   :  { %30237 = vrcp.f32 %v20721_v14 }
0x1c56   :  { %v30234_v6 = vpop.eup %30233 }
0x1c57   :  { %v20756_v34 = vmul.f32 %v30234_v6, %v35446_v20 }
0x1c58   :  { %v20727_v48 = vpop.xlane.xlu1 %20726 }
0x1c59   :  { %26952 = vst.msk [vmem:[%s36906_s19 + $0x300] sm:$0xff] %vm2109_vm6, %v20756_v34  ;;  %30239 = vrcp.f32 %v20727_v48  ;;  %29303 = vmatmul.mubr.msk.f32.vlgmr.msra.gmra.mxu0 %vm2109_vm6, %v20756_v34 }
0x1c5a   :  { %29311 = vmatpush3.msra.mxu0 %v35508_v17  ;;  %29312 = vmatprep.mubr.msk.f32.mxu0 %vm30381_vm1, %v37010_v60 }
0x1c5b   :  { %29320 = vmatprep.subr.mxu0 %v37010_v60 }
0x1c5c   :  { %v20733_v57 = vpop.xlane.xlu1 %20732 }
0x1c5d   :  { %30241 = vrcp.f32 %v20733_v57 }
0x1c5e   :  { %v30236_v54 = vpop.eup %30235 }
0x1c5f   :  { %v20760_v20 = vmul.f32 %v30236_v54, %v35460_v63 }
0x1c60   :  { %v20739_v52 = vpop.xlane.xlu1 %20738 }
0x1c61   :  { %26954 = vst.msk [vmem:[%s36906_s19 + $0x310] sm:$0xff] %vm2109_vm6, %v20760_v20  ;;  %30243 = vrcp.f32 %v20739_v52  ;;  %29313 = vmatmul.mubr.msk.f32.vlgmr.msra.gmra.mxu0 %vm2109_vm6, %v20760_v20 }
0x1c62   :  { %v30238_v17 = vpop.eup %30237  ;;  %29321 = vmatpush3.msra.mxu0 %v35533_v29  ;;  %29322 = vmatprep.mubr.msk.f32.mxu0 %vm30381_vm1, %v37010_v60 }
0x1c63   :  { %v20764_v31 = vmul.f32 %v30238_v17, %v35464_v5  ;;  %29330 = vmatprep.subr.mxu0 %v37010_v60 }
0x1c64   :  { %v20751_v63 = vpop.xlane.xlu0 %20750  ;;  %v20745_v15 = vpop.xlane.xlu1 %20744 }
0x1c65   :  { %26956 = vst.msk [vmem:[%s36906_s19 + $0x320] sm:$0xff] %vm2109_vm6, %v20764_v31  ;;  %30245 = vrcp.f32 %v20751_v63  ;;  %29323 = vmatmul.mubr.msk.f32.vlgmr.msra.gmra.mxu0 %vm2109_vm6, %v20764_v31 }
0x1c66   :  { %v30240_v36 = vpop.eup %30239  ;;  %30247 = vrcp.f32 %v20745_v15  ;;  %29331 = vmatpush3.msra.mxu0 %v35557_v16  ;;  %29332 = vmatprep.mubr.msk.f32.mxu0 %vm30381_vm1, %v37010_v60 }
0x1c67   :  { %v20768_v5 = vmul.f32 %v30240_v36, %v35469_v33  ;;  %29340 = vmatprep.subr.mxu0 %v37010_v60 }
0x1c68   :  { %v21945_v29 = vpop.permute.xlu0 %21944  ;;  %v21869_v49 = vpop.permute.xlu1 %21868 }
0x1c69   :  { %26958 = vst.msk [vmem:[%s36906_s19 + $0x330] sm:$0xff] %vm2109_vm6, %v20768_v5  ;;  %29333 = vmatmul.mubr.msk.f32.vlgmr.msra.gmra.mxu0 %vm2109_vm6, %v20768_v5  ;;  %29376 = vmatpush3.msra.mxu1 %v21945_v29 }
0x1c6a   :  { %v30242_v8 = vpop.eup %30241  ;;  %29341 = vmatpush3.msra.mxu0 %v35571_v25  ;;  %29378 = vmatmul.mubr.msk.f32.vlgmr.msra.gmra.mxu1 %vm2109_vm6, %v35490_v42 }
0x1c6b   :  { %v20772_v33 = vmul.f32 %v30242_v8, %v35473_v61  ;;  %29342 = vmatprep.mubr.msk.f32.mxu0 %vm30381_vm1, %v37010_v60  ;;  %29350 = vmatprep.subr.mxu0 %v37010_v60 }
0x1c6c   :  { %v22233_v16 = vpop.permute.xlu0 %22232  ;;  %29406 = vmatprep.subr.mxu1 %v37010_v60  ;;  %v22235_v18 = vpop.permute.xlu1 %22234  ;;  %29408 = vmatprep.mubr.msk.f32.mxu1 %vm30381_vm1, %v37010_v60 }
0x1c6d   :  { %26960 = vst.msk [vmem:[%s36906_s19 + $0x340] sm:$0xff] %vm2109_vm6, %v20772_v33  ;;  %29343 = vmatmul.mubr.msk.f32.vlgmr.msra.gmra.mxu0 %vm2109_vm6, %v20772_v33  ;;  %29407 = vmatpush3.xpose.msk.msra.mxu1 %vm847_vm4, %v22235_v18 }
0x1c6e   :  { %v30244_v61 = vpop.eup %30243  ;;  %29351 = vmatpush3.msra.mxu0 %v35581_v37  ;;  %29352 = vmatprep.mubr.msk.f32.mxu0 %vm30381_vm1, %v37010_v60 }
0x1c6f   :  { %v20776_v42 = vmul.f32 %v30244_v61, %v35477_v39  ;;  %29360 = vmatprep.subr.mxu0 %v37010_v60  ;;  %29411 = vmatprep.subr.mxu1 %v37010_v60 }
0x1c70   :  { %v22311_v25 = vpop.permute.xlu0 %22310  ;;  %29409 = vmatmul.mubr.msk.f32.vlgmr.msra.gmra.mxu1 %vm847_vm4, %v22233_v16  ;;  %v22313_v14 = vpop.permute.xlu1 %22312 }
0x1c71   :  { %26962 = vst.msk [vmem:[%s36906_s19 + $0x350] sm:$0xff] %vm2109_vm6, %v20776_v42  ;;  %29353 = vmatmul.mubr.msk.f32.vlgmr.msra.gmra.mxu0 %vm2109_vm6, %v20776_v42  ;;  %29412 = vmatpush3.xpose.msk.msra.mxu1 %vm847_vm4, %v22313_v14 }
0x1c72   :  { %v30246_v37 = vpop.eup %30245  ;;  %29361 = vmatpush3.msra.mxu0 %v35595_v38  ;;  %29413 = vmatprep.mubr.msk.f32.mxu1 %vm30381_vm1, %v37010_v60 }
0x1c73   :  { %v30248_v39 = vpop.eup %30247  ;;  %v20784_v6 = vmul.f32 %v30246_v37, %v35483_v32  ;;  %29362 = vmatprep.mubr.msk.f32.mxu0 %vm30381_vm1, %v37010_v60  ;;  %29370 = vmatprep.subr.mxu0 %v37010_v60 }
0x1c74   :  { %v20780_v34 = vmul.f32 %v30248_v39, %v35481_v35  ;;  %v22389_v48 = vpop.permute.xlu0 %22388  ;;  %29414 = vmatmul.mubr.msk.f32.vlgmr.msra.gmra.mxu1 %vm847_vm4, %v22311_v25  ;;  %29416 = vmatprep.subr.mxu1 %v37010_v60  ;;  %v22391_v57 = vpop.permute.xlu1 %22390  ;;  %v26757_v35 = vld [vmem:[%s36907_s6 + $0x18] sm:$0xff] }
0x1c75   :  { %26966 = vst.msk [vmem:[%s36906_s19 + $0x370] sm:$0xff] %vm2109_vm6, %v20784_v6  ;;  %29417 = vmatpush3.xpose.msk.msra.mxu1 %vm847_vm4, %v22391_v57  ;;  %29418 = vmatprep.mubr.msk.f32.mxu1 %vm30381_vm1, %v37010_v60 }
0x1c76   :  { %26964 = vst.msk [vmem:[%s36906_s19 + $0x360] sm:$0xff] %vm2109_vm6, %v20780_v34  ;;  %29363 = vmatmul.mubr.msk.f32.vlgmr.msra.gmra.mxu0 %vm2109_vm6, %v20780_v34  ;;  %29421 = vmatprep.subr.mxu1 %v37010_v60 }
0x1c77   :  { %29371 = vmatpush3.msra.mxu0 %v21869_v49  ;;  %29372 = vmatprep.mubr.msk.f32.mxu0 %vm30381_vm1, %v37010_v60 }
0x1c78   :  { %v22467_v32 = vpop.permute.xlu0 %22466  ;;  %29419 = vmatmul.mubr.msk.f32.vlgmr.msra.gmra.mxu1 %vm847_vm4, %v22389_v48  ;;  %v22469_v38 = vpop.permute.xlu1 %22468  ;;  %29380 = vmatprep.subr.msk.mxu0 %vm6257_vm7, %v26757_v35 }
0x1c79   :  { %v35718_v54 = vpop.f32.mrf.mxu1  ;;  %29422 = vmatpush3.xpose.msk.msra.mxu1 %vm847_vm4, %v22469_v38  ;;  %29423 = vmatprep.mubr.msk.f32.mxu1 %vm30381_vm1, %v37010_v60 }
0x1c7a   :  { %29373 = vmatmul.mubr.msk.f32.vlgmr.msra.gmra.mxu0 %vm2109_vm6, %v20784_v6  ;;  %29426 = vmatprep.subr.mxu1 %v37010_v60 }
0x1c7b   :  { %v29309_v20 = vpop.f32.mrf.mxu1  ;;  %29381 = vmatpush3.msk.msra.mxu0 %vm6257_vm7, %v26757_v35 }
0x1c7c   :  { %v22545_v52 = vpop.permute.xlu0 %22544  ;;  %29424 = vmatmul.mubr.msk.f32.vlgmr.msra.gmra.mxu1 %vm847_vm4, %v22467_v32  ;;  %v22547_v17 = vpop.permute.xlu1 %22546  ;;  %29446 = vmatprep.subr.mxu0 %v37010_v60 }
0x1c7d   :  { %29427 = vmatpush3.xpose.msk.msra.mxu1 %vm847_vm4, %v22547_v17  ;;  %29428 = vmatprep.mubr.msk.f32.mxu1 %vm30381_vm1, %v37010_v60 }
0x1c7e   :  { %29431 = vmatprep.subr.mxu1 %v37010_v60 }
0x1c80   :  { %v22623_v31 = vpop.permute.xlu0 %22622  ;;  %29429 = vmatmul.mubr.msk.f32.vlgmr.msra.gmra.mxu1 %vm847_vm4, %v22545_v52  ;;  %v22625_v63 = vpop.permute.xlu1 %22624 }
0x1c81   :  { %29432 = vmatpush3.xpose.msk.msra.mxu1 %vm847_vm4, %v22625_v63  ;;  %29433 = vmatprep.mubr.msk.f32.mxu1 %vm30381_vm1, %v37010_v60 }
0x1c82   :  { %29436 = vmatprep.subr.mxu1 %v37010_v60 }
0x1c84   :  { %v22701_v15 = vpop.permute.xlu0 %22700  ;;  %29434 = vmatmul.mubr.msk.f32.vlgmr.msra.gmra.mxu1 %vm847_vm4, %v22623_v31  ;;  %v22703_v36 = vpop.permute.xlu1 %22702 }
0x1c85   :  { %29437 = vmatpush3.xpose.msk.msra.mxu1 %vm847_vm4, %v22703_v36  ;;  %29438 = vmatprep.mubr.msk.f32.mxu1 %vm30381_vm1, %v37010_v60 }
0x1c86   :  { %29441 = vmatprep.subr.mxu1 %v37010_v60 }
0x1c88   :  { %v22779_v5 = vpop.permute.xlu0 %22778  ;;  %29439 = vmatmul.mubr.msk.f32.vlgmr.msra.gmra.mxu1 %vm847_vm4, %v22701_v15  ;;  %v22781_v29 = vpop.permute.xlu1 %22780 }
0x1c89   :  { %29442 = vmatpush3.xpose.msk.msra.mxu1 %vm847_vm4, %v22781_v29  ;;  %29443 = vmatprep.mubr.msk.f32.mxu1 %vm30381_vm1, %v37010_v60 }
0x1c8a   :  { %29451 = vmatprep.subr.mxu1 %v37010_v60 }
0x1c8c   :  { %v22937_v49 = vpop.permute.xlu0 %22936  ;;  %29444 = vmatmul.mubr.msk.f32.vlgmr.msra.gmra.mxu1 %vm847_vm4, %v22779_v5  ;;  %v22859_v31 = vpop.permute.xlu1 %22858 }
0x1c8d   :  { %29452 = vmatpush3.xpose.msk.msra.mxu1 %vm847_vm4, %v22937_v49  ;;  %29453 = vmatprep.mubr.msk.f32.mxu1 %vm30381_vm1, %v37010_v60 }
0x1c8e   :  { %29461 = vmatprep.subr.mxu1 %v37010_v60 }
0x1c90   :  { %v22935_v8 = vpop.permute.xlu0 %22934  ;;  %v22857_v29 = vpop.permute.xlu1 %22856 }
0x1c91   :  { %29454 = vmatmul.mubr.msk.f32.vlgmr.msra.gmra.mxu1 %vm847_vm4, %v22935_v8 }
0x1c92   :  { %29463 = vmatprep.mubr.msk.f32.mxu1 %vm30381_vm1, %v37010_v60 }
0x1c94   :  { %v23093_v33 = vpop.permute.xlu0 %23092 }
0x1c95   :  { %29462 = vmatpush3.xpose.msk.msra.mxu1 %vm847_vm4, %v23093_v33 }
0x1c96   :  { %29471 = vmatprep.subr.mxu1 %v37010_v60 }
0x1c98   :  { %v23091_v16 = vpop.permute.xlu0 %23090 }
0x1c99   :  { %29464 = vmatmul.mubr.msk.f32.vlgmr.msra.gmra.mxu1 %vm847_vm4, %v23091_v16 }
0x1c9a   :  { %29473 = vmatprep.mubr.msk.f32.mxu1 %vm30381_vm1, %v37010_v60 }
0x1c9c   :  { %v23249_v18 = vpop.permute.xlu0 %23248 }
0x1c9d   :  { %29472 = vmatpush3.xpose.msk.msra.mxu1 %vm847_vm4, %v23249_v18  ;;  %v23015_v18 = vpop.permute.xlu1 %23014 }
0x1c9e   :  { %29481 = vmatprep.subr.mxu1 %v37010_v60 }
0x1ca0   :  { %v23247_v61 = vpop.permute.xlu0 %23246 }
0x1ca1   :  { %29474 = vmatmul.mubr.msk.f32.vlgmr.msra.gmra.mxu1 %vm847_vm4, %v23247_v61 }
0x1ca2   :  { %29483 = vmatprep.mubr.msk.f32.mxu1 %vm30381_vm1, %v37010_v60 }
0x1ca4   :  { %v23405_v42 = vpop.permute.xlu0 %23404 }
0x1ca5   :  { %29482 = vmatpush3.xpose.msk.msra.mxu1 %vm847_vm4, %v23405_v42 }
0x1ca6   :  { %29491 = vmatprep.subr.mxu1 %v37010_v60 }
0x1ca8   :  { %v23403_v25 = vpop.permute.xlu0 %23402 }
0x1ca9   :  { %29484 = vmatmul.mubr.msk.f32.vlgmr.msra.gmra.mxu1 %vm847_vm4, %v23403_v25 }
0x1caa   :  { %29493 = vmatprep.mubr.msk.f32.mxu1 %vm30381_vm1, %v37010_v60 }
0x1cbe   :  { %v21104_v14 = vpop.f32.mrf.mxu1 }
0x1cc0   :  { %v29319_v37 = vpop.f32.mrf.mxu1 }
0x1cc6   :  { %v21256_v39 = vpop.f32.mrf.mxu1 }
0x1cc8   :  { %v29329_v6 = vpop.f32.mrf.mxu1 }
0x1cc9   :  { %v23013_v6 = vpop.permute.xlu1 %23012 }
0x1cce   :  { %v21408_v34 = vpop.f32.mrf.mxu1 }
0x1cd0   :  { %v29339_v48 = vpop.f32.mrf.mxu1 }
0x1cd2   :  { %v21560_v57 = vpop.f32.mrf.mxu1 }
0x1cd4   :  { %v29349_v35 = vpop.f32.mrf.mxu1 }
0x1cda   :  { %v21712_v32 = vpop.f32.mrf.mxu1 }
0x1cdc   :  { %v29359_v38 = vpop.f32.mrf.mxu1 }
0x1ce2   :  { %v21864_v20 = vpop.f32.mrf.mxu1 }
0x1ce4   :  { %v29369_v52 = vpop.f32.mrf.mxu1 }
0x1d19   :  { %v20876_v17 = vpop.f32.mrf.mxu0 }
0x1d1a   :  { %29382 = vmatprep.mubr.msk.f32.mxu0 %vm847_vm4, %v20876_v17 }
0x1d1b   :  { %v29304_v63 = vpop.f32.mrf.mxu0  ;;  %29383 = vmatmul.mubr.msk.f32.vlgmr.msra.gmra.mxu0 %vm847_vm4, %v35718_v54 }
0x1d1c   :  { %29447 = vmatpush3.xpose.msk.msra.mxu0 %vm847_vm4, %v22859_v31 }
0x1d1d   :  { %29456 = vmatprep.subr.mxu0 %v37010_v60 }
0x1d21   :  { %v21028_v15 = vpop.f32.mrf.mxu0 }
0x1d22   :  { %29385 = vmatprep.mubr.msk.f32.mxu0 %vm847_vm4, %v21028_v15 }
0x1d23   :  { %v29314_v36 = vpop.f32.mrf.mxu0  ;;  %29386 = vmatmul.mubr.msk.f32.gmra.mxu0 %vm847_vm4, %v21104_v14 }
0x1d24   :  { %v23171_v36 = vpop.permute.xlu1 %23170 }
0x1d25   :  { %v21180_v5 = vpop.f32.mrf.mxu0 }
0x1d26   :  { %29388 = vmatprep.mubr.msk.f32.mxu0 %vm847_vm4, %v21180_v5 }
0x1d27   :  { %v29324_v49 = vpop.f32.mrf.mxu0  ;;  %29389 = vmatmul.mubr.msk.f32.gmra.mxu0 %vm847_vm4, %v21256_v39 }
0x1d29   :  { %v21332_v8 = vpop.f32.mrf.mxu0 }
0x1d2a   :  { %v22016_v33 = vpop.f32.mrf.mxu1  ;;  %29391 = vmatprep.mubr.msk.f32.mxu0 %vm847_vm4, %v21332_v8 }
0x1d2b   :  { %v29334_v54 = vpop.f32.mrf.mxu0  ;;  %29392 = vmatmul.mubr.msk.f32.gmra.mxu0 %vm847_vm4, %v21408_v34 }
0x1d2c   :  { %v29379_v16 = vpop.f32.mrf.mxu1 }
0x1d2d   :  { %v21484_v61 = vpop.f32.mrf.mxu0 }
0x1d2e   :  { %29394 = vmatprep.mubr.msk.f32.mxu0 %vm847_vm4, %v21484_v61 }
0x1d2f   :  { %v29344_v42 = vpop.f32.mrf.mxu0  ;;  %29395 = vmatmul.mubr.msk.f32.gmra.mxu0 %vm847_vm4, %v21560_v57 }
0x1d30   :  { %v22306_v25 = vpop.f32.mrf.mxu1 }
0x1d31   :  { %v23480_v14 = vmul.f32 0.5, %v22306_v25  ;;  %v21636_v37 = vpop.f32.mrf.mxu0 }
0x1d32   :  { %29397 = vmatprep.mubr.msk.f32.mxu0 %vm847_vm4, %v21636_v37  ;;  %v29410_v39 = vpop.f32.mrf.mxu1 }
0x1d33   :  { %v35785_v48 = vadd.f32 %v23480_v14, %v31107_v10  ;;  %v29354_v35 = vpop.f32.mrf.mxu0  ;;  %29398 = vmatmul.mubr.msk.f32.gmra.mxu0 %vm847_vm4, %v21712_v32  ;;  %v23169_v14 = vpop.permute.xlu1 %23168 }
0x1d34   :  { %v22384_v34 = vpop.f32.mrf.mxu1 }
0x1d35   :  { %v23481_v38 = vmul.f32 0.5, %v22384_v34  ;;  %v23512_v52 = vsel %vm2109_vm6, %v35785_v48, -inf }
0x1d36   :  { %v21788_v17 = vpop.f32.mrf.mxu0  ;;  %23513 = vmax.xlane.f32.xlu1 %v23512_v52  ;;  %v29415_v57 = vpop.f32.mrf.mxu1 }
0x1d37   :  { %v35791_v31 = vadd.f32 %v23481_v38, %v31107_v10  ;;  %29400 = vmatprep.mubr.msk.f32.mxu0 %vm847_vm4, %v21788_v17  ;;  %v23327_v52 = vpop.permute.xlu1 %23326 }
0x1d38   :  { %v29364_v63 = vpop.f32.mrf.mxu0  ;;  %29401 = vmatmul.mubr.msk.f32.gmra.mxu0 %vm847_vm4, %v21864_v20  ;;  %v22462_v15 = vpop.f32.mrf.mxu1 }
0x1d39   :  { %v23482_v5 = vmul.f32 0.5, %v22462_v15  ;;  %v23515_v32 = vsel %vm2109_vm6, %v35791_v31, -inf }
0x1d3a   :  { %v21940_v49 = vpop.f32.mrf.mxu0  ;;  %23516 = vmax.xlane.f32.xlu0 %v23515_v32  ;;  %v29420_v8 = vpop.f32.mrf.mxu1 }
0x1d3b   :  { %v35798_v54 = vadd.f32 %v23482_v5, %v31107_v10  ;;  %29403 = vmatprep.mubr.msk.f32.mxu0 %vm847_vm4, %v21940_v49  ;;  %v23325_v32 = vpop.permute.xlu1 %23324 }
0x1d3c   :  { %v29374_v16 = vpop.f32.mrf.mxu0  ;;  %29404 = vmatmul.mubr.msk.f32.gmra.mxu0 %vm847_vm4, %v22016_v33  ;;  %v22540_v61 = vpop.f32.mrf.mxu1 }
0x1d3d   :  { %v23483_v42 = vmul.f32 0.5, %v22540_v61  ;;  %29448 = vmatprep.mubr.msk.f32.mxu0 %vm30381_vm1, %v37010_v60  ;;  %v23518_v20 = vsel %vm2109_vm6, %v35798_v54, -inf }
0x1d3e   :  { %23519 = vmax.xlane.f32.xlu0 %v23518_v20  ;;  %v29425_v25 = vpop.f32.mrf.mxu1 }
0x1d3f   :  { %v35807_v37 = vadd.f32 %v23483_v42, %v31107_v10 }
0x1d40   :  { %29449 = vmatmul.mubr.msk.f32.vlgmr.msra.gmra.mxu0 %vm847_vm4, %v22857_v29  ;;  %v22618_v39 = vpop.f32.mrf.mxu1 }
0x1d41   :  { %29457 = vmatpush3.xpose.msk.msra.mxu0 %vm847_vm4, %v23015_v18  ;;  %v23484_v33 = vmul.f32 0.5, %v22618_v39  ;;  %v23521_v35 = vsel %vm2109_vm6, %v35807_v37, -inf  ;;  %29458 = vmatprep.mubr.msk.f32.mxu0 %vm30381_vm1, %v37010_v60 }
0x1d42   :  { %23522 = vmax.xlane.f32.xlu1 %v23521_v35  ;;  %v29430_v34 = vpop.f32.mrf.mxu1  ;;  %29466 = vmatprep.subr.mxu0 %v37010_v60 }
0x1d43   :  { %v35817_v38 = vadd.f32 %v23484_v33, %v31107_v10 }
0x1d44   :  { %29459 = vmatmul.mubr.msk.f32.vlgmr.msra.gmra.mxu0 %vm847_vm4, %v23013_v6  ;;  %v22696_v29 = vpop.f32.mrf.mxu1 }
0x1d45   :  { %29467 = vmatpush3.xpose.msk.msra.mxu0 %vm847_vm4, %v23171_v36  ;;  %v23485_v18 = vmul.f32 0.5, %v22696_v29  ;;  %v23524_v17 = vsel %vm2109_vm6, %v35817_v38, -inf  ;;  %29468 = vmatprep.mubr.msk.f32.mxu0 %vm30381_vm1, %v37010_v60 }
0x1d46   :  { %23525 = vmax.xlane.f32.xlu0 %v23524_v17  ;;  %v29435_v57 = vpop.f32.mrf.mxu1  ;;  %29476 = vmatprep.subr.mxu0 %v37010_v60 }
0x1d47   :  { %v35827_v63 = vadd.f32 %v23485_v18, %v31107_v10 }
0x1d48   :  { %29469 = vmatmul.mubr.msk.f32.vlgmr.msra.gmra.mxu0 %vm847_vm4, %v23169_v14  ;;  %v22774_v6 = vpop.f32.mrf.mxu1 }
0x1d49   :  { %29477 = vmatpush3.xpose.msk.msra.mxu0 %vm847_vm4, %v23327_v52  ;;  %v23486_v15 = vmul.f32 0.5, %v22774_v6  ;;  %v23527_v36 = vsel %vm2109_vm6, %v35827_v63, -inf  ;;  %29478 = vmatprep.mubr.msk.f32.mxu0 %vm30381_vm1, %v37010_v60 }
0x1d4a   :  { %23528 = vmax.xlane.f32.xlu1 %v23527_v36  ;;  %v29440_v5 = vpop.f32.mrf.mxu1  ;;  %29486 = vmatprep.subr.mxu0 %v37010_v60 }
0x1d4b   :  { %v35837_v49 = vadd.f32 %v23486_v15, %v31107_v10 }
0x1d4c   :  { %29479 = vmatmul.mubr.msk.f32.vlgmr.msra.gmra.mxu0 %vm847_vm4, %v23325_v32  ;;  %v22852_v8 = vpop.f32.mrf.mxu1 }
0x1d4d   :  { %v23487_v16 = vmul.f32 0.5, %v22852_v8  ;;  %v23530_v61 = vsel %vm2109_vm6, %v35837_v49, -inf  ;;  %29488 = vmatprep.mubr.msk.f32.mxu0 %vm30381_vm1, %v37010_v60 }
0x1d4e   :  { %23531 = vmax.xlane.f32.xlu0 %v23530_v61  ;;  %v29445_v42 = vpop.f32.mrf.mxu1 }
0x1d4f   :  { %v23503_v20 = vadd.f32 %v23487_v16, %v31107_v10 }
0x1d51   :  { %v23008_v25 = vpop.f32.mrf.mxu1  ;;  %v23533_v14 = vsel %vm2109_vm6, %v23503_v20, -inf }
0x1d52   :  { %v23489_v39 = vmul.f32 0.5, %v23008_v25  ;;  %23534 = vmax.xlane.f32.xlu1 %v23533_v14 }
0x1d53   :  { %v29455_v33 = vpop.f32.mrf.mxu1 }
0x1d54   :  { %v23505_v35 = vadd.f32 %v23489_v39, %v31107_v10 }
0x1d56   :  { %v23539_v34 = vsel %vm2109_vm6, %v23505_v35, -inf }
0x1d57   :  { %23540 = vmax.xlane.f32.xlu1 %v23539_v34 }
0x1d59   :  { %v23164_v29 = vpop.f32.mrf.mxu1 }
0x1d5a   :  { %v23491_v52 = vmul.f32 0.5, %v23164_v29 }
0x1d5b   :  { %v29465_v18 = vpop.f32.mrf.mxu1 }
0x1d5c   :  { %v35849_v17 = vadd.f32 %v23491_v52, %v31107_v10 }
0x1d5e   :  { %v23545_v57 = vsel %vm2109_vm6, %v35849_v17, -inf }
0x1d5f   :  { %23546 = vmax.xlane.f32.xlu1 %v23545_v57 }
0x1d61   :  { %v23320_v6 = vpop.f32.mrf.mxu1 }
0x1d62   :  { %v23493_v15 = vmul.f32 0.5, %v23320_v6 }
0x1d63   :  { %v29475_v36 = vpop.f32.mrf.mxu1 }
0x1d64   :  { %v35854_v5 = vadd.f32 %v23493_v15, %v31107_v10 }
0x1d66   :  { %v23551_v32 = vsel %vm2109_vm6, %v35854_v5, -inf }
0x1d67   :  { %23552 = vmax.xlane.f32.xlu1 %v23551_v32 }
0x1d69   :  { %v23476_v8 = vpop.f32.mrf.mxu1 }
0x1d6a   :  { %v23495_v16 = vmul.f32 0.5, %v23476_v8 }
0x1d6b   :  { %v29485_v61 = vpop.f32.mrf.mxu1 }
0x1d6c   :  { %v35859_v42 = vadd.f32 %v23495_v16, %v31107_v10 }
0x1d6e   :  { %v23557_v25 = vsel %vm2109_vm6, %v35859_v42, -inf }
0x1d6f   :  { %23558 = vmax.xlane.f32.xlu1 %v23557_v25 }
0x1dbf   :  { %v23514_v14 = vpop.xlane.xlu1 %23513 }
0x1dc0   :  { %v23560_v39 = vsub.f32 %v35785_v48, %v23514_v14 }
0x1dc2   :  { %v23576_v33 = vmul.f32 1.442695, %v23560_v39 }
0x1dc3   :  { %v23517_v34 = vpop.xlane.xlu0 %23516 }
0x1dc4   :  { %30249 = vpow2.f32 %v23576_v33  ;;  %v23561_v29 = vsub.f32 %v35791_v31, %v23517_v34 }
0x1dc6   :  { %v23578_v52 = vmul.f32 1.442695, %v23561_v29 }
0x1dc8   :  { %30251 = vpow2.f32 %v23578_v52 }
0x1dcb   :  { %v23523_v18 = vpop.xlane.xlu1 %23522 }
0x1dcc   :  { %v23563_v57 = vsub.f32 %v35807_v37, %v23523_v18  ;;  %v19258_v37 = vadd.f32 %v35161_v41, %v35274_v23  ;;  %v19268_v41 = vadd.f32 %v35165_v44, %v35278_v11 }
0x1dce   :  { %v23582_v6 = vmul.f32 1.442695, %v23563_v57 }
0x1dd0   :  { %30253 = vpow2.f32 %v23582_v6 }
0x1dd1   :  { %v35866_v15 = vpop.eup %30249 }
0x1dd2   :  { %v23608_v36 = vsel %vm2109_vm6, %v35866_v15, 0.0 }
0x1dd3   :  { %23609 = vadd.xlane.f32.xlu0 %v23608_v36  ;;  %v23529_v32 = vpop.xlane.xlu1 %23528 }
0x1dd4   :  { %v23565_v48 = vsub.f32 %v35827_v63, %v23529_v32  ;;  %v19278_v32 = vadd.f32 %v35170_v12, %v35282_v47 }
0x1dd5   :  { %v35871_v8 = vpop.eup %30251 }
0x1dd6   :  { %v23586_v16 = vmul.f32 1.442695, %v23565_v48  ;;  %v23611_v31 = vsel %vm2109_vm6, %v35871_v8, 0.0 }
0x1dd7   :  { %23612 = vadd.xlane.f32.xlu1 %v23611_v31 }
0x1dd8   :  { %30255 = vpow2.f32 %v23586_v16 }
0x1ddb   :  { %v29384_v61 = vpop.f32.mrf.mxu0  ;;  %v23535_v25 = vpop.xlane.xlu1 %23534 }
0x1ddc   :  { %v35877_v14 = vadd.f32 %v29384_v61, %v19258_v37  ;;  %v23567_v39 = vsub.f32 %v23503_v20, %v23535_v25  ;;  %v19288_v37 = vadd.f32 %v35177_v13, %v35286_v21  ;;  %v19293_v13 = vadd.f32 %v35190_v56, %v35295_v22 }
0x1ddd   :  { %v35879_v33 = vpop.eup %30253  ;;  %v35883_v52 = vpop.f32.mrf.mxu0  ;;  %v19303_v56 = vadd.f32 %v35199_v24, %v35299_v9  ;;  %v37097_v9 = vld [vmem:[#allocation17_spill] sm:$0xff] }
0x1dde   :  { %v23590_v34 = vmul.f32 1.442695, %v23567_v39  ;;  %v23617_v63 = vsel %vm2109_vm6, %v35879_v33, 0.0 }
0x1ddf   :  { %23618 = vadd.xlane.f32.xlu1 %v23617_v63 }
0x1de0   :  { %30257 = vpow2.f32 %v23590_v34  ;;  %v23541_v29 = vpop.xlane.xlu1 %23540  ;;  %v19298_v34 = vadd.f32 %v35186_v59, %v35291_v27 }
0x1de1   :  { %v23569_v18 = vsub.f32 %v23505_v35, %v23541_v29 }
0x1de3   :  { %v23594_v23 = vmul.f32 1.442695, %v23569_v18  ;;  %v29387_v57 = vpop.f32.mrf.mxu0 }
0x1de4   :  { %v35887_v6 = vadd.f32 %v29387_v57, %v19268_v41  ;;  %v19308_v57 = vadd.f32 %v35195_v1, %v35297_v50  ;;  %v19318_v1 = vadd.f32 %v35204_v3, %v35307_v62 }
0x1de5   :  { %v35889_v20 = vpop.eup %30255  ;;  %30259 = vpow2.f32 %v23594_v23  ;;  %v35891_v36 = vpop.f32.mrf.mxu0 }
0x1de6   :  { %v23623_v48 = vsel %vm2109_vm6, %v35889_v20, 0.0 }
0x1de7   :  { %v29390_v16 = vpop.f32.mrf.mxu0  ;;  %23624 = vadd.xlane.f32.xlu1 %v23623_v48 }
0x1de8   :  { %v35897_v35 = vadd.f32 %v29390_v16, %v19278_v32  ;;  %v23547_v44 = vpop.xlane.xlu1 %23546 }
0x1de9   :  { %v23571_v11 = vsub.f32 %v35849_v17, %v23547_v44  ;;  %v35900_v31 = vpop.f32.mrf.mxu0  ;;  %v37095_v44 = vld [vmem:[#allocation14_spill] sm:$0xff] }
0x1deb   :  { %v23598_v61 = vmul.f32 1.442695, %v23571_v11  ;;  %v29393_v25 = vpop.f32.mrf.mxu0  ;;  %v37096_v11 = vld [vmem:[#allocation30_spill] sm:$0xff] }
0x1dec   :  { %v35904_v39 = vadd.f32 %v29393_v25, %v19288_v37  ;;  %v19313_v37 = vadd.f32 %v37096_v11, %v37095_v44 }
0x1ded   :  { %v35906_v12 = vpop.eup %30257  ;;  %30261 = vpow2.f32 %v23598_v61  ;;  %v35908_v47 = vpop.f32.mrf.mxu0 }
0x1dee   :  { %v23629_v17 = vsel %vm2109_vm6, %v35906_v12, 0.0  ;;  %v23520_v61 = vpop.xlane.xlu0 %23519 }
0x1def   :  { %v29396_v63 = vpop.f32.mrf.mxu0  ;;  %23630 = vadd.xlane.f32.xlu1 %v23629_v17  ;;  %v37098_v17 = vld [vmem:[#allocation23_spill] sm:$0xff]  ;;  %v23562_v3 = vsub.f32 %v35798_v54, %v23520_v61 }
0x1df0   :  { %v35916_v21 = vadd.f32 %v29396_v63, %v19298_v34  ;;  %v23553_v29 = vpop.xlane.xlu1 %23552  ;;  %v19328_v63 = vadd.f32 %v37098_v17, %v37097_v9 }
0x1df1   :  { %v23573_v18 = vsub.f32 %v35854_v5, %v23553_v29  ;;  %v22177_v41 = vpop.f32.mrf.mxu0 }
0x1df2   :  { %v35919_v23 = vpop.eup %30259  ;;  %v35923_v59 = vadd.f32 %v22177_v41, %v19293_v13  ;;  %v37100_v41 = vld [vmem:[#allocation13_spill] sm:$0xff] }
0x1df3   :  { %v23602_v27 = vmul.f32 1.442695, %v23573_v18  ;;  %v29399_v32 = vpop.f32.mrf.mxu0  ;;  %v23635_v48 = vsel %vm2109_vm6, %v35919_v23, 0.0  ;;  %v37099_v18 = vld [vmem:[#allocation16_spill] sm:$0xff] }
0x1df4   :  { %v35929_v22 = vadd.f32 %v29399_v32, %v19308_v57  ;;  %23636 = vadd.xlane.f32.xlu1 %v23635_v48  ;;  %v19323_v57 = vadd.f32 %v37100_v41, %v37099_v18  ;;  %v23526_v32 = vpop.xlane.xlu0 %23525 }
0x1df5   :  { %30263 = vpow2.f32 %v23602_v27  ;;  %v22187_v5 = vpop.f32.mrf.mxu0 }
0x1df6   :  { %v35931_v16 = vadd.f32 %v22187_v5, %v19303_v56  ;;  %v23580_v5 = vmul.f32 1.442695, %v23562_v3 }
0x1df8   :  { %v29402_v50 = vpop.f32.mrf.mxu0  ;;  %30265 = vpow2.f32 %v23580_v5 }
0x1df9   :  { %v35937_v25 = vadd.f32 %v29402_v50, %v19318_v1  ;;  %v23564_v50 = vsub.f32 %v35817_v38, %v23526_v32 }
0x1dfa   :  { %v35939_v34 = vpop.eup %30261  ;;  %v22197_v24 = vpop.f32.mrf.mxu0 }
0x1dfb   :  { %v35943_v13 = vadd.f32 %v22197_v24, %v19313_v37  ;;  %v23641_v29 = vsel %vm2109_vm6, %v35939_v34, 0.0  ;;  %v23532_v37 = vpop.xlane.xlu0 %23531  ;;  %v23584_v17 = vmul.f32 1.442695, %v23564_v50 }
0x1dfc   :  { %v29405_v62 = vpop.f32.mrf.mxu0  ;;  %23642 = vadd.xlane.f32.xlu1 %v23641_v29 }
0x1dfd   :  { %v35950_v27 = vadd.f32 %v29405_v62, %v19328_v63  ;;  %v23566_v63 = vsub.f32 %v35837_v49, %v23532_v37  ;;  %30267 = vpow2.f32 %v23584_v17 }
0x1dfe   :  { %v22207_v48 = vpop.f32.mrf.mxu0 }
0x1dff   :  { %v35952_v56 = vadd.f32 %v22207_v48, %v19323_v57  ;;  %v23588_v41 = vmul.f32 1.442695, %v23566_v63 }
0x1e00   :  { %v22930_v1 = vpop.f32.mrf.mxu0 }
0x1e01   :  { %v23488_v44 = vmul.f32 0.5, %v22930_v1  ;;  %30269 = vpow2.f32 %v23588_v41 }
0x1e02   :  { %v35955_v11 = vpop.eup %30263  ;;  %v29450_v54 = vpop.f32.mrf.mxu0 }
0x1e03   :  { %v35958_v61 = vadd.f32 %v23488_v44, %v31107_v10  ;;  %v23647_v24 = vsel %vm2109_vm6, %v35955_v11, 0.0 }
0x1e04   :  { %v23086_v9 = vpop.f32.mrf.mxu0  ;;  %23648 = vadd.xlane.f32.xlu1 %v23647_v24 }
0x1e05   :  { %v23490_v29 = vmul.f32 0.5, %v23086_v9  ;;  %v23536_v38 = vsel %vm2109_vm6, %v35958_v61, -inf  ;;  %v35978_v54 = vpop.eup %30265 }
0x1e06   :  { %v29460_v3 = vpop.f32.mrf.mxu0  ;;  %23537 = vmax.xlane.f32.xlu0 %v23536_v38  ;;  %v23614_v9 = vsel %vm2109_vm6, %v35978_v54, 0.0 }
0x1e07   :  { %v35966_v62 = vadd.f32 %v23490_v29, %v31107_v10 }
0x1e08   :  { %v23242_v18 = vpop.f32.mrf.mxu0 }
0x1e09   :  { %v23492_v57 = vmul.f32 0.5, %v23242_v18  ;;  %v23542_v32 = vsel %vm2109_vm6, %v35966_v62, -inf }
0x1e0a   :  { %v29470_v48 = vpop.f32.mrf.mxu0  ;;  %23543 = vmax.xlane.f32.xlu0 %v23542_v32  ;;  %v35986_v17 = vpop.eup %30267 }
0x1e0b   :  { %v35971_v49 = vadd.f32 %v23492_v57, %v31107_v10  ;;  %v23620_v63 = vsel %vm2109_vm6, %v35986_v17, 0.0 }
0x1e0c   :  { %v23398_v5 = vpop.f32.mrf.mxu0 }
0x1e0d   :  { %v23494_v1 = vmul.f32 0.5, %v23398_v5  ;;  %v23548_v50 = vsel %vm2109_vm6, %v35971_v49, -inf }
0x1e0e   :  { %v29480_v44 = vpop.f32.mrf.mxu0  ;;  %23549 = vmax.xlane.f32.xlu0 %v23548_v50 }
0x1e0f   :  { %v35976_v37 = vadd.f32 %v23494_v1, %v31107_v10  ;;  %v35992_v10 = vpop.eup %30269 }
0x1e10   :  { %v23626_v29 = vsel %vm2109_vm6, %v35992_v10, 0.0 }
0x1e11   :  { %v23554_v24 = vsel %vm2109_vm6, %v35976_v37, -inf }
0x1e12   :  { %23555 = vmax.xlane.f32.xlu0 %v23554_v24 }
0x1e15   :  { %23781 = vrot.lane.b32.xlu1 %v33864_v2, %s37101_s23  ;;  %v23559_v2 = vpop.xlane.xlu1 %23558 }
0x1e16   :  { %23615 = vadd.xlane.f32.xlu0 %v23614_v9 }
0x1e19   :  { %23857 = vrot.lane.b32.xlu1 %v33874_v43, %s37101_s23 }
0x1e1a   :  { %23621 = vadd.xlane.f32.xlu0 %v23620_v63 }
0x1e1d   :  { %23933 = vrot.lane.b32.xlu1 %v33872_v19, %s37101_s23  ;;  %v23575_v19 = vsub.f32 %v35859_v42, %v23559_v2 }
0x1e1e   :  { %23627 = vadd.xlane.f32.xlu0 %v23626_v29 }
0x1e1f   :  { %v23606_v43 = vmul.f32 1.442695, %v23575_v19 }
0x1e21   :  { %24009 = vrot.lane.b32.xlu1 %v33880_v26, %s37101_s23  ;;  %30271 = vpow2.f32 %v23606_v43 }
0x1e25   :  { %24085 = vrot.lane.b32.xlu1 %v33878_v58, %s37101_s23 }
0x1e29   :  { %24161 = vrot.lane.b32.xlu1 %v33888_v0, %s37101_s23 }
0x1e2d   :  { %24237 = vrot.lane.b32.xlu1 %v33886_v45, %s37101_s23 }
0x1e31   :  { %24313 = vrot.lane.b32.xlu1 %v33928_v55, %s37101_s23 }
0x1e34   :  { %23705 = vrot.lane.b32.xlu0 %v33868_v28, %s37101_s23  ;;  %v36021_v28 = vpop.eup %30271 }
0x1e35   :  { %24389 = vrot.lane.b32.xlu1 %v33918_v53, %s37101_s23  ;;  %v23653_v58 = vsel %vm2109_vm6, %v36021_v28, 0.0 }
0x1e39   :  { %24541 = vrot.lane.b32.xlu1 %v33936_v30, %s37101_s23 }
0x1e3d   :  { %24617 = vrot.lane.b32.xlu1 %v33962_v7, %s37101_s23 }
0x1e41   :  { %24693 = vrot.lane.b32.xlu1 %v33953_v4, %s37101_s23 }
0x1e45   :  { %24769 = vrot.lane.b32.xlu1 %v33972_v51, %s37101_s23 }
0x1e53   :  { %23654 = vadd.xlane.f32.xlu0 %v23653_v58 }
0x1e5c   :  { %v23610_v26 = vpop.xlane.xlu0 %23609 }
0x1e5d   :  { %30273 = vrcp.f32 %v23610_v26 }
0x1e60   :  { %v23613_v45 = vpop.xlane.xlu1 %23612 }
0x1e61   :  { %30275 = vrcp.f32 %v23613_v45 }
0x1e68   :  { %v23619_v0 = vpop.xlane.xlu1 %23618 }
0x1e69   :  { %30277 = vrcp.f32 %v23619_v0 }
0x1e6a   :  { %v30274_v53 = vpop.eup %30273 }
0x1e6b   :  { %v36026_v55 = vmul.f32 %v30274_v53, %v35866_v15 }
0x1e6d   :  { %27033 = vst.msk [vmem:[%s36906_s19 + $0x380] sm:$0xff] %vm2109_vm6, %v36026_v55 }
0x1e6e   :  { %v30276_v30 = vpop.eup %30275 }
0x1e6f   :  { %v23659_v4 = vmul.f32 %v30276_v30, %v35871_v8 }
0x1e70   :  { %v23625_v7 = vpop.xlane.xlu1 %23624 }
0x1e71   :  { %27034 = vst.msk [vmem:[%s36906_s19 + $0x388] sm:$0xff] %vm2109_vm6, %v23659_v4  ;;  %30279 = vrcp.f32 %v23625_v7 }
0x1e76   :  { %v30278_v51 = vpop.eup %30277 }
0x1e77   :  { %v23663_v42 = vmul.f32 %v30278_v51, %v35879_v33 }
0x1e78   :  { %v23631_v15 = vpop.xlane.xlu1 %23630 }
0x1e79   :  { %27036 = vst.msk [vmem:[%s36906_s19 + $0x398] sm:$0xff] %vm2109_vm6, %v23663_v42  ;;  %30281 = vrcp.f32 %v23631_v15 }
0x1e7d   :  { %v23637_v38 = vpop.xlane.xlu1 %23636 }
0x1e7e   :  { %v30280_v3 = vpop.eup %30279  ;;  %30283 = vrcp.f32 %v23637_v38 }
0x1e7f   :  { %v23667_v8 = vmul.f32 %v30280_v3, %v35889_v20 }
0x1e81   :  { %27038 = vst.msk [vmem:[%s36906_s19 + $0x3a8] sm:$0xff] %vm2109_vm6, %v23667_v8 }
0x1e85   :  { %v23643_v18 = vpop.xlane.xlu1 %23642 }
0x1e86   :  { %v30282_v41 = vpop.eup %30281  ;;  %30285 = vrcp.f32 %v23643_v18 }
0x1e87   :  { %v36049_v33 = vmul.f32 %v30282_v41, %v35906_v12 }
0x1e89   :  { %27040 = vst.msk [vmem:[%s36906_s19 + $0x3b8] sm:$0xff] %vm2109_vm6, %v36049_v33 }
0x1e8b   :  { %v30284_v57 = vpop.eup %30283 }
0x1e8c   :  { %v36057_v20 = vmul.f32 %v30284_v57, %v35919_v23 }
0x1e8d   :  { %v23649_v32 = vpop.xlane.xlu1 %23648 }
0x1e8e   :  { %27042 = vst.msk [vmem:[%s36906_s19 + $0x3c8] sm:$0xff] %vm2109_vm6, %v36057_v20  ;;  %30287 = vrcp.f32 %v23649_v32 }
0x1e8f   :  { %v23538_v12 = vpop.xlane.xlu0 %23537 }
0x1e90   :  { %v23568_v48 = vsub.f32 %v35958_v61, %v23538_v12 }
0x1e91   :  { %v23782_v5 = vpop.permute.xlu1 %23781 }
0x1e92   :  { %v23592_v1 = vmul.f32 1.442695, %v23568_v48  ;;  %29492 = vmatpush3.msra.mxu1 %v23782_v5 }
0x1e93   :  { %v30286_v50 = vpop.eup %30285  ;;  %v23544_v44 = vpop.xlane.xlu0 %23543  ;;  %29494 = vmatmul.mubr.msk.f32.vlgmr.msra.gmra.mxu1 %vm2109_vm6, %v23659_v4  ;;  %29501 = vmatprep.subr.mxu1 %v37010_v60 }
0x1e94   :  { %v36068_v23 = vmul.f32 %v30286_v50, %v35939_v34  ;;  %30289 = vpow2.f32 %v23592_v1  ;;  %v23570_v24 = vsub.f32 %v35966_v62, %v23544_v44  ;;  %29503 = vmatprep.mubr.msk.f32.mxu1 %vm30381_vm1, %v37010_v60 }
0x1e95   :  { %v23858_v9 = vpop.permute.xlu1 %23857 }
0x1e96   :  { %27044 = vst.msk [vmem:[%s36906_s19 + $0x3d8] sm:$0xff] %vm2109_vm6, %v36068_v23  ;;  %v23596_v61 = vmul.f32 1.442695, %v23570_v24 }
0x1e97   :  { %v23550_v63 = vpop.xlane.xlu0 %23549 }
0x1e98   :  { %30291 = vpow2.f32 %v23596_v61  ;;  %v23572_v29 = vsub.f32 %v35971_v49, %v23550_v63 }
0x1e99   :  { %v23934_v34 = vpop.permute.xlu1 %23933 }
0x1e9a   :  { %v23600_v2 = vmul.f32 1.442695, %v23572_v29  ;;  %29502 = vmatpush3.msra.mxu1 %v23934_v34 }
0x1e9b   :  { %v30288_v19 = vpop.eup %30287  ;;  %v23556_v62 = vpop.xlane.xlu0 %23555  ;;  %29504 = vmatmul.mubr.msk.f32.vlgmr.msra.gmra.mxu1 %vm2109_vm6, %v23663_v42  ;;  %29511 = vmatprep.subr.mxu1 %v37010_v60 }
0x1e9c   :  { %v36082_v43 = vmul.f32 %v30288_v19, %v35955_v11  ;;  %30293 = vpow2.f32 %v23600_v2  ;;  %v23574_v58 = vsub.f32 %v35976_v37, %v23556_v62  ;;  %29513 = vmatprep.mubr.msk.f32.mxu1 %vm30381_vm1, %v37010_v60  ;;  %v30378_v19 = vld [vmem:[%s36907_s6 + $0x18] sm:$0xff] }
0x1e9d   :  { %v24010_v26 = vpop.permute.xlu1 %24009  ;;  %v24921_v62 = vrot.slane %v30378_v19, 4  ;;  %v37106_v19 = vld [vmem:[#allocation25_spill] sm:$0xff] }
0x1e9e   :  { %27046 = vst.msk [vmem:[%s36906_s19 + $0x3e8] sm:$0xff] %vm2109_vm6, %v36082_v43  ;;  %v23604_v49 = vmul.f32 1.442695, %v23574_v58 }
0x1e9f   :  { %v23616_v45 = vpop.xlane.xlu0 %23615 }
0x1ea0   :  { %30295 = vpow2.f32 %v23604_v49 }
0x1ea1   :  { %v36092_v0 = vpop.eup %30289  ;;  %30297 = vrcp.f32 %v23616_v45  ;;  %v24086_v11 = vpop.permute.xlu1 %24085 }
0x1ea2   :  { %v23632_v37 = vsel %vm2109_vm6, %v36092_v0, 0.0  ;;  %29512 = vmatpush3.msra.mxu1 %v24086_v11 }
0x1ea3   :  { %v23622_v53 = vpop.xlane.xlu0 %23621  ;;  %23633 = vadd.xlane.f32.xlu0 %v23632_v37  ;;  %29514 = vmatmul.mubr.msk.f32.vlgmr.msra.gmra.mxu1 %vm2109_vm6, %v23667_v8 }
0x1ea4   :  { %30299 = vrcp.f32 %v23622_v53  ;;  %29521 = vmatprep.subr.mxu1 %v37010_v60  ;;  %29523 = vmatprep.mubr.msk.f32.mxu1 %vm30381_vm1, %v37010_v60 }
0x1ea5   :  { %v36100_v30 = vpop.eup %30291  ;;  %v24162_v4 = vpop.permute.xlu1 %24161 }
0x1ea6   :  { %v23638_v7 = vsel %vm2109_vm6, %v36100_v30, 0.0 }
0x1ea7   :  { %v23628_v51 = vpop.xlane.xlu0 %23627  ;;  %23639 = vadd.xlane.f32.xlu0 %v23638_v7 }
0x1ea8   :  { %30301 = vrcp.f32 %v23628_v51 }
0x1ea9   :  { %v36104_v42 = vpop.eup %30293  ;;  %v24238_v15 = vpop.permute.xlu1 %24237 }
0x1eaa   :  { %v23644_v38 = vsel %vm2109_vm6, %v36104_v42, 0.0  ;;  %29522 = vmatpush3.msra.mxu1 %v24238_v15 }
0x1eab   :  { %v23706_v3 = vpop.permute.xlu0 %23705  ;;  %23645 = vadd.xlane.f32.xlu0 %v23644_v38  ;;  %29524 = vmatmul.mubr.msk.f32.vlgmr.msra.gmra.mxu1 %vm2109_vm6, %v36049_v33 }
0x1eac   :  { %29487 = vmatpush3.msra.mxu0 %v23706_v3  ;;  %29531 = vmatprep.subr.mxu1 %v37010_v60 }
0x1ead   :  { %v36111_v8 = vpop.eup %30295  ;;  %29489 = vmatmul.mubr.msk.f32.vlgmr.msra.gmra.mxu0 %vm2109_vm6, %v36026_v55  ;;  %29496 = vmatprep.subr.mxu0 %v37010_v60  ;;  %v24314_v18 = vpop.permute.xlu1 %24313 }
0x1eae   :  { %v30298_v41 = vpop.eup %30297  ;;  %29497 = vmatpush3.msra.mxu0 %v23858_v9  ;;  %v23650_v57 = vsel %vm2109_vm6, %v36111_v8, 0.0  ;;  %29498 = vmatprep.mubr.msk.f32.mxu0 %vm30381_vm1, %v37010_v60 }
0x1eaf   :  { %v23661_v33 = vmul.f32 %v30298_v41, %v35978_v54  ;;  %23651 = vadd.xlane.f32.xlu1 %v23650_v57  ;;  %29506 = vmatprep.subr.mxu0 %v37010_v60 }
0x1eb0   :  { %29533 = vmatprep.mubr.msk.f32.mxu1 %vm30381_vm1, %v37010_v60 }
0x1eb1   :  { %v30300_v55 = vpop.eup %30299  ;;  %27035 = vst.msk [vmem:[%s36906_s19 + $0x390] sm:$0xff] %vm2109_vm6, %v23661_v33  ;;  %29499 = vmatmul.mubr.msk.f32.vlgmr.msra.gmra.mxu0 %vm2109_vm6, %v23661_v33  ;;  %v24390_v32 = vpop.permute.xlu1 %24389 }
0x1eb2   :  { %v23665_v12 = vmul.f32 %v30300_v55, %v35986_v17  ;;  %29507 = vmatpush3.msra.mxu0 %v24010_v26  ;;  %29532 = vmatpush3.msra.mxu1 %v24390_v32 }
0x1eb3   :  { %29508 = vmatprep.mubr.msk.f32.mxu0 %vm30381_vm1, %v37010_v60  ;;  %29516 = vmatprep.subr.mxu0 %v37010_v60 }
0x1eb4   :  { %27037 = vst.msk [vmem:[%s36906_s19 + $0x3a0] sm:$0xff] %vm2109_vm6, %v23665_v12  ;;  %29534 = vmatmul.mubr.msk.f32.vlgmr.msra.gmra.mxu1 %vm2109_vm6, %v36057_v20  ;;  %29541 = vmatprep.subr.mxu1 %v37010_v60 }
0x1eb5   :  { %v30302_v54 = vpop.eup %30301  ;;  %29509 = vmatmul.mubr.msk.f32.vlgmr.msra.gmra.mxu0 %vm2109_vm6, %v23665_v12  ;;  %v24542_v17 = vpop.permute.xlu1 %24541  ;;  %29543 = vmatprep.mubr.msk.f32.mxu1 %vm30381_vm1, %v37010_v60 }
0x1eb6   :  { %v23669_v48 = vmul.f32 %v30302_v54, %v35992_v10  ;;  %29517 = vmatpush3.msra.mxu0 %v24162_v4  ;;  %29542 = vmatpush3.msra.mxu1 %v24542_v17 }
0x1eb7   :  { %29518 = vmatprep.mubr.msk.f32.mxu0 %vm30381_vm1, %v37010_v60  ;;  %29526 = vmatprep.subr.mxu0 %v37010_v60 }
0x1eb8   :  { %27039 = vst.msk [vmem:[%s36906_s19 + $0x3b0] sm:$0xff] %vm2109_vm6, %v23669_v48  ;;  %29544 = vmatmul.mubr.msk.f32.vlgmr.msra.gmra.mxu1 %vm2109_vm6, %v36068_v23  ;;  %29551 = vmatprep.subr.mxu1 %v37010_v60 }
0x1eb9   :  { %29519 = vmatmul.mubr.msk.f32.vlgmr.msra.gmra.mxu0 %vm2109_vm6, %v23669_v48  ;;  %v24618_v10 = vpop.permute.xlu1 %24617  ;;  %29553 = vmatprep.mubr.msk.f32.mxu1 %vm30381_vm1, %v37010_v60 }
0x1eba   :  { %29527 = vmatpush3.msra.mxu0 %v24314_v18  ;;  %29528 = vmatprep.mubr.msk.f32.mxu0 %vm30381_vm1, %v37010_v60 }
0x1ebb   :  { %29536 = vmatprep.subr.mxu0 %v37010_v60 }
0x1ebd   :  { %v24694_v20 = vpop.permute.xlu1 %24693 }
0x1ebe   :  { %29552 = vmatpush3.msra.mxu1 %v24694_v20 }
0x1ebf   :  { %29554 = vmatmul.mubr.msk.f32.vlgmr.msra.gmra.mxu1 %vm2109_vm6, %v36082_v43  ;;  %29561 = vmatprep.subr.mxu1 %v37010_v60 }
0x1ec0   :  { %24845 = vrot.lane.b32.xlu1 %v33968_v46, %s37101_s23  ;;  %29563 = vmatprep.mubr.msk.f32.mxu1 %vm30381_vm1, %v37010_v60 }
0x1ec1   :  { %24465 = vrot.lane.b32.xlu0 %v33946_v40, %s37101_s23  ;;  %v24770_v46 = vpop.permute.xlu1 %24769 }
0x1edc   :  { %v23655_v5 = vpop.xlane.xlu0 %23654 }
0x1edd   :  { %30303 = vrcp.f32 %v23655_v5 }
0x1eea   :  { %v30304_v1 = vpop.eup %30303 }
0x1eeb   :  { %v23687_v50 = vmul.f32 %v30304_v1, %v36021_v28 }
0x1eed   :  { %27048 = vst.msk [vmem:[%s36906_s19 + $0x3f8] sm:$0xff] %vm2109_vm6, %v23687_v50 }
0x1f2c   :  { %v23634_v44 = vpop.xlane.xlu0 %23633 }
0x1f2d   :  { %30305 = vrcp.f32 %v23634_v44 }
0x1f30   :  { %v23640_v23 = vpop.xlane.xlu0 %23639 }
0x1f31   :  { %30307 = vrcp.f32 %v23640_v23  ;;  %v37102_v23 = vld [vmem:[#allocation12_spill] sm:$0xff] }
0x1f34   :  { %v23646_v24 = vpop.xlane.xlu0 %23645 }
0x1f35   :  { %30309 = vrcp.f32 %v23646_v24 }
0x1f38   :  { %v23652_v9 = vpop.xlane.xlu1 %23651  ;;  %v24466_v28 = vpop.permute.xlu0 %24465 }
0x1f39   :  { %30311 = vrcp.f32 %v23652_v9 }
0x1f3a   :  { %v30306_v40 = vpop.eup %30305 }
0x1f3b   :  { %v23673_v61 = vmul.f32 %v30306_v40, %v36092_v0 }
0x1f3c   :  { %v24846_v63 = vpop.permute.xlu1 %24845 }
0x1f3d   :  { %27041 = vst.msk [vmem:[%s36906_s19 + $0x3c0] sm:$0xff] %vm2109_vm6, %v23673_v61  ;;  %29529 = vmatmul.mubr.msk.f32.vlgmr.msra.gmra.mxu0 %vm2109_vm6, %v23673_v61  ;;  %29562 = vmatpush3.msra.mxu1 %v24846_v63  ;;  %v36235_v63 = vld [vmem:[%s36908_s7 + $0x1] ss:$0 sm:$0xff] }
0x1f3e   :  { %v30308_v29 = vpop.eup %30307  ;;  %29537 = vmatpush3.msra.mxu0 %v24466_v28  ;;  %29564 = vmatmul.mubr.msk.f32.vlgmr.msra.gmra.mxu1 %vm2109_vm6, %v23687_v50 }
0x1f3f   :  { %v23677_v34 = vmul.f32 %v30308_v29, %v36100_v30  ;;  %29538 = vmatprep.mubr.msk.f32.mxu0 %vm30381_vm1, %v37010_v60  ;;  %29546 = vmatprep.subr.mxu0 %v37010_v60  ;;  %v37104_v29 = vld [vmem:[#allocation31_spill] sm:$0xff] }
0x1f41   :  { %27043 = vst.msk [vmem:[%s36906_s19 + $0x3d0] sm:$0xff] %vm2109_vm6, %v23677_v34  ;;  %29539 = vmatmul.mubr.msk.f32.vlgmr.msra.gmra.mxu0 %vm2109_vm6, %v23677_v34  ;;  %v37105_v34 = vld [vmem:[#allocation21_spill] sm:$0xff] }
0x1f42   :  { %v30310_v2 = vpop.eup %30309  ;;  %29547 = vmatpush3.msra.mxu0 %v24618_v10  ;;  %29548 = vmatprep.mubr.msk.f32.mxu0 %vm30381_vm1, %v37010_v60 }
0x1f43   :  { %v23681_v43 = vmul.f32 %v30310_v2, %v36104_v42  ;;  %29556 = vmatprep.subr.mxu0 %v37010_v60  ;;  %v19263_v2 = vadd.f32 %v37105_v34, %v37104_v29 }
0x1f45   :  { %27045 = vst.msk [vmem:[%s36906_s19 + $0x3e0] sm:$0xff] %vm2109_vm6, %v23681_v43  ;;  %29549 = vmatmul.mubr.msk.f32.vlgmr.msra.gmra.mxu0 %vm2109_vm6, %v23681_v43 }
0x1f46   :  { %v30312_v58 = vpop.eup %30311  ;;  %29557 = vmatpush3.msra.mxu0 %v24770_v46  ;;  %29558 = vmatprep.mubr.msk.f32.mxu0 %vm30381_vm1, %v37010_v60  ;;  %v37103_v46 = vld [vmem:[#allocation29_spill] sm:$0xff] }
0x1f47   :  { %v23685_v26 = vmul.f32 %v30312_v58, %v36111_v8  ;;  %29566 = vmatprep.subr.msk.mxu0 %vm6257_vm7, %v24921_v62  ;;  %v19253_v24 = vadd.f32 %v37103_v46, %v37102_v23  ;;  %v37116_v23 = vld [vmem:[#allocation5_spill] sm:$0xff] }
0x1f49   :  { %27047 = vst.msk [vmem:[%s36906_s19 + $0x3f0] sm:$0xff] %vm2109_vm6, %v23685_v26  ;;  %29559 = vmatmul.mubr.msk.f32.vlgmr.msra.gmra.mxu0 %vm2109_vm6, %v23685_v26  ;;  %v22216_v40 = vadd.f32 %v35883_v52, %v19253_v24  ;;  %v22218_v26 = vadd.f32 %v35891_v36, %v19263_v2  ;;  %v37107_v52 = vld [vmem:[#allocation20_spill] sm:$0xff] }
0x1f4a   :  { %29567 = vmatpush3.msk.msra.mxu0 %vm6257_vm7, %v24921_v62  ;;  %v37117_v24 = vld [vmem:[#allocation4_spill] sm:$0xff] }
0x1f53   :  { %v23853_v49 = vpop.f32.mrf.mxu1 }
0x1f55   :  { %v29495_v45 = vpop.f32.mrf.mxu1 }
0x1f5b   :  { %v24005_v0 = vpop.f32.mrf.mxu1 }
0x1f5d   :  { %v29505_v11 = vpop.f32.mrf.mxu1 }
0x1f5e   :  { %v37108_v11 = vld [vmem:[#allocation24_spill] sm:$0xff] }
0x1f63   :  { %v24157_v37 = vpop.f32.mrf.mxu1 }
0x1f65   :  { %v29515_v53 = vpop.f32.mrf.mxu1 }
0x1f6b   :  { %v24309_v60 = vpop.f32.mrf.mxu1 }
0x1f6d   :  { %v23777_v30 = vpop.f32.mrf.mxu0  ;;  %v29525_v4 = vpop.f32.mrf.mxu1 }
0x1f6e   :  { %29568 = vmatprep.mubr.msk.f32.mxu0 %vm847_vm4, %v23777_v30 }
0x1f6f   :  { %v29490_v7 = vpop.f32.mrf.mxu0  ;;  %29569 = vmatmul.mubr.msk.f32.vlgmr.msra.gmra.mxu0 %vm847_vm4, %v23853_v49 }
0x1f70   :  { %v37110_v7 = vld [vmem:[#allocation2_spill] sm:$0xff] }
0x1f71   :  { %v23929_v51 = vpop.f32.mrf.mxu0 }
0x1f72   :  { %29571 = vmatprep.mubr.msk.f32.mxu0 %vm847_vm4, %v23929_v51 }
0x1f73   :  { %v29500_v42 = vpop.f32.mrf.mxu0  ;;  %29572 = vmatmul.mubr.msk.f32.gmra.mxu0 %vm847_vm4, %v24005_v0 }
0x1f74   :  { %v24461_v15 = vpop.f32.mrf.mxu1 }
0x1f75   :  { %v24081_v38 = vpop.f32.mrf.mxu0 }
0x1f76   :  { %v29535_v3 = vpop.f32.mrf.mxu1  ;;  %29574 = vmatprep.mubr.msk.f32.mxu0 %vm847_vm4, %v24081_v38 }
0x1f77   :  { %v29510_v8 = vpop.f32.mrf.mxu0  ;;  %29575 = vmatmul.mubr.msk.f32.gmra.mxu0 %vm847_vm4, %v24157_v37  ;;  %v37109_v37 = vld [vmem:[#allocation11_spill] sm:$0xff] }
0x1f78   :  { %v24613_v18 = vpop.f32.mrf.mxu1  ;;  %v19273_v53 = vadd.f32 %v37109_v37, %v37108_v11  ;;  %v37112_v8 = vld [vmem:[#allocation15_spill] sm:$0xff] }
0x1f79   :  { %v24233_v41 = vpop.f32.mrf.mxu0 }
0x1f7a   :  { %v29545_v57 = vpop.f32.mrf.mxu1  ;;  %29577 = vmatprep.mubr.msk.f32.mxu0 %vm847_vm4, %v24233_v41  ;;  %v22220_v42 = vadd.f32 %v35900_v31, %v19273_v53 }
0x1f7b   :  { %v29520_v33 = vpop.f32.mrf.mxu0  ;;  %29578 = vmatmul.mubr.msk.f32.gmra.mxu0 %vm847_vm4, %v24309_v60 }
0x1f7f   :  { %v24765_v55 = vpop.f32.mrf.mxu1 }
0x1f81   :  { %v29555_v32 = vpop.f32.mrf.mxu1 }
0x1ffd   :  { %v24385_v12 = vpop.f32.mrf.mxu0 }
0x1ffe   :  { %v24917_v54 = vpop.f32.mrf.mxu1  ;;  %29580 = vmatprep.mubr.msk.f32.mxu0 %vm847_vm4, %v24385_v12 }
0x1fff   :  { %v29530_v17 = vpop.f32.mrf.mxu0  ;;  %29581 = vmatmul.mubr.msk.f32.gmra.mxu0 %vm847_vm4, %v24461_v15  ;;  %v37111_v15 = vld [vmem:[#allocation3_spill] sm:$0xff] }
0x2000   :  { %v29565_v48 = vpop.f32.mrf.mxu1  ;;  %v37115_v17 = vld [vmem:[#allocation18_spill] sm:$0xff] }
0x2001   :  { %v24537_v10 = vpop.f32.mrf.mxu0 }
0x2002   :  { %29583 = vmatprep.mubr.msk.f32.mxu0 %vm847_vm4, %v24537_v10 }
0x2003   :  { %v29540_v20 = vpop.f32.mrf.mxu0  ;;  %29584 = vmatmul.mubr.msk.f32.gmra.mxu0 %vm847_vm4, %v24613_v18  ;;  %v37113_v18 = vld [vmem:[#allocation10_spill] sm:$0xff] }
0x2004   :  { %v19283_v41 = vadd.f32 %v37113_v18, %v37112_v8 }
0x2005   :  { %v24689_v5 = vpop.f32.mrf.mxu0 }
0x2006   :  { %29586 = vmatprep.mubr.msk.f32.mxu0 %vm847_vm4, %v24689_v5  ;;  %v22222_v32 = vadd.f32 %v35908_v47, %v19283_v41  ;;  %v37122_v41 = vld [vmem:[#allocation9_spill] sm:$0xff] }
0x2007   :  { %v29550_v1 = vpop.f32.mrf.mxu0  ;;  %29587 = vmatmul.mubr.msk.f32.gmra.mxu0 %vm847_vm4, %v24765_v55 }
0x2009   :  { %v24841_v50 = vpop.f32.mrf.mxu0 }
0x200a   :  { %29589 = vmatprep.mubr.msk.f32.mxu0 %vm847_vm4, %v24841_v50 }
0x200b   :  { %v29560_v44 = vpop.f32.mrf.mxu0  ;;  %29590 = vmatmul.mubr.msk.f32.gmra.mxu0 %vm847_vm4, %v24917_v54  ;;  %v37114_v54 = vld [vmem:[#allocation26_spill] sm:$0xff] }
0x202f   :  { %v29570_v9 = vpop.f32.mrf.mxu0 }
0x2030   :  { %v25118_v61 = vadd.f32 %v29570_v9, %v35877_v14 }
0x2031   :  { %v25038_v28 = vpop.f32.mrf.mxu0 }
0x2032   :  { %v25134_v62 = vadd.f32 %v25118_v61, %v37106_v19  ;;  %v25117_v43 = vadd.f32 %v25038_v28, %v22216_v40 }
0x2033   :  { %v29573_v58 = vpop.f32.mrf.mxu0 }
0x2034   :  { %v36242_v49 = vadd.f32 %v36235_v63, %v25134_v62  ;;  %v25133_v14 = vadd.f32 %v25117_v43, %v37107_v52  ;;  %v25120_v45 = vadd.f32 %v29573_v58, %v35887_v6  ;;  %v37118_v43 = vld [vmem:[#allocation27_spill] sm:$0xff] }
0x2035   :  { %v25048_v0 = vpop.f32.mrf.mxu0 }
0x2036   :  { %v36249_v60 = vadd.f32 %v36235_v63, %v25133_v14  ;;  %v25119_v30 = vadd.f32 %v25048_v0, %v22218_v26  ;;  %v25175_v4 = vsel %vm397_vm3, %v36242_v49, 0.0  ;;  %v25136_v36 = vadd.f32 %v25120_v45, %v37110_v7  ;;  %v37119_v0 = vld [vmem:[#allocation19_spill] sm:$0xff] }
0x2037   :  { %25176 = vadd.xlane.f32.xlu1 %v25175_v4  ;;  %v29576_v51 = vpop.f32.mrf.mxu0 }
0x2038   :  { %v25135_v38 = vadd.f32 %v25119_v30, %v37111_v15  ;;  %v25122_v6 = vadd.f32 %v29576_v51, %v35897_v35  ;;  %v25172_v3 = vsel %vm397_vm3, %v36249_v60, 0.0  ;;  %v36266_v31 = vadd.f32 %v36235_v63, %v25136_v36 }
0x2039   :  { %25173 = vadd.xlane.f32.xlu0 %v25172_v3  ;;  %v25058_v57 = vpop.f32.mrf.mxu0 }
0x203a   :  { %v36262_v33 = vadd.f32 %v36235_v63, %v25135_v38  ;;  %v25121_v55 = vadd.f32 %v25058_v57, %v22220_v42  ;;  %v25138_v35 = vadd.f32 %v25122_v6, %v37114_v54  ;;  %v25181_v47 = vsel %vm397_vm3, %v36266_v31, 0.0  ;;  %v37121_v38 = vld [vmem:[#allocation6_spill] sm:$0xff] }
0x203b   :  { %v29579_v12 = vpop.f32.mrf.mxu0 }
0x203c   :  { %v25137_v48 = vadd.f32 %v25121_v55, %v37115_v17  ;;  %v25124_v10 = vadd.f32 %v29579_v12, %v35904_v39  ;;  %v25178_v20 = vsel %vm397_vm3, %v36262_v33, 0.0  ;;  %v36279_v44 = vadd.f32 %v36235_v63, %v25138_v35  ;;  %v37123_v17 = vld [vmem:[#allocation8_spill] sm:$0xff] }
0x203d   :  { %25179 = vadd.xlane.f32.xlu0 %v25178_v20  ;;  %v25068_v5 = vpop.f32.mrf.mxu0 }
0x203e   :  { %v36274_v1 = vadd.f32 %v36235_v63, %v25137_v48  ;;  %v25123_v50 = vadd.f32 %v25068_v5, %v22222_v32  ;;  %v25140_v46 = vadd.f32 %v25124_v10, %v37116_v23  ;;  %v25187_v28 = vsel %vm397_vm3, %v36279_v44, 0.0  ;;  %v37124_v23 = vld [vmem:[#allocation28_spill] sm:$0xff] }
0x2040   :  { %v25139_v9 = vadd.f32 %v25123_v50, %v37117_v24  ;;  %v25184_v39 = vsel %vm397_vm3, %v36274_v1, 0.0  ;;  %v36289_v61 = vadd.f32 %v36235_v63, %v25140_v46 }
0x2041   :  { %25182 = vadd.xlane.f32.xlu0 %v25181_v47  ;;  %25185 = vadd.xlane.f32.xlu1 %v25184_v39 }
0x2042   :  { %v36286_v40 = vadd.f32 %v36235_v63, %v25139_v9  ;;  %v25193_v34 = vsel %vm397_vm3, %v36289_v61, 0.0 }
0x2044   :  { %v25190_v29 = vsel %vm397_vm3, %v36286_v40, 0.0 }
0x2045   :  { %25188 = vadd.xlane.f32.xlu0 %v25187_v28  ;;  %25191 = vadd.xlane.f32.xlu1 %v25190_v29 }
0x2049   :  { %25194 = vadd.xlane.f32.xlu0 %v25193_v34 }
0x20bf   :  { %v29582_v2 = vpop.f32.mrf.mxu0 }
0x20c0   :  { %v25126_v19 = vadd.f32 %v29582_v2, %v35916_v21  ;;  %v25177_v30 = vpop.xlane.xlu1 %25176  ;;  %v37120_v21 = vld [vmem:[#allocation7_spill] sm:$0xff]  ;;  %v37125_v2 = vld [vmem:[#allocation22_spill] sm:$0xff] }
0x20c1   :  { %v25078_v62 = vpop.f32.mrf.mxu0  ;;  %v25221_v8 = vmul.f32 0.0625, %v25177_v30 }
0x20c2   :  { %v25142_v58 = vadd.f32 %v25126_v19, %v37118_v43  ;;  %v25125_v26 = vadd.f32 %v25078_v62, %v35923_v59  ;;  %v25174_v52 = vpop.xlane.xlu0 %25173 }
0x20c3   :  { %v29585_v14 = vpop.f32.mrf.mxu0  ;;  %v25220_v54 = vmul.f32 0.0625, %v25174_v52  ;;  %v36334_v5 = vsub.f32 %v36242_v49, %v25221_v8 }
0x20c4   :  { %v36301_v45 = vadd.f32 %v36235_v63, %v25142_v58  ;;  %v25141_v11 = vadd.f32 %v25125_v26, %v37119_v0  ;;  %v25128_v37 = vadd.f32 %v29585_v14, %v35929_v22 }
0x20c5   :  { %v25088_v53 = vpop.f32.mrf.mxu0  ;;  %v36344_v39 = vsub.f32 %v36249_v60, %v25220_v54 }
0x20c6   :  { %v36306_v4 = vadd.f32 %v36235_v63, %v25141_v11  ;;  %v25144_v7 = vadd.f32 %v25128_v37, %v37120_v21  ;;  %v25127_v36 = vadd.f32 %v25088_v53, %v35931_v16  ;;  %v25180_v51 = vpop.xlane.xlu0 %25179  ;;  %v25199_v59 = vsel %vm397_vm3, %v36301_v45, 0.0 }
0x20c7   :  { %25200 = vadd.xlane.f32.xlu0 %v25199_v59  ;;  %v29588_v42 = vpop.f32.mrf.mxu0  ;;  %v25222_v29 = vmul.f32 0.0625, %v25180_v51  ;;  %v25252_v53 = vmul.f32 %v36344_v39, %v36344_v39 }
0x20c8   :  { %v36313_v15 = vadd.f32 %v36235_v63, %v25144_v7  ;;  %v25143_v22 = vadd.f32 %v25127_v36, %v37121_v38  ;;  %v25130_v6 = vadd.f32 %v29588_v42, %v35937_v25  ;;  %v25196_v3 = vsel %vm397_vm3, %v36306_v4, 0.0 }
0x20c9   :  { %25197 = vadd.xlane.f32.xlu1 %v25196_v3  ;;  %v25098_v18 = vpop.f32.mrf.mxu0  ;;  %v36363_v0 = vsub.f32 %v36262_v33, %v25222_v29  ;;  %v25268_v42 = vsel %vm397_vm3, %v25252_v53, 0.0 }
0x20ca   :  { %v36320_v16 = vadd.f32 %v36235_v63, %v25143_v22  ;;  %v25146_v57 = vadd.f32 %v25130_v6, %v37122_v41  ;;  %v25129_v55 = vadd.f32 %v25098_v18, %v35943_v13  ;;  %v25183_v32 = vpop.xlane.xlu0 %25182  ;;  %v25205_v12 = vsel %vm397_vm3, %v36313_v15, 0.0  ;;  %v25186_v28 = vpop.xlane.xlu1 %25185 }
0x20cb   :  { %25206 = vadd.xlane.f32.xlu0 %v25205_v12  ;;  %v29591_v25 = vpop.f32.mrf.mxu0  ;;  %v25223_v13 = vmul.f32 0.0625, %v25183_v32  ;;  %v25224_v11 = vmul.f32 0.0625, %v25186_v28  ;;  %v25254_v38 = vmul.f32 %v36363_v0, %v36363_v0 }
0x20cc   :  { %v36327_v35 = vadd.f32 %v36235_v63, %v25146_v57  ;;  %v25145_v48 = vadd.f32 %v25129_v55, %v37123_v17  ;;  %v25132_v10 = vadd.f32 %v29591_v25, %v35950_v27  ;;  %v25202_v20 = vsel %vm397_vm3, %v36320_v16, 0.0  ;;  %v27086_v17 = vld [vmem:[%s36909_s10 + $0x18] sm:$0xff] }
0x20cd   :  { %25203 = vadd.xlane.f32.xlu1 %v25202_v20  ;;  %v25108_v50 = vpop.f32.mrf.mxu0  ;;  %v36355_v43 = vsub.f32 %v36266_v31, %v25223_v13  ;;  %v36376_v51 = vsub.f32 %v36274_v1, %v25224_v11  ;;  %v25274_v18 = vsel %vm397_vm3, %v25254_v38, 0.0  ;;  %29592 = vmatprep.subr.mxu1 %v27086_v17 }
0x20ce   :  { %v36337_v47 = vadd.f32 %v36235_v63, %v25145_v48  ;;  %v25148_v46 = vadd.f32 %v25132_v10, %v37124_v23  ;;  %v25131_v24 = vadd.f32 %v25108_v50, %v35952_v56  ;;  %v25189_v9 = vpop.xlane.xlu0 %25188  ;;  %v25211_v27 = vsel %vm397_vm3, %v36327_v35, 0.0  ;;  %v25192_v30 = vpop.xlane.xlu1 %25191  ;;  %29593 = vmatpush3.msra.mxu1 %v27086_v17  ;;  %v27085_v48 = vld [vmem:[%s36909_s10 + $0x10] sm:$0xff] }
0x20cf   :  { %25212 = vadd.xlane.f32.xlu0 %v25211_v27  ;;  %v25253_v56 = vmul.f32 %v36334_v5, %v36334_v5  ;;  %v25225_v26 = vmul.f32 0.0625, %v25189_v9  ;;  %v25255_v36 = vmul.f32 %v36355_v43, %v36355_v43  ;;  %v25226_v59 = vmul.f32 0.0625, %v25192_v30  ;;  %29594 = vmatprep.subr.mxu1 %v27085_v48 }
0x20d0   :  { %v36347_v34 = vadd.f32 %v36235_v63, %v25148_v46  ;;  %v25147_v19 = vadd.f32 %v25131_v24, %v37125_v2  ;;  %v25208_v62 = vsel %vm397_vm3, %v36337_v47, 0.0  ;;  %v25256_v41 = vmul.f32 %v36376_v51, %v36376_v51  ;;  %29595 = vmatpush3.msra.mxu1 %v27085_v48 }
0x20d1   :  { %25209 = vadd.xlane.f32.xlu1 %v25208_v62  ;;  %v25271_v7 = vsel %vm397_vm3, %v25253_v56, 0.0  ;;  %v25277_v6 = vsel %vm397_vm3, %v25255_v36, 0.0  ;;  %v36388_v8 = vsub.f32 %v36286_v40, %v25226_v59 }
0x20d2   :  { %v36358_v58 = vadd.f32 %v36235_v63, %v25147_v19  ;;  %v25217_v52 = vsel %vm397_vm3, %v36347_v34, 0.0  ;;  %v25195_v14 = vpop.xlane.xlu0 %25194  ;;  %v36370_v63 = vsub.f32 %v36279_v44, %v25225_v26  ;;  %v25280_v32 = vsel %vm397_vm3, %v25256_v41, 0.0 }
0x20d3   :  { %25218 = vadd.xlane.f32.xlu0 %v25217_v52  ;;  %v25227_v21 = vmul.f32 0.0625, %v25195_v14  ;;  %v25258_v12 = vmul.f32 %v36388_v8, %v36388_v8 }
0x20d4   :  { %v25214_v37 = vsel %vm397_vm3, %v36358_v58, 0.0  ;;  %v25257_v3 = vmul.f32 %v36370_v63, %v36370_v63 }
0x20d5   :  { %25215 = vadd.xlane.f32.xlu1 %v25214_v37  ;;  %v36382_v22 = vsub.f32 %v36289_v61, %v25227_v21  ;;  %v25286_v25 = vsel %vm397_vm3, %v25258_v12, 0.0 }
0x20d6   :  { %v25283_v57 = vsel %vm397_vm3, %v25257_v3, 0.0 }
0x20d7   :  { %25272 = vadd.xlane.f32.xlu0 %v25271_v7  ;;  %v25259_v55 = vmul.f32 %v36382_v22, %v36382_v22 }
0x20d9   :  { %25269 = vadd.xlane.f32.xlu1 %v25268_v42  ;;  %v25289_v54 = vsel %vm397_vm3, %v25259_v55, 0.0 }
0x20db   :  { %25278 = vadd.xlane.f32.xlu0 %v25277_v6 }
0x20dd   :  { %25275 = vadd.xlane.f32.xlu1 %v25274_v18 }
0x20df   :  { %25284 = vadd.xlane.f32.xlu0 %v25283_v57 }
0x20e1   :  { %25281 = vadd.xlane.f32.xlu1 %v25280_v32 }
0x20e3   :  { %25290 = vadd.xlane.f32.xlu0 %v25289_v54 }
0x20e5   :  { %25287 = vadd.xlane.f32.xlu1 %v25286_v25 }
0x2150   :  { %v25201_v10 = vpop.xlane.xlu0 %25200 }
0x2151   :  { %v25229_v20 = vmul.f32 0.0625, %v25201_v10 }
0x2152   :  { %v25198_v13 = vpop.xlane.xlu1 %25197 }
0x2153   :  { %v36408_v50 = vsub.f32 %v36301_v45, %v25229_v20  ;;  %v25228_v23 = vmul.f32 0.0625, %v25198_v13 }
0x2154   :  { %v25207_v46 = vpop.xlane.xlu0 %25206 }
0x2155   :  { %v36411_v24 = vsub.f32 %v36306_v4, %v25228_v23  ;;  %v25231_v9 = vmul.f32 0.0625, %v25207_v46  ;;  %v25261_v27 = vmul.f32 %v36408_v50, %v36408_v50 }
0x2156   :  { %v25204_v28 = vpop.xlane.xlu1 %25203 }
0x2157   :  { %v36416_v29 = vsub.f32 %v36313_v15, %v25231_v9  ;;  %v25230_v2 = vmul.f32 0.0625, %v25204_v28  ;;  %v25295_v19 = vsel %vm397_vm3, %v25261_v27, 0.0  ;;  %v25260_v62 = vmul.f32 %v36411_v24, %v36411_v24 }
0x2158   :  { %v25213_v56 = vpop.xlane.xlu0 %25212  ;;  %25296 = vadd.xlane.f32.xlu0 %v25295_v19 }
0x2159   :  { %v36422_v26 = vsub.f32 %v36320_v16, %v25230_v2  ;;  %v25233_v52 = vmul.f32 0.0625, %v25213_v56  ;;  %v25292_v14 = vsel %vm397_vm3, %v25260_v62, 0.0  ;;  %v25263_v11 = vmul.f32 %v36416_v29, %v36416_v29 }
0x215a   :  { %25293 = vadd.xlane.f32.xlu1 %v25292_v14  ;;  %v25210_v37 = vpop.xlane.xlu1 %25209 }
0x215b   :  { %v36428_v53 = vsub.f32 %v36327_v35, %v25233_v52  ;;  %v25232_v30 = vmul.f32 0.0625, %v25210_v37  ;;  %v25301_v21 = vsel %vm397_vm3, %v25263_v11, 0.0  ;;  %v25262_v7 = vmul.f32 %v36422_v26, %v36422_v26 }
0x215c   :  { %v25219_v36 = vpop.xlane.xlu0 %25218  ;;  %25302 = vadd.xlane.f32.xlu0 %v25301_v21 }
0x215d   :  { %v36434_v59 = vsub.f32 %v36337_v47, %v25232_v30  ;;  %v25235_v42 = vmul.f32 0.0625, %v25219_v36  ;;  %v25298_v38 = vsel %vm397_vm3, %v25262_v7, 0.0  ;;  %v25265_v6 = vmul.f32 %v36428_v53, %v36428_v53 }
0x215e   :  { %25299 = vadd.xlane.f32.xlu1 %v25298_v38  ;;  %v25216_v3 = vpop.xlane.xlu1 %25215 }
0x215f   :  { %v36440_v18 = vsub.f32 %v36347_v34, %v25235_v42  ;;  %v25234_v41 = vmul.f32 0.0625, %v25216_v3  ;;  %v25307_v57 = vsel %vm397_vm3, %v25265_v6, 0.0  ;;  %v25264_v55 = vmul.f32 %v36434_v59, %v36434_v59 }
0x2160   :  { %25308 = vadd.xlane.f32.xlu0 %v25307_v57  ;;  %v25273_v32 = vpop.xlane.xlu0 %25272  ;;  %v36458_v57 = vld [vmem:[%s36910_s8 + $0x1] ss:$0 sm:$0xff] }
0x2161   :  { %v36446_v12 = vsub.f32 %v36358_v58, %v25234_v41  ;;  %v25317_v54 = vmul.f32 0.0625, %v25273_v32  ;;  %v25304_v25 = vsel %vm397_vm3, %v25264_v55, 0.0  ;;  %v25267_v17 = vmul.f32 %v36440_v18, %v36440_v18 }
0x2162   :  { %25305 = vadd.xlane.f32.xlu1 %v25304_v25  ;;  %v25270_v48 = vpop.xlane.xlu1 %25269 }
0x2163   :  { %v25333_v10 = vadd.f32 1e-05, %v25317_v54  ;;  %v25316_v20 = vmul.f32 0.0625, %v25270_v48  ;;  %v25313_v13 = vsel %vm397_vm3, %v25267_v17, 0.0  ;;  %v25266_v23 = vmul.f32 %v36446_v12, %v36446_v12 }
0x2164   :  { %25314 = vadd.xlane.f32.xlu0 %v25313_v13  ;;  %v25279_v46 = vpop.xlane.xlu0 %25278 }
0x2165   :  { %30313 = vrsqrt.f32 %v25333_v10  ;;  %v25332_v9 = vadd.f32 1e-05, %v25316_v20  ;;  %v25319_v27 = vmul.f32 0.0625, %v25279_v46  ;;  %v25310_v28 = vsel %vm397_vm3, %v25266_v23, 0.0  ;;  %v36467_v10 = vld [vmem:[%s36911_s9 + $0x1] ss:$0 sm:$0xff] }
0x2166   :  { %25311 = vadd.xlane.f32.xlu1 %v25310_v28  ;;  %v25276_v2 = vpop.xlane.xlu1 %25275 }
0x2167   :  { %30315 = vrsqrt.f32 %v25332_v9  ;;  %v25335_v19 = vadd.f32 1e-05, %v25319_v27  ;;  %v25318_v62 = vmul.f32 0.0625, %v25276_v2 }
0x2168   :  { %v25285_v56 = vpop.xlane.xlu0 %25284 }
0x2169   :  { %30317 = vrsqrt.f32 %v25335_v19  ;;  %v25334_v52 = vadd.f32 1e-05, %v25318_v62  ;;  %v25321_v14 = vmul.f32 0.0625, %v25285_v56 }
0x216a   :  { %v25282_v11 = vpop.xlane.xlu1 %25281 }
0x216b   :  { %30319 = vrsqrt.f32 %v25334_v52  ;;  %v25337_v37 = vadd.f32 1e-05, %v25321_v14  ;;  %v25320_v30 = vmul.f32 0.0625, %v25282_v11 }
0x216c   :  { %v25291_v21 = vpop.xlane.xlu0 %25290 }
0x216d   :  { %30321 = vrsqrt.f32 %v25337_v37  ;;  %v25336_v7 = vadd.f32 1e-05, %v25320_v30  ;;  %v25323_v36 = vmul.f32 0.0625, %v25291_v21 }
0x216e   :  { %v25288_v42 = vpop.xlane.xlu1 %25287 }
0x216f   :  { %30323 = vrsqrt.f32 %v25336_v7  ;;  %v25339_v38 = vadd.f32 1e-05, %v25323_v36  ;;  %v25322_v6 = vmul.f32 0.0625, %v25288_v42  ;;  %v27110_v36 = vld [vmem:[%s36912_s12 + $0x70] sm:$0xff]  ;;  %v27109_v42 = vld [vmem:[%s36912_s12 + $0x68] sm:$0xff] }
0x2171   :  { %30325 = vrsqrt.f32 %v25339_v38  ;;  %v25338_v3 = vadd.f32 1e-05, %v25322_v6  ;;  %v27108_v38 = vld [vmem:[%s36912_s12 + $0x60] sm:$0xff]  ;;  %v27107_v6 = vld [vmem:[%s36912_s12 + $0x58] sm:$0xff] }
0x2172   :  { %v30314_v41 = vpop.eup %30313 }
0x2173   :  { %v25365_v55 = vmul.f32 %v30314_v41, %v36334_v5  ;;  %30327 = vrsqrt.f32 %v25338_v3  ;;  %v27106_v3 = vld [vmem:[%s36912_s12 + $0x50] sm:$0xff]  ;;  %v27105_v41 = vld [vmem:[%s36912_s12 + $0x48] sm:$0xff] }
0x2174   :  { %v30316_v32 = vpop.eup %30315 }
0x2175   :  { %v25364_v54 = vmul.f32 %v30316_v32, %v36344_v39  ;;  %v25385_v17 = vmul.f32 %v36458_v57, %v25365_v55  ;;  %v27104_v55 = vld [vmem:[%s36912_s12 + $0x40] sm:$0xff] }
0x2176   :  { %v30318_v25 = vpop.eup %30317 }
0x2177   :  { %v25367_v48 = vmul.f32 %v30318_v25, %v36355_v43  ;;  %v25384_v20 = vmul.f32 %v36458_v57, %v25364_v54  ;;  %v25405_v39 = vadd.f32 %v36467_v10, %v25385_v17 }
0x2178   :  { %v30320_v13 = vpop.eup %30319 }
0x2179   :  { %v25404_v23 = vadd.f32 %v36467_v10, %v25384_v20  ;;  %v25366_v5 = vmul.f32 %v30320_v13, %v36363_v0  ;;  %v25387_v9 = vmul.f32 %v36458_v57, %v25367_v48 }
0x217a   :  { %v30322_v46 = vpop.eup %30321 }
0x217b   :  { %v25369_v27 = vmul.f32 %v30322_v46, %v36370_v63  ;;  %29596 = vmatprep.mubr.msk.f32.mxu1 %vm397_vm3, %v25404_v23  ;;  %v25386_v43 = vmul.f32 %v36458_v57, %v25366_v5  ;;  %v25407_v0 = vadd.f32 %v36467_v10, %v25387_v9 }
0x217c   :  { %v30324_v28 = vpop.eup %30323  ;;  %29597 = vmatmul.mubr.msk.f32.vlgmr.msra.gmra.mxu1 %vm397_vm3, %v25405_v39 }
0x217d   :  { %v25406_v2 = vadd.f32 %v36467_v10, %v25386_v43  ;;  %v25368_v19 = vmul.f32 %v30324_v28, %v36376_v51  ;;  %v25389_v56 = vmul.f32 %v36458_v57, %v25369_v27 }
0x217e   :  { %v30326_v62 = vpop.eup %30325 }
0x217f   :  { %v25371_v52 = vmul.f32 %v30326_v62, %v36382_v22  ;;  %29599 = vmatprep.mubr.msk.f32.mxu1 %vm397_vm3, %v25406_v2  ;;  %v25388_v63 = vmul.f32 %v36458_v57, %v25368_v19  ;;  %v25409_v51 = vadd.f32 %v36467_v10, %v25389_v56 }
0x2180   :  { %v30328_v14 = vpop.eup %30327  ;;  %29600 = vmatmul.mubr.msk.f32.gmra.mxu1 %vm397_vm3, %v25407_v0 }
0x2181   :  { %v25408_v11 = vadd.f32 %v36467_v10, %v25388_v63  ;;  %v25370_v37 = vmul.f32 %v30328_v14, %v36388_v8  ;;  %v25391_v30 = vmul.f32 %v36458_v57, %v25371_v52  ;;  %v27111_v8 = vld [vmem:[%s36912_s12 + $0x78] sm:$0xff] }
0x2182   :  { %29620 = vmatprep.subr.mxu0 %v27111_v8 }
0x2183   :  { %29602 = vmatprep.mubr.msk.f32.mxu1 %vm397_vm3, %v25408_v11  ;;  %v25390_v21 = vmul.f32 %v36458_v57, %v25370_v37  ;;  %v25411_v7 = vadd.f32 %v36467_v10, %v25391_v30  ;;  %29621 = vmatpush3.msra.mxu0 %v27111_v8 }
0x2184   :  { %29603 = vmatmul.mubr.msk.f32.gmra.mxu1 %vm397_vm3, %v25409_v51  ;;  %29622 = vmatprep.subr.mxu0 %v27110_v36 }
0x2185   :  { %v25410_v22 = vadd.f32 %v36467_v10, %v25390_v21  ;;  %29623 = vmatpush3.msra.mxu0 %v27110_v36 }
0x2186   :  { %29624 = vmatprep.subr.mxu0 %v27109_v42 }
0x2187   :  { %29605 = vmatprep.mubr.msk.f32.mxu1 %vm397_vm3, %v25410_v22  ;;  %29625 = vmatpush3.msra.mxu0 %v27109_v42 }
0x2188   :  { %29606 = vmatmul.mubr.msk.f32.gmra.mxu1 %vm397_vm3, %v25411_v7  ;;  %29626 = vmatprep.subr.mxu0 %v27108_v38 }
0x2189   :  { %29627 = vmatpush3.msra.mxu0 %v27108_v38 }
0x218a   :  { %29628 = vmatprep.subr.mxu0 %v27107_v6 }
0x218b   :  { %29629 = vmatpush3.msra.mxu0 %v27107_v6 }
0x218c   :  { %29630 = vmatprep.subr.mxu0 %v27106_v3 }
0x218d   :  { %29631 = vmatpush3.msra.mxu0 %v27106_v3 }
0x218e   :  { %29632 = vmatprep.subr.mxu0 %v27105_v41 }
0x218f   :  { %29633 = vmatpush3.msra.mxu0 %v27105_v41 }
0x2190   :  { %29634 = vmatprep.subr.mxu0 %v27104_v55 }
0x2191   :  { %29635 = vmatpush3.msra.mxu0 %v27104_v55 }
0x21e1   :  { %v25297_v32 = vpop.xlane.xlu0 %25296 }
0x21e2   :  { %v25325_v54 = vmul.f32 0.0625, %v25297_v32 }
0x21e3   :  { %v25294_v25 = vpop.xlane.xlu1 %25293 }
0x21e4   :  { %v25341_v17 = vadd.f32 1e-05, %v25325_v54  ;;  %v25324_v48 = vmul.f32 0.0625, %v25294_v25 }
0x21e5   :  { %v25303_v20 = vpop.xlane.xlu0 %25302 }
0x21e6   :  { %30329 = vrsqrt.f32 %v25341_v17  ;;  %v25340_v13 = vadd.f32 1e-05, %v25324_v48  ;;  %v25327_v23 = vmul.f32 0.0625, %v25303_v20 }
0x21e7   :  { %v25300_v5 = vpop.xlane.xlu1 %25299 }
0x21e8   :  { %30331 = vrsqrt.f32 %v25340_v13  ;;  %v25343_v46 = vadd.f32 1e-05, %v25327_v23  ;;  %v25326_v39 = vmul.f32 0.0625, %v25300_v5 }
0x21e9   :  { %v25309_v9 = vpop.xlane.xlu0 %25308 }
0x21ea   :  { %30333 = vrsqrt.f32 %v25343_v46  ;;  %v25342_v27 = vadd.f32 1e-05, %v25326_v39  ;;  %v25329_v43 = vmul.f32 0.0625, %v25309_v9 }
0x21eb   :  { %v25306_v28 = vpop.xlane.xlu1 %25305 }
0x21ec   :  { %30335 = vrsqrt.f32 %v25342_v27  ;;  %v25345_v2 = vadd.f32 1e-05, %v25329_v43  ;;  %v25328_v19 = vmul.f32 0.0625, %v25306_v28 }
0x21ed   :  { %v25315_v62 = vpop.xlane.xlu0 %25314 }
0x21ee   :  { %30337 = vrsqrt.f32 %v25345_v2  ;;  %v25344_v0 = vadd.f32 1e-05, %v25328_v19  ;;  %v25331_v56 = vmul.f32 0.0625, %v25315_v62 }
0x21ef   :  { %v25312_v52 = vpop.xlane.xlu1 %25311 }
0x21f0   :  { %30339 = vrsqrt.f32 %v25344_v0  ;;  %v25347_v63 = vadd.f32 1e-05, %v25331_v56  ;;  %v25330_v14 = vmul.f32 0.0625, %v25312_v52 }
0x21f2   :  { %30341 = vrsqrt.f32 %v25347_v63  ;;  %v25346_v11 = vadd.f32 1e-05, %v25330_v14 }
0x21f3   :  { %v30330_v37 = vpop.eup %30329 }
0x21f4   :  { %v25373_v51 = vmul.f32 %v30330_v37, %v36408_v50  ;;  %30343 = vrsqrt.f32 %v25346_v11 }
0x21f5   :  { %v30332_v30 = vpop.eup %30331 }
0x21f6   :  { %v25372_v21 = vmul.f32 %v30332_v30, %v36411_v24  ;;  %v25393_v7 = vmul.f32 %v36458_v57, %v25373_v51 }
0x21f7   :  { %v30334_v22 = vpop.eup %30333 }
0x21f8   :  { %v25375_v8 = vmul.f32 %v30334_v22, %v36416_v29  ;;  %v25392_v36 = vmul.f32 %v36458_v57, %v25372_v21  ;;  %v25413_v41 = vadd.f32 %v36467_v10, %v25393_v7 }
0x21f9   :  { %v30336_v42 = vpop.eup %30335 }
0x21fa   :  { %v25412_v38 = vadd.f32 %v36467_v10, %v25392_v36  ;;  %v25374_v6 = vmul.f32 %v30336_v42, %v36422_v26  ;;  %v25395_v50 = vmul.f32 %v36458_v57, %v25375_v8 }
0x21fb   :  { %v30338_v3 = vpop.eup %30337 }
0x21fc   :  { %v25377_v55 = vmul.f32 %v30338_v3, %v36428_v53  ;;  %29608 = vmatprep.mubr.msk.f32.mxu1 %vm397_vm3, %v25412_v38  ;;  %v25394_v24 = vmul.f32 %v36458_v57, %v25374_v6  ;;  %v25415_v26 = vadd.f32 %v36467_v10, %v25395_v50 }
0x21fd   :  { %v30340_v32 = vpop.eup %30339  ;;  %29609 = vmatmul.mubr.msk.f32.gmra.mxu1 %vm397_vm3, %v25413_v41 }
0x21fe   :  { %v25414_v29 = vadd.f32 %v36467_v10, %v25394_v24  ;;  %v25376_v54 = vmul.f32 %v30340_v32, %v36434_v59  ;;  %v25397_v17 = vmul.f32 %v36458_v57, %v25377_v55 }
0x21ff   :  { %v30342_v25 = vpop.eup %30341 }
0x2200   :  { %v25379_v48 = vmul.f32 %v30342_v25, %v36440_v18  ;;  %29611 = vmatprep.mubr.msk.f32.mxu1 %vm397_vm3, %v25414_v29  ;;  %v25396_v53 = vmul.f32 %v36458_v57, %v25376_v54  ;;  %v25417_v59 = vadd.f32 %v36467_v10, %v25397_v17 }
0x2201   :  { %v30344_v20 = vpop.eup %30343  ;;  %29612 = vmatmul.mubr.msk.f32.gmra.mxu1 %vm397_vm3, %v25415_v26 }
0x2202   :  { %v25416_v13 = vadd.f32 %v36467_v10, %v25396_v53  ;;  %v25378_v23 = vmul.f32 %v30344_v20, %v36446_v12  ;;  %v25399_v5 = vmul.f32 %v36458_v57, %v25379_v48  ;;  %v27087_v12 = vld [vmem:[%s36913_s11 + $0x1] ss:$0 sm:$0xff] }
0x2204   :  { %29614 = vmatprep.mubr.msk.f32.mxu1 %vm397_vm3, %v25416_v13  ;;  %v25398_v46 = vmul.f32 %v36458_v57, %v25378_v23  ;;  %v25419_v39 = vadd.f32 %v36467_v10, %v25399_v5 }
0x2205   :  { %29615 = vmatmul.mubr.msk.f32.gmra.mxu1 %vm397_vm3, %v25417_v59 }
0x2206   :  { %v25418_v18 = vadd.f32 %v36467_v10, %v25398_v46 }
0x2208   :  { %29617 = vmatprep.mubr.msk.f32.mxu1 %vm397_vm3, %v25418_v18 }
0x2209   :  { %29618 = vmatmul.mubr.msk.f32.gmra.mxu1 %vm397_vm3, %v25419_v39 }
0x223c   :  { %v29598_v9 = vpop.f32.mrf.mxu1 }
0x223d   :  { %v25548_v27 = vadd.f32 %v29598_v9, %v27087_v12 }
0x223e   :  { %v25542_v43 = vpop.f32.mrf.mxu1 }
0x223f   :  { %v25543_v28 = vadd.f32 %v27087_v12, %v25542_v43  ;;  %v25622_v19 = vmax.f32 %v25548_v27, 0.0  ;;  %v36575_v27 = vld [vmem:[%s36914_s13 + $0x1] ss:$0 sm:$0xff] }
0x2240   :  { %v29601_v2 = vpop.f32.mrf.mxu1 }
0x2241   :  { %v25621_v57 = vmax.f32 %v25543_v28, 0.0  ;;  %v25558_v62 = vadd.f32 %v29601_v2, %v27087_v12 }
0x2242   :  { %v25552_v0 = vpop.f32.mrf.mxu1 }
0x2243   :  { %v25553_v56 = vadd.f32 %v27087_v12, %v25552_v0  ;;  %29636 = vmatprep.mubr.msk.f32.mxu0 %vm12918_vm8, %v25621_v57  ;;  %v25624_v63 = vmax.f32 %v25558_v62, 0.0 }
0x2244   :  { %v29604_v10 = vpop.f32.mrf.mxu1  ;;  %29637 = vmatmul.mubr.msk.f32.vlgmr.msra.gmra.mxu0 %vm12918_vm8, %v25622_v19 }
0x2245   :  { %v25623_v52 = vmax.f32 %v25553_v56, 0.0  ;;  %v25568_v14 = vadd.f32 %v29604_v10, %v27087_v12 }
0x2246   :  { %v25562_v11 = vpop.f32.mrf.mxu1 }
0x2247   :  { %v25563_v37 = vadd.f32 %v27087_v12, %v25562_v11  ;;  %29639 = vmatprep.mubr.msk.f32.mxu0 %vm12918_vm8, %v25623_v52  ;;  %v25626_v21 = vmax.f32 %v25568_v14, 0.0 }
0x2248   :  { %v29607_v51 = vpop.f32.mrf.mxu1  ;;  %29640 = vmatmul.mubr.msk.f32.gmra.mxu0 %vm12918_vm8, %v25624_v63 }
0x2249   :  { %v25625_v30 = vmax.f32 %v25563_v37, 0.0  ;;  %v25578_v22 = vadd.f32 %v29607_v51, %v27087_v12 }
0x224a   :  { %v25572_v7 = vpop.f32.mrf.mxu1 }
0x224b   :  { %v25573_v8 = vadd.f32 %v27087_v12, %v25572_v7  ;;  %29642 = vmatprep.mubr.msk.f32.mxu0 %vm12918_vm8, %v25625_v30  ;;  %v25628_v42 = vmax.f32 %v25578_v22, 0.0 }
0x224c   :  { %29643 = vmatmul.mubr.msk.f32.gmra.mxu0 %vm12918_vm8, %v25626_v21 }
0x224d   :  { %v25627_v36 = vmax.f32 %v25573_v8, 0.0 }
0x224f   :  { %29645 = vmatprep.mubr.msk.f32.mxu0 %vm12918_vm8, %v25627_v36 }
0x2250   :  { %29646 = vmatmul.mubr.msk.f32.gmra.mxu0 %vm12918_vm8, %v25628_v42 }
0x22bd   :  { %v29610_v38 = vpop.f32.mrf.mxu1 }
0x22be   :  { %v25588_v6 = vadd.f32 %v29610_v38, %v27087_v12 }
0x22bf   :  { %v25582_v3 = vpop.f32.mrf.mxu1 }
0x22c0   :  { %v25583_v41 = vadd.f32 %v27087_v12, %v25582_v3  ;;  %v25630_v24 = vmax.f32 %v25588_v6, 0.0 }
0x22c1   :  { %v29613_v50 = vpop.f32.mrf.mxu1 }
0x22c2   :  { %v25629_v55 = vmax.f32 %v25583_v41, 0.0  ;;  %v25598_v32 = vadd.f32 %v29613_v50, %v27087_v12 }
0x22c3   :  { %v25592_v29 = vpop.f32.mrf.mxu1 }
0x22c4   :  { %v25593_v54 = vadd.f32 %v27087_v12, %v25592_v29  ;;  %29648 = vmatprep.mubr.msk.f32.mxu0 %vm12918_vm8, %v25629_v55  ;;  %v25632_v17 = vmax.f32 %v25598_v32, 0.0 }
0x22c5   :  { %v29616_v25 = vpop.f32.mrf.mxu1  ;;  %29649 = vmatmul.mubr.msk.f32.gmra.mxu0 %vm12918_vm8, %v25630_v24 }
0x22c6   :  { %v25631_v26 = vmax.f32 %v25593_v54, 0.0  ;;  %v25608_v48 = vadd.f32 %v29616_v25, %v27087_v12 }
0x22c7   :  { %v25602_v53 = vpop.f32.mrf.mxu1 }
0x22c8   :  { %v25603_v20 = vadd.f32 %v27087_v12, %v25602_v53  ;;  %29651 = vmatprep.mubr.msk.f32.mxu0 %vm12918_vm8, %v25631_v26  ;;  %v25634_v59 = vmax.f32 %v25608_v48, 0.0 }
0x22c9   :  { %v29619_v13 = vpop.f32.mrf.mxu1  ;;  %29652 = vmatmul.mubr.msk.f32.gmra.mxu0 %vm12918_vm8, %v25632_v17 }
0x22ca   :  { %v25633_v23 = vmax.f32 %v25603_v20, 0.0  ;;  %v25618_v5 = vadd.f32 %v29619_v13, %v27087_v12 }
0x22cb   :  { %v25612_v46 = vpop.f32.mrf.mxu1 }
0x22cc   :  { %v25613_v18 = vadd.f32 %v27087_v12, %v25612_v46  ;;  %29654 = vmatprep.mubr.msk.f32.mxu0 %vm12918_vm8, %v25633_v23  ;;  %v25636_v9 = vmax.f32 %v25618_v5, 0.0 }
0x22cd   :  { %29655 = vmatmul.mubr.msk.f32.gmra.mxu0 %vm12918_vm8, %v25634_v59 }
0x22ce   :  { %v25635_v39 = vmax.f32 %v25613_v18, 0.0 }
0x22d0   :  { %29657 = vmatprep.mubr.msk.f32.mxu0 %vm12918_vm8, %v25635_v39 }
0x22d1   :  { %29658 = vmatmul.mubr.msk.f32.gmra.mxu0 %vm12918_vm8, %v25636_v9 }
0x2304   :  { %v29638_v43 = vpop.f32.mrf.mxu0 }
0x2305   :  { %v25771_v28 = vadd.f32 %v29638_v43, %v36575_v27 }
0x2306   :  { %v25765_v2 = vpop.f32.mrf.mxu0 }
0x2307   :  { %v36579_v12 = vadd.f32 %v25771_v28, %v36242_v49  ;;  %v25766_v57 = vadd.f32 %v36575_v27, %v25765_v2 }
0x2308   :  { %v29641_v19 = vpop.f32.mrf.mxu0 }
0x2309   :  { %v36583_v62 = vadd.f32 %v25766_v57, %v36249_v60  ;;  %v25781_v0 = vadd.f32 %v29641_v19, %v36575_v27  ;;  %v25865_v56 = vsel %vm397_vm3, %v36579_v12, 0.0 }
0x230a   :  { %25866 = vadd.xlane.f32.xlu0 %v25865_v56  ;;  %v25775_v10 = vpop.f32.mrf.mxu0 }
0x230b   :  { %v36589_v52 = vadd.f32 %v25781_v0, %v36266_v31  ;;  %v25776_v63 = vadd.f32 %v36575_v27, %v25775_v10  ;;  %v25862_v49 = vsel %vm397_vm3, %v36583_v62, 0.0 }
0x230c   :  { %25863 = vadd.xlane.f32.xlu1 %v25862_v49  ;;  %v29644_v14 = vpop.f32.mrf.mxu0 }
0x230d   :  { %v36595_v60 = vadd.f32 %v25776_v63, %v36262_v33  ;;  %v25791_v11 = vadd.f32 %v29644_v14, %v36575_v27  ;;  %v25871_v37 = vsel %vm397_vm3, %v36589_v52, 0.0 }
0x230e   :  { %25872 = vadd.xlane.f32.xlu0 %v25871_v37  ;;  %v25785_v51 = vpop.f32.mrf.mxu0 }
0x230f   :  { %v36601_v31 = vadd.f32 %v25791_v11, %v36279_v44  ;;  %v25786_v30 = vadd.f32 %v36575_v27, %v25785_v51  ;;  %v25868_v21 = vsel %vm397_vm3, %v36595_v60, 0.0 }
0x2310   :  { %25869 = vadd.xlane.f32.xlu1 %v25868_v21  ;;  %v29647_v22 = vpop.f32.mrf.mxu0 }
0x2311   :  { %v36607_v33 = vadd.f32 %v25786_v30, %v36274_v1  ;;  %v25801_v7 = vadd.f32 %v29647_v22, %v36575_v27  ;;  %v25877_v8 = vsel %vm397_vm3, %v36601_v31, 0.0 }
0x2312   :  { %25878 = vadd.xlane.f32.xlu0 %v25877_v8  ;;  %v25795_v36 = vpop.f32.mrf.mxu0 }
0x2313   :  { %v36613_v44 = vadd.f32 %v25801_v7, %v36289_v61  ;;  %v25796_v42 = vadd.f32 %v36575_v27, %v25795_v36  ;;  %v25874_v38 = vsel %vm397_vm3, %v36607_v33, 0.0 }
0x2314   :  { %25875 = vadd.xlane.f32.xlu1 %v25874_v38 }
0x2315   :  { %v36619_v6 = vadd.f32 %v25796_v42, %v36286_v40  ;;  %v25883_v1 = vsel %vm397_vm3, %v36613_v44, 0.0 }
0x2316   :  { %25884 = vadd.xlane.f32.xlu0 %v25883_v1 }
0x2317   :  { %v25880_v3 = vsel %vm397_vm3, %v36619_v6, 0.0 }
0x2318   :  { %25881 = vadd.xlane.f32.xlu1 %v25880_v3 }
0x2385   :  { %v29650_v41 = vpop.f32.mrf.mxu0 }
0x2386   :  { %v25811_v61 = vadd.f32 %v29650_v41, %v36575_v27 }
0x2387   :  { %v25805_v50 = vpop.f32.mrf.mxu0 }
0x2388   :  { %v36627_v55 = vadd.f32 %v25811_v61, %v36301_v45  ;;  %v25806_v24 = vadd.f32 %v36575_v27, %v25805_v50 }
0x2389   :  { %v29653_v32 = vpop.f32.mrf.mxu0 }
0x238a   :  { %v36631_v40 = vadd.f32 %v25806_v24, %v36306_v4  ;;  %v25821_v29 = vadd.f32 %v29653_v32, %v36575_v27  ;;  %v25889_v54 = vsel %vm397_vm3, %v36627_v55, 0.0 }
0x238b   :  { %25890 = vadd.xlane.f32.xlu0 %v25889_v54  ;;  %v25815_v25 = vpop.f32.mrf.mxu0 }
0x238c   :  { %v36637_v26 = vadd.f32 %v25821_v29, %v36313_v15  ;;  %v25816_v17 = vadd.f32 %v36575_v27, %v25815_v25  ;;  %v25886_v45 = vsel %vm397_vm3, %v36631_v40, 0.0 }
0x238d   :  { %25887 = vadd.xlane.f32.xlu1 %v25886_v45  ;;  %v29656_v48 = vpop.f32.mrf.mxu0  ;;  %v26114_v45 = vld [vmem:[%s36915_s16] sm:$0xff] }
0x238e   :  { %v36643_v4 = vadd.f32 %v25816_v17, %v36320_v16  ;;  %v25831_v53 = vadd.f32 %v29656_v48, %v36575_v27  ;;  %v25895_v20 = vsel %vm397_vm3, %v36637_v26, 0.0 }
0x238f   :  { %25896 = vadd.xlane.f32.xlu0 %v25895_v20  ;;  %v25825_v13 = vpop.f32.mrf.mxu0 }
0x2390   :  { %v36649_v15 = vadd.f32 %v25831_v53, %v36327_v35  ;;  %v25826_v23 = vadd.f32 %v36575_v27, %v25825_v13  ;;  %v25892_v59 = vsel %vm397_vm3, %v36643_v4, 0.0 }
0x2391   :  { %25893 = vadd.xlane.f32.xlu1 %v25892_v59  ;;  %v29659_v5 = vpop.f32.mrf.mxu0 }
0x2392   :  { %v36655_v16 = vadd.f32 %v25826_v23, %v36337_v47  ;;  %v25841_v46 = vadd.f32 %v29659_v5, %v36575_v27  ;;  %v25901_v18 = vsel %vm397_vm3, %v36649_v15, 0.0 }
0x2393   :  { %v25867_v39 = vpop.xlane.xlu0 %25866  ;;  %25902 = vadd.xlane.f32.xlu0 %v25901_v18  ;;  %v25835_v9 = vpop.f32.mrf.mxu0 }
0x2394   :  { %v36661_v35 = vadd.f32 %v25841_v46, %v36347_v34  ;;  %v25911_v43 = vmul.f32 0.0625, %v25867_v39  ;;  %v25836_v28 = vadd.f32 %v36575_v27, %v25835_v9  ;;  %v25898_v2 = vsel %vm397_vm3, %v36655_v16, 0.0 }
0x2395   :  { %25899 = vadd.xlane.f32.xlu1 %v25898_v2  ;;  %v25864_v47 = vpop.xlane.xlu1 %25863 }
0x2396   :  { %v36667_v57 = vsub.f32 %v36579_v12, %v25911_v43  ;;  %v36670_v19 = vadd.f32 %v25836_v28, %v36358_v58  ;;  %v25910_v0 = vmul.f32 0.0625, %v25864_v47  ;;  %v25907_v56 = vsel %vm397_vm3, %v36661_v35, 0.0 }
0x2397   :  { %v25873_v34 = vpop.xlane.xlu0 %25872  ;;  %25908 = vadd.xlane.f32.xlu0 %v25907_v56 }
0x2398   :  { %v36675_v10 = vsub.f32 %v36583_v62, %v25910_v0  ;;  %v25913_v27 = vmul.f32 0.0625, %v25873_v34  ;;  %v25904_v63 = vsel %vm397_vm3, %v36670_v19, 0.0  ;;  %v25943_v12 = vmul.f32 %v36667_v57, %v36667_v57 }
0x2399   :  { %25905 = vadd.xlane.f32.xlu1 %v25904_v63  ;;  %v25870_v49 = vpop.xlane.xlu1 %25869 }
0x239a   :  { %v36682_v58 = vsub.f32 %v36589_v52, %v25913_v27  ;;  %v25912_v14 = vmul.f32 0.0625, %v25870_v49  ;;  %v25961_v11 = vsel %vm397_vm3, %v25943_v12, 0.0  ;;  %v25942_v37 = vmul.f32 %v36675_v10, %v36675_v10 }
0x239b   :  { %v25879_v62 = vpop.xlane.xlu0 %25878  ;;  %25962 = vadd.xlane.f32.xlu0 %v25961_v11 }
0x239c   :  { %v36688_v51 = vsub.f32 %v36595_v60, %v25912_v14  ;;  %v25915_v30 = vmul.f32 0.0625, %v25879_v62  ;;  %v25958_v21 = vsel %vm397_vm3, %v25942_v37, 0.0  ;;  %v25945_v22 = vmul.f32 %v36682_v58, %v36682_v58 }
0x239d   :  { %25959 = vadd.xlane.f32.xlu1 %v25958_v21  ;;  %v25876_v52 = vpop.xlane.xlu1 %25875 }
0x239e   :  { %v36694_v7 = vsub.f32 %v36601_v31, %v25915_v30  ;;  %v25914_v8 = vmul.f32 0.0625, %v25876_v52  ;;  %v25967_v36 = vsel %vm397_vm3, %v25945_v22, 0.0  ;;  %v25944_v42 = vmul.f32 %v36688_v51, %v36688_v51 }
0x239f   :  { %v25885_v38 = vpop.xlane.xlu0 %25884  ;;  %25968 = vadd.xlane.f32.xlu0 %v25967_v36 }
0x23a0   :  { %v36700_v60 = vsub.f32 %v36607_v33, %v25914_v8  ;;  %v25917_v1 = vmul.f32 0.0625, %v25885_v38  ;;  %v25964_v3 = vsel %vm397_vm3, %v25944_v42, 0.0  ;;  %v25947_v41 = vmul.f32 %v36694_v7, %v36694_v7 }
0x23a1   :  { %25965 = vadd.xlane.f32.xlu1 %v25964_v3  ;;  %v25882_v31 = vpop.xlane.xlu1 %25881 }
0x23a2   :  { %v36706_v61 = vsub.f32 %v36613_v44, %v25917_v1  ;;  %v25916_v50 = vmul.f32 0.0625, %v25882_v31  ;;  %v25973_v24 = vsel %vm397_vm3, %v25947_v41, 0.0  ;;  %v25946_v32 = vmul.f32 %v36700_v60, %v36700_v60 }
0x23a3   :  { %25974 = vadd.xlane.f32.xlu0 %v25973_v24 }
0x23a4   :  { %v36712_v33 = vsub.f32 %v36619_v6, %v25916_v50  ;;  %v25970_v29 = vsel %vm397_vm3, %v25946_v32, 0.0  ;;  %v25949_v54 = vmul.f32 %v36706_v61, %v36706_v61  ;;  %v26115_v6 = vld [vmem:[%s36915_s16 + $0x8] sm:$0xff] }
0x23a5   :  { %25971 = vadd.xlane.f32.xlu1 %v25970_v29  ;;  %29660 = vmatprep.subr.mxu1 %v26115_v6 }
0x23a6   :  { %v25979_v25 = vsel %vm397_vm3, %v25949_v54, 0.0  ;;  %v25948_v44 = vmul.f32 %v36712_v33, %v36712_v33  ;;  %29661 = vmatpush3.msra.mxu1 %v26115_v6 }
0x23a7   :  { %25980 = vadd.xlane.f32.xlu0 %v25979_v25  ;;  %29662 = vmatprep.subr.mxu1 %v26114_v45 }
0x23a8   :  { %v25976_v17 = vsel %vm397_vm3, %v25948_v44, 0.0  ;;  %29663 = vmatpush3.msra.mxu1 %v26114_v45 }
0x23a9   :  { %25977 = vadd.xlane.f32.xlu1 %v25976_v17 }
0x2414   :  { %v25891_v48 = vpop.xlane.xlu0 %25890 }
0x2415   :  { %v25919_v53 = vmul.f32 0.0625, %v25891_v48 }
0x2416   :  { %v25888_v20 = vpop.xlane.xlu1 %25887 }
0x2417   :  { %v36728_v13 = vsub.f32 %v36627_v55, %v25919_v53  ;;  %v25918_v23 = vmul.f32 0.0625, %v25888_v20 }
0x2418   :  { %v25897_v59 = vpop.xlane.xlu0 %25896 }
0x2419   :  { %v36731_v5 = vsub.f32 %v36631_v40, %v25918_v23  ;;  %v25921_v46 = vmul.f32 0.0625, %v25897_v59  ;;  %v25951_v18 = vmul.f32 %v36728_v13, %v36728_v13 }
0x241a   :  { %v25894_v39 = vpop.xlane.xlu1 %25893 }
0x241b   :  { %v36736_v9 = vsub.f32 %v36637_v26, %v25921_v46  ;;  %v25920_v43 = vmul.f32 0.0625, %v25894_v39  ;;  %v25985_v28 = vsel %vm397_vm3, %v25951_v18, 0.0  ;;  %v25950_v55 = vmul.f32 %v36731_v5, %v36731_v5 }
0x241c   :  { %v25903_v2 = vpop.xlane.xlu0 %25902  ;;  %25986 = vadd.xlane.f32.xlu0 %v25985_v28  ;;  %v36778_v28 = vld [vmem:[%s36916_s14] ss:$0 sm:$0xff] }
0x241d   :  { %v36742_v47 = vsub.f32 %v36643_v4, %v25920_v43  ;;  %v25923_v40 = vmul.f32 0.0625, %v25903_v2  ;;  %v25982_v0 = vsel %vm397_vm3, %v25950_v55, 0.0  ;;  %v25953_v56 = vmul.f32 %v36736_v9, %v36736_v9 }
0x241e   :  { %25983 = vadd.xlane.f32.xlu1 %v25982_v0  ;;  %v25900_v26 = vpop.xlane.xlu1 %25899 }
0x241f   :  { %v36748_v34 = vsub.f32 %v36649_v15, %v25923_v40  ;;  %v25922_v27 = vmul.f32 0.0625, %v25900_v26  ;;  %v25991_v63 = vsel %vm397_vm3, %v25953_v56, 0.0  ;;  %v25952_v12 = vmul.f32 %v36742_v47, %v36742_v47  ;;  %v36786_v26 = vld [vmem:[%s36917_s15] ss:$0 sm:$0xff] }
0x2420   :  { %25992 = vadd.xlane.f32.xlu0 %v25991_v63  ;;  %v25909_v4 = vpop.xlane.xlu0 %25908 }
0x2421   :  { %v36754_v49 = vsub.f32 %v36655_v16, %v25922_v27  ;;  %v25925_v14 = vmul.f32 0.0625, %v25909_v4  ;;  %v25988_v11 = vsel %vm397_vm3, %v25952_v12, 0.0  ;;  %v25955_v37 = vmul.f32 %v36748_v34, %v36748_v34 }
0x2422   :  { %25989 = vadd.xlane.f32.xlu1 %v25988_v11  ;;  %v25906_v15 = vpop.xlane.xlu1 %25905 }
0x2423   :  { %v36760_v62 = vsub.f32 %v36661_v35, %v25925_v14  ;;  %v25924_v30 = vmul.f32 0.0625, %v25906_v15  ;;  %v25997_v21 = vsel %vm397_vm3, %v25955_v37, 0.0  ;;  %v25954_v22 = vmul.f32 %v36754_v49, %v36754_v49 }
0x2424   :  { %25998 = vadd.xlane.f32.xlu0 %v25997_v21  ;;  %v25963_v16 = vpop.xlane.xlu0 %25962 }
0x2425   :  { %v36766_v52 = vsub.f32 %v36670_v19, %v25924_v30  ;;  %v26007_v8 = vmul.f32 0.0625, %v25963_v16  ;;  %v25994_v36 = vsel %vm397_vm3, %v25954_v22, 0.0  ;;  %v25957_v42 = vmul.f32 %v36760_v62, %v36760_v62 }
0x2426   :  { %25995 = vadd.xlane.f32.xlu1 %v25994_v36  ;;  %v25960_v35 = vpop.xlane.xlu1 %25959 }
0x2427   :  { %v26023_v38 = vadd.f32 1e-05, %v26007_v8  ;;  %v26006_v1 = vmul.f32 0.0625, %v25960_v35  ;;  %v26003_v3 = vsel %vm397_vm3, %v25957_v42, 0.0  ;;  %v25956_v41 = vmul.f32 %v36766_v52, %v36766_v52 }
0x2428   :  { %26004 = vadd.xlane.f32.xlu0 %v26003_v3  ;;  %v25969_v31 = vpop.xlane.xlu0 %25968 }
0x2429   :  { %30345 = vrsqrt.f32 %v26023_v38  ;;  %v26022_v19 = vadd.f32 1e-05, %v26006_v1  ;;  %v26009_v50 = vmul.f32 0.0625, %v25969_v31  ;;  %v26000_v24 = vsel %vm397_vm3, %v25956_v41, 0.0 }
0x242a   :  { %26001 = vadd.xlane.f32.xlu1 %v26000_v24  ;;  %v25966_v32 = vpop.xlane.xlu1 %25965 }
0x242b   :  { %30347 = vrsqrt.f32 %v26022_v19  ;;  %v26025_v29 = vadd.f32 1e-05, %v26009_v50  ;;  %v26008_v54 = vmul.f32 0.0625, %v25966_v32 }
0x242c   :  { %v25975_v25 = vpop.xlane.xlu0 %25974 }
0x242d   :  { %30349 = vrsqrt.f32 %v26025_v29  ;;  %v26024_v44 = vadd.f32 1e-05, %v26008_v54  ;;  %v26011_v17 = vmul.f32 0.0625, %v25975_v25 }
0x242e   :  { %v25972_v6 = vpop.xlane.xlu1 %25971 }
0x242f   :  { %30351 = vrsqrt.f32 %v26024_v44  ;;  %v26027_v45 = vadd.f32 1e-05, %v26011_v17  ;;  %v26010_v48 = vmul.f32 0.0625, %v25972_v6 }
0x2430   :  { %v25981_v53 = vpop.xlane.xlu0 %25980 }
0x2431   :  { %30353 = vrsqrt.f32 %v26027_v45  ;;  %v26026_v20 = vadd.f32 1e-05, %v26010_v48  ;;  %v26013_v23 = vmul.f32 0.0625, %v25981_v53 }
0x2432   :  { %v25978_v59 = vpop.xlane.xlu1 %25977 }
0x2433   :  { %30355 = vrsqrt.f32 %v26026_v20  ;;  %v26029_v46 = vadd.f32 1e-05, %v26013_v23  ;;  %v26012_v18 = vmul.f32 0.0625, %v25978_v59 }
0x2435   :  { %30357 = vrsqrt.f32 %v26029_v46  ;;  %v26028_v39 = vadd.f32 1e-05, %v26012_v18 }
0x2436   :  { %v30346_v43 = vpop.eup %30345 }
0x2437   :  { %v26055_v55 = vmul.f32 %v30346_v43, %v36667_v57  ;;  %30359 = vrsqrt.f32 %v26028_v39 }
0x2438   :  { %v30348_v2 = vpop.eup %30347 }
0x2439   :  { %v26054_v40 = vmul.f32 %v30348_v2, %v36675_v10  ;;  %v26077_v56 = vmul.f32 %v36778_v28, %v26055_v55 }
0x243a   :  { %v30350_v0 = vpop.eup %30349 }
0x243b   :  { %v26057_v27 = vmul.f32 %v30350_v0, %v36682_v58  ;;  %v26076_v63 = vmul.f32 %v36778_v28, %v26054_v40  ;;  %v26099_v10 = vadd.f32 %v36786_v26, %v26077_v56 }
0x243c   :  { %v30352_v12 = vpop.eup %30351 }
0x243d   :  { %v26098_v4 = vadd.f32 %v36786_v26, %v26076_v63  ;;  %v26056_v57 = vmul.f32 %v30352_v12, %v36688_v51  ;;  %v26079_v11 = vmul.f32 %v36778_v28, %v26057_v27 }
0x243e   :  { %v30354_v14 = vpop.eup %30353 }
0x243f   :  { %v26059_v37 = vmul.f32 %v30354_v14, %v36694_v7  ;;  %29664 = vmatprep.mubr.msk.f32.mxu1 %vm397_vm3, %v26098_v4  ;;  %v26078_v15 = vmul.f32 %v36778_v28, %v26056_v57  ;;  %v26101_v51 = vadd.f32 %v36786_v26, %v26079_v11 }
0x2440   :  { %v30356_v30 = vpop.eup %30355  ;;  %29665 = vmatmul.mubr.msk.f32.vlgmr.msra.gmra.mxu1 %vm397_vm3, %v26099_v10 }
0x2441   :  { %v26100_v58 = vadd.f32 %v36786_v26, %v26078_v15  ;;  %v26058_v21 = vmul.f32 %v30356_v30, %v36700_v60  ;;  %v26081_v16 = vmul.f32 %v36778_v28, %v26059_v37 }
0x2442   :  { %v30358_v22 = vpop.eup %30357 }
0x2443   :  { %v26061_v8 = vmul.f32 %v30358_v22, %v36706_v61  ;;  %29667 = vmatprep.mubr.msk.f32.mxu1 %vm397_vm3, %v26100_v58  ;;  %v26080_v7 = vmul.f32 %v36778_v28, %v26058_v21  ;;  %v26103_v60 = vadd.f32 %v36786_v26, %v26081_v16 }
0x2444   :  { %v30360_v36 = vpop.eup %30359  ;;  %29668 = vmatmul.mubr.msk.f32.gmra.mxu1 %vm397_vm3, %v26101_v51 }
0x2445   :  { %v26102_v42 = vadd.f32 %v36786_v26, %v26080_v7  ;;  %v26060_v35 = vmul.f32 %v30360_v36, %v36712_v33  ;;  %v26083_v38 = vmul.f32 %v36778_v28, %v26061_v8 }
0x2447   :  { %29670 = vmatprep.mubr.msk.f32.mxu1 %vm397_vm3, %v26102_v42  ;;  %v26082_v1 = vmul.f32 %v36778_v28, %v26060_v35  ;;  %v26105_v3 = vadd.f32 %v36786_v26, %v26083_v38 }
0x2448   :  { %29671 = vmatmul.mubr.msk.f32.gmra.mxu1 %vm397_vm3, %v26103_v60 }
0x2449   :  { %v26104_v61 = vadd.f32 %v36786_v26, %v26082_v1 }
0x244b   :  { %29673 = vmatprep.mubr.msk.f32.mxu1 %vm397_vm3, %v26104_v61 }
0x244c   :  { %29674 = vmatmul.mubr.msk.f32.gmra.mxu1 %vm397_vm3, %v26105_v3 }
0x24a5   :  { %v25987_v41 = vpop.xlane.xlu0 %25986 }
0x24a6   :  { %v26015_v33 = vmul.f32 0.0625, %v25987_v41 }
0x24a7   :  { %v25984_v31 = vpop.xlane.xlu1 %25983 }
0x24a8   :  { %v26031_v19 = vadd.f32 1e-05, %v26015_v33  ;;  %v26014_v50 = vmul.f32 0.0625, %v25984_v31 }
0x24a9   :  { %v25993_v24 = vpop.xlane.xlu0 %25992 }
0x24aa   :  { %30361 = vrsqrt.f32 %v26031_v19  ;;  %v26030_v32 = vadd.f32 1e-05, %v26014_v50  ;;  %v26017_v29 = vmul.f32 0.0625, %v25993_v24 }
0x24ab   :  { %v25990_v54 = vpop.xlane.xlu1 %25989 }
0x24ac   :  { %30363 = vrsqrt.f32 %v26030_v32  ;;  %v26033_v25 = vadd.f32 1e-05, %v26017_v29  ;;  %v26016_v44 = vmul.f32 0.0625, %v25990_v54 }
0x24ad   :  { %v25999_v17 = vpop.xlane.xlu0 %25998 }
0x24ae   :  { %30365 = vrsqrt.f32 %v26033_v25  ;;  %v26032_v6 = vadd.f32 1e-05, %v26016_v44  ;;  %v26019_v45 = vmul.f32 0.0625, %v25999_v17 }
0x24af   :  { %v25996_v48 = vpop.xlane.xlu1 %25995 }
0x24b0   :  { %30367 = vrsqrt.f32 %v26032_v6  ;;  %v26035_v53 = vadd.f32 1e-05, %v26019_v45  ;;  %v26018_v20 = vmul.f32 0.0625, %v25996_v48 }
0x24b1   :  { %v26005_v23 = vpop.xlane.xlu0 %26004 }
0x24b2   :  { %30369 = vrsqrt.f32 %v26035_v53  ;;  %v26034_v59 = vadd.f32 1e-05, %v26018_v20  ;;  %v26021_v46 = vmul.f32 0.0625, %v26005_v23 }
0x24b3   :  { %v26002_v18 = vpop.xlane.xlu1 %26001 }
0x24b4   :  { %30371 = vrsqrt.f32 %v26034_v59  ;;  %v26037_v39 = vadd.f32 1e-05, %v26021_v46  ;;  %v26020_v43 = vmul.f32 0.0625, %v26002_v18 }
0x24b6   :  { %30373 = vrsqrt.f32 %v26037_v39  ;;  %v26036_v55 = vadd.f32 1e-05, %v26020_v43 }
0x24b7   :  { %v30362_v2 = vpop.eup %30361 }
0x24b8   :  { %v26063_v40 = vmul.f32 %v30362_v2, %v36728_v13  ;;  %30375 = vrsqrt.f32 %v26036_v55 }
0x24b9   :  { %v30364_v0 = vpop.eup %30363 }
0x24ba   :  { %v26062_v56 = vmul.f32 %v30364_v0, %v36731_v5  ;;  %v26085_v63 = vmul.f32 %v36778_v28, %v26063_v40 }
0x24bb   :  { %v30366_v27 = vpop.eup %30365 }
0x24bc   :  { %v26065_v12 = vmul.f32 %v30366_v27, %v36736_v9  ;;  %v26084_v4 = vmul.f32 %v36778_v28, %v26062_v56  ;;  %v26107_v37 = vadd.f32 %v36786_v26, %v26085_v63 }
0x24bd   :  { %v30368_v57 = vpop.eup %30367 }
0x24be   :  { %v26106_v14 = vadd.f32 %v36786_v26, %v26084_v4  ;;  %v26064_v10 = vmul.f32 %v30368_v57, %v36742_v47  ;;  %v26087_v13 = vmul.f32 %v36778_v28, %v26065_v12 }
0x24bf   :  { %v30370_v11 = vpop.eup %30369 }
0x24c0   :  { %v26067_v15 = vmul.f32 %v30370_v11, %v36748_v34  ;;  %29676 = vmatprep.mubr.msk.f32.mxu1 %vm397_vm3, %v26106_v14  ;;  %v26086_v5 = vmul.f32 %v36778_v28, %v26064_v10  ;;  %v26109_v47 = vadd.f32 %v36786_v26, %v26087_v13 }
0x24c1   :  { %v30372_v30 = vpop.eup %30371  ;;  %29677 = vmatmul.mubr.msk.f32.gmra.mxu1 %vm397_vm3, %v26107_v37 }
0x24c2   :  { %v26108_v9 = vadd.f32 %v36786_v26, %v26086_v5  ;;  %v26066_v58 = vmul.f32 %v30372_v30, %v36754_v49  ;;  %v26089_v22 = vmul.f32 %v36778_v28, %v26067_v15 }
0x24c3   :  { %v30374_v21 = vpop.eup %30373 }
0x24c4   :  { %v26069_v51 = vmul.f32 %v30374_v21, %v36760_v62  ;;  %29679 = vmatprep.mubr.msk.f32.mxu1 %vm397_vm3, %v26108_v9  ;;  %v26088_v34 = vmul.f32 %v36778_v28, %v26066_v58  ;;  %v26111_v49 = vadd.f32 %v36786_v26, %v26089_v22 }
0x24c5   :  { %v30376_v16 = vpop.eup %30375  ;;  %29680 = vmatmul.mubr.msk.f32.gmra.mxu1 %vm397_vm3, %v26109_v47 }
0x24c6   :  { %v26110_v8 = vadd.f32 %v36786_v26, %v26088_v34  ;;  %v26068_v7 = vmul.f32 %v30376_v16, %v36766_v52  ;;  %v26091_v36 = vmul.f32 %v36778_v28, %v26069_v51  ;;  %v27131_v52 = vld [vmem:[%s36918_s17] ss:$0 sm:$0xff] }
0x24c8   :  { %29682 = vmatprep.mubr.msk.f32.mxu1 %vm397_vm3, %v26110_v8  ;;  %v26090_v42 = vmul.f32 %v36778_v28, %v26068_v7  ;;  %v26113_v35 = vadd.f32 %v36786_v26, %v26091_v36 }
0x24c9   :  { %29683 = vmatmul.mubr.msk.f32.gmra.mxu1 %vm397_vm3, %v26111_v49 }
0x24ca   :  { %v26112_v62 = vadd.f32 %v36786_v26, %v26090_v42 }
0x24cc   :  { %29685 = vmatprep.mubr.msk.f32.mxu1 %vm397_vm3, %v26112_v62 }
0x24cd   :  { %29686 = vmatmul.mubr.msk.f32.gmra.mxu1 %vm397_vm3, %v26113_v35 }
0x2500   :  { %v29666_v60 = vpop.f32.mrf.mxu1 }
0x2501   :  { %v26243_v38 = vadd.f32 %v29666_v60, %v27131_v52 }
0x2502   :  { %v26237_v1 = vpop.f32.mrf.mxu1 }
0x2503   :  { %26317 = vst [vmem:[%s36919_s18 + $0x8] sm:$0xff] %v26243_v38  ;;  %v26238_v28 = vadd.f32 %v27131_v52, %v26237_v1 }
0x2504   :  { %v29669_v61 = vpop.f32.mrf.mxu1 }
0x2505   :  { %26316 = vst [vmem:[%s36919_s18] sm:$0xff] %v26238_v28  ;;  %v26253_v26 = vadd.f32 %v29669_v61, %v27131_v52 }
0x2506   :  { %v26247_v3 = vpop.f32.mrf.mxu1 }
0x2507   :  { %26319 = vst [vmem:[%s36919_s18 + $0x18] sm:$0xff] %v26253_v26  ;;  %v26248_v41 = vadd.f32 %v27131_v52, %v26247_v3 }
0x2508   :  { %v29672_v33 = vpop.f32.mrf.mxu1 }
0x2509   :  { %26318 = vst [vmem:[%s36919_s18 + $0x10] sm:$0xff] %v26248_v41  ;;  %v26263_v31 = vadd.f32 %v29672_v33, %v27131_v52 }
0x250a   :  { %v26257_v19 = vpop.f32.mrf.mxu1 }
0x250b   :  { %26321 = vst [vmem:[%s36919_s18 + $0x28] sm:$0xff] %v26263_v31  ;;  %v26258_v50 = vadd.f32 %v27131_v52, %v26257_v19 }
0x250c   :  { %v29675_v24 = vpop.f32.mrf.mxu1 }
0x250d   :  { %26320 = vst [vmem:[%s36919_s18 + $0x20] sm:$0xff] %v26258_v50  ;;  %v26273_v32 = vadd.f32 %v29675_v24, %v27131_v52 }
0x250e   :  { %v26267_v29 = vpop.f32.mrf.mxu1 }
0x250f   :  { %26323 = vst [vmem:[%s36919_s18 + $0x38] sm:$0xff] %v26273_v32  ;;  %v26268_v54 = vadd.f32 %v27131_v52, %v26267_v29 }
0x2511   :  { %26322 = vst [vmem:[%s36919_s18 + $0x30] sm:$0xff] %v26268_v54 }
0x2581   :  { %v29678_v25 = vpop.f32.mrf.mxu1 }
0x2582   :  { %v26283_v44 = vadd.f32 %v29678_v25, %v27131_v52 }
0x2583   :  { %v26277_v17 = vpop.f32.mrf.mxu1 }
0x2584   :  { %26325 = vst [vmem:[%s36919_s18 + $0x48] sm:$0xff] %v26283_v44  ;;  %v26278_v6 = vadd.f32 %v27131_v52, %v26277_v17 }
0x2585   :  { %v29681_v45 = vpop.f32.mrf.mxu1 }
0x2586   :  { %26324 = vst [vmem:[%s36919_s18 + $0x40] sm:$0xff] %v26278_v6  ;;  %v26293_v48 = vadd.f32 %v29681_v45, %v27131_v52 }
0x2587   :  { %v26287_v53 = vpop.f32.mrf.mxu1 }
0x2588   :  { %26327 = vst [vmem:[%s36919_s18 + $0x58] sm:$0xff] %v26293_v48  ;;  %v26288_v20 = vadd.f32 %v27131_v52, %v26287_v53 }
0x2589   :  { %v29684_v23 = vpop.f32.mrf.mxu1 }
0x258a   :  { %26326 = vst [vmem:[%s36919_s18 + $0x50] sm:$0xff] %v26288_v20  ;;  %v26303_v59 = vadd.f32 %v29684_v23, %v27131_v52 }
0x258b   :  { %v26297_v46 = vpop.f32.mrf.mxu1 }
0x258c   :  { %26329 = vst [vmem:[%s36919_s18 + $0x68] sm:$0xff] %v26303_v59  ;;  %v26298_v18 = vadd.f32 %v27131_v52, %v26297_v46 }
0x258d   :  { %v29687_v39 = vpop.f32.mrf.mxu1 }
0x258e   :  { %26328 = vst [vmem:[%s36919_s18 + $0x60] sm:$0xff] %v26298_v18  ;;  %v26313_v43 = vadd.f32 %v29687_v39, %v27131_v52 }
0x258f   :  { %v26307_v55 = vpop.f32.mrf.mxu1 }
0x2590   :  { %26331 = vst [vmem:[%s36919_s18 + $0x78] sm:$0xff] %v26313_v43  ;;  %v26308_v2 = vadd.f32 %v27131_v52, %v26307_v55 }
0x2592   :  { %26330 = vst [vmem:[%s36919_s18 + $0x70] sm:$0xff] %v26308_v2 }

</bundles_post_ra>
